<compile_context>
chip_gen: v7x
topology: tpu7x:2x2x1
jax: 0.10.0
libtpu: 0.0.40
codegen_flags: <defaults>
</compile_context>

<pallas_src>
import functools
import math

import jax
import jax.numpy as jnp
from jax import lax
from jax.experimental import pallas as pl
from jax.experimental.pallas import tpu as pltpu

MP_ITER = 9
NCLASS = 14
NPAD = 128      # classifier output padded to a full lane register


def slstm_kernel(emb_ref, mask3_ref,
                 win_ref, bin_ref,
                 wg_gh_ref, wg_hb_ref, bga_ref, bgo_ref,
                 wn_ref, wngh_ref, bn_ref,
                 wup_ref, bup_ref, wfc_ref, bfc_ref,
                 pred_ref, *, mp_iter, mp_unroll):
    f32 = jnp.float32
    bf16 = jnp.bfloat16
    N = emb_ref.shape[0]                       # TB * L rows in this block
    H = win_ref.shape[1]
    TB, L = mask3_ref.shape[0], mask3_ref.shape[1]

    # ---------------- loop-invariant prep (hoisted out of the loop) ----------
    mask3 = mask3_ref[...]                     # (TB, L, 1)
    mask2 = mask3.reshape(N, 1)                # (N, 1)
    inv_msum = 1.0 / jnp.sum(mask3, axis=1)    # (TB, 1)

    # sequence-edge masks generated in-kernel (no lane-padded streamed inputs)
    pos = lax.broadcasted_iota(jnp.int32, (TB, L, 1), 1).reshape(N, 1)
    edge_l = jnp.where(pos > 0, 1.0, 0.0).astype(f32)        # 0 at seq starts
    edge_r = jnp.where(pos < L - 1, 1.0, 0.0).astype(f32)    # 0 at seq ends
    # node l is penalised by (1 - mask[l+1]) * 200, last node unpenalised;
    # the g-node slot by (1 - mask[0]) * 200 -- faithful to the reference's
    # cat([mask, ones], 1) vs cat([h_bar, nhs], 1) alignment.
    pen_node = ((1.0 - pltpu.roll(mask2, N - 1, 0)) * edge_r
                * 200.0).reshape(TB, L, 1)
    pen_bar = (1.0 - mask3[:, 0, :]) * 200.0                  # (TB, 1)

    bin_b = bin_ref[...]             # (1, H)
    bga = bga_ref[...]               # (1, H)
    bgo = bgo_ref[...]               # (1, H)
    bn = bn_ref[...]                 # (1, 6H) fused node-gate bias

    # embs = self.input(self.emb(data))   (emb_ref is already bf16)
    embs = jnp.dot(emb_ref[...], win_ref[...],
                   preferred_element_type=f32) + bin_b        # (N, H) f32
    nhs = embs
    ncs = embs
    gh = jnp.sum(embs.reshape(TB, L, H), axis=1) * inv_msum   # (TB, H)
    gc = gh

    def step(nhs, ncs, gh, gc):
        nhs_bf = nhs.astype(bf16)
        gh_bf = gh.astype(bf16)
        nhs3 = nhs.reshape(TB, L, H)
        ncs3 = ncs.reshape(TB, L, H)

        # ---------------- update_g_node (current nhs, ncs, gh, gc) ----------
        h_bar = jnp.sum(nhs3, axis=1) * inv_msum                        # (TB, H)
        # fused (H, 2H) weights: one dot each for gh and h_bar gives both the
        # attention ([:, :H]) and output-gate ([:, H:]) pre-activations.
        gh_pre = jnp.dot(gh_bf, wg_gh_ref[...],
                         preferred_element_type=f32)                    # (TB, 2H)
        hb_pre = jnp.dot(h_bar.astype(bf16), wg_hb_ref[...],
                         preferred_element_type=f32)                    # (TB, 2H)
        gh_att = gh_pre[:, 0:H]
        node_att = jnp.dot(nhs_bf, wg_hb_ref[:, 0:H],
                           preferred_element_type=f32)                  # (N, H)
        fs_node = (node_att.reshape(TB, L, H)
                   + (gh_att + bga)[:, None, :] + pen_node)             # (TB, L, H)
        fs_bar = gh_att + hb_pre[:, 0:H] + bga + pen_bar                # (TB, H)
        m = jnp.maximum(jnp.max(fs_node, axis=1), fs_bar)               # (TB, H)
        e_node = jnp.exp(fs_node - m[:, None, :])
        e_bar = jnp.exp(fs_bar - m)
        denom = jnp.sum(e_node, axis=1) + e_bar
        n_gc = ((jnp.sum(e_node * ncs3, axis=1) + e_bar * gc)
                * pl.reciprocal(denom, approx=True))
        gate = jax.nn.sigmoid(gh_pre[:, H:2 * H] + hb_pre[:, H:2 * H] + bgo)
        n_gh = gate * jnp.tanh(n_gc)

        # ---------------- update_nodes (current nhs/ncs, OLD gh/gc) ---------
        ncs_l = pltpu.roll(ncs, 1, 0) * edge_l
        ncs_r = pltpu.roll(ncs, N - 1, 0) * edge_r
        gc_rep = jnp.broadcast_to(gc[:, None, :], (TB, L, H)).reshape(N, H)

        # one fused MXU call: cat([nhs_l | nhs | nhs_r | embs], -1) (N, 4H)
        # x (4H, 6H)  ->  all 6 gate pre-activations; gh's contribution is a
        # (TB, 6H) dot broadcast over L.
        ihs_bf = jnp.concatenate(
            [pltpu.roll(nhs, 1, 0) * edge_l, nhs,
             pltpu.roll(nhs, N - 1, 0) * edge_r, embs], axis=1).astype(bf16)
        gh_gate = jnp.dot(gh_bf, wngh_ref[...],
                          preferred_element_type=f32)                   # (TB, 6H)
        fs = (jnp.dot(ihs_bf, wn_ref[...], preferred_element_type=f32)
              + jnp.broadcast_to(gh_gate[:, None, :],
                                 (TB, L, 6 * H)).reshape(N, 6 * H)
              + bn)                                                     # (N, 6H)

        og = jax.nn.sigmoid(fs[:, 0:H])
        # 5-way gate softmax with streaming accumulation (few live temps)
        m5 = fs[:, H:2 * H]
        for j in range(2, 6):
            m5 = jnp.maximum(m5, fs[:, j * H:(j + 1) * H])
        # ics order: [ncs_left, ncs, ncs_right, gc, embs]
        ics = (ncs_l, ncs, ncs_r, gc_rep, embs)
        num = jnp.zeros_like(embs)
        den = jnp.zeros_like(embs)
        for j in range(5):
            e = jnp.exp(fs[:, (1 + j) * H:(2 + j) * H] - m5)
            num = num + e * ics[j]
            den = den + e
        n_c = num * pl.reciprocal(den, approx=True)
        n_h = og * jnp.tanh(n_c)

        return mask2 * n_h, mask2 * n_c, n_gh, n_gc

    if mp_unroll:
        # small H: full unroll keeps the whole body visible to the scheduler
        for _ in range(mp_iter):
            nhs, ncs, gh, gc = step(nhs, ncs, gh, gc)
    else:
        # large H: bound live ranges / instruction footprint with a real loop
        nhs, ncs, gh, gc = lax.fori_loop(
            0, mp_iter, lambda _, c: step(*c), (nhs, ncs, gh, gc))

    # rep = cat([nhs, gh], 1).sum(1) / mask.sum(1); up_fc + classifier
    rep = (jnp.sum(nhs.reshape(TB, L, H), axis=1) + gh) * inv_msum       # (TB, H)
    rep = jnp.tanh(jnp.dot(rep.astype(bf16), wup_ref[...],
                           preferred_element_type=f32) + bup_ref[...])   # (TB, 2H)
    logits = jnp.dot(rep.astype(bf16), wfc_ref[...],
                     preferred_element_type=f32) + bfc_ref[...]          # (TB, NPAD)
    mlog = jnp.max(logits, axis=1, keepdims=True)
    shifted = logits - mlog
    pred_ref[...] = shifted - jnp.log(jnp.sum(jnp.exp(shifted), axis=1,
                                              keepdims=True))


def slstm_forward(data, mask, params, *, block_batch=None):
    B, L = data.shape
    nemb = params['emb'].shape[1]
    H = params['Win'].shape[1]
    mask = mask.astype(jnp.float32)
    bf16 = jnp.bfloat16
    assert L % 8 == 0, "sequence length must be a multiple of 8 sublanes"

    if block_batch is None:
        # Target N = TB*L ~ 512 state rows per grid step (amortises the small
        # (TB, H) g-node matmuls; v6e's MXU wants M >= 256) while staying
        # comfortable in v7x's 64 MiB VMEM; force G = ceil(B/TB) >= 2 so the
        # "parallel" grid axis really shards across v7x's two TensorCores.
        TB = max(1, min(B, 512 // max(L, 1)))
        if B >= 2:
            TB = min(TB, -(-B // 2))
    else:
        TB = block_batch
    G = -(-B // TB)
    Bpad = G * TB

    if Bpad != B:
        # pad with dummy all-ones-mask sequences; their outputs are sliced off
        data = jnp.concatenate(
            [data, jnp.zeros((Bpad - B, L), data.dtype)], axis=0)
        mask = jnp.concatenate(
            [mask, jnp.ones((Bpad - B, L), jnp.float32)], axis=0)

    # ---- plain-JAX glue: embedding gather (bf16 halves the streamed bytes) --
    emb2d = params['emb'][data].reshape(Bpad * L, nemb).astype(bf16)
    mask3 = mask[:, :, None]                                     # (Bpad, L, 1)

    # ---- weight repacking: bf16 MXU tiles, f32 biases -----------------------
    Wga, Wgo, Wn = params['Wga'], params['Wgo'], params['Wn']
    # g-node: fused [att | out] weights for the gh half and the h_bar half
    wg_gh = jnp.concatenate([Wga[0:H], Wgo[0:H]], axis=1).astype(bf16)       # (H, 2H)
    wg_hb = jnp.concatenate([Wga[H:2 * H], Wgo[H:2 * H]], axis=1).astype(bf16)
    # node gates: single (4H, 6H) tile over [nhs_l|nhs|nhs_r|embs] with gate
    # order [og, g0..g4]; the gh K-block is split out (applied at (TB, 6H))
    # and the unused `uh` output block of the original n_fc is dropped.
    gate_cols = [slice(0, H)] + [slice((2 + k) * H, (3 + k) * H)
                                 for k in range(5)]
    wn_node = jnp.concatenate([Wn[0:4 * H, c] for c in gate_cols],
                              axis=1).astype(bf16)                           # (4H, 6H)
    wn_gh = jnp.concatenate([Wn[4 * H:5 * H, c] for c in gate_cols],
                            axis=1).astype(bf16)                             # (H, 6H)
    bn_f = jnp.concatenate([params['bn'][:, c] for c in gate_cols], axis=1)  # (1, 6H)
    win = params['Win'].astype(bf16)
    wup = params['Wup'].astype(bf16)
    # classifier padded to a full 128-lane register (lane-dense final store)
    wfc = jnp.zeros((2 * H, NPAD), jnp.float32).at[:, :NCLASS].set(
        params['Wfc']).astype(bf16)
    bfc = jnp.full((1, NPAD), -1e30, jnp.float32).at[:, :NCLASS].set(
        params['bfc'])

    def batched(block_shape):
        n_rest = len(block_shape) - 1
        return pl.BlockSpec(block_shape, lambda b, _n=n_rest: (b,) + (0,) * _n)

    def invariant(arr):
        # constant index_map + single buffering: weights are fetched once and
        # stay resident (halves weight VMEM vs the default double-buffering).
        nd = arr.ndim
        return pl.BlockSpec(arr.shape, lambda b, _nd=nd: (0,) * _nd,
                            pipeline_mode=pl.Buffered(1))

    inputs = [emb2d, mask3,
              win, params['bin'],
              wg_gh, wg_hb, params['bga'], params['bgo'],
              wn_node, wn_gh, bn_f,
              wup, params['bup'], wfc, bfc]
    in_specs = ([batched((TB * L, nemb)), batched((TB, L, 1))]
                + [invariant(a) for a in inputs[2:]])

    pred = pl.pallas_call(
        functools.partial(slstm_kernel, mp_iter=MP_ITER, mp_unroll=(H < 256)),
        out_shape=jax.ShapeDtypeStruct((G, TB, NPAD), jnp.float32),
        grid=(G,),
        in_specs=in_specs,
        out_specs=pl.BlockSpec((None, TB, NPAD), lambda b: (b, 0, 0)),
        compiler_params=pltpu.CompilerParams(
            dimension_semantics=("parallel",),
            # above the 16/32 MiB scoped defaults (v5e/v6e), below v7x's
            # 64 MiB physical VMEM
            vmem_limit_bytes=48 * 1024 * 1024),
    )(*inputs)
    return {'prediction': pred.reshape(Bpad, NPAD)[:B, :NCLASS]}


# ----------------------------- pure-JAX reference ----------------------------
def slstm_reference(data, mask, p):
    B, L = data.shape
    H = p['Win'].shape[1]
    mask = mask.astype(jnp.float32)
    embs = p['emb'][data] @ p['Win'] + p['bin'][0]
    msum = jnp.sum(mask, axis=1)[:, None]
    nhs = ncs = embs
    gh = gc = jnp.sum(embs, axis=1) / msum
    z = jnp.zeros((B, 1, H), jnp.float32)

    def update_g_node(nhs, ncs, gh, gc):
        h_bar = jnp.sum(nhs, axis=1) / msum
        ihs = jnp.concatenate([h_bar[:, None, :], nhs], axis=1)
        ics = jnp.concatenate([gc[:, None, :], ncs], axis=1)
        xxx = jnp.concatenate(
            [jnp.broadcast_to(gh[:, None, :], (B, L + 1, H)), ihs], axis=2)
        fs = xxx @ p['Wga'] + p['bga'][0]
        mcat = jnp.concatenate([jnp.broadcast_to(mask[:, :, None], (B, L, H)),
                                jnp.ones((B, 1, H), jnp.float32)], axis=1)
        fs = fs + (1.0 - mcat) * 200.0
        n_gc = jnp.sum(jax.nn.softmax(fs, axis=1) * ics, axis=1)
        n_gh = jax.nn.sigmoid(jnp.concatenate([gh, h_bar], axis=1) @ p['Wgo']
                              + p['bgo'][0]) * jnp.tanh(n_gc)
        return n_gh, n_gc

    def update_nodes(nhs, ncs, gh, gc):
        ihs = jnp.concatenate([
            jnp.concatenate([z, nhs[:, :-1, :]], axis=1),
            nhs,
            jnp.concatenate([nhs[:, 1:, :], z], axis=1),
            embs,
            jnp.broadcast_to(gh[:, None, :], (B, L, H))], axis=2)
        fs = ihs @ p['Wn'] + p['bn'][0]
        og = jax.nn.sigmoid(fs[:, :, :H])
        gs = jax.nn.softmax(fs[:, :, 2 * H:].reshape(B, L, 5, H), axis=2)
        ics = jnp.stack([
            jnp.concatenate([z, ncs[:, :-1, :]], axis=1),
            ncs,
            jnp.concatenate([ncs[:, 1:, :], z], axis=1),
            jnp.broadcast_to(gc[:, None, :], (B, L, H)),
            embs], axis=2)
        n_c = jnp.sum(gs * ics, axis=2)
        return og * jnp.tanh(n_c), n_c

    for _ in range(MP_ITER):
        n_gh, n_gc = update_g_node(nhs, ncs, gh, gc)
        nhs, ncs = update_nodes(nhs, ncs, gh, gc)
        nhs = mask[:, :, None] * nhs
        ncs = mask[:, :, None] * ncs
        gh, gc = n_gh, n_gc

    rep = (jnp.sum(nhs, axis=1) + gh) / msum
    rep = jnp.tanh(rep @ p['Wup'] + p['bup'][0])
    logits = rep @ p['Wfc'] + p['bfc'][0]
    return jax.nn.log_softmax(logits, axis=1)


def linear_params(key, n_in, n_out):
    k1, k2 = jax.random.split(key)
    bound = 1.0 / math.sqrt(n_in)
    w = jax.random.uniform(k1, (n_in, n_out), jnp.float32, -bound, bound)
    b = jax.random.uniform(k2, (1, n_out), jnp.float32, -bound, bound)
    return w, b


if __name__ == "__main__":
    B, L, V, nemb, H = 2, 8, 20, 16, 32

    key = jax.random.PRNGKey(0)
    keys = jax.random.split(key, 9)
    params = {}
    params['emb'] = jax.random.normal(keys[0], (V, nemb), jnp.float32)    # Tar_emb
    params['Win'], params['bin'] = linear_params(keys[1], nemb, H)        # self.input
    params['Wn'], params['bn'] = linear_params(keys[2], 5 * H, 7 * H)     # self.n_fc
    params['Wga'], params['bga'] = linear_params(keys[3], 2 * H, H)       # self.g_att_fc
    params['Wgo'], params['bgo'] = linear_params(keys[4], 2 * H, H)       # self.g_out_fc
    params['Wup'], params['bup'] = linear_params(keys[5], H, 2 * H)       # self.up_fc
    params['Wfc'], params['bfc'] = linear_params(keys[6], 2 * H, NCLASS)  # self.fc

    data = jax.random.randint(keys[7], (B, L), 0, V, dtype=jnp.int32)
    mask = jnp.array([[1, 1, 1, 1, 1, 1, 1, 1],
                      [1, 1, 1, 1, 1, 0, 0, 0]], dtype=jnp.float32)

    out = slstm_forward(data, mask, params)
    pred = jax.block_until_ready(out['prediction'])

    with jax.default_matmul_precision("highest"):
        ref = slstm_reference(data, mask, params)
    ref = jax.block_until_ready(ref)
    err = float(jnp.max(jnp.abs(pred - ref)))
    # bf16 MXU matmuls (f32 accumulation) vs a float32 reference through a
    # 9-iteration recurrence: allow a slightly wider tolerance than pure f32.
    assert err < 2e-2, f"kernel/reference mismatch: max abs err = {err}"
    print("KERNEL_OK")
</pallas_src>

<mosaic_0001>
module attributes {stable_mosaic.version = 11 : i64} {
  func.func @slstm_kernel(%arg0: i32, %arg1: memref<8x16xbf16, #tpu.memory_space<vmem>>, %arg2: memref<1x8x1xf32, #tpu.memory_space<vmem>>, %arg3: memref<16x32xbf16, #tpu.memory_space<vmem>>, %arg4: memref<1x32xf32, #tpu.memory_space<vmem>>, %arg5: memref<32x64xbf16, #tpu.memory_space<vmem>>, %arg6: memref<32x64xbf16, #tpu.memory_space<vmem>>, %arg7: memref<1x32xf32, #tpu.memory_space<vmem>>, %arg8: memref<1x32xf32, #tpu.memory_space<vmem>>, %arg9: memref<128x192xbf16, #tpu.memory_space<vmem>>, %arg10: memref<32x192xbf16, #tpu.memory_space<vmem>>, %arg11: memref<1x192xf32, #tpu.memory_space<vmem>>, %arg12: memref<32x64xbf16, #tpu.memory_space<vmem>>, %arg13: memref<1x64xf32, #tpu.memory_space<vmem>>, %arg14: memref<64x128xbf16, #tpu.memory_space<vmem>>, %arg15: memref<1x128xf32, #tpu.memory_space<vmem>>, %arg16: memref<1x1x128xf32, #tpu.memory_space<vmem>>) attributes {dimension_semantics = [#tpu.dimension_semantics<parallel>], iteration_bounds = array<i64: 2>, scalar_prefetch = 0 : i64, scratch_operands = 0 : i64, tpu.core_type = #tpu.core_type<tc>, window_params = [{transform_indices = @transform_0, window_bounds = array<i64: 8, 16>}, {transform_indices = @transform_1, window_bounds = array<i64: 1, 8, 1>}, {pipeline_mode = #tpu.pipeline_mode<synchronous>, transform_indices = @transform_2, window_bounds = array<i64: 16, 32>}, {pipeline_mode = #tpu.pipeline_mode<synchronous>, transform_indices = @transform_3, window_bounds = array<i64: 1, 32>}, {pipeline_mode = #tpu.pipeline_mode<synchronous>, transform_indices = @transform_4, window_bounds = array<i64: 32, 64>}, {pipeline_mode = #tpu.pipeline_mode<synchronous>, transform_indices = @transform_5, window_bounds = array<i64: 32, 64>}, {pipeline_mode = #tpu.pipeline_mode<synchronous>, transform_indices = @transform_6, window_bounds = array<i64: 1, 32>}, {pipeline_mode = #tpu.pipeline_mode<synchronous>, transform_indices = @transform_7, window_bounds = array<i64: 1, 32>}, {pipeline_mode = #tpu.pipeline_mode<synchronous>, transform_indices = @transform_8, window_bounds = array<i64: 128, 192>}, {pipeline_mode = #tpu.pipeline_mode<synchronous>, transform_indices = @transform_9, window_bounds = array<i64: 32, 192>}, {pipeline_mode = #tpu.pipeline_mode<synchronous>, transform_indices = @transform_10, window_bounds = array<i64: 1, 192>}, {pipeline_mode = #tpu.pipeline_mode<synchronous>, transform_indices = @transform_11, window_bounds = array<i64: 32, 64>}, {pipeline_mode = #tpu.pipeline_mode<synchronous>, transform_indices = @transform_12, window_bounds = array<i64: 1, 64>}, {pipeline_mode = #tpu.pipeline_mode<synchronous>, transform_indices = @transform_13, window_bounds = array<i64: 64, 128>}, {pipeline_mode = #tpu.pipeline_mode<synchronous>, transform_indices = @transform_14, window_bounds = array<i64: 1, 128>}, {transform_indices = @transform_15, window_bounds = array<i64: 1, 1, 128>}]} {
    %c0 = arith.constant 0 : index
    %c0_0 = arith.constant 0 : index
    %c0_1 = arith.constant 0 : index
    %0 = vector.load %arg2[%c0, %c0_0, %c0_1] : memref<1x8x1xf32, #tpu.memory_space<vmem>>, vector<1x8x1xf32>
    %1 = vector.shape_cast %0 : vector<1x8x1xf32> to vector<8x1xf32>
    %cst = arith.constant dense<0.000000e+00> : vector<1x1xf32>
    %2 = vector.multi_reduction <add>, %0, %cst [1] : vector<1x8x1xf32> to vector<1x1xf32>
    %cst_2 = arith.constant 1.000000e+00 : f32
    %3 = vector.broadcast %cst_2 : f32 to vector<1x1xf32>
    %4 = arith.divf %3, %2 : vector<1x1xf32>
    %5 = tpu.iota {dimensions = array<i32: 1>} : vector<1x8x1xi32>
    %6 = vector.shape_cast %5 : vector<1x8x1xi32> to vector<8x1xi32>
    %c0_i32 = arith.constant 0 : i32
    %7 = vector.broadcast %c0_i32 : i32 to vector<8x1xi32>
    %8 = arith.cmpi sgt, %6, %7 : vector<8x1xi32>
    %cst_3 = arith.constant 1.000000e+00 : f32
    %cst_4 = arith.constant 0.000000e+00 : f32
    %9 = vector.broadcast %cst_3 : f32 to vector<8x1xf32>
    %10 = vector.broadcast %cst_4 : f32 to vector<8x1xf32>
    %11 = arith.select %8, %9, %10 : vector<8x1xi1>, vector<8x1xf32>
    %c7_i32 = arith.constant 7 : i32
    %12 = vector.broadcast %c7_i32 : i32 to vector<8x1xi32>
    %13 = arith.cmpi slt, %6, %12 : vector<8x1xi32>
    %cst_5 = arith.constant 1.000000e+00 : f32
    %cst_6 = arith.constant 0.000000e+00 : f32
    %14 = vector.broadcast %cst_5 : f32 to vector<8x1xf32>
    %15 = vector.broadcast %cst_6 : f32 to vector<8x1xf32>
    %16 = arith.select %13, %14, %15 : vector<8x1xi1>, vector<8x1xf32>
    %c7_i32_7 = arith.constant 7 : i32
    %17 = tpu.dynamic_rotate %1 by %c7_i32_7 dim 0 : vector<8x1xf32>, i32 -> vector<8x1xf32>
    %cst_8 = arith.constant 1.000000e+00 : f32
    %18 = vector.broadcast %cst_8 : f32 to vector<8x1xf32>
    %19 = arith.subf %18, %17 : vector<8x1xf32>
    %20 = arith.mulf %19, %16 : vector<8x1xf32>
    %cst_9 = arith.constant 2.000000e+02 : f32
    %21 = vector.broadcast %cst_9 : f32 to vector<8x1xf32>
    %22 = arith.mulf %20, %21 : vector<8x1xf32>
    %23 = vector.shape_cast %22 : vector<8x1xf32> to vector<1x8x1xf32>
    %24 = vector.extract_strided_slice %0 {offsets = [0, 0, 0], sizes = [1, 1, 1], strides = [1, 1, 1]} : vector<1x8x1xf32> to vector<1x1x1xf32>
    %25 = vector.shape_cast %24 : vector<1x1x1xf32> to vector<1x1xf32>
    %cst_10 = arith.constant 1.000000e+00 : f32
    %26 = vector.broadcast %cst_10 : f32 to vector<1x1xf32>
    %27 = arith.subf %26, %25 : vector<1x1xf32>
    %cst_11 = arith.constant 2.000000e+02 : f32
    %28 = vector.broadcast %cst_11 : f32 to vector<1x1xf32>
    %29 = arith.mulf %27, %28 : vector<1x1xf32>
    %c0_12 = arith.constant 0 : index
    %c0_13 = arith.constant 0 : index
    %30 = vector.load %arg4[%c0_12, %c0_13] : memref<1x32xf32, #tpu.memory_space<vmem>>, vector<1x32xf32>
    %c0_14 = arith.constant 0 : index
    %c0_15 = arith.constant 0 : index
    %31 = vector.load %arg7[%c0_14, %c0_15] : memref<1x32xf32, #tpu.memory_space<vmem>>, vector<1x32xf32>
    %c0_16 = arith.constant 0 : index
    %c0_17 = arith.constant 0 : index
    %32 = vector.load %arg8[%c0_16, %c0_17] : memref<1x32xf32, #tpu.memory_space<vmem>>, vector<1x32xf32>
    %c0_18 = arith.constant 0 : index
    %c0_19 = arith.constant 0 : index
    %33 = vector.load %arg11[%c0_18, %c0_19] : memref<1x192xf32, #tpu.memory_space<vmem>>, vector<1x192xf32>
    %c0_20 = arith.constant 0 : index
    %c0_21 = arith.constant 0 : index
    %34 = vector.load %arg1[%c0_20, %c0_21] : memref<8x16xbf16, #tpu.memory_space<vmem>>, vector<8x16xbf16>
    %c0_22 = arith.constant 0 : index
    %c0_23 = arith.constant 0 : index
    %35 = vector.load %arg3[%c0_22, %c0_23] : memref<16x32xbf16, #tpu.memory_space<vmem>>, vector<16x32xbf16>
    %cst_24 = arith.constant dense<0.000000e+00> : vector<8x32xf32>
    %36 = tpu.matmul %34, %35, %cst_24 {dimension_numbers = #tpu.dot_dimension_numbers<[1], [0], [0], [1], [0, 0, 1, 1], [], []>} : vector<8x16xbf16>, vector<16x32xbf16>, vector<8x32xf32> -> vector<8x32xf32>
    %37 = vector.broadcast %30 : vector<1x32xf32> to vector<8x32xf32>
    %38 = arith.addf %36, %37 : vector<8x32xf32>
    %39 = vector.shape_cast %38 : vector<8x32xf32> to vector<1x8x32xf32>
    %cst_25 = arith.constant dense<0.000000e+00> : vector<1x32xf32>
    %40 = vector.multi_reduction <add>, %39, %cst_25 [1] : vector<1x8x32xf32> to vector<1x32xf32>
    %41 = vector.broadcast %4 : vector<1x1xf32> to vector<1x32xf32>
    %42 = arith.mulf %40, %41 : vector<1x32xf32>
    %43 = arith.truncf %38 : vector<8x32xf32> to vector<8x32xbf16>
    %44 = arith.truncf %42 : vector<1x32xf32> to vector<1x32xbf16>
    %45 = vector.shape_cast %38 : vector<8x32xf32> to vector<1x8x32xf32>
    %46 = vector.shape_cast %38 : vector<8x32xf32> to vector<1x8x32xf32>
    %cst_26 = arith.constant dense<0.000000e+00> : vector<1x32xf32>
    %47 = vector.multi_reduction <add>, %45, %cst_26 [1] : vector<1x8x32xf32> to vector<1x32xf32>
    %48 = vector.broadcast %4 : vector<1x1xf32> to vector<1x32xf32>
    %49 = arith.mulf %47, %48 : vector<1x32xf32>
    %c0_27 = arith.constant 0 : index
    %c0_28 = arith.constant 0 : index
    %50 = vector.load %arg5[%c0_27, %c0_28] : memref<32x64xbf16, #tpu.memory_space<vmem>>, vector<32x64xbf16>
    %cst_29 = arith.constant dense<0.000000e+00> : vector<1x64xf32>
    %51 = tpu.matmul %44, %50, %cst_29 {dimension_numbers = #tpu.dot_dimension_numbers<[1], [0], [0], [1], [0, 0, 1, 1], [], []>} : vector<1x32xbf16>, vector<32x64xbf16>, vector<1x64xf32> -> vector<1x64xf32>
    %52 = arith.truncf %49 : vector<1x32xf32> to vector<1x32xbf16>
    %c0_30 = arith.constant 0 : index
    %c0_31 = arith.constant 0 : index
    %53 = vector.load %arg6[%c0_30, %c0_31] : memref<32x64xbf16, #tpu.memory_space<vmem>>, vector<32x64xbf16>
    %cst_32 = arith.constant dense<0.000000e+00> : vector<1x64xf32>
    %54 = tpu.matmul %52, %53, %cst_32 {dimension_numbers = #tpu.dot_dimension_numbers<[1], [0], [0], [1], [0, 0, 1, 1], [], []>} : vector<1x32xbf16>, vector<32x64xbf16>, vector<1x64xf32> -> vector<1x64xf32>
    %55 = vector.extract_strided_slice %51 {offsets = [0, 0], sizes = [1, 32], strides = [1, 1]} : vector<1x64xf32> to vector<1x32xf32>
    %c0_33 = arith.constant 0 : index
    %c0_34 = arith.constant 0 : index
    %56 = vector.load %arg6[%c0_33, %c0_34] : memref<32x64xbf16, #tpu.memory_space<vmem>>, vector<32x32xbf16>
    %cst_35 = arith.constant dense<0.000000e+00> : vector<8x32xf32>
    %57 = tpu.matmul %43, %56, %cst_35 {dimension_numbers = #tpu.dot_dimension_numbers<[1], [0], [0], [1], [0, 0, 1, 1], [], []>} : vector<8x32xbf16>, vector<32x32xbf16>, vector<8x32xf32> -> vector<8x32xf32>
    %58 = vector.shape_cast %57 : vector<8x32xf32> to vector<1x8x32xf32>
    %59 = arith.addf %55, %31 : vector<1x32xf32>
    %60 = vector.shape_cast %59 : vector<1x32xf32> to vector<1x1x32xf32>
    %61 = vector.broadcast %60 : vector<1x1x32xf32> to vector<1x8x32xf32>
    %62 = arith.addf %58, %61 : vector<1x8x32xf32>
    %63 = vector.broadcast %23 : vector<1x8x1xf32> to vector<1x8x32xf32>
    %64 = arith.addf %62, %63 : vector<1x8x32xf32>
    %65 = vector.extract_strided_slice %54 {offsets = [0, 0], sizes = [1, 32], strides = [1, 1]} : vector<1x64xf32> to vector<1x32xf32>
    %66 = arith.addf %55, %65 : vector<1x32xf32>
    %67 = arith.addf %66, %31 : vector<1x32xf32>
    %68 = vector.broadcast %29 : vector<1x1xf32> to vector<1x32xf32>
    %69 = arith.addf %67, %68 : vector<1x32xf32>
    %cst_36 = arith.constant dense<0xFF800000> : vector<1x32xf32>
    %70 = vector.multi_reduction <maximumf>, %64, %cst_36 [1] : vector<1x8x32xf32> to vector<1x32xf32>
    %71 = arith.maximumf %70, %69 : vector<1x32xf32>
    %72 = vector.shape_cast %71 : vector<1x32xf32> to vector<1x1x32xf32>
    %73 = vector.broadcast %72 : vector<1x1x32xf32> to vector<1x8x32xf32>
    %74 = arith.subf %64, %73 : vector<1x8x32xf32>
    %75 = math.exp %74 : vector<1x8x32xf32>
    %76 = arith.subf %69, %71 : vector<1x32xf32>
    %77 = math.exp %76 : vector<1x32xf32>
    %cst_37 = arith.constant dense<0.000000e+00> : vector<1x32xf32>
    %78 = vector.multi_reduction <add>, %75, %cst_37 [1] : vector<1x8x32xf32> to vector<1x32xf32>
    %79 = arith.addf %78, %77 : vector<1x32xf32>
    %80 = arith.mulf %75, %46 : vector<1x8x32xf32>
    %cst_38 = arith.constant dense<0.000000e+00> : vector<1x32xf32>
    %81 = vector.multi_reduction <add>, %80, %cst_38 [1] : vector<1x8x32xf32> to vector<1x32xf32>
    %82 = arith.mulf %77, %42 : vector<1x32xf32>
    %83 = arith.addf %81, %82 : vector<1x32xf32>
    %84 = tpu.reciprocal %79 {approx = true} : vector<1x32xf32> -> vector<1x32xf32>
    %85 = arith.mulf %83, %84 : vector<1x32xf32>
    %86 = vector.extract_strided_slice %51 {offsets = [0, 32], sizes = [1, 32], strides = [1, 1]} : vector<1x64xf32> to vector<1x32xf32>
    %87 = vector.extract_strided_slice %54 {offsets = [0, 32], sizes = [1, 32], strides = [1, 1]} : vector<1x64xf32> to vector<1x32xf32>
    %88 = arith.addf %86, %87 : vector<1x32xf32>
    %89 = arith.addf %88, %32 : vector<1x32xf32>
    %90 = arith.negf %89 : vector<1x32xf32>
    %91 = math.exp %90 : vector<1x32xf32>
    %cst_39 = arith.constant 1.000000e+00 : f32
    %92 = vector.broadcast %cst_39 : f32 to vector<1x32xf32>
    %93 = arith.addf %92, %91 : vector<1x32xf32>
    %94 = arith.divf %92, %93 : vector<1x32xf32>
    %95 = math.tanh %85 : vector<1x32xf32>
    %96 = arith.mulf %94, %95 : vector<1x32xf32>
    %c1_i32 = arith.constant 1 : i32
    %97 = tpu.dynamic_rotate %38 by %c1_i32 dim 0 : vector<8x32xf32>, i32 -> vector<8x32xf32>
    %98 = vector.broadcast %11 : vector<8x1xf32> to vector<8x32xf32>
    %99 = arith.mulf %97, %98 : vector<8x32xf32>
    %c7_i32_40 = arith.constant 7 : i32
    %100 = tpu.dynamic_rotate %38 by %c7_i32_40 dim 0 : vector<8x32xf32>, i32 -> vector<8x32xf32>
    %101 = vector.broadcast %16 : vector<8x1xf32> to vector<8x32xf32>
    %102 = arith.mulf %100, %101 : vector<8x32xf32>
    %103 = vector.shape_cast %42 : vector<1x32xf32> to vector<1x1x32xf32>
    %104 = vector.shape_cast %103 : vector<1x1x32xf32> to vector<1x1x32xf32>
    %105 = vector.broadcast %104 : vector<1x1x32xf32> to vector<1x8x32xf32>
    %106 = vector.shape_cast %105 : vector<1x8x32xf32> to vector<8x32xf32>
    %c1_i32_41 = arith.constant 1 : i32
    %107 = tpu.dynamic_rotate %38 by %c1_i32_41 dim 0 : vector<8x32xf32>, i32 -> vector<8x32xf32>
    %108 = vector.broadcast %11 : vector<8x1xf32> to vector<8x32xf32>
    %109 = arith.mulf %107, %108 : vector<8x32xf32>
    %c7_i32_42 = arith.constant 7 : i32
    %110 = tpu.dynamic_rotate %38 by %c7_i32_42 dim 0 : vector<8x32xf32>, i32 -> vector<8x32xf32>
    %111 = vector.broadcast %16 : vector<8x1xf32> to vector<8x32xf32>
    %112 = arith.mulf %110, %111 : vector<8x32xf32>
    %113 = tpu.concatenate %109, %38, %112, %38 in 1 : vector<8x32xf32>, vector<8x32xf32>, vector<8x32xf32>, vector<8x32xf32> -> vector<8x128xf32>
    %114 = arith.truncf %113 : vector<8x128xf32> to vector<8x128xbf16>
    %c0_43 = arith.constant 0 : index
    %c0_44 = arith.constant 0 : index
    %115 = vector.load %arg10[%c0_43, %c0_44] : memref<32x192xbf16, #tpu.memory_space<vmem>>, vector<32x192xbf16>
    %cst_45 = arith.constant dense<0.000000e+00> : vector<1x192xf32>
    %116 = tpu.matmul %44, %115, %cst_45 {dimension_numbers = #tpu.dot_dimension_numbers<[1], [0], [0], [1], [0, 0, 1, 1], [], []>} : vector<1x32xbf16>, vector<32x192xbf16>, vector<1x192xf32> -> vector<1x192xf32>
    %c0_46 = arith.constant 0 : index
    %c0_47 = arith.constant 0 : index
    %117 = vector.load %arg9[%c0_46, %c0_47] : memref<128x192xbf16, #tpu.memory_space<vmem>>, vector<128x192xbf16>
    %cst_48 = arith.constant dense<0.000000e+00> : vector<8x192xf32>
    %118 = tpu.matmul %114, %117, %cst_48 {dimension_numbers = #tpu.dot_dimension_numbers<[1], [0], [0], [1], [0, 0, 1, 1], [], []>} : vector<8x128xbf16>, vector<128x192xbf16>, vector<8x192xf32> -> vector<8x192xf32>
    %119 = vector.shape_cast %116 : vector<1x192xf32> to vector<1x1x192xf32>
    %120 = vector.shape_cast %119 : vector<1x1x192xf32> to vector<1x1x192xf32>
    %121 = vector.broadcast %120 : vector<1x1x192xf32> to vector<1x8x192xf32>
    %122 = vector.shape_cast %121 : vector<1x8x192xf32> to vector<8x192xf32>
    %123 = arith.addf %118, %122 : vector<8x192xf32>
    %124 = vector.broadcast %33 : vector<1x192xf32> to vector<8x192xf32>
    %125 = arith.addf %123, %124 : vector<8x192xf32>
    %126 = vector.extract_strided_slice %125 {offsets = [0, 0], sizes = [8, 32], strides = [1, 1]} : vector<8x192xf32> to vector<8x32xf32>
    %127 = arith.negf %126 : vector<8x32xf32>
    %128 = math.exp %127 : vector<8x32xf32>
    %cst_49 = arith.constant 1.000000e+00 : f32
    %129 = vector.broadcast %cst_49 : f32 to vector<8x32xf32>
    %130 = arith.addf %129, %128 : vector<8x32xf32>
    %131 = arith.divf %129, %130 : vector<8x32xf32>
    %132 = vector.extract_strided_slice %125 {offsets = [0, 32], sizes = [8, 32], strides = [1, 1]} : vector<8x192xf32> to vector<8x32xf32>
    %133 = vector.extract_strided_slice %125 {offsets = [0, 64], sizes = [8, 32], strides = [1, 1]} : vector<8x192xf32> to vector<8x32xf32>
    %134 = arith.maximumf %132, %133 : vector<8x32xf32>
    %135 = vector.extract_strided_slice %125 {offsets = [0, 96], sizes = [8, 32], strides = [1, 1]} : vector<8x192xf32> to vector<8x32xf32>
    %136 = arith.maximumf %134, %135 : vector<8x32xf32>
    %137 = vector.extract_strided_slice %125 {offsets = [0, 128], sizes = [8, 32], strides = [1, 1]} : vector<8x192xf32> to vector<8x32xf32>
    %138 = arith.maximumf %136, %137 : vector<8x32xf32>
    %139 = vector.extract_strided_slice %125 {offsets = [0, 160], sizes = [8, 32], strides = [1, 1]} : vector<8x192xf32> to vector<8x32xf32>
    %140 = arith.maximumf %138, %139 : vector<8x32xf32>
    %cst_50 = arith.constant 0.000000e+00 : f32
    %141 = vector.broadcast %cst_50 : f32 to vector<8x32xf32>
    %cst_51 = arith.constant 0.000000e+00 : f32
    %142 = vector.broadcast %cst_51 : f32 to vector<8x32xf32>
    %143 = vector.extract_strided_slice %125 {offsets = [0, 32], sizes = [8, 32], strides = [1, 1]} : vector<8x192xf32> to vector<8x32xf32>
    %144 = arith.subf %143, %140 : vector<8x32xf32>
    %145 = math.exp %144 : vector<8x32xf32>
    %146 = arith.mulf %145, %99 : vector<8x32xf32>
    %147 = arith.addf %141, %146 : vector<8x32xf32>
    %148 = arith.addf %142, %145 : vector<8x32xf32>
    %149 = vector.extract_strided_slice %125 {offsets = [0, 64], sizes = [8, 32], strides = [1, 1]} : vector<8x192xf32> to vector<8x32xf32>
    %150 = arith.subf %149, %140 : vector<8x32xf32>
    %151 = math.exp %150 : vector<8x32xf32>
    %152 = arith.mulf %151, %38 : vector<8x32xf32>
    %153 = arith.addf %147, %152 : vector<8x32xf32>
    %154 = arith.addf %148, %151 : vector<8x32xf32>
    %155 = vector.extract_strided_slice %125 {offsets = [0, 96], sizes = [8, 32], strides = [1, 1]} : vector<8x192xf32> to vector<8x32xf32>
    %156 = arith.subf %155, %140 : vector<8x32xf32>
    %157 = math.exp %156 : vector<8x32xf32>
    %158 = arith.mulf %157, %102 : vector<8x32xf32>
    %159 = arith.addf %153, %158 : vector<8x32xf32>
    %160 = arith.addf %154, %157 : vector<8x32xf32>
    %161 = vector.extract_strided_slice %125 {offsets = [0, 128], sizes = [8, 32], strides = [1, 1]} : vector<8x192xf32> to vector<8x32xf32>
    %162 = arith.subf %161, %140 : vector<8x32xf32>
    %163 = math.exp %162 : vector<8x32xf32>
    %164 = arith.mulf %163, %106 : vector<8x32xf32>
    %165 = arith.addf %159, %164 : vector<8x32xf32>
    %166 = arith.addf %160, %163 : vector<8x32xf32>
    %167 = vector.extract_strided_slice %125 {offsets = [0, 160], sizes = [8, 32], strides = [1, 1]} : vector<8x192xf32> to vector<8x32xf32>
    %168 = arith.subf %167, %140 : vector<8x32xf32>
    %169 = math.exp %168 : vector<8x32xf32>
    %170 = arith.mulf %169, %38 : vector<8x32xf32>
    %171 = arith.addf %165, %170 : vector<8x32xf32>
    %172 = arith.addf %166, %169 : vector<8x32xf32>
    %173 = tpu.reciprocal %172 {approx = true} : vector<8x32xf32> -> vector<8x32xf32>
    %174 = arith.mulf %171, %173 : vector<8x32xf32>
    %175 = math.tanh %174 : vector<8x32xf32>
    %176 = arith.mulf %131, %175 : vector<8x32xf32>
    %177 = vector.broadcast %1 : vector<8x1xf32> to vector<8x32xf32>
    %178 = arith.mulf %177, %176 : vector<8x32xf32>
    %179 = vector.broadcast %1 : vector<8x1xf32> to vector<8x32xf32>
    %180 = arith.mulf %179, %174 : vector<8x32xf32>
    %181 = arith.truncf %178 : vector<8x32xf32> to vector<8x32xbf16>
    %182 = arith.truncf %96 : vector<1x32xf32> to vector<1x32xbf16>
    %183 = vector.shape_cast %178 : vector<8x32xf32> to vector<1x8x32xf32>
    %184 = vector.shape_cast %180 : vector<8x32xf32> to vector<1x8x32xf32>
    %cst_52 = arith.constant dense<0.000000e+00> : vector<1x32xf32>
    %185 = vector.multi_reduction <add>, %183, %cst_52 [1] : vector<1x8x32xf32> to vector<1x32xf32>
    %186 = vector.broadcast %4 : vector<1x1xf32> to vector<1x32xf32>
    %187 = arith.mulf %185, %186 : vector<1x32xf32>
    %c0_53 = arith.constant 0 : index
    %c0_54 = arith.constant 0 : index
    %188 = vector.load %arg5[%c0_53, %c0_54] : memref<32x64xbf16, #tpu.memory_space<vmem>>, vector<32x64xbf16>
    %cst_55 = arith.constant dense<0.000000e+00> : vector<1x64xf32>
    %189 = tpu.matmul %182, %188, %cst_55 {dimension_numbers = #tpu.dot_dimension_numbers<[1], [0], [0], [1], [0, 0, 1, 1], [], []>} : vector<1x32xbf16>, vector<32x64xbf16>, vector<1x64xf32> -> vector<1x64xf32>
    %190 = arith.truncf %187 : vector<1x32xf32> to vector<1x32xbf16>
    %c0_56 = arith.constant 0 : index
    %c0_57 = arith.constant 0 : index
    %191 = vector.load %arg6[%c0_56, %c0_57] : memref<32x64xbf16, #tpu.memory_space<vmem>>, vector<32x64xbf16>
    %cst_58 = arith.constant dense<0.000000e+00> : vector<1x64xf32>
    %192 = tpu.matmul %190, %191, %cst_58 {dimension_numbers = #tpu.dot_dimension_numbers<[1], [0], [0], [1], [0, 0, 1, 1], [], []>} : vector<1x32xbf16>, vector<32x64xbf16>, vector<1x64xf32> -> vector<1x64xf32>
    %193 = vector.extract_strided_slice %189 {offsets = [0, 0], sizes = [1, 32], strides = [1, 1]} : vector<1x64xf32> to vector<1x32xf32>
    %c0_59 = arith.constant 0 : index
    %c0_60 = arith.constant 0 : index
    %194 = vector.load %arg6[%c0_59, %c0_60] : memref<32x64xbf16, #tpu.memory_space<vmem>>, vector<32x32xbf16>
    %cst_61 = arith.constant dense<0.000000e+00> : vector<8x32xf32>
    %195 = tpu.matmul %181, %194, %cst_61 {dimension_numbers = #tpu.dot_dimension_numbers<[1], [0], [0], [1], [0, 0, 1, 1], [], []>} : vector<8x32xbf16>, vector<32x32xbf16>, vector<8x32xf32> -> vector<8x32xf32>
    %196 = vector.shape_cast %195 : vector<8x32xf32> to vector<1x8x32xf32>
    %197 = arith.addf %193, %31 : vector<1x32xf32>
    %198 = vector.shape_cast %197 : vector<1x32xf32> to vector<1x1x32xf32>
    %199 = vector.broadcast %198 : vector<1x1x32xf32> to vector<1x8x32xf32>
    %200 = arith.addf %196, %199 : vector<1x8x32xf32>
    %201 = vector.broadcast %23 : vector<1x8x1xf32> to vector<1x8x32xf32>
    %202 = arith.addf %200, %201 : vector<1x8x32xf32>
    %203 = vector.extract_strided_slice %192 {offsets = [0, 0], sizes = [1, 32], strides = [1, 1]} : vector<1x64xf32> to vector<1x32xf32>
    %204 = arith.addf %193, %203 : vector<1x32xf32>
    %205 = arith.addf %204, %31 : vector<1x32xf32>
    %206 = vector.broadcast %29 : vector<1x1xf32> to vector<1x32xf32>
    %207 = arith.addf %205, %206 : vector<1x32xf32>
    %cst_62 = arith.constant dense<0xFF800000> : vector<1x32xf32>
    %208 = vector.multi_reduction <maximumf>, %202, %cst_62 [1] : vector<1x8x32xf32> to vector<1x32xf32>
    %209 = arith.maximumf %208, %207 : vector<1x32xf32>
    %210 = vector.shape_cast %209 : vector<1x32xf32> to vector<1x1x32xf32>
    %211 = vector.broadcast %210 : vector<1x1x32xf32> to vector<1x8x32xf32>
    %212 = arith.subf %202, %211 : vector<1x8x32xf32>
    %213 = math.exp %212 : vector<1x8x32xf32>
    %214 = arith.subf %207, %209 : vector<1x32xf32>
    %215 = math.exp %214 : vector<1x32xf32>
    %cst_63 = arith.constant dense<0.000000e+00> : vector<1x32xf32>
    %216 = vector.multi_reduction <add>, %213, %cst_63 [1] : vector<1x8x32xf32> to vector<1x32xf32>
    %217 = arith.addf %216, %215 : vector<1x32xf32>
    %218 = arith.mulf %213, %184 : vector<1x8x32xf32>
    %cst_64 = arith.constant dense<0.000000e+00> : vector<1x32xf32>
    %219 = vector.multi_reduction <add>, %218, %cst_64 [1] : vector<1x8x32xf32> to vector<1x32xf32>
    %220 = arith.mulf %215, %85 : vector<1x32xf32>
    %221 = arith.addf %219, %220 : vector<1x32xf32>
    %222 = tpu.reciprocal %217 {approx = true} : vector<1x32xf32> -> vector<1x32xf32>
    %223 = arith.mulf %221, %222 : vector<1x32xf32>
    %224 = vector.extract_strided_slice %189 {offsets = [0, 32], sizes = [1, 32], strides = [1, 1]} : vector<1x64xf32> to vector<1x32xf32>
    %225 = vector.extract_strided_slice %192 {offsets = [0, 32], sizes = [1, 32], strides = [1, 1]} : vector<1x64xf32> to vector<1x32xf32>
    %226 = arith.addf %224, %225 : vector<1x32xf32>
    %227 = arith.addf %226, %32 : vector<1x32xf32>
    %228 = arith.negf %227 : vector<1x32xf32>
    %229 = math.exp %228 : vector<1x32xf32>
    %cst_65 = arith.constant 1.000000e+00 : f32
    %230 = vector.broadcast %cst_65 : f32 to vector<1x32xf32>
    %231 = arith.addf %230, %229 : vector<1x32xf32>
    %232 = arith.divf %230, %231 : vector<1x32xf32>
    %233 = math.tanh %223 : vector<1x32xf32>
    %234 = arith.mulf %232, %233 : vector<1x32xf32>
    %c1_i32_66 = arith.constant 1 : i32
    %235 = tpu.dynamic_rotate %180 by %c1_i32_66 dim 0 : vector<8x32xf32>, i32 -> vector<8x32xf32>
    %236 = vector.broadcast %11 : vector<8x1xf32> to vector<8x32xf32>
    %237 = arith.mulf %235, %236 : vector<8x32xf32>
    %c7_i32_67 = arith.constant 7 : i32
    %238 = tpu.dynamic_rotate %180 by %c7_i32_67 dim 0 : vector<8x32xf32>, i32 -> vector<8x32xf32>
    %239 = vector.broadcast %16 : vector<8x1xf32> to vector<8x32xf32>
    %240 = arith.mulf %238, %239 : vector<8x32xf32>
    %241 = vector.shape_cast %85 : vector<1x32xf32> to vector<1x1x32xf32>
    %242 = vector.shape_cast %241 : vector<1x1x32xf32> to vector<1x1x32xf32>
    %243 = vector.broadcast %242 : vector<1x1x32xf32> to vector<1x8x32xf32>
    %244 = vector.shape_cast %243 : vector<1x8x32xf32> to vector<8x32xf32>
    %c1_i32_68 = arith.constant 1 : i32
    %245 = tpu.dynamic_rotate %178 by %c1_i32_68 dim 0 : vector<8x32xf32>, i32 -> vector<8x32xf32>
    %246 = vector.broadcast %11 : vector<8x1xf32> to vector<8x32xf32>
    %247 = arith.mulf %245, %246 : vector<8x32xf32>
    %c7_i32_69 = arith.constant 7 : i32
    %248 = tpu.dynamic_rotate %178 by %c7_i32_69 dim 0 : vector<8x32xf32>, i32 -> vector<8x32xf32>
    %249 = vector.broadcast %16 : vector<8x1xf32> to vector<8x32xf32>
    %250 = arith.mulf %248, %249 : vector<8x32xf32>
    %251 = tpu.concatenate %247, %178, %250, %38 in 1 : vector<8x32xf32>, vector<8x32xf32>, vector<8x32xf32>, vector<8x32xf32> -> vector<8x128xf32>
    %252 = arith.truncf %251 : vector<8x128xf32> to vector<8x128xbf16>
    %c0_70 = arith.constant 0 : index
    %c0_71 = arith.constant 0 : index
    %253 = vector.load %arg10[%c0_70, %c0_71] : memref<32x192xbf16, #tpu.memory_space<vmem>>, vector<32x192xbf16>
    %cst_72 = arith.constant dense<0.000000e+00> : vector<1x192xf32>
    %254 = tpu.matmul %182, %253, %cst_72 {dimension_numbers = #tpu.dot_dimension_numbers<[1], [0], [0], [1], [0, 0, 1, 1], [], []>} : vector<1x32xbf16>, vector<32x192xbf16>, vector<1x192xf32> -> vector<1x192xf32>
    %c0_73 = arith.constant 0 : index
    %c0_74 = arith.constant 0 : index
    %255 = vector.load %arg9[%c0_73, %c0_74] : memref<128x192xbf16, #tpu.memory_space<vmem>>, vector<128x192xbf16>
    %cst_75 = arith.constant dense<0.000000e+00> : vector<8x192xf32>
    %256 = tpu.matmul %252, %255, %cst_75 {dimension_numbers = #tpu.dot_dimension_numbers<[1], [0], [0], [1], [0, 0, 1, 1], [], []>} : vector<8x128xbf16>, vector<128x192xbf16>, vector<8x192xf32> -> vector<8x192xf32>
    %257 = vector.shape_cast %254 : vector<1x192xf32> to vector<1x1x192xf32>
    %258 = vector.shape_cast %257 : vector<1x1x192xf32> to vector<1x1x192xf32>
    %259 = vector.broadcast %258 : vector<1x1x192xf32> to vector<1x8x192xf32>
    %260 = vector.shape_cast %259 : vector<1x8x192xf32> to vector<8x192xf32>
    %261 = arith.addf %256, %260 : vector<8x192xf32>
    %262 = vector.broadcast %33 : vector<1x192xf32> to vector<8x192xf32>
    %263 = arith.addf %261, %262 : vector<8x192xf32>
    %264 = vector.extract_strided_slice %263 {offsets = [0, 0], sizes = [8, 32], strides = [1, 1]} : vector<8x192xf32> to vector<8x32xf32>
    %265 = arith.negf %264 : vector<8x32xf32>
    %266 = math.exp %265 : vector<8x32xf32>
    %cst_76 = arith.constant 1.000000e+00 : f32
    %267 = vector.broadcast %cst_76 : f32 to vector<8x32xf32>
    %268 = arith.addf %267, %266 : vector<8x32xf32>
    %269 = arith.divf %267, %268 : vector<8x32xf32>
    %270 = vector.extract_strided_slice %263 {offsets = [0, 32], sizes = [8, 32], strides = [1, 1]} : vector<8x192xf32> to vector<8x32xf32>
    %271 = vector.extract_strided_slice %263 {offsets = [0, 64], sizes = [8, 32], strides = [1, 1]} : vector<8x192xf32> to vector<8x32xf32>
    %272 = arith.maximumf %270, %271 : vector<8x32xf32>
    %273 = vector.extract_strided_slice %263 {offsets = [0, 96], sizes = [8, 32], strides = [1, 1]} : vector<8x192xf32> to vector<8x32xf32>
    %274 = arith.maximumf %272, %273 : vector<8x32xf32>
    %275 = vector.extract_strided_slice %263 {offsets = [0, 128], sizes = [8, 32], strides = [1, 1]} : vector<8x192xf32> to vector<8x32xf32>
    %276 = arith.maximumf %274, %275 : vector<8x32xf32>
    %277 = vector.extract_strided_slice %263 {offsets = [0, 160], sizes = [8, 32], strides = [1, 1]} : vector<8x192xf32> to vector<8x32xf32>
    %278 = arith.maximumf %276, %277 : vector<8x32xf32>
    %cst_77 = arith.constant 0.000000e+00 : f32
    %279 = vector.broadcast %cst_77 : f32 to vector<8x32xf32>
    %cst_78 = arith.constant 0.000000e+00 : f32
    %280 = vector.broadcast %cst_78 : f32 to vector<8x32xf32>
    %281 = vector.extract_strided_slice %263 {offsets = [0, 32], sizes = [8, 32], strides = [1, 1]} : vector<8x192xf32> to vector<8x32xf32>
    %282 = arith.subf %281, %278 : vector<8x32xf32>
    %283 = math.exp %282 : vector<8x32xf32>
    %284 = arith.mulf %283, %237 : vector<8x32xf32>
    %285 = arith.addf %279, %284 : vector<8x32xf32>
    %286 = arith.addf %280, %283 : vector<8x32xf32>
    %287 = vector.extract_strided_slice %263 {offsets = [0, 64], sizes = [8, 32], strides = [1, 1]} : vector<8x192xf32> to vector<8x32xf32>
    %288 = arith.subf %287, %278 : vector<8x32xf32>
    %289 = math.exp %288 : vector<8x32xf32>
    %290 = arith.mulf %289, %180 : vector<8x32xf32>
    %291 = arith.addf %285, %290 : vector<8x32xf32>
    %292 = arith.addf %286, %289 : vector<8x32xf32>
    %293 = vector.extract_strided_slice %263 {offsets = [0, 96], sizes = [8, 32], strides = [1, 1]} : vector<8x192xf32> to vector<8x32xf32>
    %294 = arith.subf %293, %278 : vector<8x32xf32>
    %295 = math.exp %294 : vector<8x32xf32>
    %296 = arith.mulf %295, %240 : vector<8x32xf32>
    %297 = arith.addf %291, %296 : vector<8x32xf32>
    %298 = arith.addf %292, %295 : vector<8x32xf32>
    %299 = vector.extract_strided_slice %263 {offsets = [0, 128], sizes = [8, 32], strides = [1, 1]} : vector<8x192xf32> to vector<8x32xf32>
    %300 = arith.subf %299, %278 : vector<8x32xf32>
    %301 = math.exp %300 : vector<8x32xf32>
    %302 = arith.mulf %301, %244 : vector<8x32xf32>
    %303 = arith.addf %297, %302 : vector<8x32xf32>
    %304 = arith.addf %298, %301 : vector<8x32xf32>
    %305 = vector.extract_strided_slice %263 {offsets = [0, 160], sizes = [8, 32], strides = [1, 1]} : vector<8x192xf32> to vector<8x32xf32>
    %306 = arith.subf %305, %278 : vector<8x32xf32>
    %307 = math.exp %306 : vector<8x32xf32>
    %308 = arith.mulf %307, %38 : vector<8x32xf32>
    %309 = arith.addf %303, %308 : vector<8x32xf32>
    %310 = arith.addf %304, %307 : vector<8x32xf32>
    %311 = tpu.reciprocal %310 {approx = true} : vector<8x32xf32> -> vector<8x32xf32>
    %312 = arith.mulf %309, %311 : vector<8x32xf32>
    %313 = math.tanh %312 : vector<8x32xf32>
    %314 = arith.mulf %269, %313 : vector<8x32xf32>
    %315 = vector.broadcast %1 : vector<8x1xf32> to vector<8x32xf32>
    %316 = arith.mulf %315, %314 : vector<8x32xf32>
    %317 = vector.broadcast %1 : vector<8x1xf32> to vector<8x32xf32>
    %318 = arith.mulf %317, %312 : vector<8x32xf32>
    %319 = arith.truncf %316 : vector<8x32xf32> to vector<8x32xbf16>
    %320 = arith.truncf %234 : vector<1x32xf32> to vector<1x32xbf16>
    %321 = vector.shape_cast %316 : vector<8x32xf32> to vector<1x8x32xf32>
    %322 = vector.shape_cast %318 : vector<8x32xf32> to vector<1x8x32xf32>
    %cst_79 = arith.constant dense<0.000000e+00> : vector<1x32xf32>
    %323 = vector.multi_reduction <add>, %321, %cst_79 [1] : vector<1x8x32xf32> to vector<1x32xf32>
    %324 = vector.broadcast %4 : vector<1x1xf32> to vector<1x32xf32>
    %325 = arith.mulf %323, %324 : vector<1x32xf32>
    %c0_80 = arith.constant 0 : index
    %c0_81 = arith.constant 0 : index
    %326 = vector.load %arg5[%c0_80, %c0_81] : memref<32x64xbf16, #tpu.memory_space<vmem>>, vector<32x64xbf16>
    %cst_82 = arith.constant dense<0.000000e+00> : vector<1x64xf32>
    %327 = tpu.matmul %320, %326, %cst_82 {dimension_numbers = #tpu.dot_dimension_numbers<[1], [0], [0], [1], [0, 0, 1, 1], [], []>} : vector<1x32xbf16>, vector<32x64xbf16>, vector<1x64xf32> -> vector<1x64xf32>
    %328 = arith.truncf %325 : vector<1x32xf32> to vector<1x32xbf16>
    %c0_83 = arith.constant 0 : index
    %c0_84 = arith.constant 0 : index
    %329 = vector.load %arg6[%c0_83, %c0_84] : memref<32x64xbf16, #tpu.memory_space<vmem>>, vector<32x64xbf16>
    %cst_85 = arith.constant dense<0.000000e+00> : vector<1x64xf32>
    %330 = tpu.matmul %328, %329, %cst_85 {dimension_numbers = #tpu.dot_dimension_numbers<[1], [0], [0], [1], [0, 0, 1, 1], [], []>} : vector<1x32xbf16>, vector<32x64xbf16>, vector<1x64xf32> -> vector<1x64xf32>
    %331 = vector.extract_strided_slice %327 {offsets = [0, 0], sizes = [1, 32], strides = [1, 1]} : vector<1x64xf32> to vector<1x32xf32>
    %c0_86 = arith.constant 0 : index
    %c0_87 = arith.constant 0 : index
    %332 = vector.load %arg6[%c0_86, %c0_87] : memref<32x64xbf16, #tpu.memory_space<vmem>>, vector<32x32xbf16>
    %cst_88 = arith.constant dense<0.000000e+00> : vector<8x32xf32>
    %333 = tpu.matmul %319, %332, %cst_88 {dimension_numbers = #tpu.dot_dimension_numbers<[1], [0], [0], [1], [0, 0, 1, 1], [], []>} : vector<8x32xbf16>, vector<32x32xbf16>, vector<8x32xf32> -> vector<8x32xf32>
    %334 = vector.shape_cast %333 : vector<8x32xf32> to vector<1x8x32xf32>
    %335 = arith.addf %331, %31 : vector<1x32xf32>
    %336 = vector.shape_cast %335 : vector<1x32xf32> to vector<1x1x32xf32>
    %337 = vector.broadcast %336 : vector<1x1x32xf32> to vector<1x8x32xf32>
    %338 = arith.addf %334, %337 : vector<1x8x32xf32>
    %339 = vector.broadcast %23 : vector<1x8x1xf32> to vector<1x8x32xf32>
    %340 = arith.addf %338, %339 : vector<1x8x32xf32>
    %341 = vector.extract_strided_slice %330 {offsets = [0, 0], sizes = [1, 32], strides = [1, 1]} : vector<1x64xf32> to vector<1x32xf32>
    %342 = arith.addf %331, %341 : vector<1x32xf32>
    %343 = arith.addf %342, %31 : vector<1x32xf32>
    %344 = vector.broadcast %29 : vector<1x1xf32> to vector<1x32xf32>
    %345 = arith.addf %343, %344 : vector<1x32xf32>
    %cst_89 = arith.constant dense<0xFF800000> : vector<1x32xf32>
    %346 = vector.multi_reduction <maximumf>, %340, %cst_89 [1] : vector<1x8x32xf32> to vector<1x32xf32>
    %347 = arith.maximumf %346, %345 : vector<1x32xf32>
    %348 = vector.shape_cast %347 : vector<1x32xf32> to vector<1x1x32xf32>
    %349 = vector.broadcast %348 : vector<1x1x32xf32> to vector<1x8x32xf32>
    %350 = arith.subf %340, %349 : vector<1x8x32xf32>
    %351 = math.exp %350 : vector<1x8x32xf32>
    %352 = arith.subf %345, %347 : vector<1x32xf32>
    %353 = math.exp %352 : vector<1x32xf32>
    %cst_90 = arith.constant dense<0.000000e+00> : vector<1x32xf32>
    %354 = vector.multi_reduction <add>, %351, %cst_90 [1] : vector<1x8x32xf32> to vector<1x32xf32>
    %355 = arith.addf %354, %353 : vector<1x32xf32>
    %356 = arith.mulf %351, %322 : vector<1x8x32xf32>
    %cst_91 = arith.constant dense<0.000000e+00> : vector<1x32xf32>
    %357 = vector.multi_reduction <add>, %356, %cst_91 [1] : vector<1x8x32xf32> to vector<1x32xf32>
    %358 = arith.mulf %353, %223 : vector<1x32xf32>
    %359 = arith.addf %357, %358 : vector<1x32xf32>
    %360 = tpu.reciprocal %355 {approx = true} : vector<1x32xf32> -> vector<1x32xf32>
    %361 = arith.mulf %359, %360 : vector<1x32xf32>
    %362 = vector.extract_strided_slice %327 {offsets = [0, 32], sizes = [1, 32], strides = [1, 1]} : vector<1x64xf32> to vector<1x32xf32>
    %363 = vector.extract_strided_slice %330 {offsets = [0, 32], sizes = [1, 32], strides = [1, 1]} : vector<1x64xf32> to vector<1x32xf32>
    %364 = arith.addf %362, %363 : vector<1x32xf32>
    %365 = arith.addf %364, %32 : vector<1x32xf32>
    %366 = arith.negf %365 : vector<1x32xf32>
    %367 = math.exp %366 : vector<1x32xf32>
    %cst_92 = arith.constant 1.000000e+00 : f32
    %368 = vector.broadcast %cst_92 : f32 to vector<1x32xf32>
    %369 = arith.addf %368, %367 : vector<1x32xf32>
    %370 = arith.divf %368, %369 : vector<1x32xf32>
    %371 = math.tanh %361 : vector<1x32xf32>
    %372 = arith.mulf %370, %371 : vector<1x32xf32>
    %c1_i32_93 = arith.constant 1 : i32
    %373 = tpu.dynamic_rotate %318 by %c1_i32_93 dim 0 : vector<8x32xf32>, i32 -> vector<8x32xf32>
    %374 = vector.broadcast %11 : vector<8x1xf32> to vector<8x32xf32>
    %375 = arith.mulf %373, %374 : vector<8x32xf32>
    %c7_i32_94 = arith.constant 7 : i32
    %376 = tpu.dynamic_rotate %318 by %c7_i32_94 dim 0 : vector<8x32xf32>, i32 -> vector<8x32xf32>
    %377 = vector.broadcast %16 : vector<8x1xf32> to vector<8x32xf32>
    %378 = arith.mulf %376, %377 : vector<8x32xf32>
    %379 = vector.shape_cast %223 : vector<1x32xf32> to vector<1x1x32xf32>
    %380 = vector.shape_cast %379 : vector<1x1x32xf32> to vector<1x1x32xf32>
    %381 = vector.broadcast %380 : vector<1x1x32xf32> to vector<1x8x32xf32>
    %382 = vector.shape_cast %381 : vector<1x8x32xf32> to vector<8x32xf32>
    %c1_i32_95 = arith.constant 1 : i32
    %383 = tpu.dynamic_rotate %316 by %c1_i32_95 dim 0 : vector<8x32xf32>, i32 -> vector<8x32xf32>
    %384 = vector.broadcast %11 : vector<8x1xf32> to vector<8x32xf32>
    %385 = arith.mulf %383, %384 : vector<8x32xf32>
    %c7_i32_96 = arith.constant 7 : i32
    %386 = tpu.dynamic_rotate %316 by %c7_i32_96 dim 0 : vector<8x32xf32>, i32 -> vector<8x32xf32>
    %387 = vector.broadcast %16 : vector<8x1xf32> to vector<8x32xf32>
    %388 = arith.mulf %386, %387 : vector<8x32xf32>
    %389 = tpu.concatenate %385, %316, %388, %38 in 1 : vector<8x32xf32>, vector<8x32xf32>, vector<8x32xf32>, vector<8x32xf32> -> vector<8x128xf32>
    %390 = arith.truncf %389 : vector<8x128xf32> to vector<8x128xbf16>
    %c0_97 = arith.constant 0 : index
    %c0_98 = arith.constant 0 : index
    %391 = vector.load %arg10[%c0_97, %c0_98] : memref<32x192xbf16, #tpu.memory_space<vmem>>, vector<32x192xbf16>
    %cst_99 = arith.constant dense<0.000000e+00> : vector<1x192xf32>
    %392 = tpu.matmul %320, %391, %cst_99 {dimension_numbers = #tpu.dot_dimension_numbers<[1], [0], [0], [1], [0, 0, 1, 1], [], []>} : vector<1x32xbf16>, vector<32x192xbf16>, vector<1x192xf32> -> vector<1x192xf32>
    %c0_100 = arith.constant 0 : index
    %c0_101 = arith.constant 0 : index
    %393 = vector.load %arg9[%c0_100, %c0_101] : memref<128x192xbf16, #tpu.memory_space<vmem>>, vector<128x192xbf16>
    %cst_102 = arith.constant dense<0.000000e+00> : vector<8x192xf32>
    %394 = tpu.matmul %390, %393, %cst_102 {dimension_numbers = #tpu.dot_dimension_numbers<[1], [0], [0], [1], [0, 0, 1, 1], [], []>} : vector<8x128xbf16>, vector<128x192xbf16>, vector<8x192xf32> -> vector<8x192xf32>
    %395 = vector.shape_cast %392 : vector<1x192xf32> to vector<1x1x192xf32>
    %396 = vector.shape_cast %395 : vector<1x1x192xf32> to vector<1x1x192xf32>
    %397 = vector.broadcast %396 : vector<1x1x192xf32> to vector<1x8x192xf32>
    %398 = vector.shape_cast %397 : vector<1x8x192xf32> to vector<8x192xf32>
    %399 = arith.addf %394, %398 : vector<8x192xf32>
    %400 = vector.broadcast %33 : vector<1x192xf32> to vector<8x192xf32>
    %401 = arith.addf %399, %400 : vector<8x192xf32>
    %402 = vector.extract_strided_slice %401 {offsets = [0, 0], sizes = [8, 32], strides = [1, 1]} : vector<8x192xf32> to vector<8x32xf32>
    %403 = arith.negf %402 : vector<8x32xf32>
    %404 = math.exp %403 : vector<8x32xf32>
    %cst_103 = arith.constant 1.000000e+00 : f32
    %405 = vector.broadcast %cst_103 : f32 to vector<8x32xf32>
    %406 = arith.addf %405, %404 : vector<8x32xf32>
    %407 = arith.divf %405, %406 : vector<8x32xf32>
    %408 = vector.extract_strided_slice %401 {offsets = [0, 32], sizes = [8, 32], strides = [1, 1]} : vector<8x192xf32> to vector<8x32xf32>
    %409 = vector.extract_strided_slice %401 {offsets = [0, 64], sizes = [8, 32], strides = [1, 1]} : vector<8x192xf32> to vector<8x32xf32>
    %410 = arith.maximumf %408, %409 : vector<8x32xf32>
    %411 = vector.extract_strided_slice %401 {offsets = [0, 96], sizes = [8, 32], strides = [1, 1]} : vector<8x192xf32> to vector<8x32xf32>
    %412 = arith.maximumf %410, %411 : vector<8x32xf32>
    %413 = vector.extract_strided_slice %401 {offsets = [0, 128], sizes = [8, 32], strides = [1, 1]} : vector<8x192xf32> to vector<8x32xf32>
    %414 = arith.maximumf %412, %413 : vector<8x32xf32>
    %415 = vector.extract_strided_slice %401 {offsets = [0, 160], sizes = [8, 32], strides = [1, 1]} : vector<8x192xf32> to vector<8x32xf32>
    %416 = arith.maximumf %414, %415 : vector<8x32xf32>
    %cst_104 = arith.constant 0.000000e+00 : f32
    %417 = vector.broadcast %cst_104 : f32 to vector<8x32xf32>
    %cst_105 = arith.constant 0.000000e+00 : f32
    %418 = vector.broadcast %cst_105 : f32 to vector<8x32xf32>
    %419 = vector.extract_strided_slice %401 {offsets = [0, 32], sizes = [8, 32], strides = [1, 1]} : vector<8x192xf32> to vector<8x32xf32>
    %420 = arith.subf %419, %416 : vector<8x32xf32>
    %421 = math.exp %420 : vector<8x32xf32>
    %422 = arith.mulf %421, %375 : vector<8x32xf32>
    %423 = arith.addf %417, %422 : vector<8x32xf32>
    %424 = arith.addf %418, %421 : vector<8x32xf32>
    %425 = vector.extract_strided_slice %401 {offsets = [0, 64], sizes = [8, 32], strides = [1, 1]} : vector<8x192xf32> to vector<8x32xf32>
    %426 = arith.subf %425, %416 : vector<8x32xf32>
    %427 = math.exp %426 : vector<8x32xf32>
    %428 = arith.mulf %427, %318 : vector<8x32xf32>
    %429 = arith.addf %423, %428 : vector<8x32xf32>
    %430 = arith.addf %424, %427 : vector<8x32xf32>
    %431 = vector.extract_strided_slice %401 {offsets = [0, 96], sizes = [8, 32], strides = [1, 1]} : vector<8x192xf32> to vector<8x32xf32>
    %432 = arith.subf %431, %416 : vector<8x32xf32>
    %433 = math.exp %432 : vector<8x32xf32>
    %434 = arith.mulf %433, %378 : vector<8x32xf32>
    %435 = arith.addf %429, %434 : vector<8x32xf32>
    %436 = arith.addf %430, %433 : vector<8x32xf32>
    %437 = vector.extract_strided_slice %401 {offsets = [0, 128], sizes = [8, 32], strides = [1, 1]} : vector<8x192xf32> to vector<8x32xf32>
    %438 = arith.subf %437, %416 : vector<8x32xf32>
    %439 = math.exp %438 : vector<8x32xf32>
    %440 = arith.mulf %439, %382 : vector<8x32xf32>
    %441 = arith.addf %435, %440 : vector<8x32xf32>
    %442 = arith.addf %436, %439 : vector<8x32xf32>
    %443 = vector.extract_strided_slice %401 {offsets = [0, 160], sizes = [8, 32], strides = [1, 1]} : vector<8x192xf32> to vector<8x32xf32>
    %444 = arith.subf %443, %416 : vector<8x32xf32>
    %445 = math.exp %444 : vector<8x32xf32>
    %446 = arith.mulf %445, %38 : vector<8x32xf32>
    %447 = arith.addf %441, %446 : vector<8x32xf32>
    %448 = arith.addf %442, %445 : vector<8x32xf32>
    %449 = tpu.reciprocal %448 {approx = true} : vector<8x32xf32> -> vector<8x32xf32>
    %450 = arith.mulf %447, %449 : vector<8x32xf32>
    %451 = math.tanh %450 : vector<8x32xf32>
    %452 = arith.mulf %407, %451 : vector<8x32xf32>
    %453 = vector.broadcast %1 : vector<8x1xf32> to vector<8x32xf32>
    %454 = arith.mulf %453, %452 : vector<8x32xf32>
    %455 = vector.broadcast %1 : vector<8x1xf32> to vector<8x32xf32>
    %456 = arith.mulf %455, %450 : vector<8x32xf32>
    %457 = arith.truncf %454 : vector<8x32xf32> to vector<8x32xbf16>
    %458 = arith.truncf %372 : vector<1x32xf32> to vector<1x32xbf16>
    %459 = vector.shape_cast %454 : vector<8x32xf32> to vector<1x8x32xf32>
    %460 = vector.shape_cast %456 : vector<8x32xf32> to vector<1x8x32xf32>
    %cst_106 = arith.constant dense<0.000000e+00> : vector<1x32xf32>
    %461 = vector.multi_reduction <add>, %459, %cst_106 [1] : vector<1x8x32xf32> to vector<1x32xf32>
    %462 = vector.broadcast %4 : vector<1x1xf32> to vector<1x32xf32>
    %463 = arith.mulf %461, %462 : vector<1x32xf32>
    %c0_107 = arith.constant 0 : index
    %c0_108 = arith.constant 0 : index
    %464 = vector.load %arg5[%c0_107, %c0_108] : memref<32x64xbf16, #tpu.memory_space<vmem>>, vector<32x64xbf16>
    %cst_109 = arith.constant dense<0.000000e+00> : vector<1x64xf32>
    %465 = tpu.matmul %458, %464, %cst_109 {dimension_numbers = #tpu.dot_dimension_numbers<[1], [0], [0], [1], [0, 0, 1, 1], [], []>} : vector<1x32xbf16>, vector<32x64xbf16>, vector<1x64xf32> -> vector<1x64xf32>
    %466 = arith.truncf %463 : vector<1x32xf32> to vector<1x32xbf16>
    %c0_110 = arith.constant 0 : index
    %c0_111 = arith.constant 0 : index
    %467 = vector.load %arg6[%c0_110, %c0_111] : memref<32x64xbf16, #tpu.memory_space<vmem>>, vector<32x64xbf16>
    %cst_112 = arith.constant dense<0.000000e+00> : vector<1x64xf32>
    %468 = tpu.matmul %466, %467, %cst_112 {dimension_numbers = #tpu.dot_dimension_numbers<[1], [0], [0], [1], [0, 0, 1, 1], [], []>} : vector<1x32xbf16>, vector<32x64xbf16>, vector<1x64xf32> -> vector<1x64xf32>
    %469 = vector.extract_strided_slice %465 {offsets = [0, 0], sizes = [1, 32], strides = [1, 1]} : vector<1x64xf32> to vector<1x32xf32>
    %c0_113 = arith.constant 0 : index
    %c0_114 = arith.constant 0 : index
    %470 = vector.load %arg6[%c0_113, %c0_114] : memref<32x64xbf16, #tpu.memory_space<vmem>>, vector<32x32xbf16>
    %cst_115 = arith.constant dense<0.000000e+00> : vector<8x32xf32>
    %471 = tpu.matmul %457, %470, %cst_115 {dimension_numbers = #tpu.dot_dimension_numbers<[1], [0], [0], [1], [0, 0, 1, 1], [], []>} : vector<8x32xbf16>, vector<32x32xbf16>, vector<8x32xf32> -> vector<8x32xf32>
    %472 = vector.shape_cast %471 : vector<8x32xf32> to vector<1x8x32xf32>
    %473 = arith.addf %469, %31 : vector<1x32xf32>
    %474 = vector.shape_cast %473 : vector<1x32xf32> to vector<1x1x32xf32>
    %475 = vector.broadcast %474 : vector<1x1x32xf32> to vector<1x8x32xf32>
    %476 = arith.addf %472, %475 : vector<1x8x32xf32>
    %477 = vector.broadcast %23 : vector<1x8x1xf32> to vector<1x8x32xf32>
    %478 = arith.addf %476, %477 : vector<1x8x32xf32>
    %479 = vector.extract_strided_slice %468 {offsets = [0, 0], sizes = [1, 32], strides = [1, 1]} : vector<1x64xf32> to vector<1x32xf32>
    %480 = arith.addf %469, %479 : vector<1x32xf32>
    %481 = arith.addf %480, %31 : vector<1x32xf32>
    %482 = vector.broadcast %29 : vector<1x1xf32> to vector<1x32xf32>
    %483 = arith.addf %481, %482 : vector<1x32xf32>
    %cst_116 = arith.constant dense<0xFF800000> : vector<1x32xf32>
    %484 = vector.multi_reduction <maximumf>, %478, %cst_116 [1] : vector<1x8x32xf32> to vector<1x32xf32>
    %485 = arith.maximumf %484, %483 : vector<1x32xf32>
    %486 = vector.shape_cast %485 : vector<1x32xf32> to vector<1x1x32xf32>
    %487 = vector.broadcast %486 : vector<1x1x32xf32> to vector<1x8x32xf32>
    %488 = arith.subf %478, %487 : vector<1x8x32xf32>
    %489 = math.exp %488 : vector<1x8x32xf32>
    %490 = arith.subf %483, %485 : vector<1x32xf32>
    %491 = math.exp %490 : vector<1x32xf32>
    %cst_117 = arith.constant dense<0.000000e+00> : vector<1x32xf32>
    %492 = vector.multi_reduction <add>, %489, %cst_117 [1] : vector<1x8x32xf32> to vector<1x32xf32>
    %493 = arith.addf %492, %491 : vector<1x32xf32>
    %494 = arith.mulf %489, %460 : vector<1x8x32xf32>
    %cst_118 = arith.constant dense<0.000000e+00> : vector<1x32xf32>
    %495 = vector.multi_reduction <add>, %494, %cst_118 [1] : vector<1x8x32xf32> to vector<1x32xf32>
    %496 = arith.mulf %491, %361 : vector<1x32xf32>
    %497 = arith.addf %495, %496 : vector<1x32xf32>
    %498 = tpu.reciprocal %493 {approx = true} : vector<1x32xf32> -> vector<1x32xf32>
    %499 = arith.mulf %497, %498 : vector<1x32xf32>
    %500 = vector.extract_strided_slice %465 {offsets = [0, 32], sizes = [1, 32], strides = [1, 1]} : vector<1x64xf32> to vector<1x32xf32>
    %501 = vector.extract_strided_slice %468 {offsets = [0, 32], sizes = [1, 32], strides = [1, 1]} : vector<1x64xf32> to vector<1x32xf32>
    %502 = arith.addf %500, %501 : vector<1x32xf32>
    %503 = arith.addf %502, %32 : vector<1x32xf32>
    %504 = arith.negf %503 : vector<1x32xf32>
    %505 = math.exp %504 : vector<1x32xf32>
    %cst_119 = arith.constant 1.000000e+00 : f32
    %506 = vector.broadcast %cst_119 : f32 to vector<1x32xf32>
    %507 = arith.addf %506, %505 : vector<1x32xf32>
    %508 = arith.divf %506, %507 : vector<1x32xf32>
    %509 = math.tanh %499 : vector<1x32xf32>
    %510 = arith.mulf %508, %509 : vector<1x32xf32>
    %c1_i32_120 = arith.constant 1 : i32
    %511 = tpu.dynamic_rotate %456 by %c1_i32_120 dim 0 : vector<8x32xf32>, i32 -> vector<8x32xf32>
    %512 = vector.broadcast %11 : vector<8x1xf32> to vector<8x32xf32>
    %513 = arith.mulf %511, %512 : vector<8x32xf32>
    %c7_i32_121 = arith.constant 7 : i32
    %514 = tpu.dynamic_rotate %456 by %c7_i32_121 dim 0 : vector<8x32xf32>, i32 -> vector<8x32xf32>
    %515 = vector.broadcast %16 : vector<8x1xf32> to vector<8x32xf32>
    %516 = arith.mulf %514, %515 : vector<8x32xf32>
    %517 = vector.shape_cast %361 : vector<1x32xf32> to vector<1x1x32xf32>
    %518 = vector.shape_cast %517 : vector<1x1x32xf32> to vector<1x1x32xf32>
    %519 = vector.broadcast %518 : vector<1x1x32xf32> to vector<1x8x32xf32>
    %520 = vector.shape_cast %519 : vector<1x8x32xf32> to vector<8x32xf32>
    %c1_i32_122 = arith.constant 1 : i32
    %521 = tpu.dynamic_rotate %454 by %c1_i32_122 dim 0 : vector<8x32xf32>, i32 -> vector<8x32xf32>
    %522 = vector.broadcast %11 : vector<8x1xf32> to vector<8x32xf32>
    %523 = arith.mulf %521, %522 : vector<8x32xf32>
    %c7_i32_123 = arith.constant 7 : i32
    %524 = tpu.dynamic_rotate %454 by %c7_i32_123 dim 0 : vector<8x32xf32>, i32 -> vector<8x32xf32>
    %525 = vector.broadcast %16 : vector<8x1xf32> to vector<8x32xf32>
    %526 = arith.mulf %524, %525 : vector<8x32xf32>
    %527 = tpu.concatenate %523, %454, %526, %38 in 1 : vector<8x32xf32>, vector<8x32xf32>, vector<8x32xf32>, vector<8x32xf32> -> vector<8x128xf32>
    %528 = arith.truncf %527 : vector<8x128xf32> to vector<8x128xbf16>
    %c0_124 = arith.constant 0 : index
    %c0_125 = arith.constant 0 : index
    %529 = vector.load %arg10[%c0_124, %c0_125] : memref<32x192xbf16, #tpu.memory_space<vmem>>, vector<32x192xbf16>
    %cst_126 = arith.constant dense<0.000000e+00> : vector<1x192xf32>
    %530 = tpu.matmul %458, %529, %cst_126 {dimension_numbers = #tpu.dot_dimension_numbers<[1], [0], [0], [1], [0, 0, 1, 1], [], []>} : vector<1x32xbf16>, vector<32x192xbf16>, vector<1x192xf32> -> vector<1x192xf32>
    %c0_127 = arith.constant 0 : index
    %c0_128 = arith.constant 0 : index
    %531 = vector.load %arg9[%c0_127, %c0_128] : memref<128x192xbf16, #tpu.memory_space<vmem>>, vector<128x192xbf16>
    %cst_129 = arith.constant dense<0.000000e+00> : vector<8x192xf32>
    %532 = tpu.matmul %528, %531, %cst_129 {dimension_numbers = #tpu.dot_dimension_numbers<[1], [0], [0], [1], [0, 0, 1, 1], [], []>} : vector<8x128xbf16>, vector<128x192xbf16>, vector<8x192xf32> -> vector<8x192xf32>
    %533 = vector.shape_cast %530 : vector<1x192xf32> to vector<1x1x192xf32>
    %534 = vector.shape_cast %533 : vector<1x1x192xf32> to vector<1x1x192xf32>
    %535 = vector.broadcast %534 : vector<1x1x192xf32> to vector<1x8x192xf32>
    %536 = vector.shape_cast %535 : vector<1x8x192xf32> to vector<8x192xf32>
    %537 = arith.addf %532, %536 : vector<8x192xf32>
    %538 = vector.broadcast %33 : vector<1x192xf32> to vector<8x192xf32>
    %539 = arith.addf %537, %538 : vector<8x192xf32>
    %540 = vector.extract_strided_slice %539 {offsets = [0, 0], sizes = [8, 32], strides = [1, 1]} : vector<8x192xf32> to vector<8x32xf32>
    %541 = arith.negf %540 : vector<8x32xf32>
    %542 = math.exp %541 : vector<8x32xf32>
    %cst_130 = arith.constant 1.000000e+00 : f32
    %543 = vector.broadcast %cst_130 : f32 to vector<8x32xf32>
    %544 = arith.addf %543, %542 : vector<8x32xf32>
    %545 = arith.divf %543, %544 : vector<8x32xf32>
    %546 = vector.extract_strided_slice %539 {offsets = [0, 32], sizes = [8, 32], strides = [1, 1]} : vector<8x192xf32> to vector<8x32xf32>
    %547 = vector.extract_strided_slice %539 {offsets = [0, 64], sizes = [8, 32], strides = [1, 1]} : vector<8x192xf32> to vector<8x32xf32>
    %548 = arith.maximumf %546, %547 : vector<8x32xf32>
    %549 = vector.extract_strided_slice %539 {offsets = [0, 96], sizes = [8, 32], strides = [1, 1]} : vector<8x192xf32> to vector<8x32xf32>
    %550 = arith.maximumf %548, %549 : vector<8x32xf32>
    %551 = vector.extract_strided_slice %539 {offsets = [0, 128], sizes = [8, 32], strides = [1, 1]} : vector<8x192xf32> to vector<8x32xf32>
    %552 = arith.maximumf %550, %551 : vector<8x32xf32>
    %553 = vector.extract_strided_slice %539 {offsets = [0, 160], sizes = [8, 32], strides = [1, 1]} : vector<8x192xf32> to vector<8x32xf32>
    %554 = arith.maximumf %552, %553 : vector<8x32xf32>
    %cst_131 = arith.constant 0.000000e+00 : f32
    %555 = vector.broadcast %cst_131 : f32 to vector<8x32xf32>
    %cst_132 = arith.constant 0.000000e+00 : f32
    %556 = vector.broadcast %cst_132 : f32 to vector<8x32xf32>
    %557 = vector.extract_strided_slice %539 {offsets = [0, 32], sizes = [8, 32], strides = [1, 1]} : vector<8x192xf32> to vector<8x32xf32>
    %558 = arith.subf %557, %554 : vector<8x32xf32>
    %559 = math.exp %558 : vector<8x32xf32>
    %560 = arith.mulf %559, %513 : vector<8x32xf32>
    %561 = arith.addf %555, %560 : vector<8x32xf32>
    %562 = arith.addf %556, %559 : vector<8x32xf32>
    %563 = vector.extract_strided_slice %539 {offsets = [0, 64], sizes = [8, 32], strides = [1, 1]} : vector<8x192xf32> to vector<8x32xf32>
    %564 = arith.subf %563, %554 : vector<8x32xf32>
    %565 = math.exp %564 : vector<8x32xf32>
    %566 = arith.mulf %565, %456 : vector<8x32xf32>
    %567 = arith.addf %561, %566 : vector<8x32xf32>
    %568 = arith.addf %562, %565 : vector<8x32xf32>
    %569 = vector.extract_strided_slice %539 {offsets = [0, 96], sizes = [8, 32], strides = [1, 1]} : vector<8x192xf32> to vector<8x32xf32>
    %570 = arith.subf %569, %554 : vector<8x32xf32>
    %571 = math.exp %570 : vector<8x32xf32>
    %572 = arith.mulf %571, %516 : vector<8x32xf32>
    %573 = arith.addf %567, %572 : vector<8x32xf32>
    %574 = arith.addf %568, %571 : vector<8x32xf32>
    %575 = vector.extract_strided_slice %539 {offsets = [0, 128], sizes = [8, 32], strides = [1, 1]} : vector<8x192xf32> to vector<8x32xf32>
    %576 = arith.subf %575, %554 : vector<8x32xf32>
    %577 = math.exp %576 : vector<8x32xf32>
    %578 = arith.mulf %577, %520 : vector<8x32xf32>
    %579 = arith.addf %573, %578 : vector<8x32xf32>
    %580 = arith.addf %574, %577 : vector<8x32xf32>
    %581 = vector.extract_strided_slice %539 {offsets = [0, 160], sizes = [8, 32], strides = [1, 1]} : vector<8x192xf32> to vector<8x32xf32>
    %582 = arith.subf %581, %554 : vector<8x32xf32>
    %583 = math.exp %582 : vector<8x32xf32>
    %584 = arith.mulf %583, %38 : vector<8x32xf32>
    %585 = arith.addf %579, %584 : vector<8x32xf32>
    %586 = arith.addf %580, %583 : vector<8x32xf32>
    %587 = tpu.reciprocal %586 {approx = true} : vector<8x32xf32> -> vector<8x32xf32>
    %588 = arith.mulf %585, %587 : vector<8x32xf32>
    %589 = math.tanh %588 : vector<8x32xf32>
    %590 = arith.mulf %545, %589 : vector<8x32xf32>
    %591 = vector.broadcast %1 : vector<8x1xf32> to vector<8x32xf32>
    %592 = arith.mulf %591, %590 : vector<8x32xf32>
    %593 = vector.broadcast %1 : vector<8x1xf32> to vector<8x32xf32>
    %594 = arith.mulf %593, %588 : vector<8x32xf32>
    %595 = arith.truncf %592 : vector<8x32xf32> to vector<8x32xbf16>
    %596 = arith.truncf %510 : vector<1x32xf32> to vector<1x32xbf16>
    %597 = vector.shape_cast %592 : vector<8x32xf32> to vector<1x8x32xf32>
    %598 = vector.shape_cast %594 : vector<8x32xf32> to vector<1x8x32xf32>
    %cst_133 = arith.constant dense<0.000000e+00> : vector<1x32xf32>
    %599 = vector.multi_reduction <add>, %597, %cst_133 [1] : vector<1x8x32xf32> to vector<1x32xf32>
    %600 = vector.broadcast %4 : vector<1x1xf32> to vector<1x32xf32>
    %601 = arith.mulf %599, %600 : vector<1x32xf32>
    %c0_134 = arith.constant 0 : index
    %c0_135 = arith.constant 0 : index
    %602 = vector.load %arg5[%c0_134, %c0_135] : memref<32x64xbf16, #tpu.memory_space<vmem>>, vector<32x64xbf16>
    %cst_136 = arith.constant dense<0.000000e+00> : vector<1x64xf32>
    %603 = tpu.matmul %596, %602, %cst_136 {dimension_numbers = #tpu.dot_dimension_numbers<[1], [0], [0], [1], [0, 0, 1, 1], [], []>} : vector<1x32xbf16>, vector<32x64xbf16>, vector<1x64xf32> -> vector<1x64xf32>
    %604 = arith.truncf %601 : vector<1x32xf32> to vector<1x32xbf16>
    %c0_137 = arith.constant 0 : index
    %c0_138 = arith.constant 0 : index
    %605 = vector.load %arg6[%c0_137, %c0_138] : memref<32x64xbf16, #tpu.memory_space<vmem>>, vector<32x64xbf16>
    %cst_139 = arith.constant dense<0.000000e+00> : vector<1x64xf32>
    %606 = tpu.matmul %604, %605, %cst_139 {dimension_numbers = #tpu.dot_dimension_numbers<[1], [0], [0], [1], [0, 0, 1, 1], [], []>} : vector<1x32xbf16>, vector<32x64xbf16>, vector<1x64xf32> -> vector<1x64xf32>
    %607 = vector.extract_strided_slice %603 {offsets = [0, 0], sizes = [1, 32], strides = [1, 1]} : vector<1x64xf32> to vector<1x32xf32>
    %c0_140 = arith.constant 0 : index
    %c0_141 = arith.constant 0 : index
    %608 = vector.load %arg6[%c0_140, %c0_141] : memref<32x64xbf16, #tpu.memory_space<vmem>>, vector<32x32xbf16>
    %cst_142 = arith.constant dense<0.000000e+00> : vector<8x32xf32>
    %609 = tpu.matmul %595, %608, %cst_142 {dimension_numbers = #tpu.dot_dimension_numbers<[1], [0], [0], [1], [0, 0, 1, 1], [], []>} : vector<8x32xbf16>, vector<32x32xbf16>, vector<8x32xf32> -> vector<8x32xf32>
    %610 = vector.shape_cast %609 : vector<8x32xf32> to vector<1x8x32xf32>
    %611 = arith.addf %607, %31 : vector<1x32xf32>
    %612 = vector.shape_cast %611 : vector<1x32xf32> to vector<1x1x32xf32>
    %613 = vector.broadcast %612 : vector<1x1x32xf32> to vector<1x8x32xf32>
    %614 = arith.addf %610, %613 : vector<1x8x32xf32>
    %615 = vector.broadcast %23 : vector<1x8x1xf32> to vector<1x8x32xf32>
    %616 = arith.addf %614, %615 : vector<1x8x32xf32>
    %617 = vector.extract_strided_slice %606 {offsets = [0, 0], sizes = [1, 32], strides = [1, 1]} : vector<1x64xf32> to vector<1x32xf32>
    %618 = arith.addf %607, %617 : vector<1x32xf32>
    %619 = arith.addf %618, %31 : vector<1x32xf32>
    %620 = vector.broadcast %29 : vector<1x1xf32> to vector<1x32xf32>
    %621 = arith.addf %619, %620 : vector<1x32xf32>
    %cst_143 = arith.constant dense<0xFF800000> : vector<1x32xf32>
    %622 = vector.multi_reduction <maximumf>, %616, %cst_143 [1] : vector<1x8x32xf32> to vector<1x32xf32>
    %623 = arith.maximumf %622, %621 : vector<1x32xf32>
    %624 = vector.shape_cast %623 : vector<1x32xf32> to vector<1x1x32xf32>
    %625 = vector.broadcast %624 : vector<1x1x32xf32> to vector<1x8x32xf32>
    %626 = arith.subf %616, %625 : vector<1x8x32xf32>
    %627 = math.exp %626 : vector<1x8x32xf32>
    %628 = arith.subf %621, %623 : vector<1x32xf32>
    %629 = math.exp %628 : vector<1x32xf32>
    %cst_144 = arith.constant dense<0.000000e+00> : vector<1x32xf32>
    %630 = vector.multi_reduction <add>, %627, %cst_144 [1] : vector<1x8x32xf32> to vector<1x32xf32>
    %631 = arith.addf %630, %629 : vector<1x32xf32>
    %632 = arith.mulf %627, %598 : vector<1x8x32xf32>
    %cst_145 = arith.constant dense<0.000000e+00> : vector<1x32xf32>
    %633 = vector.multi_reduction <add>, %632, %cst_145 [1] : vector<1x8x32xf32> to vector<1x32xf32>
    %634 = arith.mulf %629, %499 : vector<1x32xf32>
    %635 = arith.addf %633, %634 : vector<1x32xf32>
    %636 = tpu.reciprocal %631 {approx = true} : vector<1x32xf32> -> vector<1x32xf32>
    %637 = arith.mulf %635, %636 : vector<1x32xf32>
    %638 = vector.extract_strided_slice %603 {offsets = [0, 32], sizes = [1, 32], strides = [1, 1]} : vector<1x64xf32> to vector<1x32xf32>
    %639 = vector.extract_strided_slice %606 {offsets = [0, 32], sizes = [1, 32], strides = [1, 1]} : vector<1x64xf32> to vector<1x32xf32>
    %640 = arith.addf %638, %639 : vector<1x32xf32>
    %641 = arith.addf %640, %32 : vector<1x32xf32>
    %642 = arith.negf %641 : vector<1x32xf32>
    %643 = math.exp %642 : vector<1x32xf32>
    %cst_146 = arith.constant 1.000000e+00 : f32
    %644 = vector.broadcast %cst_146 : f32 to vector<1x32xf32>
    %645 = arith.addf %644, %643 : vector<1x32xf32>
    %646 = arith.divf %644, %645 : vector<1x32xf32>
    %647 = math.tanh %637 : vector<1x32xf32>
    %648 = arith.mulf %646, %647 : vector<1x32xf32>
    %c1_i32_147 = arith.constant 1 : i32
    %649 = tpu.dynamic_rotate %594 by %c1_i32_147 dim 0 : vector<8x32xf32>, i32 -> vector<8x32xf32>
    %650 = vector.broadcast %11 : vector<8x1xf32> to vector<8x32xf32>
    %651 = arith.mulf %649, %650 : vector<8x32xf32>
    %c7_i32_148 = arith.constant 7 : i32
    %652 = tpu.dynamic_rotate %594 by %c7_i32_148 dim 0 : vector<8x32xf32>, i32 -> vector<8x32xf32>
    %653 = vector.broadcast %16 : vector<8x1xf32> to vector<8x32xf32>
    %654 = arith.mulf %652, %653 : vector<8x32xf32>
    %655 = vector.shape_cast %499 : vector<1x32xf32> to vector<1x1x32xf32>
    %656 = vector.shape_cast %655 : vector<1x1x32xf32> to vector<1x1x32xf32>
    %657 = vector.broadcast %656 : vector<1x1x32xf32> to vector<1x8x32xf32>
    %658 = vector.shape_cast %657 : vector<1x8x32xf32> to vector<8x32xf32>
    %c1_i32_149 = arith.constant 1 : i32
    %659 = tpu.dynamic_rotate %592 by %c1_i32_149 dim 0 : vector<8x32xf32>, i32 -> vector<8x32xf32>
    %660 = vector.broadcast %11 : vector<8x1xf32> to vector<8x32xf32>
    %661 = arith.mulf %659, %660 : vector<8x32xf32>
    %c7_i32_150 = arith.constant 7 : i32
    %662 = tpu.dynamic_rotate %592 by %c7_i32_150 dim 0 : vector<8x32xf32>, i32 -> vector<8x32xf32>
    %663 = vector.broadcast %16 : vector<8x1xf32> to vector<8x32xf32>
    %664 = arith.mulf %662, %663 : vector<8x32xf32>
    %665 = tpu.concatenate %661, %592, %664, %38 in 1 : vector<8x32xf32>, vector<8x32xf32>, vector<8x32xf32>, vector<8x32xf32> -> vector<8x128xf32>
    %666 = arith.truncf %665 : vector<8x128xf32> to vector<8x128xbf16>
    %c0_151 = arith.constant 0 : index
    %c0_152 = arith.constant 0 : index
    %667 = vector.load %arg10[%c0_151, %c0_152] : memref<32x192xbf16, #tpu.memory_space<vmem>>, vector<32x192xbf16>
    %cst_153 = arith.constant dense<0.000000e+00> : vector<1x192xf32>
    %668 = tpu.matmul %596, %667, %cst_153 {dimension_numbers = #tpu.dot_dimension_numbers<[1], [0], [0], [1], [0, 0, 1, 1], [], []>} : vector<1x32xbf16>, vector<32x192xbf16>, vector<1x192xf32> -> vector<1x192xf32>
    %c0_154 = arith.constant 0 : index
    %c0_155 = arith.constant 0 : index
    %669 = vector.load %arg9[%c0_154, %c0_155] : memref<128x192xbf16, #tpu.memory_space<vmem>>, vector<128x192xbf16>
    %cst_156 = arith.constant dense<0.000000e+00> : vector<8x192xf32>
    %670 = tpu.matmul %666, %669, %cst_156 {dimension_numbers = #tpu.dot_dimension_numbers<[1], [0], [0], [1], [0, 0, 1, 1], [], []>} : vector<8x128xbf16>, vector<128x192xbf16>, vector<8x192xf32> -> vector<8x192xf32>
    %671 = vector.shape_cast %668 : vector<1x192xf32> to vector<1x1x192xf32>
    %672 = vector.shape_cast %671 : vector<1x1x192xf32> to vector<1x1x192xf32>
    %673 = vector.broadcast %672 : vector<1x1x192xf32> to vector<1x8x192xf32>
    %674 = vector.shape_cast %673 : vector<1x8x192xf32> to vector<8x192xf32>
    %675 = arith.addf %670, %674 : vector<8x192xf32>
    %676 = vector.broadcast %33 : vector<1x192xf32> to vector<8x192xf32>
    %677 = arith.addf %675, %676 : vector<8x192xf32>
    %678 = vector.extract_strided_slice %677 {offsets = [0, 0], sizes = [8, 32], strides = [1, 1]} : vector<8x192xf32> to vector<8x32xf32>
    %679 = arith.negf %678 : vector<8x32xf32>
    %680 = math.exp %679 : vector<8x32xf32>
    %cst_157 = arith.constant 1.000000e+00 : f32
    %681 = vector.broadcast %cst_157 : f32 to vector<8x32xf32>
    %682 = arith.addf %681, %680 : vector<8x32xf32>
    %683 = arith.divf %681, %682 : vector<8x32xf32>
    %684 = vector.extract_strided_slice %677 {offsets = [0, 32], sizes = [8, 32], strides = [1, 1]} : vector<8x192xf32> to vector<8x32xf32>
    %685 = vector.extract_strided_slice %677 {offsets = [0, 64], sizes = [8, 32], strides = [1, 1]} : vector<8x192xf32> to vector<8x32xf32>
    %686 = arith.maximumf %684, %685 : vector<8x32xf32>
    %687 = vector.extract_strided_slice %677 {offsets = [0, 96], sizes = [8, 32], strides = [1, 1]} : vector<8x192xf32> to vector<8x32xf32>
    %688 = arith.maximumf %686, %687 : vector<8x32xf32>
    %689 = vector.extract_strided_slice %677 {offsets = [0, 128], sizes = [8, 32], strides = [1, 1]} : vector<8x192xf32> to vector<8x32xf32>
    %690 = arith.maximumf %688, %689 : vector<8x32xf32>
    %691 = vector.extract_strided_slice %677 {offsets = [0, 160], sizes = [8, 32], strides = [1, 1]} : vector<8x192xf32> to vector<8x32xf32>
    %692 = arith.maximumf %690, %691 : vector<8x32xf32>
    %cst_158 = arith.constant 0.000000e+00 : f32
    %693 = vector.broadcast %cst_158 : f32 to vector<8x32xf32>
    %cst_159 = arith.constant 0.000000e+00 : f32
    %694 = vector.broadcast %cst_159 : f32 to vector<8x32xf32>
    %695 = vector.extract_strided_slice %677 {offsets = [0, 32], sizes = [8, 32], strides = [1, 1]} : vector<8x192xf32> to vector<8x32xf32>
    %696 = arith.subf %695, %692 : vector<8x32xf32>
    %697 = math.exp %696 : vector<8x32xf32>
    %698 = arith.mulf %697, %651 : vector<8x32xf32>
    %699 = arith.addf %693, %698 : vector<8x32xf32>
    %700 = arith.addf %694, %697 : vector<8x32xf32>
    %701 = vector.extract_strided_slice %677 {offsets = [0, 64], sizes = [8, 32], strides = [1, 1]} : vector<8x192xf32> to vector<8x32xf32>
    %702 = arith.subf %701, %692 : vector<8x32xf32>
    %703 = math.exp %702 : vector<8x32xf32>
    %704 = arith.mulf %703, %594 : vector<8x32xf32>
    %705 = arith.addf %699, %704 : vector<8x32xf32>
    %706 = arith.addf %700, %703 : vector<8x32xf32>
    %707 = vector.extract_strided_slice %677 {offsets = [0, 96], sizes = [8, 32], strides = [1, 1]} : vector<8x192xf32> to vector<8x32xf32>
    %708 = arith.subf %707, %692 : vector<8x32xf32>
    %709 = math.exp %708 : vector<8x32xf32>
    %710 = arith.mulf %709, %654 : vector<8x32xf32>
    %711 = arith.addf %705, %710 : vector<8x32xf32>
    %712 = arith.addf %706, %709 : vector<8x32xf32>
    %713 = vector.extract_strided_slice %677 {offsets = [0, 128], sizes = [8, 32], strides = [1, 1]} : vector<8x192xf32> to vector<8x32xf32>
    %714 = arith.subf %713, %692 : vector<8x32xf32>
    %715 = math.exp %714 : vector<8x32xf32>
    %716 = arith.mulf %715, %658 : vector<8x32xf32>
    %717 = arith.addf %711, %716 : vector<8x32xf32>
    %718 = arith.addf %712, %715 : vector<8x32xf32>
    %719 = vector.extract_strided_slice %677 {offsets = [0, 160], sizes = [8, 32], strides = [1, 1]} : vector<8x192xf32> to vector<8x32xf32>
    %720 = arith.subf %719, %692 : vector<8x32xf32>
    %721 = math.exp %720 : vector<8x32xf32>
    %722 = arith.mulf %721, %38 : vector<8x32xf32>
    %723 = arith.addf %717, %722 : vector<8x32xf32>
    %724 = arith.addf %718, %721 : vector<8x32xf32>
    %725 = tpu.reciprocal %724 {approx = true} : vector<8x32xf32> -> vector<8x32xf32>
    %726 = arith.mulf %723, %725 : vector<8x32xf32>
    %727 = math.tanh %726 : vector<8x32xf32>
    %728 = arith.mulf %683, %727 : vector<8x32xf32>
    %729 = vector.broadcast %1 : vector<8x1xf32> to vector<8x32xf32>
    %730 = arith.mulf %729, %728 : vector<8x32xf32>
    %731 = vector.broadcast %1 : vector<8x1xf32> to vector<8x32xf32>
    %732 = arith.mulf %731, %726 : vector<8x32xf32>
    %733 = arith.truncf %730 : vector<8x32xf32> to vector<8x32xbf16>
    %734 = arith.truncf %648 : vector<1x32xf32> to vector<1x32xbf16>
    %735 = vector.shape_cast %730 : vector<8x32xf32> to vector<1x8x32xf32>
    %736 = vector.shape_cast %732 : vector<8x32xf32> to vector<1x8x32xf32>
    %cst_160 = arith.constant dense<0.000000e+00> : vector<1x32xf32>
    %737 = vector.multi_reduction <add>, %735, %cst_160 [1] : vector<1x8x32xf32> to vector<1x32xf32>
    %738 = vector.broadcast %4 : vector<1x1xf32> to vector<1x32xf32>
    %739 = arith.mulf %737, %738 : vector<1x32xf32>
    %c0_161 = arith.constant 0 : index
    %c0_162 = arith.constant 0 : index
    %740 = vector.load %arg5[%c0_161, %c0_162] : memref<32x64xbf16, #tpu.memory_space<vmem>>, vector<32x64xbf16>
    %cst_163 = arith.constant dense<0.000000e+00> : vector<1x64xf32>
    %741 = tpu.matmul %734, %740, %cst_163 {dimension_numbers = #tpu.dot_dimension_numbers<[1], [0], [0], [1], [0, 0, 1, 1], [], []>} : vector<1x32xbf16>, vector<32x64xbf16>, vector<1x64xf32> -> vector<1x64xf32>
    %742 = arith.truncf %739 : vector<1x32xf32> to vector<1x32xbf16>
    %c0_164 = arith.constant 0 : index
    %c0_165 = arith.constant 0 : index
    %743 = vector.load %arg6[%c0_164, %c0_165] : memref<32x64xbf16, #tpu.memory_space<vmem>>, vector<32x64xbf16>
    %cst_166 = arith.constant dense<0.000000e+00> : vector<1x64xf32>
    %744 = tpu.matmul %742, %743, %cst_166 {dimension_numbers = #tpu.dot_dimension_numbers<[1], [0], [0], [1], [0, 0, 1, 1], [], []>} : vector<1x32xbf16>, vector<32x64xbf16>, vector<1x64xf32> -> vector<1x64xf32>
    %745 = vector.extract_strided_slice %741 {offsets = [0, 0], sizes = [1, 32], strides = [1, 1]} : vector<1x64xf32> to vector<1x32xf32>
    %c0_167 = arith.constant 0 : index
    %c0_168 = arith.constant 0 : index
    %746 = vector.load %arg6[%c0_167, %c0_168] : memref<32x64xbf16, #tpu.memory_space<vmem>>, vector<32x32xbf16>
    %cst_169 = arith.constant dense<0.000000e+00> : vector<8x32xf32>
    %747 = tpu.matmul %733, %746, %cst_169 {dimension_numbers = #tpu.dot_dimension_numbers<[1], [0], [0], [1], [0, 0, 1, 1], [], []>} : vector<8x32xbf16>, vector<32x32xbf16>, vector<8x32xf32> -> vector<8x32xf32>
    %748 = vector.shape_cast %747 : vector<8x32xf32> to vector<1x8x32xf32>
    %749 = arith.addf %745, %31 : vector<1x32xf32>
    %750 = vector.shape_cast %749 : vector<1x32xf32> to vector<1x1x32xf32>
    %751 = vector.broadcast %750 : vector<1x1x32xf32> to vector<1x8x32xf32>
    %752 = arith.addf %748, %751 : vector<1x8x32xf32>
    %753 = vector.broadcast %23 : vector<1x8x1xf32> to vector<1x8x32xf32>
    %754 = arith.addf %752, %753 : vector<1x8x32xf32>
    %755 = vector.extract_strided_slice %744 {offsets = [0, 0], sizes = [1, 32], strides = [1, 1]} : vector<1x64xf32> to vector<1x32xf32>
    %756 = arith.addf %745, %755 : vector<1x32xf32>
    %757 = arith.addf %756, %31 : vector<1x32xf32>
    %758 = vector.broadcast %29 : vector<1x1xf32> to vector<1x32xf32>
    %759 = arith.addf %757, %758 : vector<1x32xf32>
    %cst_170 = arith.constant dense<0xFF800000> : vector<1x32xf32>
    %760 = vector.multi_reduction <maximumf>, %754, %cst_170 [1] : vector<1x8x32xf32> to vector<1x32xf32>
    %761 = arith.maximumf %760, %759 : vector<1x32xf32>
    %762 = vector.shape_cast %761 : vector<1x32xf32> to vector<1x1x32xf32>
    %763 = vector.broadcast %762 : vector<1x1x32xf32> to vector<1x8x32xf32>
    %764 = arith.subf %754, %763 : vector<1x8x32xf32>
    %765 = math.exp %764 : vector<1x8x32xf32>
    %766 = arith.subf %759, %761 : vector<1x32xf32>
    %767 = math.exp %766 : vector<1x32xf32>
    %cst_171 = arith.constant dense<0.000000e+00> : vector<1x32xf32>
    %768 = vector.multi_reduction <add>, %765, %cst_171 [1] : vector<1x8x32xf32> to vector<1x32xf32>
    %769 = arith.addf %768, %767 : vector<1x32xf32>
    %770 = arith.mulf %765, %736 : vector<1x8x32xf32>
    %cst_172 = arith.constant dense<0.000000e+00> : vector<1x32xf32>
    %771 = vector.multi_reduction <add>, %770, %cst_172 [1] : vector<1x8x32xf32> to vector<1x32xf32>
    %772 = arith.mulf %767, %637 : vector<1x32xf32>
    %773 = arith.addf %771, %772 : vector<1x32xf32>
    %774 = tpu.reciprocal %769 {approx = true} : vector<1x32xf32> -> vector<1x32xf32>
    %775 = arith.mulf %773, %774 : vector<1x32xf32>
    %776 = vector.extract_strided_slice %741 {offsets = [0, 32], sizes = [1, 32], strides = [1, 1]} : vector<1x64xf32> to vector<1x32xf32>
    %777 = vector.extract_strided_slice %744 {offsets = [0, 32], sizes = [1, 32], strides = [1, 1]} : vector<1x64xf32> to vector<1x32xf32>
    %778 = arith.addf %776, %777 : vector<1x32xf32>
    %779 = arith.addf %778, %32 : vector<1x32xf32>
    %780 = arith.negf %779 : vector<1x32xf32>
    %781 = math.exp %780 : vector<1x32xf32>
    %cst_173 = arith.constant 1.000000e+00 : f32
    %782 = vector.broadcast %cst_173 : f32 to vector<1x32xf32>
    %783 = arith.addf %782, %781 : vector<1x32xf32>
    %784 = arith.divf %782, %783 : vector<1x32xf32>
    %785 = math.tanh %775 : vector<1x32xf32>
    %786 = arith.mulf %784, %785 : vector<1x32xf32>
    %c1_i32_174 = arith.constant 1 : i32
    %787 = tpu.dynamic_rotate %732 by %c1_i32_174 dim 0 : vector<8x32xf32>, i32 -> vector<8x32xf32>
    %788 = vector.broadcast %11 : vector<8x1xf32> to vector<8x32xf32>
    %789 = arith.mulf %787, %788 : vector<8x32xf32>
    %c7_i32_175 = arith.constant 7 : i32
    %790 = tpu.dynamic_rotate %732 by %c7_i32_175 dim 0 : vector<8x32xf32>, i32 -> vector<8x32xf32>
    %791 = vector.broadcast %16 : vector<8x1xf32> to vector<8x32xf32>
    %792 = arith.mulf %790, %791 : vector<8x32xf32>
    %793 = vector.shape_cast %637 : vector<1x32xf32> to vector<1x1x32xf32>
    %794 = vector.shape_cast %793 : vector<1x1x32xf32> to vector<1x1x32xf32>
    %795 = vector.broadcast %794 : vector<1x1x32xf32> to vector<1x8x32xf32>
    %796 = vector.shape_cast %795 : vector<1x8x32xf32> to vector<8x32xf32>
    %c1_i32_176 = arith.constant 1 : i32
    %797 = tpu.dynamic_rotate %730 by %c1_i32_176 dim 0 : vector<8x32xf32>, i32 -> vector<8x32xf32>
    %798 = vector.broadcast %11 : vector<8x1xf32> to vector<8x32xf32>
    %799 = arith.mulf %797, %798 : vector<8x32xf32>
    %c7_i32_177 = arith.constant 7 : i32
    %800 = tpu.dynamic_rotate %730 by %c7_i32_177 dim 0 : vector<8x32xf32>, i32 -> vector<8x32xf32>
    %801 = vector.broadcast %16 : vector<8x1xf32> to vector<8x32xf32>
    %802 = arith.mulf %800, %801 : vector<8x32xf32>
    %803 = tpu.concatenate %799, %730, %802, %38 in 1 : vector<8x32xf32>, vector<8x32xf32>, vector<8x32xf32>, vector<8x32xf32> -> vector<8x128xf32>
    %804 = arith.truncf %803 : vector<8x128xf32> to vector<8x128xbf16>
    %c0_178 = arith.constant 0 : index
    %c0_179 = arith.constant 0 : index
    %805 = vector.load %arg10[%c0_178, %c0_179] : memref<32x192xbf16, #tpu.memory_space<vmem>>, vector<32x192xbf16>
    %cst_180 = arith.constant dense<0.000000e+00> : vector<1x192xf32>
    %806 = tpu.matmul %734, %805, %cst_180 {dimension_numbers = #tpu.dot_dimension_numbers<[1], [0], [0], [1], [0, 0, 1, 1], [], []>} : vector<1x32xbf16>, vector<32x192xbf16>, vector<1x192xf32> -> vector<1x192xf32>
    %c0_181 = arith.constant 0 : index
    %c0_182 = arith.constant 0 : index
    %807 = vector.load %arg9[%c0_181, %c0_182] : memref<128x192xbf16, #tpu.memory_space<vmem>>, vector<128x192xbf16>
    %cst_183 = arith.constant dense<0.000000e+00> : vector<8x192xf32>
    %808 = tpu.matmul %804, %807, %cst_183 {dimension_numbers = #tpu.dot_dimension_numbers<[1], [0], [0], [1], [0, 0, 1, 1], [], []>} : vector<8x128xbf16>, vector<128x192xbf16>, vector<8x192xf32> -> vector<8x192xf32>
    %809 = vector.shape_cast %806 : vector<1x192xf32> to vector<1x1x192xf32>
    %810 = vector.shape_cast %809 : vector<1x1x192xf32> to vector<1x1x192xf32>
    %811 = vector.broadcast %810 : vector<1x1x192xf32> to vector<1x8x192xf32>
    %812 = vector.shape_cast %811 : vector<1x8x192xf32> to vector<8x192xf32>
    %813 = arith.addf %808, %812 : vector<8x192xf32>
    %814 = vector.broadcast %33 : vector<1x192xf32> to vector<8x192xf32>
    %815 = arith.addf %813, %814 : vector<8x192xf32>
    %816 = vector.extract_strided_slice %815 {offsets = [0, 0], sizes = [8, 32], strides = [1, 1]} : vector<8x192xf32> to vector<8x32xf32>
    %817 = arith.negf %816 : vector<8x32xf32>
    %818 = math.exp %817 : vector<8x32xf32>
    %cst_184 = arith.constant 1.000000e+00 : f32
    %819 = vector.broadcast %cst_184 : f32 to vector<8x32xf32>
    %820 = arith.addf %819, %818 : vector<8x32xf32>
    %821 = arith.divf %819, %820 : vector<8x32xf32>
    %822 = vector.extract_strided_slice %815 {offsets = [0, 32], sizes = [8, 32], strides = [1, 1]} : vector<8x192xf32> to vector<8x32xf32>
    %823 = vector.extract_strided_slice %815 {offsets = [0, 64], sizes = [8, 32], strides = [1, 1]} : vector<8x192xf32> to vector<8x32xf32>
    %824 = arith.maximumf %822, %823 : vector<8x32xf32>
    %825 = vector.extract_strided_slice %815 {offsets = [0, 96], sizes = [8, 32], strides = [1, 1]} : vector<8x192xf32> to vector<8x32xf32>
    %826 = arith.maximumf %824, %825 : vector<8x32xf32>
    %827 = vector.extract_strided_slice %815 {offsets = [0, 128], sizes = [8, 32], strides = [1, 1]} : vector<8x192xf32> to vector<8x32xf32>
    %828 = arith.maximumf %826, %827 : vector<8x32xf32>
    %829 = vector.extract_strided_slice %815 {offsets = [0, 160], sizes = [8, 32], strides = [1, 1]} : vector<8x192xf32> to vector<8x32xf32>
    %830 = arith.maximumf %828, %829 : vector<8x32xf32>
    %cst_185 = arith.constant 0.000000e+00 : f32
    %831 = vector.broadcast %cst_185 : f32 to vector<8x32xf32>
    %cst_186 = arith.constant 0.000000e+00 : f32
    %832 = vector.broadcast %cst_186 : f32 to vector<8x32xf32>
    %833 = vector.extract_strided_slice %815 {offsets = [0, 32], sizes = [8, 32], strides = [1, 1]} : vector<8x192xf32> to vector<8x32xf32>
    %834 = arith.subf %833, %830 : vector<8x32xf32>
    %835 = math.exp %834 : vector<8x32xf32>
    %836 = arith.mulf %835, %789 : vector<8x32xf32>
    %837 = arith.addf %831, %836 : vector<8x32xf32>
    %838 = arith.addf %832, %835 : vector<8x32xf32>
    %839 = vector.extract_strided_slice %815 {offsets = [0, 64], sizes = [8, 32], strides = [1, 1]} : vector<8x192xf32> to vector<8x32xf32>
    %840 = arith.subf %839, %830 : vector<8x32xf32>
    %841 = math.exp %840 : vector<8x32xf32>
    %842 = arith.mulf %841, %732 : vector<8x32xf32>
    %843 = arith.addf %837, %842 : vector<8x32xf32>
    %844 = arith.addf %838, %841 : vector<8x32xf32>
    %845 = vector.extract_strided_slice %815 {offsets = [0, 96], sizes = [8, 32], strides = [1, 1]} : vector<8x192xf32> to vector<8x32xf32>
    %846 = arith.subf %845, %830 : vector<8x32xf32>
    %847 = math.exp %846 : vector<8x32xf32>
    %848 = arith.mulf %847, %792 : vector<8x32xf32>
    %849 = arith.addf %843, %848 : vector<8x32xf32>
    %850 = arith.addf %844, %847 : vector<8x32xf32>
    %851 = vector.extract_strided_slice %815 {offsets = [0, 128], sizes = [8, 32], strides = [1, 1]} : vector<8x192xf32> to vector<8x32xf32>
    %852 = arith.subf %851, %830 : vector<8x32xf32>
    %853 = math.exp %852 : vector<8x32xf32>
    %854 = arith.mulf %853, %796 : vector<8x32xf32>
    %855 = arith.addf %849, %854 : vector<8x32xf32>
    %856 = arith.addf %850, %853 : vector<8x32xf32>
    %857 = vector.extract_strided_slice %815 {offsets = [0, 160], sizes = [8, 32], strides = [1, 1]} : vector<8x192xf32> to vector<8x32xf32>
    %858 = arith.subf %857, %830 : vector<8x32xf32>
    %859 = math.exp %858 : vector<8x32xf32>
    %860 = arith.mulf %859, %38 : vector<8x32xf32>
    %861 = arith.addf %855, %860 : vector<8x32xf32>
    %862 = arith.addf %856, %859 : vector<8x32xf32>
    %863 = tpu.reciprocal %862 {approx = true} : vector<8x32xf32> -> vector<8x32xf32>
    %864 = arith.mulf %861, %863 : vector<8x32xf32>
    %865 = math.tanh %864 : vector<8x32xf32>
    %866 = arith.mulf %821, %865 : vector<8x32xf32>
    %867 = vector.broadcast %1 : vector<8x1xf32> to vector<8x32xf32>
    %868 = arith.mulf %867, %866 : vector<8x32xf32>
    %869 = vector.broadcast %1 : vector<8x1xf32> to vector<8x32xf32>
    %870 = arith.mulf %869, %864 : vector<8x32xf32>
    %871 = arith.truncf %868 : vector<8x32xf32> to vector<8x32xbf16>
    %872 = arith.truncf %786 : vector<1x32xf32> to vector<1x32xbf16>
    %873 = vector.shape_cast %868 : vector<8x32xf32> to vector<1x8x32xf32>
    %874 = vector.shape_cast %870 : vector<8x32xf32> to vector<1x8x32xf32>
    %cst_187 = arith.constant dense<0.000000e+00> : vector<1x32xf32>
    %875 = vector.multi_reduction <add>, %873, %cst_187 [1] : vector<1x8x32xf32> to vector<1x32xf32>
    %876 = vector.broadcast %4 : vector<1x1xf32> to vector<1x32xf32>
    %877 = arith.mulf %875, %876 : vector<1x32xf32>
    %c0_188 = arith.constant 0 : index
    %c0_189 = arith.constant 0 : index
    %878 = vector.load %arg5[%c0_188, %c0_189] : memref<32x64xbf16, #tpu.memory_space<vmem>>, vector<32x64xbf16>
    %cst_190 = arith.constant dense<0.000000e+00> : vector<1x64xf32>
    %879 = tpu.matmul %872, %878, %cst_190 {dimension_numbers = #tpu.dot_dimension_numbers<[1], [0], [0], [1], [0, 0, 1, 1], [], []>} : vector<1x32xbf16>, vector<32x64xbf16>, vector<1x64xf32> -> vector<1x64xf32>
    %880 = arith.truncf %877 : vector<1x32xf32> to vector<1x32xbf16>
    %c0_191 = arith.constant 0 : index
    %c0_192 = arith.constant 0 : index
    %881 = vector.load %arg6[%c0_191, %c0_192] : memref<32x64xbf16, #tpu.memory_space<vmem>>, vector<32x64xbf16>
    %cst_193 = arith.constant dense<0.000000e+00> : vector<1x64xf32>
    %882 = tpu.matmul %880, %881, %cst_193 {dimension_numbers = #tpu.dot_dimension_numbers<[1], [0], [0], [1], [0, 0, 1, 1], [], []>} : vector<1x32xbf16>, vector<32x64xbf16>, vector<1x64xf32> -> vector<1x64xf32>
    %883 = vector.extract_strided_slice %879 {offsets = [0, 0], sizes = [1, 32], strides = [1, 1]} : vector<1x64xf32> to vector<1x32xf32>
    %c0_194 = arith.constant 0 : index
    %c0_195 = arith.constant 0 : index
    %884 = vector.load %arg6[%c0_194, %c0_195] : memref<32x64xbf16, #tpu.memory_space<vmem>>, vector<32x32xbf16>
    %cst_196 = arith.constant dense<0.000000e+00> : vector<8x32xf32>
    %885 = tpu.matmul %871, %884, %cst_196 {dimension_numbers = #tpu.dot_dimension_numbers<[1], [0], [0], [1], [0, 0, 1, 1], [], []>} : vector<8x32xbf16>, vector<32x32xbf16>, vector<8x32xf32> -> vector<8x32xf32>
    %886 = vector.shape_cast %885 : vector<8x32xf32> to vector<1x8x32xf32>
    %887 = arith.addf %883, %31 : vector<1x32xf32>
    %888 = vector.shape_cast %887 : vector<1x32xf32> to vector<1x1x32xf32>
    %889 = vector.broadcast %888 : vector<1x1x32xf32> to vector<1x8x32xf32>
    %890 = arith.addf %886, %889 : vector<1x8x32xf32>
    %891 = vector.broadcast %23 : vector<1x8x1xf32> to vector<1x8x32xf32>
    %892 = arith.addf %890, %891 : vector<1x8x32xf32>
    %893 = vector.extract_strided_slice %882 {offsets = [0, 0], sizes = [1, 32], strides = [1, 1]} : vector<1x64xf32> to vector<1x32xf32>
    %894 = arith.addf %883, %893 : vector<1x32xf32>
    %895 = arith.addf %894, %31 : vector<1x32xf32>
    %896 = vector.broadcast %29 : vector<1x1xf32> to vector<1x32xf32>
    %897 = arith.addf %895, %896 : vector<1x32xf32>
    %cst_197 = arith.constant dense<0xFF800000> : vector<1x32xf32>
    %898 = vector.multi_reduction <maximumf>, %892, %cst_197 [1] : vector<1x8x32xf32> to vector<1x32xf32>
    %899 = arith.maximumf %898, %897 : vector<1x32xf32>
    %900 = vector.shape_cast %899 : vector<1x32xf32> to vector<1x1x32xf32>
    %901 = vector.broadcast %900 : vector<1x1x32xf32> to vector<1x8x32xf32>
    %902 = arith.subf %892, %901 : vector<1x8x32xf32>
    %903 = math.exp %902 : vector<1x8x32xf32>
    %904 = arith.subf %897, %899 : vector<1x32xf32>
    %905 = math.exp %904 : vector<1x32xf32>
    %cst_198 = arith.constant dense<0.000000e+00> : vector<1x32xf32>
    %906 = vector.multi_reduction <add>, %903, %cst_198 [1] : vector<1x8x32xf32> to vector<1x32xf32>
    %907 = arith.addf %906, %905 : vector<1x32xf32>
    %908 = arith.mulf %903, %874 : vector<1x8x32xf32>
    %cst_199 = arith.constant dense<0.000000e+00> : vector<1x32xf32>
    %909 = vector.multi_reduction <add>, %908, %cst_199 [1] : vector<1x8x32xf32> to vector<1x32xf32>
    %910 = arith.mulf %905, %775 : vector<1x32xf32>
    %911 = arith.addf %909, %910 : vector<1x32xf32>
    %912 = tpu.reciprocal %907 {approx = true} : vector<1x32xf32> -> vector<1x32xf32>
    %913 = arith.mulf %911, %912 : vector<1x32xf32>
    %914 = vector.extract_strided_slice %879 {offsets = [0, 32], sizes = [1, 32], strides = [1, 1]} : vector<1x64xf32> to vector<1x32xf32>
    %915 = vector.extract_strided_slice %882 {offsets = [0, 32], sizes = [1, 32], strides = [1, 1]} : vector<1x64xf32> to vector<1x32xf32>
    %916 = arith.addf %914, %915 : vector<1x32xf32>
    %917 = arith.addf %916, %32 : vector<1x32xf32>
    %918 = arith.negf %917 : vector<1x32xf32>
    %919 = math.exp %918 : vector<1x32xf32>
    %cst_200 = arith.constant 1.000000e+00 : f32
    %920 = vector.broadcast %cst_200 : f32 to vector<1x32xf32>
    %921 = arith.addf %920, %919 : vector<1x32xf32>
    %922 = arith.divf %920, %921 : vector<1x32xf32>
    %923 = math.tanh %913 : vector<1x32xf32>
    %924 = arith.mulf %922, %923 : vector<1x32xf32>
    %c1_i32_201 = arith.constant 1 : i32
    %925 = tpu.dynamic_rotate %870 by %c1_i32_201 dim 0 : vector<8x32xf32>, i32 -> vector<8x32xf32>
    %926 = vector.broadcast %11 : vector<8x1xf32> to vector<8x32xf32>
    %927 = arith.mulf %925, %926 : vector<8x32xf32>
    %c7_i32_202 = arith.constant 7 : i32
    %928 = tpu.dynamic_rotate %870 by %c7_i32_202 dim 0 : vector<8x32xf32>, i32 -> vector<8x32xf32>
    %929 = vector.broadcast %16 : vector<8x1xf32> to vector<8x32xf32>
    %930 = arith.mulf %928, %929 : vector<8x32xf32>
    %931 = vector.shape_cast %775 : vector<1x32xf32> to vector<1x1x32xf32>
    %932 = vector.shape_cast %931 : vector<1x1x32xf32> to vector<1x1x32xf32>
    %933 = vector.broadcast %932 : vector<1x1x32xf32> to vector<1x8x32xf32>
    %934 = vector.shape_cast %933 : vector<1x8x32xf32> to vector<8x32xf32>
    %c1_i32_203 = arith.constant 1 : i32
    %935 = tpu.dynamic_rotate %868 by %c1_i32_203 dim 0 : vector<8x32xf32>, i32 -> vector<8x32xf32>
    %936 = vector.broadcast %11 : vector<8x1xf32> to vector<8x32xf32>
    %937 = arith.mulf %935, %936 : vector<8x32xf32>
    %c7_i32_204 = arith.constant 7 : i32
    %938 = tpu.dynamic_rotate %868 by %c7_i32_204 dim 0 : vector<8x32xf32>, i32 -> vector<8x32xf32>
    %939 = vector.broadcast %16 : vector<8x1xf32> to vector<8x32xf32>
    %940 = arith.mulf %938, %939 : vector<8x32xf32>
    %941 = tpu.concatenate %937, %868, %940, %38 in 1 : vector<8x32xf32>, vector<8x32xf32>, vector<8x32xf32>, vector<8x32xf32> -> vector<8x128xf32>
    %942 = arith.truncf %941 : vector<8x128xf32> to vector<8x128xbf16>
    %c0_205 = arith.constant 0 : index
    %c0_206 = arith.constant 0 : index
    %943 = vector.load %arg10[%c0_205, %c0_206] : memref<32x192xbf16, #tpu.memory_space<vmem>>, vector<32x192xbf16>
    %cst_207 = arith.constant dense<0.000000e+00> : vector<1x192xf32>
    %944 = tpu.matmul %872, %943, %cst_207 {dimension_numbers = #tpu.dot_dimension_numbers<[1], [0], [0], [1], [0, 0, 1, 1], [], []>} : vector<1x32xbf16>, vector<32x192xbf16>, vector<1x192xf32> -> vector<1x192xf32>
    %c0_208 = arith.constant 0 : index
    %c0_209 = arith.constant 0 : index
    %945 = vector.load %arg9[%c0_208, %c0_209] : memref<128x192xbf16, #tpu.memory_space<vmem>>, vector<128x192xbf16>
    %cst_210 = arith.constant dense<0.000000e+00> : vector<8x192xf32>
    %946 = tpu.matmul %942, %945, %cst_210 {dimension_numbers = #tpu.dot_dimension_numbers<[1], [0], [0], [1], [0, 0, 1, 1], [], []>} : vector<8x128xbf16>, vector<128x192xbf16>, vector<8x192xf32> -> vector<8x192xf32>
    %947 = vector.shape_cast %944 : vector<1x192xf32> to vector<1x1x192xf32>
    %948 = vector.shape_cast %947 : vector<1x1x192xf32> to vector<1x1x192xf32>
    %949 = vector.broadcast %948 : vector<1x1x192xf32> to vector<1x8x192xf32>
    %950 = vector.shape_cast %949 : vector<1x8x192xf32> to vector<8x192xf32>
    %951 = arith.addf %946, %950 : vector<8x192xf32>
    %952 = vector.broadcast %33 : vector<1x192xf32> to vector<8x192xf32>
    %953 = arith.addf %951, %952 : vector<8x192xf32>
    %954 = vector.extract_strided_slice %953 {offsets = [0, 0], sizes = [8, 32], strides = [1, 1]} : vector<8x192xf32> to vector<8x32xf32>
    %955 = arith.negf %954 : vector<8x32xf32>
    %956 = math.exp %955 : vector<8x32xf32>
    %cst_211 = arith.constant 1.000000e+00 : f32
    %957 = vector.broadcast %cst_211 : f32 to vector<8x32xf32>
    %958 = arith.addf %957, %956 : vector<8x32xf32>
    %959 = arith.divf %957, %958 : vector<8x32xf32>
    %960 = vector.extract_strided_slice %953 {offsets = [0, 32], sizes = [8, 32], strides = [1, 1]} : vector<8x192xf32> to vector<8x32xf32>
    %961 = vector.extract_strided_slice %953 {offsets = [0, 64], sizes = [8, 32], strides = [1, 1]} : vector<8x192xf32> to vector<8x32xf32>
    %962 = arith.maximumf %960, %961 : vector<8x32xf32>
    %963 = vector.extract_strided_slice %953 {offsets = [0, 96], sizes = [8, 32], strides = [1, 1]} : vector<8x192xf32> to vector<8x32xf32>
    %964 = arith.maximumf %962, %963 : vector<8x32xf32>
    %965 = vector.extract_strided_slice %953 {offsets = [0, 128], sizes = [8, 32], strides = [1, 1]} : vector<8x192xf32> to vector<8x32xf32>
    %966 = arith.maximumf %964, %965 : vector<8x32xf32>
    %967 = vector.extract_strided_slice %953 {offsets = [0, 160], sizes = [8, 32], strides = [1, 1]} : vector<8x192xf32> to vector<8x32xf32>
    %968 = arith.maximumf %966, %967 : vector<8x32xf32>
    %cst_212 = arith.constant 0.000000e+00 : f32
    %969 = vector.broadcast %cst_212 : f32 to vector<8x32xf32>
    %cst_213 = arith.constant 0.000000e+00 : f32
    %970 = vector.broadcast %cst_213 : f32 to vector<8x32xf32>
    %971 = vector.extract_strided_slice %953 {offsets = [0, 32], sizes = [8, 32], strides = [1, 1]} : vector<8x192xf32> to vector<8x32xf32>
    %972 = arith.subf %971, %968 : vector<8x32xf32>
    %973 = math.exp %972 : vector<8x32xf32>
    %974 = arith.mulf %973, %927 : vector<8x32xf32>
    %975 = arith.addf %969, %974 : vector<8x32xf32>
    %976 = arith.addf %970, %973 : vector<8x32xf32>
    %977 = vector.extract_strided_slice %953 {offsets = [0, 64], sizes = [8, 32], strides = [1, 1]} : vector<8x192xf32> to vector<8x32xf32>
    %978 = arith.subf %977, %968 : vector<8x32xf32>
    %979 = math.exp %978 : vector<8x32xf32>
    %980 = arith.mulf %979, %870 : vector<8x32xf32>
    %981 = arith.addf %975, %980 : vector<8x32xf32>
    %982 = arith.addf %976, %979 : vector<8x32xf32>
    %983 = vector.extract_strided_slice %953 {offsets = [0, 96], sizes = [8, 32], strides = [1, 1]} : vector<8x192xf32> to vector<8x32xf32>
    %984 = arith.subf %983, %968 : vector<8x32xf32>
    %985 = math.exp %984 : vector<8x32xf32>
    %986 = arith.mulf %985, %930 : vector<8x32xf32>
    %987 = arith.addf %981, %986 : vector<8x32xf32>
    %988 = arith.addf %982, %985 : vector<8x32xf32>
    %989 = vector.extract_strided_slice %953 {offsets = [0, 128], sizes = [8, 32], strides = [1, 1]} : vector<8x192xf32> to vector<8x32xf32>
    %990 = arith.subf %989, %968 : vector<8x32xf32>
    %991 = math.exp %990 : vector<8x32xf32>
    %992 = arith.mulf %991, %934 : vector<8x32xf32>
    %993 = arith.addf %987, %992 : vector<8x32xf32>
    %994 = arith.addf %988, %991 : vector<8x32xf32>
    %995 = vector.extract_strided_slice %953 {offsets = [0, 160], sizes = [8, 32], strides = [1, 1]} : vector<8x192xf32> to vector<8x32xf32>
    %996 = arith.subf %995, %968 : vector<8x32xf32>
    %997 = math.exp %996 : vector<8x32xf32>
    %998 = arith.mulf %997, %38 : vector<8x32xf32>
    %999 = arith.addf %993, %998 : vector<8x32xf32>
    %1000 = arith.addf %994, %997 : vector<8x32xf32>
    %1001 = tpu.reciprocal %1000 {approx = true} : vector<8x32xf32> -> vector<8x32xf32>
    %1002 = arith.mulf %999, %1001 : vector<8x32xf32>
    %1003 = math.tanh %1002 : vector<8x32xf32>
    %1004 = arith.mulf %959, %1003 : vector<8x32xf32>
    %1005 = vector.broadcast %1 : vector<8x1xf32> to vector<8x32xf32>
    %1006 = arith.mulf %1005, %1004 : vector<8x32xf32>
    %1007 = vector.broadcast %1 : vector<8x1xf32> to vector<8x32xf32>
    %1008 = arith.mulf %1007, %1002 : vector<8x32xf32>
    %1009 = arith.truncf %1006 : vector<8x32xf32> to vector<8x32xbf16>
    %1010 = arith.truncf %924 : vector<1x32xf32> to vector<1x32xbf16>
    %1011 = vector.shape_cast %1006 : vector<8x32xf32> to vector<1x8x32xf32>
    %1012 = vector.shape_cast %1008 : vector<8x32xf32> to vector<1x8x32xf32>
    %cst_214 = arith.constant dense<0.000000e+00> : vector<1x32xf32>
    %1013 = vector.multi_reduction <add>, %1011, %cst_214 [1] : vector<1x8x32xf32> to vector<1x32xf32>
    %1014 = vector.broadcast %4 : vector<1x1xf32> to vector<1x32xf32>
    %1015 = arith.mulf %1013, %1014 : vector<1x32xf32>
    %c0_215 = arith.constant 0 : index
    %c0_216 = arith.constant 0 : index
    %1016 = vector.load %arg5[%c0_215, %c0_216] : memref<32x64xbf16, #tpu.memory_space<vmem>>, vector<32x64xbf16>
    %cst_217 = arith.constant dense<0.000000e+00> : vector<1x64xf32>
    %1017 = tpu.matmul %1010, %1016, %cst_217 {dimension_numbers = #tpu.dot_dimension_numbers<[1], [0], [0], [1], [0, 0, 1, 1], [], []>} : vector<1x32xbf16>, vector<32x64xbf16>, vector<1x64xf32> -> vector<1x64xf32>
    %1018 = arith.truncf %1015 : vector<1x32xf32> to vector<1x32xbf16>
    %c0_218 = arith.constant 0 : index
    %c0_219 = arith.constant 0 : index
    %1019 = vector.load %arg6[%c0_218, %c0_219] : memref<32x64xbf16, #tpu.memory_space<vmem>>, vector<32x64xbf16>
    %cst_220 = arith.constant dense<0.000000e+00> : vector<1x64xf32>
    %1020 = tpu.matmul %1018, %1019, %cst_220 {dimension_numbers = #tpu.dot_dimension_numbers<[1], [0], [0], [1], [0, 0, 1, 1], [], []>} : vector<1x32xbf16>, vector<32x64xbf16>, vector<1x64xf32> -> vector<1x64xf32>
    %1021 = vector.extract_strided_slice %1017 {offsets = [0, 0], sizes = [1, 32], strides = [1, 1]} : vector<1x64xf32> to vector<1x32xf32>
    %c0_221 = arith.constant 0 : index
    %c0_222 = arith.constant 0 : index
    %1022 = vector.load %arg6[%c0_221, %c0_222] : memref<32x64xbf16, #tpu.memory_space<vmem>>, vector<32x32xbf16>
    %cst_223 = arith.constant dense<0.000000e+00> : vector<8x32xf32>
    %1023 = tpu.matmul %1009, %1022, %cst_223 {dimension_numbers = #tpu.dot_dimension_numbers<[1], [0], [0], [1], [0, 0, 1, 1], [], []>} : vector<8x32xbf16>, vector<32x32xbf16>, vector<8x32xf32> -> vector<8x32xf32>
    %1024 = vector.shape_cast %1023 : vector<8x32xf32> to vector<1x8x32xf32>
    %1025 = arith.addf %1021, %31 : vector<1x32xf32>
    %1026 = vector.shape_cast %1025 : vector<1x32xf32> to vector<1x1x32xf32>
    %1027 = vector.broadcast %1026 : vector<1x1x32xf32> to vector<1x8x32xf32>
    %1028 = arith.addf %1024, %1027 : vector<1x8x32xf32>
    %1029 = vector.broadcast %23 : vector<1x8x1xf32> to vector<1x8x32xf32>
    %1030 = arith.addf %1028, %1029 : vector<1x8x32xf32>
    %1031 = vector.extract_strided_slice %1020 {offsets = [0, 0], sizes = [1, 32], strides = [1, 1]} : vector<1x64xf32> to vector<1x32xf32>
    %1032 = arith.addf %1021, %1031 : vector<1x32xf32>
    %1033 = arith.addf %1032, %31 : vector<1x32xf32>
    %1034 = vector.broadcast %29 : vector<1x1xf32> to vector<1x32xf32>
    %1035 = arith.addf %1033, %1034 : vector<1x32xf32>
    %cst_224 = arith.constant dense<0xFF800000> : vector<1x32xf32>
    %1036 = vector.multi_reduction <maximumf>, %1030, %cst_224 [1] : vector<1x8x32xf32> to vector<1x32xf32>
    %1037 = arith.maximumf %1036, %1035 : vector<1x32xf32>
    %1038 = vector.shape_cast %1037 : vector<1x32xf32> to vector<1x1x32xf32>
    %1039 = vector.broadcast %1038 : vector<1x1x32xf32> to vector<1x8x32xf32>
    %1040 = arith.subf %1030, %1039 : vector<1x8x32xf32>
    %1041 = math.exp %1040 : vector<1x8x32xf32>
    %1042 = arith.subf %1035, %1037 : vector<1x32xf32>
    %1043 = math.exp %1042 : vector<1x32xf32>
    %cst_225 = arith.constant dense<0.000000e+00> : vector<1x32xf32>
    %1044 = vector.multi_reduction <add>, %1041, %cst_225 [1] : vector<1x8x32xf32> to vector<1x32xf32>
    %1045 = arith.addf %1044, %1043 : vector<1x32xf32>
    %1046 = arith.mulf %1041, %1012 : vector<1x8x32xf32>
    %cst_226 = arith.constant dense<0.000000e+00> : vector<1x32xf32>
    %1047 = vector.multi_reduction <add>, %1046, %cst_226 [1] : vector<1x8x32xf32> to vector<1x32xf32>
    %1048 = arith.mulf %1043, %913 : vector<1x32xf32>
    %1049 = arith.addf %1047, %1048 : vector<1x32xf32>
    %1050 = tpu.reciprocal %1045 {approx = true} : vector<1x32xf32> -> vector<1x32xf32>
    %1051 = arith.mulf %1049, %1050 : vector<1x32xf32>
    %1052 = vector.extract_strided_slice %1017 {offsets = [0, 32], sizes = [1, 32], strides = [1, 1]} : vector<1x64xf32> to vector<1x32xf32>
    %1053 = vector.extract_strided_slice %1020 {offsets = [0, 32], sizes = [1, 32], strides = [1, 1]} : vector<1x64xf32> to vector<1x32xf32>
    %1054 = arith.addf %1052, %1053 : vector<1x32xf32>
    %1055 = arith.addf %1054, %32 : vector<1x32xf32>
    %1056 = arith.negf %1055 : vector<1x32xf32>
    %1057 = math.exp %1056 : vector<1x32xf32>
    %cst_227 = arith.constant 1.000000e+00 : f32
    %1058 = vector.broadcast %cst_227 : f32 to vector<1x32xf32>
    %1059 = arith.addf %1058, %1057 : vector<1x32xf32>
    %1060 = arith.divf %1058, %1059 : vector<1x32xf32>
    %1061 = math.tanh %1051 : vector<1x32xf32>
    %1062 = arith.mulf %1060, %1061 : vector<1x32xf32>
    %c1_i32_228 = arith.constant 1 : i32
    %1063 = tpu.dynamic_rotate %1008 by %c1_i32_228 dim 0 : vector<8x32xf32>, i32 -> vector<8x32xf32>
    %1064 = vector.broadcast %11 : vector<8x1xf32> to vector<8x32xf32>
    %1065 = arith.mulf %1063, %1064 : vector<8x32xf32>
    %c7_i32_229 = arith.constant 7 : i32
    %1066 = tpu.dynamic_rotate %1008 by %c7_i32_229 dim 0 : vector<8x32xf32>, i32 -> vector<8x32xf32>
    %1067 = vector.broadcast %16 : vector<8x1xf32> to vector<8x32xf32>
    %1068 = arith.mulf %1066, %1067 : vector<8x32xf32>
    %1069 = vector.shape_cast %913 : vector<1x32xf32> to vector<1x1x32xf32>
    %1070 = vector.shape_cast %1069 : vector<1x1x32xf32> to vector<1x1x32xf32>
    %1071 = vector.broadcast %1070 : vector<1x1x32xf32> to vector<1x8x32xf32>
    %1072 = vector.shape_cast %1071 : vector<1x8x32xf32> to vector<8x32xf32>
    %c1_i32_230 = arith.constant 1 : i32
    %1073 = tpu.dynamic_rotate %1006 by %c1_i32_230 dim 0 : vector<8x32xf32>, i32 -> vector<8x32xf32>
    %1074 = vector.broadcast %11 : vector<8x1xf32> to vector<8x32xf32>
    %1075 = arith.mulf %1073, %1074 : vector<8x32xf32>
    %c7_i32_231 = arith.constant 7 : i32
    %1076 = tpu.dynamic_rotate %1006 by %c7_i32_231 dim 0 : vector<8x32xf32>, i32 -> vector<8x32xf32>
    %1077 = vector.broadcast %16 : vector<8x1xf32> to vector<8x32xf32>
    %1078 = arith.mulf %1076, %1077 : vector<8x32xf32>
    %1079 = tpu.concatenate %1075, %1006, %1078, %38 in 1 : vector<8x32xf32>, vector<8x32xf32>, vector<8x32xf32>, vector<8x32xf32> -> vector<8x128xf32>
    %1080 = arith.truncf %1079 : vector<8x128xf32> to vector<8x128xbf16>
    %c0_232 = arith.constant 0 : index
    %c0_233 = arith.constant 0 : index
    %1081 = vector.load %arg10[%c0_232, %c0_233] : memref<32x192xbf16, #tpu.memory_space<vmem>>, vector<32x192xbf16>
    %cst_234 = arith.constant dense<0.000000e+00> : vector<1x192xf32>
    %1082 = tpu.matmul %1010, %1081, %cst_234 {dimension_numbers = #tpu.dot_dimension_numbers<[1], [0], [0], [1], [0, 0, 1, 1], [], []>} : vector<1x32xbf16>, vector<32x192xbf16>, vector<1x192xf32> -> vector<1x192xf32>
    %c0_235 = arith.constant 0 : index
    %c0_236 = arith.constant 0 : index
    %1083 = vector.load %arg9[%c0_235, %c0_236] : memref<128x192xbf16, #tpu.memory_space<vmem>>, vector<128x192xbf16>
    %cst_237 = arith.constant dense<0.000000e+00> : vector<8x192xf32>
    %1084 = tpu.matmul %1080, %1083, %cst_237 {dimension_numbers = #tpu.dot_dimension_numbers<[1], [0], [0], [1], [0, 0, 1, 1], [], []>} : vector<8x128xbf16>, vector<128x192xbf16>, vector<8x192xf32> -> vector<8x192xf32>
    %1085 = vector.shape_cast %1082 : vector<1x192xf32> to vector<1x1x192xf32>
    %1086 = vector.shape_cast %1085 : vector<1x1x192xf32> to vector<1x1x192xf32>
    %1087 = vector.broadcast %1086 : vector<1x1x192xf32> to vector<1x8x192xf32>
    %1088 = vector.shape_cast %1087 : vector<1x8x192xf32> to vector<8x192xf32>
    %1089 = arith.addf %1084, %1088 : vector<8x192xf32>
    %1090 = vector.broadcast %33 : vector<1x192xf32> to vector<8x192xf32>
    %1091 = arith.addf %1089, %1090 : vector<8x192xf32>
    %1092 = vector.extract_strided_slice %1091 {offsets = [0, 0], sizes = [8, 32], strides = [1, 1]} : vector<8x192xf32> to vector<8x32xf32>
    %1093 = arith.negf %1092 : vector<8x32xf32>
    %1094 = math.exp %1093 : vector<8x32xf32>
    %cst_238 = arith.constant 1.000000e+00 : f32
    %1095 = vector.broadcast %cst_238 : f32 to vector<8x32xf32>
    %1096 = arith.addf %1095, %1094 : vector<8x32xf32>
    %1097 = arith.divf %1095, %1096 : vector<8x32xf32>
    %1098 = vector.extract_strided_slice %1091 {offsets = [0, 32], sizes = [8, 32], strides = [1, 1]} : vector<8x192xf32> to vector<8x32xf32>
    %1099 = vector.extract_strided_slice %1091 {offsets = [0, 64], sizes = [8, 32], strides = [1, 1]} : vector<8x192xf32> to vector<8x32xf32>
    %1100 = arith.maximumf %1098, %1099 : vector<8x32xf32>
    %1101 = vector.extract_strided_slice %1091 {offsets = [0, 96], sizes = [8, 32], strides = [1, 1]} : vector<8x192xf32> to vector<8x32xf32>
    %1102 = arith.maximumf %1100, %1101 : vector<8x32xf32>
    %1103 = vector.extract_strided_slice %1091 {offsets = [0, 128], sizes = [8, 32], strides = [1, 1]} : vector<8x192xf32> to vector<8x32xf32>
    %1104 = arith.maximumf %1102, %1103 : vector<8x32xf32>
    %1105 = vector.extract_strided_slice %1091 {offsets = [0, 160], sizes = [8, 32], strides = [1, 1]} : vector<8x192xf32> to vector<8x32xf32>
    %1106 = arith.maximumf %1104, %1105 : vector<8x32xf32>
    %cst_239 = arith.constant 0.000000e+00 : f32
    %1107 = vector.broadcast %cst_239 : f32 to vector<8x32xf32>
    %cst_240 = arith.constant 0.000000e+00 : f32
    %1108 = vector.broadcast %cst_240 : f32 to vector<8x32xf32>
    %1109 = vector.extract_strided_slice %1091 {offsets = [0, 32], sizes = [8, 32], strides = [1, 1]} : vector<8x192xf32> to vector<8x32xf32>
    %1110 = arith.subf %1109, %1106 : vector<8x32xf32>
    %1111 = math.exp %1110 : vector<8x32xf32>
    %1112 = arith.mulf %1111, %1065 : vector<8x32xf32>
    %1113 = arith.addf %1107, %1112 : vector<8x32xf32>
    %1114 = arith.addf %1108, %1111 : vector<8x32xf32>
    %1115 = vector.extract_strided_slice %1091 {offsets = [0, 64], sizes = [8, 32], strides = [1, 1]} : vector<8x192xf32> to vector<8x32xf32>
    %1116 = arith.subf %1115, %1106 : vector<8x32xf32>
    %1117 = math.exp %1116 : vector<8x32xf32>
    %1118 = arith.mulf %1117, %1008 : vector<8x32xf32>
    %1119 = arith.addf %1113, %1118 : vector<8x32xf32>
    %1120 = arith.addf %1114, %1117 : vector<8x32xf32>
    %1121 = vector.extract_strided_slice %1091 {offsets = [0, 96], sizes = [8, 32], strides = [1, 1]} : vector<8x192xf32> to vector<8x32xf32>
    %1122 = arith.subf %1121, %1106 : vector<8x32xf32>
    %1123 = math.exp %1122 : vector<8x32xf32>
    %1124 = arith.mulf %1123, %1068 : vector<8x32xf32>
    %1125 = arith.addf %1119, %1124 : vector<8x32xf32>
    %1126 = arith.addf %1120, %1123 : vector<8x32xf32>
    %1127 = vector.extract_strided_slice %1091 {offsets = [0, 128], sizes = [8, 32], strides = [1, 1]} : vector<8x192xf32> to vector<8x32xf32>
    %1128 = arith.subf %1127, %1106 : vector<8x32xf32>
    %1129 = math.exp %1128 : vector<8x32xf32>
    %1130 = arith.mulf %1129, %1072 : vector<8x32xf32>
    %1131 = arith.addf %1125, %1130 : vector<8x32xf32>
    %1132 = arith.addf %1126, %1129 : vector<8x32xf32>
    %1133 = vector.extract_strided_slice %1091 {offsets = [0, 160], sizes = [8, 32], strides = [1, 1]} : vector<8x192xf32> to vector<8x32xf32>
    %1134 = arith.subf %1133, %1106 : vector<8x32xf32>
    %1135 = math.exp %1134 : vector<8x32xf32>
    %1136 = arith.mulf %1135, %38 : vector<8x32xf32>
    %1137 = arith.addf %1131, %1136 : vector<8x32xf32>
    %1138 = arith.addf %1132, %1135 : vector<8x32xf32>
    %1139 = tpu.reciprocal %1138 {approx = true} : vector<8x32xf32> -> vector<8x32xf32>
    %1140 = arith.mulf %1137, %1139 : vector<8x32xf32>
    %1141 = math.tanh %1140 : vector<8x32xf32>
    %1142 = arith.mulf %1097, %1141 : vector<8x32xf32>
    %1143 = vector.broadcast %1 : vector<8x1xf32> to vector<8x32xf32>
    %1144 = arith.mulf %1143, %1142 : vector<8x32xf32>
    %1145 = vector.broadcast %1 : vector<8x1xf32> to vector<8x32xf32>
    %1146 = arith.mulf %1145, %1140 : vector<8x32xf32>
    %1147 = arith.truncf %1144 : vector<8x32xf32> to vector<8x32xbf16>
    %1148 = arith.truncf %1062 : vector<1x32xf32> to vector<1x32xbf16>
    %1149 = vector.shape_cast %1144 : vector<8x32xf32> to vector<1x8x32xf32>
    %1150 = vector.shape_cast %1146 : vector<8x32xf32> to vector<1x8x32xf32>
    %cst_241 = arith.constant dense<0.000000e+00> : vector<1x32xf32>
    %1151 = vector.multi_reduction <add>, %1149, %cst_241 [1] : vector<1x8x32xf32> to vector<1x32xf32>
    %1152 = vector.broadcast %4 : vector<1x1xf32> to vector<1x32xf32>
    %1153 = arith.mulf %1151, %1152 : vector<1x32xf32>
    %c0_242 = arith.constant 0 : index
    %c0_243 = arith.constant 0 : index
    %1154 = vector.load %arg5[%c0_242, %c0_243] : memref<32x64xbf16, #tpu.memory_space<vmem>>, vector<32x64xbf16>
    %cst_244 = arith.constant dense<0.000000e+00> : vector<1x64xf32>
    %1155 = tpu.matmul %1148, %1154, %cst_244 {dimension_numbers = #tpu.dot_dimension_numbers<[1], [0], [0], [1], [0, 0, 1, 1], [], []>} : vector<1x32xbf16>, vector<32x64xbf16>, vector<1x64xf32> -> vector<1x64xf32>
    %1156 = arith.truncf %1153 : vector<1x32xf32> to vector<1x32xbf16>
    %c0_245 = arith.constant 0 : index
    %c0_246 = arith.constant 0 : index
    %1157 = vector.load %arg6[%c0_245, %c0_246] : memref<32x64xbf16, #tpu.memory_space<vmem>>, vector<32x64xbf16>
    %cst_247 = arith.constant dense<0.000000e+00> : vector<1x64xf32>
    %1158 = tpu.matmul %1156, %1157, %cst_247 {dimension_numbers = #tpu.dot_dimension_numbers<[1], [0], [0], [1], [0, 0, 1, 1], [], []>} : vector<1x32xbf16>, vector<32x64xbf16>, vector<1x64xf32> -> vector<1x64xf32>
    %1159 = vector.extract_strided_slice %1155 {offsets = [0, 0], sizes = [1, 32], strides = [1, 1]} : vector<1x64xf32> to vector<1x32xf32>
    %c0_248 = arith.constant 0 : index
    %c0_249 = arith.constant 0 : index
    %1160 = vector.load %arg6[%c0_248, %c0_249] : memref<32x64xbf16, #tpu.memory_space<vmem>>, vector<32x32xbf16>
    %cst_250 = arith.constant dense<0.000000e+00> : vector<8x32xf32>
    %1161 = tpu.matmul %1147, %1160, %cst_250 {dimension_numbers = #tpu.dot_dimension_numbers<[1], [0], [0], [1], [0, 0, 1, 1], [], []>} : vector<8x32xbf16>, vector<32x32xbf16>, vector<8x32xf32> -> vector<8x32xf32>
    %1162 = vector.shape_cast %1161 : vector<8x32xf32> to vector<1x8x32xf32>
    %1163 = arith.addf %1159, %31 : vector<1x32xf32>
    %1164 = vector.shape_cast %1163 : vector<1x32xf32> to vector<1x1x32xf32>
    %1165 = vector.broadcast %1164 : vector<1x1x32xf32> to vector<1x8x32xf32>
    %1166 = arith.addf %1162, %1165 : vector<1x8x32xf32>
    %1167 = vector.broadcast %23 : vector<1x8x1xf32> to vector<1x8x32xf32>
    %1168 = arith.addf %1166, %1167 : vector<1x8x32xf32>
    %1169 = vector.extract_strided_slice %1158 {offsets = [0, 0], sizes = [1, 32], strides = [1, 1]} : vector<1x64xf32> to vector<1x32xf32>
    %1170 = arith.addf %1159, %1169 : vector<1x32xf32>
    %1171 = arith.addf %1170, %31 : vector<1x32xf32>
    %1172 = vector.broadcast %29 : vector<1x1xf32> to vector<1x32xf32>
    %1173 = arith.addf %1171, %1172 : vector<1x32xf32>
    %cst_251 = arith.constant dense<0xFF800000> : vector<1x32xf32>
    %1174 = vector.multi_reduction <maximumf>, %1168, %cst_251 [1] : vector<1x8x32xf32> to vector<1x32xf32>
    %1175 = arith.maximumf %1174, %1173 : vector<1x32xf32>
    %1176 = vector.shape_cast %1175 : vector<1x32xf32> to vector<1x1x32xf32>
    %1177 = vector.broadcast %1176 : vector<1x1x32xf32> to vector<1x8x32xf32>
    %1178 = arith.subf %1168, %1177 : vector<1x8x32xf32>
    %1179 = math.exp %1178 : vector<1x8x32xf32>
    %1180 = arith.subf %1173, %1175 : vector<1x32xf32>
    %1181 = math.exp %1180 : vector<1x32xf32>
    %cst_252 = arith.constant dense<0.000000e+00> : vector<1x32xf32>
    %1182 = vector.multi_reduction <add>, %1179, %cst_252 [1] : vector<1x8x32xf32> to vector<1x32xf32>
    %1183 = arith.addf %1182, %1181 : vector<1x32xf32>
    %1184 = arith.mulf %1179, %1150 : vector<1x8x32xf32>
    %cst_253 = arith.constant dense<0.000000e+00> : vector<1x32xf32>
    %1185 = vector.multi_reduction <add>, %1184, %cst_253 [1] : vector<1x8x32xf32> to vector<1x32xf32>
    %1186 = arith.mulf %1181, %1051 : vector<1x32xf32>
    %1187 = arith.addf %1185, %1186 : vector<1x32xf32>
    %1188 = tpu.reciprocal %1183 {approx = true} : vector<1x32xf32> -> vector<1x32xf32>
    %1189 = arith.mulf %1187, %1188 : vector<1x32xf32>
    %1190 = vector.extract_strided_slice %1155 {offsets = [0, 32], sizes = [1, 32], strides = [1, 1]} : vector<1x64xf32> to vector<1x32xf32>
    %1191 = vector.extract_strided_slice %1158 {offsets = [0, 32], sizes = [1, 32], strides = [1, 1]} : vector<1x64xf32> to vector<1x32xf32>
    %1192 = arith.addf %1190, %1191 : vector<1x32xf32>
    %1193 = arith.addf %1192, %32 : vector<1x32xf32>
    %1194 = arith.negf %1193 : vector<1x32xf32>
    %1195 = math.exp %1194 : vector<1x32xf32>
    %cst_254 = arith.constant 1.000000e+00 : f32
    %1196 = vector.broadcast %cst_254 : f32 to vector<1x32xf32>
    %1197 = arith.addf %1196, %1195 : vector<1x32xf32>
    %1198 = arith.divf %1196, %1197 : vector<1x32xf32>
    %1199 = math.tanh %1189 : vector<1x32xf32>
    %1200 = arith.mulf %1198, %1199 : vector<1x32xf32>
    %c1_i32_255 = arith.constant 1 : i32
    %1201 = tpu.dynamic_rotate %1146 by %c1_i32_255 dim 0 : vector<8x32xf32>, i32 -> vector<8x32xf32>
    %1202 = vector.broadcast %11 : vector<8x1xf32> to vector<8x32xf32>
    %1203 = arith.mulf %1201, %1202 : vector<8x32xf32>
    %c7_i32_256 = arith.constant 7 : i32
    %1204 = tpu.dynamic_rotate %1146 by %c7_i32_256 dim 0 : vector<8x32xf32>, i32 -> vector<8x32xf32>
    %1205 = vector.broadcast %16 : vector<8x1xf32> to vector<8x32xf32>
    %1206 = arith.mulf %1204, %1205 : vector<8x32xf32>
    %1207 = vector.shape_cast %1051 : vector<1x32xf32> to vector<1x1x32xf32>
    %1208 = vector.shape_cast %1207 : vector<1x1x32xf32> to vector<1x1x32xf32>
    %1209 = vector.broadcast %1208 : vector<1x1x32xf32> to vector<1x8x32xf32>
    %1210 = vector.shape_cast %1209 : vector<1x8x32xf32> to vector<8x32xf32>
    %c1_i32_257 = arith.constant 1 : i32
    %1211 = tpu.dynamic_rotate %1144 by %c1_i32_257 dim 0 : vector<8x32xf32>, i32 -> vector<8x32xf32>
    %1212 = vector.broadcast %11 : vector<8x1xf32> to vector<8x32xf32>
    %1213 = arith.mulf %1211, %1212 : vector<8x32xf32>
    %c7_i32_258 = arith.constant 7 : i32
    %1214 = tpu.dynamic_rotate %1144 by %c7_i32_258 dim 0 : vector<8x32xf32>, i32 -> vector<8x32xf32>
    %1215 = vector.broadcast %16 : vector<8x1xf32> to vector<8x32xf32>
    %1216 = arith.mulf %1214, %1215 : vector<8x32xf32>
    %1217 = tpu.concatenate %1213, %1144, %1216, %38 in 1 : vector<8x32xf32>, vector<8x32xf32>, vector<8x32xf32>, vector<8x32xf32> -> vector<8x128xf32>
    %1218 = arith.truncf %1217 : vector<8x128xf32> to vector<8x128xbf16>
    %c0_259 = arith.constant 0 : index
    %c0_260 = arith.constant 0 : index
    %1219 = vector.load %arg10[%c0_259, %c0_260] : memref<32x192xbf16, #tpu.memory_space<vmem>>, vector<32x192xbf16>
    %cst_261 = arith.constant dense<0.000000e+00> : vector<1x192xf32>
    %1220 = tpu.matmul %1148, %1219, %cst_261 {dimension_numbers = #tpu.dot_dimension_numbers<[1], [0], [0], [1], [0, 0, 1, 1], [], []>} : vector<1x32xbf16>, vector<32x192xbf16>, vector<1x192xf32> -> vector<1x192xf32>
    %c0_262 = arith.constant 0 : index
    %c0_263 = arith.constant 0 : index
    %1221 = vector.load %arg9[%c0_262, %c0_263] : memref<128x192xbf16, #tpu.memory_space<vmem>>, vector<128x192xbf16>
    %cst_264 = arith.constant dense<0.000000e+00> : vector<8x192xf32>
    %1222 = tpu.matmul %1218, %1221, %cst_264 {dimension_numbers = #tpu.dot_dimension_numbers<[1], [0], [0], [1], [0, 0, 1, 1], [], []>} : vector<8x128xbf16>, vector<128x192xbf16>, vector<8x192xf32> -> vector<8x192xf32>
    %1223 = vector.shape_cast %1220 : vector<1x192xf32> to vector<1x1x192xf32>
    %1224 = vector.shape_cast %1223 : vector<1x1x192xf32> to vector<1x1x192xf32>
    %1225 = vector.broadcast %1224 : vector<1x1x192xf32> to vector<1x8x192xf32>
    %1226 = vector.shape_cast %1225 : vector<1x8x192xf32> to vector<8x192xf32>
    %1227 = arith.addf %1222, %1226 : vector<8x192xf32>
    %1228 = vector.broadcast %33 : vector<1x192xf32> to vector<8x192xf32>
    %1229 = arith.addf %1227, %1228 : vector<8x192xf32>
    %1230 = vector.extract_strided_slice %1229 {offsets = [0, 0], sizes = [8, 32], strides = [1, 1]} : vector<8x192xf32> to vector<8x32xf32>
    %1231 = arith.negf %1230 : vector<8x32xf32>
    %1232 = math.exp %1231 : vector<8x32xf32>
    %cst_265 = arith.constant 1.000000e+00 : f32
    %1233 = vector.broadcast %cst_265 : f32 to vector<8x32xf32>
    %1234 = arith.addf %1233, %1232 : vector<8x32xf32>
    %1235 = arith.divf %1233, %1234 : vector<8x32xf32>
    %1236 = vector.extract_strided_slice %1229 {offsets = [0, 32], sizes = [8, 32], strides = [1, 1]} : vector<8x192xf32> to vector<8x32xf32>
    %1237 = vector.extract_strided_slice %1229 {offsets = [0, 64], sizes = [8, 32], strides = [1, 1]} : vector<8x192xf32> to vector<8x32xf32>
    %1238 = arith.maximumf %1236, %1237 : vector<8x32xf32>
    %1239 = vector.extract_strided_slice %1229 {offsets = [0, 96], sizes = [8, 32], strides = [1, 1]} : vector<8x192xf32> to vector<8x32xf32>
    %1240 = arith.maximumf %1238, %1239 : vector<8x32xf32>
    %1241 = vector.extract_strided_slice %1229 {offsets = [0, 128], sizes = [8, 32], strides = [1, 1]} : vector<8x192xf32> to vector<8x32xf32>
    %1242 = arith.maximumf %1240, %1241 : vector<8x32xf32>
    %1243 = vector.extract_strided_slice %1229 {offsets = [0, 160], sizes = [8, 32], strides = [1, 1]} : vector<8x192xf32> to vector<8x32xf32>
    %1244 = arith.maximumf %1242, %1243 : vector<8x32xf32>
    %cst_266 = arith.constant 0.000000e+00 : f32
    %1245 = vector.broadcast %cst_266 : f32 to vector<8x32xf32>
    %cst_267 = arith.constant 0.000000e+00 : f32
    %1246 = vector.broadcast %cst_267 : f32 to vector<8x32xf32>
    %1247 = vector.extract_strided_slice %1229 {offsets = [0, 32], sizes = [8, 32], strides = [1, 1]} : vector<8x192xf32> to vector<8x32xf32>
    %1248 = arith.subf %1247, %1244 : vector<8x32xf32>
    %1249 = math.exp %1248 : vector<8x32xf32>
    %1250 = arith.mulf %1249, %1203 : vector<8x32xf32>
    %1251 = arith.addf %1245, %1250 : vector<8x32xf32>
    %1252 = arith.addf %1246, %1249 : vector<8x32xf32>
    %1253 = vector.extract_strided_slice %1229 {offsets = [0, 64], sizes = [8, 32], strides = [1, 1]} : vector<8x192xf32> to vector<8x32xf32>
    %1254 = arith.subf %1253, %1244 : vector<8x32xf32>
    %1255 = math.exp %1254 : vector<8x32xf32>
    %1256 = arith.mulf %1255, %1146 : vector<8x32xf32>
    %1257 = arith.addf %1251, %1256 : vector<8x32xf32>
    %1258 = arith.addf %1252, %1255 : vector<8x32xf32>
    %1259 = vector.extract_strided_slice %1229 {offsets = [0, 96], sizes = [8, 32], strides = [1, 1]} : vector<8x192xf32> to vector<8x32xf32>
    %1260 = arith.subf %1259, %1244 : vector<8x32xf32>
    %1261 = math.exp %1260 : vector<8x32xf32>
    %1262 = arith.mulf %1261, %1206 : vector<8x32xf32>
    %1263 = arith.addf %1257, %1262 : vector<8x32xf32>
    %1264 = arith.addf %1258, %1261 : vector<8x32xf32>
    %1265 = vector.extract_strided_slice %1229 {offsets = [0, 128], sizes = [8, 32], strides = [1, 1]} : vector<8x192xf32> to vector<8x32xf32>
    %1266 = arith.subf %1265, %1244 : vector<8x32xf32>
    %1267 = math.exp %1266 : vector<8x32xf32>
    %1268 = arith.mulf %1267, %1210 : vector<8x32xf32>
    %1269 = arith.addf %1263, %1268 : vector<8x32xf32>
    %1270 = arith.addf %1264, %1267 : vector<8x32xf32>
    %1271 = vector.extract_strided_slice %1229 {offsets = [0, 160], sizes = [8, 32], strides = [1, 1]} : vector<8x192xf32> to vector<8x32xf32>
    %1272 = arith.subf %1271, %1244 : vector<8x32xf32>
    %1273 = math.exp %1272 : vector<8x32xf32>
    %1274 = arith.mulf %1273, %38 : vector<8x32xf32>
    %1275 = arith.addf %1269, %1274 : vector<8x32xf32>
    %1276 = arith.addf %1270, %1273 : vector<8x32xf32>
    %1277 = tpu.reciprocal %1276 {approx = true} : vector<8x32xf32> -> vector<8x32xf32>
    %1278 = arith.mulf %1275, %1277 : vector<8x32xf32>
    %1279 = math.tanh %1278 : vector<8x32xf32>
    %1280 = arith.mulf %1235, %1279 : vector<8x32xf32>
    %1281 = vector.broadcast %1 : vector<8x1xf32> to vector<8x32xf32>
    %1282 = arith.mulf %1281, %1280 : vector<8x32xf32>
    %1283 = vector.shape_cast %1282 : vector<8x32xf32> to vector<1x8x32xf32>
    %cst_268 = arith.constant dense<0.000000e+00> : vector<1x32xf32>
    %1284 = vector.multi_reduction <add>, %1283, %cst_268 [1] : vector<1x8x32xf32> to vector<1x32xf32>
    %1285 = arith.addf %1284, %1200 : vector<1x32xf32>
    %1286 = vector.broadcast %4 : vector<1x1xf32> to vector<1x32xf32>
    %1287 = arith.mulf %1285, %1286 : vector<1x32xf32>
    %1288 = arith.truncf %1287 : vector<1x32xf32> to vector<1x32xbf16>
    %c0_269 = arith.constant 0 : index
    %c0_270 = arith.constant 0 : index
    %1289 = vector.load %arg12[%c0_269, %c0_270] : memref<32x64xbf16, #tpu.memory_space<vmem>>, vector<32x64xbf16>
    %cst_271 = arith.constant dense<0.000000e+00> : vector<1x64xf32>
    %1290 = tpu.matmul %1288, %1289, %cst_271 {dimension_numbers = #tpu.dot_dimension_numbers<[1], [0], [0], [1], [0, 0, 1, 1], [], []>} : vector<1x32xbf16>, vector<32x64xbf16>, vector<1x64xf32> -> vector<1x64xf32>
    %c0_272 = arith.constant 0 : index
    %c0_273 = arith.constant 0 : index
    %1291 = vector.load %arg13[%c0_272, %c0_273] : memref<1x64xf32, #tpu.memory_space<vmem>>, vector<1x64xf32>
    %1292 = arith.addf %1290, %1291 : vector<1x64xf32>
    %1293 = math.tanh %1292 : vector<1x64xf32>
    %1294 = arith.truncf %1293 : vector<1x64xf32> to vector<1x64xbf16>
    %c0_274 = arith.constant 0 : index
    %c0_275 = arith.constant 0 : index
    %1295 = vector.load %arg14[%c0_274, %c0_275] : memref<64x128xbf16, #tpu.memory_space<vmem>>, vector<64x128xbf16>
    %cst_276 = arith.constant dense<0.000000e+00> : vector<1x128xf32>
    %1296 = tpu.matmul %1294, %1295, %cst_276 {dimension_numbers = #tpu.dot_dimension_numbers<[1], [0], [0], [1], [0, 0, 1, 1], [], []>} : vector<1x64xbf16>, vector<64x128xbf16>, vector<1x128xf32> -> vector<1x128xf32>
    %c0_277 = arith.constant 0 : index
    %c0_278 = arith.constant 0 : index
    %1297 = vector.load %arg15[%c0_277, %c0_278] : memref<1x128xf32, #tpu.memory_space<vmem>>, vector<1x128xf32>
    %1298 = arith.addf %1296, %1297 : vector<1x128xf32>
    %cst_279 = arith.constant dense<0xFF800000> : vector<1xf32>
    %1299 = vector.multi_reduction <maximumf>, %1298, %cst_279 [1] : vector<1x128xf32> to vector<1xf32>
    %1300 = vector.shape_cast %1299 : vector<1xf32> to vector<1x1xf32>
    %1301 = vector.broadcast %1300 : vector<1x1xf32> to vector<1x128xf32>
    %1302 = arith.subf %1298, %1301 : vector<1x128xf32>
    %1303 = math.exp %1302 : vector<1x128xf32>
    %cst_280 = arith.constant dense<0.000000e+00> : vector<1xf32>
    %1304 = vector.multi_reduction <add>, %1303, %cst_280 [1] : vector<1x128xf32> to vector<1xf32>
    %1305 = vector.shape_cast %1304 : vector<1xf32> to vector<1x1xf32>
    %1306 = math.log %1305 : vector<1x1xf32>
    %1307 = vector.broadcast %1306 : vector<1x1xf32> to vector<1x128xf32>
    %1308 = arith.subf %1302, %1307 : vector<1x128xf32>
    %c0_281 = arith.constant 0 : index
    %c0_282 = arith.constant 0 : index
    %c0_283 = arith.constant 0 : index
    %1309 = vector.load %arg16[%c0_281, %c0_282, %c0_283] : memref<1x1x128xf32, #tpu.memory_space<vmem>>, vector<1x1x128xf32>
    %1310 = vector.shape_cast %1309 : vector<1x1x128xf32> to vector<1x128xf32>
    %1311 = vector.shape_cast %1308 : vector<1x128xf32> to vector<1x1x128xf32>
    tpu.vector_store %arg16[%c0_281, %c0_282, %c0_283], %1311 {strides = array<i32>} : memref<1x1x128xf32, #tpu.memory_space<vmem>>, vector<1x1x128xf32>,
    return
  }
  func.func @transform_0(%arg0: i32) -> (i32, i32) {
    %c0_i32 = arith.constant 0 : i32
    %c0_i32_0 = arith.constant 0 : i32
    return %arg0, %c0_i32 : i32, i32
  }
  func.func @transform_1(%arg0: i32) -> (i32, i32, i32) {
    %c0_i32 = arith.constant 0 : i32
    %c0_i32_0 = arith.constant 0 : i32
    %c0_i32_1 = arith.constant 0 : i32
    return %arg0, %c0_i32, %c0_i32_0 : i32, i32, i32
  }
  func.func @transform_2(%arg0: i32) -> (i32, i32) {
    %c0_i32 = arith.constant 0 : i32
    %c0_i32_0 = arith.constant 0 : i32
    %c0_i32_1 = arith.constant 0 : i32
    return %c0_i32, %c0_i32_0 : i32, i32
  }
  func.func @transform_3(%arg0: i32) -> (i32, i32) {
    %c0_i32 = arith.constant 0 : i32
    %c0_i32_0 = arith.constant 0 : i32
    %c0_i32_1 = arith.constant 0 : i32
    return %c0_i32, %c0_i32_0 : i32, i32
  }
  func.func @transform_4(%arg0: i32) -> (i32, i32) {
    %c0_i32 = arith.constant 0 : i32
    %c0_i32_0 = arith.constant 0 : i32
    %c0_i32_1 = arith.constant 0 : i32
    return %c0_i32, %c0_i32_0 : i32, i32
  }
  func.func @transform_5(%arg0: i32) -> (i32, i32) {
    %c0_i32 = arith.constant 0 : i32
    %c0_i32_0 = arith.constant 0 : i32
    %c0_i32_1 = arith.constant 0 : i32
    return %c0_i32, %c0_i32_0 : i32, i32
  }
  func.func @transform_6(%arg0: i32) -> (i32, i32) {
    %c0_i32 = arith.constant 0 : i32
    %c0_i32_0 = arith.constant 0 : i32
    %c0_i32_1 = arith.constant 0 : i32
    return %c0_i32, %c0_i32_0 : i32, i32
  }
  func.func @transform_7(%arg0: i32) -> (i32, i32) {
    %c0_i32 = arith.constant 0 : i32
    %c0_i32_0 = arith.constant 0 : i32
    %c0_i32_1 = arith.constant 0 : i32
    return %c0_i32, %c0_i32_0 : i32, i32
  }
  func.func @transform_8(%arg0: i32) -> (i32, i32) {
    %c0_i32 = arith.constant 0 : i32
    %c0_i32_0 = arith.constant 0 : i32
    %c0_i32_1 = arith.constant 0 : i32
    return %c0_i32, %c0_i32_0 : i32, i32
  }
  func.func @transform_9(%arg0: i32) -> (i32, i32) {
    %c0_i32 = arith.constant 0 : i32
    %c0_i32_0 = arith.constant 0 : i32
    %c0_i32_1 = arith.constant 0 : i32
    return %c0_i32, %c0_i32_0 : i32, i32
  }
  func.func @transform_10(%arg0: i32) -> (i32, i32) {
    %c0_i32 = arith.constant 0 : i32
    %c0_i32_0 = arith.constant 0 : i32
    %c0_i32_1 = arith.constant 0 : i32
    return %c0_i32, %c0_i32_0 : i32, i32
  }
  func.func @transform_11(%arg0: i32) -> (i32, i32) {
    %c0_i32 = arith.constant 0 : i32
    %c0_i32_0 = arith.constant 0 : i32
    %c0_i32_1 = arith.constant 0 : i32
    return %c0_i32, %c0_i32_0 : i32, i32
  }
  func.func @transform_12(%arg0: i32) -> (i32, i32) {
    %c0_i32 = arith.constant 0 : i32
    %c0_i32_0 = arith.constant 0 : i32
    %c0_i32_1 = arith.constant 0 : i32
    return %c0_i32, %c0_i32_0 : i32, i32
  }
  func.func @transform_13(%arg0: i32) -> (i32, i32) {
    %c0_i32 = arith.constant 0 : i32
    %c0_i32_0 = arith.constant 0 : i32
    %c0_i32_1 = arith.constant 0 : i32
    return %c0_i32, %c0_i32_0 : i32, i32
  }
  func.func @transform_14(%arg0: i32) -> (i32, i32) {
    %c0_i32 = arith.constant 0 : i32
    %c0_i32_0 = arith.constant 0 : i32
    %c0_i32_1 = arith.constant 0 : i32
    return %c0_i32, %c0_i32_0 : i32, i32
  }
  func.func @transform_15(%arg0: i32) -> (i32, i32, i32) {
    %c0_i32 = arith.constant 0 : i32
    %c0_i32_0 = arith.constant 0 : i32
    %c0_i32_1 = arith.constant 0 : i32
    return %arg0, %c0_i32, %c0_i32_0 : i32, i32, i32
  }
}

</mosaic_0001>

<bundles_post_ra>
// kernel: tpu_custom_call.1
= control target key start
LH: loop header
LB: loop body
LE: loop exit
PB: predicated region body
PF: predicated region fallthrough
CT: control target
= control target key end

     0   :  { %s7585_s0 = inlined_call_operand.vmem [shape: bf16[16,16], index: 0, kind: input, shape index: {}]   ;;  %s7586_s1 = inlined_call_operand.vmem [shape: f32[2,8,1], index: 1, kind: input, shape index: {}]   ;;  %s7587_s2 = inlined_call_operand.vmem [shape: bf16[16,32], index: 2, kind: input, shape index: {}]   ;;  %s7588_s3 = inlined_call_operand.vmem [shape: f32[1,32], index: 3, kind: input, shape index: {}]   ;;  %s7589_s4 = inlined_call_operand.vmem [shape: bf16[32,64], index: 4, kind: input, shape index: {}]   ;;  %s7590_s5 = inlined_call_operand.vmem [shape: bf16[32,64], index: 5, kind: input, shape index: {}]   ;;  %s7591_s6 = inlined_call_operand.vmem [shape: f32[1,32], index: 6, kind: input, shape index: {}]   ;;  %s7592_s7 = inlined_call_operand.vmem [shape: f32[1,32], index: 7, kind: input, shape index: {}]   ;;  %s7593_s8 = inlined_call_operand.vmem [shape: bf16[128,192], index: 8, kind: input, shape index: {}]   ;;  %s7594_s9 = inlined_call_operand.vmem [shape: bf16[32,192], index: 9, kind: input, shape index: {}]   ;;  %s7595_s10 = inlined_call_operand.vmem [shape: f32[1,192], index: 10, kind: input, shape index: {}]   ;;  %s7596_s11 = inlined_call_operand.vmem [shape: bf16[32,64], index: 11, kind: input, shape index: {}]   ;;  %s7597_s12 = inlined_call_operand.vmem [shape: f32[1,64], index: 12, kind: input, shape index: {}]   ;;  %s7598_s13 = inlined_call_operand.vmem [shape: bf16[64,128], index: 13, kind: input, shape index: {}]   ;;  %s7599_s14 = inlined_call_operand.vmem [shape: f32[1,128], index: 14, kind: input, shape index: {}]   ;;  %s7600_s15 = inlined_call_operand.hbm [shape: f32[2,1,128], index: 15, kind: output, shape index: {}]  }
   0x1   :  { %7608 = sst [smem:[#allocation7_spill]] %s7585_s0 }
   0x2   :  { %7609 = sst [smem:[#allocation8_spill]] %s7586_s1 }
   0x3   :  { %7610 = sst [smem:[#allocation9_spill]] %s7587_s2 }
   0x4   :  { %20 = vsyncpa [#allocation3], 0 }
   0x5   :  { %22 = vsyncpa [#allocation3 + $0x1], 0  ;;  %s5891_s18 = smov 0   ;;  %s5893_s19 = smov 0  }
   0x6   :  { %s5895_s20 = smov 0   ;;  %s5897_s21 = smov 0  }
   0x7 LB: > { %7611 = sst [smem:[#allocation5_spill]] %s5798_s20  ;;  %s5912_s22 = sadd.s32 4294967295, %s5802_s21   ;;  %s5802_s21 = sphi %s5897_s21, %s7625_s21   ;;  %s5798_s20 = sphi %s5895_s20, %s7622_s20   ;;  %s5794_s19 = sphi %s5893_s19, %s7624_s19   ;;  %s5790_s18 = sphi %s5891_s18, %s7623_s18  }
   0x8   : > { %s4885_s23 = sadd.s32 4294967294, %s5802_s21   ;;  %s5916_s24 = sadd.s32 1, %s5802_s21  }
   0x9   : > { %s360_s25 = sadd.s32 1, %s5798_s20  ;;  %s357_s26 = ssub.s32 %s5802_s21, %s5916_s24 }
   0xa   : > { %p370_p0 = scmp.ne.s32.totalorder %s5798_s20, %s5794_s19  ;;  %p358_p1 = scmp.eq.s32.totalorder %s357_s26, 0 }
   0xb   : > { %p371_p2 = scmp.eq.s32.totalorder %s5912_s22, 1  ;;  %p376_p3 = scmp.ne.s32.totalorder %s5794_s19, %s5790_s18 }
   0xc   : > { %p377_p4 = scmp.eq.s32.totalorder %s4885_s23, 1  ;;  %p4888_p7 = scmp.ge.s32.totalorder %s5802_s21, 1 }
   0xd   : > { %s5927_s27 = scalar_select %p358_p1, %s5798_s20, %s360_s25  }
   0xe   : > { %p5929_p5 = por %p371_p2, %p370_p0  ;;  %p5933_p6 = por %p377_p4, %p376_p3 }
   0xf   : > { %7612 = sst [smem:[#allocation6_spill]] %s5927_s27  ;;  %p448_p8 = scmp.lt.s32.totalorder %s5802_s21, 3 }
  0x11   : > { %p449_p9 = pnand %p4888_p7, %p448_p8 }
  0x12   : > { %s7615_s2 = sld [smem:[#allocation9_spill]] (!%p449_p9)  ;;  %v5804_v1 = vmov (!%p449_p9), 0.0   ;;  %p498_p10 = scmp.lt.s32.totalorder (!%p449_p9), %s5912_s22, 1  ;;  %vm5805_vm0 = vmmov (!%p449_p9), 0   ;;  %vm508_vm1 = vcmask (!%p449_p9), 7168   ;;  %vm549_vm2 = vcmask (!%p449_p9), 130048  }
  0x13   : > { %452 = sbr.rel (%p449_p9) target bundleno = 8770 (0x2242), region = 80  ;;  %5075 = vmatprep.subr.bf16.mxu0 (!%p449_p9), %v5804_v1  ;;  %5081 = vmatprep.subr.bf16.mxu1 (!%p449_p9), %v5804_v1  ;;  %v5806_v2 = vmov (!%p449_p9), 0   ;;  %s7616_s0 = sld [smem:[#allocation7_spill]] (!%p449_p9)  ;;  %v5967_v13 = vld [vmem:[%s7589_s4] sm:$0xff] (!%p449_p9)   ;;  %v5979_v15 = vld [vmem:[%s7589_s4 + $0x8] sm:$0xff] (!%p449_p9)   ;;  %v518_v18 = vlaneseq (!%p449_p9)  ;;  %vm593_vm4 = vcmask (!%p449_p9), 261120  }
  0x14   : > { %5077 = vmatprep.mubr.msk.bf16.mxu0 (!%p449_p9), %vm5805_vm0, %v5804_v1  ;;  %5362 = vset.pattern.permute.xlu0 (!%p449_p9), %v5806_v2  ;;  %s7617_s1 = sld [smem:[#allocation8_spill]] (!%p449_p9)  ;;  %v5972_v14 = vld [vmem:[%s7590_s5] sm:$0xff] (!%p449_p9)   ;;  %v5984_v16 = vld [vmem:[%s7590_s5 + $0x8] sm:$0xff] (!%p449_p9)   ;;  %v6035_v40 = vld [vmem:[%s7594_s9 + $0x14] ss:$8 sps:$4 sm:$0xff] (!%p449_p9)   ;;  %vm862_vm6 = vcmask (!%p449_p9), 523264  }
  0x15   : > { %5085 = vmatprep.mubr.msk.bf16.mxu1 (!%p449_p9), %vm5805_vm0, %v5804_v1  ;;  %5363 = vset.pattern.permute.xlu1 (!%p449_p9), %v5806_v2  ;;  %v5994_v17 = vld [vmem:[%s7594_s9 + $0x4] ss:$8 sps:$4 sm:$0xff] (!%p449_p9)   ;;  %v5997_v19 = vshrl.u32 (!%p449_p9), %v518_v18, 7  ;;  %v4891_v20 = vld [vmem:[%s7588_s3] ss:$0 sm:$0xff] (!%p449_p9)  ;;  %vm864_vm7 = vcmask (!%p449_p9), 785408  }
  0x16   : > { %5082 = vmatpush3.bf16.msra.mxu1 (!%p449_p9), %v5967_v13  ;;  %v6028_v38 = vld [vmem:[%s7594_s9] ss:$8 sps:$4 sm:$0xff] (!%p449_p9)   ;;  %v6044_v41 = vld [vmem:[%s7594_s9 + $0x10] ss:$8 sps:$4 sm:$0xff] (!%p449_p9)   ;;  %v6051_v42 = vld [vmem:[%s7593_s8 + $0x4] ss:$8 sps:$4 sm:$0xff] (!%p449_p9)  }
  0x17   : > { %5083 = vmatprep.subr.bf16.mxu1 (!%p449_p9), %v5804_v1  ;;  %vm522_vm3 = vcmp.lt.s32.totalorder (!%p449_p9), %v5997_v19, 7  ;;  %v6061_v43 = vld [vmem:[%s7593_s8] ss:$8 sps:$4 sm:$0xff] (!%p449_p9)   ;;  %v6069_v45 = vld [vmem:[%s7593_s8 + $0x14] ss:$8 sps:$4 sm:$0xff] (!%p449_p9)   ;;  %vm520_vm5 = vcmp.gt.s32.totalorder (!%p449_p9), %v5997_v19, 0 }
  0x18   : > { %v5364_v0 = vld [vmem:[%s7615_s2] sm:$0xff] (!%p449_p9)   ;;  %v6006_v25 = vsel (!%p449_p9), %vm522_vm3, 1.0, %v5804_v1  ;;  %v6078_v46 = vld [vmem:[%s7593_s8 + $0x10] ss:$8 sps:$4 sm:$0xff] (!%p449_p9)   ;;  %v6101_v49 = vld [vmem:[%s7593_s8 + $0x34] ss:$8 sps:$4 sm:$0xff] (!%p449_p9)  }
  0x19   : > { %5076 = vmatpush3.bf16.msra.mxu0 (!%p449_p9), %v5364_v0  ;;  %v6085_v47 = vld [vmem:[%s7593_s8 + $0x24] ss:$8 sps:$4 sm:$0xff] (!%p449_p9)   ;;  %v6095_v48 = vld [vmem:[%s7593_s8 + $0x20] ss:$8 sps:$4 sm:$0xff] (!%p449_p9)   ;;  %v6109_v50 = vld [vmem:[%s7593_s8 + $0x30] ss:$8 sps:$4 sm:$0xff] (!%p449_p9)  }
  0x1a   : > { %s499_s17 = scalar_select %p498_p10, %s5912_s22, 1  ;;  %5089 = vmatprep.subr.bf16.mxu0 %v5804_v1  ;;  %5084 = vmatpush3.bf16.msra.mxu1 %v5979_v15  ;;  %v6115_v51 = vld [vmem:[%s7593_s8 + $0x44] ss:$8 sps:$4 sm:$0xff]   ;;  %v6121_v52 = vld [vmem:[%s7593_s8 + $0x40] ss:$8 sps:$4 sm:$0xff]   ;;  %v6165_v60 = vsel %vm520_vm5, 1.0, %v5804_v1 }
  0x1b   : > { %5097 = vmatprep.subr.bf16.mxu1 %v5804_v1  ;;  %v6127_v53 = vld [vmem:[%s7593_s8 + $0x54] ss:$8 sps:$4 sm:$0xff]   ;;  %v6133_v54 = vld [vmem:[%s7593_s8 + $0x50] ss:$8 sps:$4 sm:$0xff]   ;;  %v6139_v55 = vld [vmem:[%s7593_s8 + $0x64] ss:$8 sps:$4 sm:$0xff]  }
  0x1c   : > { %s4889_s23 = sshll.u32 %s499_s17, 2  ;;  %s4890_s25 = sshll.u32 %s499_s17, 3  ;;  %v6145_v56 = vld [vmem:[%s7593_s8 + $0x60] ss:$8 sps:$4 sm:$0xff]   ;;  %v6151_v57 = vld [vmem:[%s7593_s8 + $0x74] ss:$8 sps:$4 sm:$0xff]  }
  0x1d   : > { %s501_s16 = scalar_lea.vmem %s7616_s0, %s4889_s23  ;;  %s505_s20 = scalar_lea.vmem %s7617_s1, %s4890_s25  ;;  %v6157_v58 = vld [vmem:[%s7593_s8 + $0x70] ss:$8 sps:$4 sm:$0xff]   ;;  %vm4791_vm8 = vcmask 1040384  }
  0x1e   : > { %v5959_v3 = vld [vmem:[%s505_s20] sm:$0xff]  ;;  %s7602_s17 = smov 32   ;;  %s7606_s23 = smov 64  }
  0x1f   : > { %v534_v4 = vld [vmem:[%s501_s16] sm:$0xf]  ;;  %v509_v5 = vsel %vm508_vm1, %v5959_v3, 0.0  ;;  %s7604_s25 = smov 96   ;;  %s7618_s2 = smov 32  }
  0x20   : > { %5078 = vmatmul.mubr.msk.bf16.vlgmr.msra.gmra.mrb[0].mxu0 %vm549_vm2, %v534_v4  ;;  %v510_v6 = vrot.slane %v509_v5, 4  ;;  %s7619_s27 = smov 96   ;;  %s496_s16 = sand.u32 1, %s5794_s19  }
  0x21   : > { %5093 = vmatprep.mubr.msk.bf16.mxu0 %vm5805_vm0, %v5804_v1  ;;  %5090 = vmatpush3.bf16.msra.mxu0 %v5972_v14  ;;  %s497_s20 = scalar_lea.vmem [#allocation2], %s496_s16 }
  0x22   : > { %v511_v7 = vadd.f32 %v510_v6, %v509_v5  ;;  %5091 = vmatprep.subr.bf16.mxu0 %v5804_v1 }
  0x24   : > { %v512_v8 = vrot.slane %v511_v7, 2 }
  0x25   : > { %5092 = vmatpush3.bf16.msra.mxu0 %v5984_v16 }
  0x26   : > { %v513_v9 = vadd.f32 %v512_v8, %v511_v7  ;;  %891 = vmatprep.subr.bf16.mxu0 %v5994_v17  ;;  %v6200_v8 = vld [vmem:[%s7591_s6] sm:$0x1] }
  0x28   : > { %v514_v10 = vrot.slane %v513_v9, 1 }
  0x2a   : > { %v515_v11 = vadd.f32 %v514_v10, %v513_v9 }
  0x2c   : > { %5405 = vrcp.f32 %v515_v11 }
  0x36   : > { %v5406_v12 = vpop.eup %5405 }
  0x37   : > { %603 = vperm.xlu0 %5362, %v5406_v12  }
  0xb6   : > { %v6020_v35 = vpop.permute.xlu0 %603 }
  0xf3   : > { %v587_v21 = vpop.f32.mrb[0].mxu0 }
  0xf4   : > { %v6003_v22 = vadd.f32 %v4891_v20, %v587_v21  ;;  %v5079_v23 = vpop.f32.mrb[1].mxu0 }
  0xf5   : > { %v590_v24 = vpop.f32.mrb[2].mxu0  ;;  %v6205_v23 = vsub.s32 0, %v5997_v19 }
  0xf6   : > { %851 = vrot.lane.b32.xlu0 %v6003_v22, %s7602_s17  ;;  %v5080_v26 = vpop.f32.mrb[3].mxu0  ;;  %v848_v27 = vrot.slane %v6003_v22, 1  ;;  %v594_v28 = vsel %vm593_vm4, %v6003_v22, 0.0  ;;  %v607_v44 = vpack.c.bf16 %v6003_v22, %v6003_v22  ;;  %v846_v59 = vrot.slane %v6003_v22, 7  ;;  %s7620_s17 = smov 64  }
  0xf7   : > { %v595_v29 = vrot.slane %v594_v28, 4 }
  0xf8   : > { %v6014_v30 = vmul.f32 %v848_v27, %v6006_v25  ;;  %v6170_v63 = vmul.f32 %v846_v59, %v6165_v60 }
  0xf9   : > { %v596_v31 = vadd.f32 %v595_v29, %v594_v28 }
  0xfa   : > { %855 = vrot.lane.b32.xlu1 %v6014_v30, %s7606_s23 }
  0xfb   : > { %v597_v32 = vrot.slane %v596_v31, 2 }
  0xfd   : > { %v598_v33 = vadd.f32 %v597_v32, %v596_v31 }
  0xfe   : > { %858 = vrot.lane.b32.xlu1 %v6003_v22, %s7604_s25 }
  0xff   : > { %v599_v34 = vrot.slane %v598_v33, 1 }
 0x101   : > { %v600_v36 = vadd.f32 %v599_v34, %v598_v33 }
 0x103   : > { %v6023_v37 = vmul.f32 %v6020_v35, %v600_v36 }
 0x105   : > { %v608_v39 = vpack.c.bf16 %v6023_v37, %v6023_v37 }
 0x107   : > { %5086 = vmatmul.mubr.msk.bf16.vlgmr.msra.gmra.mrb[0].mxu1 %vm593_vm4, %v608_v39  ;;  %5094 = vmatmul.mubr.msk.bf16.vlgmr.msra.gmra.mrb[4].mxu0 %vm593_vm4, %v608_v39 }
 0x108   : > { %5098 = vmatpush3.bf16.msra.mxu1 %v5972_v14  ;;  %892 = vmatpush1.bf16.msra.mxu0 %v6028_v38 }
 0x109   : > { %5099 = vmatprep.subr.bf16.mxu1 %v5804_v1  ;;  %893 = vmatprep.subr.bf16.mxu0 %v6035_v40 }
 0x10a   : > { %5101 = vmatprep.mubr.msk.bf16.mxu1 %vm5805_vm0, %v5804_v1  ;;  %923 = vmatprep.mubr.bf16.mxu0 %v5806_v2 }
 0x10c   : > { %5100 = vmatpush3.bf16.msra.mxu1 %v5984_v16  ;;  %894 = vmatpush1.bf16.msra.mxu0 %v6044_v41 }
 0x10d   : > { %1036 = vmatprep.subr.bf16.mxu1 %v6051_v42  ;;  %5105 = vmatprep.subr.bf16.mxu0 %v5804_v1 }
 0x10f   : > { %5102 = vmatmul.mubr.msk.bf16.vlgmr.msra.gmra.mrb[4].mxu1 %vm593_vm4, %v607_v44  ;;  %4907 = vmatmul.mubr.msk.bf16.vlgmr.msra.gmra.mrb[8].mxu0 %vm593_vm4, %v608_v39 }
 0x110   : > { %1037 = vmatpush1.bf16.msra.mxu1 %v6061_v43  ;;  %1068 = vmatprep.mubr.bf16.mxu1 %v5806_v2 }
 0x111   : > { %1038 = vmatprep.subr.bf16.mxu1 %v6069_v45  ;;  %5106 = vmatpush3.bf16.msra.mxu0 %v5967_v13 }
 0x112   : > { %5107 = vmatprep.subr.bf16.mxu0 %v5804_v1  ;;  %5109 = vmatprep.mubr.msk.bf16.mxu0 %vm5805_vm0, %v5804_v1 }
 0x114   : > { %1039 = vmatpush1.bf16.msra.mxu1 %v6078_v46 }
 0x115   : > { %1040 = vmatprep.subr.bf16.mxu1 %v6085_v47  ;;  %5108 = vmatpush3.bf16.msra.mxu0 %v5979_v15 }
 0x116   : > { %5113 = vmatprep.subr.bf16.mxu0 %v5804_v1 }
 0x118   : > { %1041 = vmatpush1.bf16.msra.mxu1 %v6095_v48 }
 0x119   : > { %1042 = vmatprep.subr.bf16.mxu1 %v6101_v49 }
 0x11c   : > { %1043 = vmatpush1.bf16.msra.mxu1 %v6109_v50 }
 0x11d   : > { %1044 = vmatprep.subr.bf16.mxu1 %v6115_v51 }
 0x120   : > { %1045 = vmatpush1.bf16.msra.mxu1 %v6121_v52 }
 0x121   : > { %1046 = vmatprep.subr.bf16.mxu1 %v6127_v53 }
 0x124   : > { %1047 = vmatpush1.bf16.msra.mxu1 %v6133_v54 }
 0x125   : > { %1048 = vmatprep.subr.bf16.mxu1 %v6139_v55 }
 0x128   : > { %1049 = vmatpush1.bf16.msra.mxu1 %v6145_v56 }
 0x129   : > { %1050 = vmatprep.subr.bf16.mxu1 %v6151_v57 }
 0x12c   : > { %1051 = vmatpush1.bf16.msra.mxu1 %v6157_v58 }
 0x12d   : > { %1481 = vmatprep.subr.bf16.mxu1 %v6051_v42 }
 0x168   : > { %v6167_v61 = vpop.permute.xlu0 %851 }
 0x169   : > { %v861_v0 = vsel %vm593_vm4, %v6170_v63, %v6167_v61 }
 0x16c   : > { %v856_v62 = vpop.permute.xlu1 %855 }
 0x16d   : > { %v863_v4 = vsel %vm862_vm6, %v861_v0, %v856_v62  ;;  %v533_v62 = vld [vmem:[%s7595_s10] sm:$0x3] }
 0x170   : > { %v6176_v5 = vpop.permute.xlu1 %858 }
 0x171   : > { %v865_v6 = vsel %vm864_vm7, %v863_v4, %v6176_v5  ;;  %v6214_v4 = vrot.slane %v533_v62, %v6205_v23 }
 0x172   : > { %v866_v7 = vpack.c.bf16 %v865_v6, %v865_v6  ;;  %v1084_v6 = vsub.s32 1, %v5997_v19 }
 0x174   : > { %1069 = vmatmul.mubr.bf16.vlgmr.msra.gmra.mrb[8].mxu1 %v866_v7 }
 0x175   : > { %1482 = vmatpush1.bf16.msra.mxu1 %v6061_v43  ;;  %1513 = vmatprep.mubr.bf16.mxu1 %v5806_v2 }
 0x176   : > { %1483 = vmatprep.subr.bf16.mxu1 %v6069_v45 }
 0x179   : > { %1484 = vmatpush1.bf16.msra.mxu1 %v6078_v46 }
 0x17a   : > { %1485 = vmatprep.subr.bf16.mxu1 %v6085_v47 }
 0x17d   : > { %1486 = vmatpush1.bf16.msra.mxu1 %v6095_v48 }
 0x17e   : > { %1487 = vmatprep.subr.bf16.mxu1 %v6101_v49 }
 0x181   : > { %1488 = vmatpush1.bf16.msra.mxu1 %v6109_v50 }
 0x182   : > { %1489 = vmatprep.subr.bf16.mxu1 %v6115_v51 }
 0x185   : > { %1490 = vmatpush1.bf16.msra.mxu1 %v6121_v52 }
 0x186   : > { %1491 = vmatprep.subr.bf16.mxu1 %v6127_v53 }
 0x189   : > { %1492 = vmatpush1.bf16.msra.mxu1 %v6133_v54 }
 0x18a   : > { %1493 = vmatprep.subr.bf16.mxu1 %v6139_v55 }
 0x18d   : > { %1494 = vmatpush1.bf16.msra.mxu1 %v6145_v56 }
 0x18e   : > { %1495 = vmatprep.subr.bf16.mxu1 %v6151_v57 }
 0x191   : > { %1496 = vmatpush1.bf16.msra.mxu1 %v6157_v58 }
 0x192   : > { %1911 = vmatprep.subr.bf16.mxu1 %v6051_v42 }
 0x1da   : > { %v662_v9 = vpop.f32.mrb[0].mxu1  ;;  %v718_v10 = vpop.f32.mrb[4].mxu0 }
 0x1db   : > { %v6202_v11 = vadd.f32 %v718_v10, %v662_v9  ;;  %v5087_v12 = vpop.f32.mrb[1].mxu1  ;;  %v5095_v18 = vpop.f32.mrb[5].mxu0  ;;  %v767_v24 = vadd.f32 %v662_v9, %v6200_v8 }
 0x1dc   : > { %v665_v20 = vpop.f32.mrb[2].mxu1  ;;  %v721_v21 = vpop.f32.mrb[6].mxu0 }
 0x1dd   : > { %v5088_v26 = vpop.f32.mrb[3].mxu1  ;;  %v5096_v27 = vpop.f32.mrb[7].mxu0  ;;  %v771_v28 = vrot.slane %v767_v24, %v6205_v23  ;;  %v6221_v24 = vrot.slane %v533_v62, %v1084_v6 }
 0x1de   : > { %v524_v27 = vrot.slane %v5959_v3, 1 }
 0x1e2   : > { %v761_v29 = vpop.f32.mrb[4].mxu1  ;;  %v925_v31 = vpop.f32.mrb[8].mxu0 }
 0x1e3   : > { %v772_v32 = vadd.f32 %v771_v28, %v761_v29  ;;  %v5103_v33 = vpop.f32.mrb[5].mxu1  ;;  %v927_v34 = vpop.f32.mrb[9].mxu0  ;;  %v951_v0 = vrot.slane %v925_v31, %v6205_v23  ;;  %v525_v31 = vsub.f32 1.0, %v524_v27 }
 0x1e4   : > { %v764_v36 = vpop.f32.mrb[6].mxu1  ;;  %v929_v39 = vpop.f32.mrb[10].mxu0  ;;  %v955_v7 = vrot.slane %v927_v34, %v6205_v23 }
 0x1e5   : > { %v5104_v44 = vpop.f32.mrb[7].mxu1  ;;  %v930_v59 = vpop.f32.mrb[11].mxu0 }
 0x1e6   : > { %v526_v44 = vmul.f32 %v525_v31, %v6006_v25 }
 0x1e8   : > { %v527_v62 = vmul.f32 200.0, %v526_v44 }
 0x247   : > { %v1070_v9 = vpop.f32.mrb[8].mxu1 }
 0x248   : > { %v1071_v10 = vadd.f32 %v1070_v9, %v951_v0  ;;  %v1072_v12 = vpop.f32.mrb[9].mxu1  ;;  %v528_v0 = vsub.f32 1.0, %v5959_v3 }
 0x249   : > { %v1073_v18 = vadd.f32 %v1072_v12, %v955_v7  ;;  %v1074_v20 = vpop.f32.mrb[10].mxu1 }
 0x24a   : > { %v6219_v21 = vadd.f32 %v6214_v4, %v1071_v10  ;;  %v1075_v26 = vpop.f32.mrb[11].mxu1  ;;  %v529_v6 = vmul.f32 200.0, %v528_v0 }
 0x24b   : > { %v6228_v19 = vadd.f32 %v6221_v24, %v1073_v18 }
 0x24c   : > { %1101 = vrot.lane.b32.xlu1 %v6219_v21, %s7606_s23  ;;  %1097 = vrot.lane.b32.xlu0 %v6219_v21, %s7604_s25 }
 0x250   : > { %1106 = vrot.lane.b32.xlu0 %v6228_v19, %s7618_s2 }
 0x2be   : > { %v1098_v28 = vpop.permute.xlu0 %1097  ;;  %v1102_v33 = vpop.permute.xlu1 %1101 }
 0x2bf   : > { %v1100_v29 = vmax.f32 %v6219_v21, %v1098_v28 }
 0x2c1   : > { %v1104_v34 = vmax.f32 %v1100_v29, %v1102_v33 }
 0x2c2   : > { %v1107_v36 = vpop.permute.xlu0 %1106 }
 0x2c3   : > { %v1109_v39 = vmax.f32 %v1104_v34, %v1107_v36 }
 0x2c5   : > { %v6236_v59 = vmax.f32 %v1109_v39, %v6228_v19 }
 0x2c7   : > { %1142 = vrot.lane.b32.xlu0 %v6236_v59, %s7606_s23  ;;  %1122 = vrot.lane.b32.xlu1 %v6236_v59, %s7618_s2 }
 0x2cb   : > { %775 = vperm.xlu0 %5362, %v527_v62   ;;  %1162 = vrot.lane.b32.xlu1 %v6236_v59, %s7604_s25 }
 0x2cf   : > { %1128 = vrot.lane.b32.xlu0 %v6003_v22, %s7606_s23  ;;  %783 = vperm.xlu1 %5363, %v529_v6  }
 0x2d3   : > { %1148 = vrot.lane.b32.xlu1 %v6014_v30, %s7604_s25 }
 0x339   : > { %v1143_v7 = vpop.permute.xlu0 %1142  ;;  %v1123_v9 = vpop.permute.xlu1 %1122 }
 0x33a   : > { %v1145_v10 = vsub.f32 %v6219_v21, %v1143_v7  ;;  %v1125_v12 = vsub.f32 %v6219_v21, %v1123_v9 }
 0x33c   : > { %v1146_v18 = vmul.f32 1.442695, %v1145_v10  ;;  %v1126_v20 = vmul.f32 1.442695, %v1125_v12 }
 0x33d   : > { %v1163_v26 = vpop.permute.xlu1 %1162 }
 0x33e   : > { %5407 = vpow2.f32 %v1146_v18  ;;  %v1165_v27 = vsub.f32 %v6228_v19, %v1163_v26 }
 0x33f   : > { %5409 = vpow2.f32 %v1126_v20  ;;  %v4901_v20 = vld [vmem:[%s7592_s7] ss:$0 sm:$0xff] }
 0x340   : > { %v1166_v28 = vmul.f32 1.442695, %v1165_v27 }
 0x342   : > { %5411 = vpow2.f32 %v1166_v28 }
 0x348   : > { %v5408_v29 = vpop.eup %5407 }
 0x349   : > { %v5410_v31 = vpop.eup %5409  ;;  %1158 = vrot.lane.b32.xlu1 %v5408_v29, %s7606_s23 }
 0x34a   : > { %1138 = vrot.lane.b32.xlu0 %v5410_v31, %s7604_s25  ;;  %v6254_v30 = vpop.permute.xlu0 %775 }
 0x34b   : > { %v778_v33 = vadd.f32 %v6254_v30, %v772_v32 }
 0x34c   : > { %v5412_v34 = vpop.eup %5411 }
 0x34d   : > { %v787_v36 = vsel %vm593_vm4, %v778_v33, -inf  ;;  %1115 = vrot.lane.b32.xlu1 %v6170_v63, %s7618_s2  ;;  %v1168_v12 = vmul.f32 %v5412_v34, %v6023_v37  ;;  %v780_v63 = vadd.f32 %v6202_v11, %v6200_v8 }
 0x34e   : > { %v788_v39 = vrot.slane %v787_v36, 4  ;;  %1175 = vrot.lane.b32.xlu0 %v5412_v34, %s7618_s2  ;;  %v1129_v44 = vpop.permute.xlu0 %1128  ;;  %v6261_v62 = vpop.permute.xlu1 %783 }
 0x34f   : > { %v1131_v0 = vmul.f32 %v5410_v31, %v1129_v44  ;;  %v786_v27 = vadd.f32 %v6261_v62, %v780_v63 }
 0x350   : > { %v789_v6 = vmax.f32 %v787_v36, %v788_v39 }
 0x352   : > { %v790_v7 = vrot.slane %v789_v6, 2  ;;  %1133 = vrot.lane.b32.xlu0 %v1131_v0, %s7604_s25  ;;  %v1149_v9 = vpop.permute.xlu1 %1148 }
 0x353   : > { %v1151_v10 = vmul.f32 %v5408_v29, %v1149_v9 }
 0x354   : > { %v791_v32 = vmax.f32 %v789_v6, %v790_v7 }
 0x355   : > { %1153 = vrot.lane.b32.xlu1 %v1151_v10, %s7606_s23 }
 0x356   : > { %v792_v18 = vrot.slane %v791_v32, 1  ;;  %1170 = vrot.lane.b32.xlu0 %v1168_v12, %s7618_s2 }
 0x358   : > { %v793_v26 = vmax.f32 %v791_v32, %v792_v18 }
 0x359   : > { %830 = vrot.lane.b32.xlu1 %v4901_v20, %s7618_s2 }
 0x35a   : > { %v794_v28 = vmax.f32 %v793_v26, %v786_v27 }
 0x35c   : > { %v798_v29 = vrot.slane %v794_v28, %v6205_v23  ;;  %v802_v36 = vsub.f32 %v786_v27, %v794_v28 }
 0x35d   : > { %1195 = vperm.xlu1 %5363, %v5959_v3  }
 0x35e   : > { %v799_v31 = vsub.f32 %v778_v33, %v798_v29  ;;  %v803_v39 = vmul.f32 1.442695, %v802_v36 }
 0x360   : > { %v800_v34 = vmul.f32 1.442695, %v799_v31 }
 0x362   : > { %5413 = vpow2.f32 %v800_v34 }
 0x363   : > { %5415 = vpow2.f32 %v803_v39 }
 0x36c   : > { %v5414_v44 = vpop.eup %5413 }
 0x36d   : > { %v805_v0 = vsel %vm593_vm4, %v5414_v44, 0.0  ;;  %v813_v6 = vmul.f32 %v5414_v44, %v6003_v22  ;;  %v5416_v26 = vpop.eup %5415 }
 0x36e   : > { %v806_v7 = vrot.slane %v805_v0, 4  ;;  %v821_v22 = vmul.f32 %v5416_v26, %v6023_v37 }
 0x36f   : > { %v814_v9 = vsel %vm593_vm4, %v813_v6, 0.0 }
 0x370   : > { %v807_v10 = vadd.f32 %v806_v7, %v805_v0  ;;  %v815_v32 = vrot.slane %v814_v9, 4  ;;  %v1111_v0 = vsub.f32 %v6219_v21, %v6236_v59  ;;  %v1179_v7 = vsub.f32 %v6228_v19, %v6236_v59 }
 0x372   : > { %v808_v12 = vrot.slane %v807_v10, 2  ;;  %v816_v63 = vadd.f32 %v815_v32, %v814_v9  ;;  %v1112_v6 = vmul.f32 1.442695, %v1111_v0  ;;  %v1180_v9 = vmul.f32 1.442695, %v1179_v7 }
 0x374   : > { %v809_v18 = vadd.f32 %v808_v12, %v807_v10  ;;  %v817_v3 = vrot.slane %v816_v63, 2 }
 0x376   : > { %v810_v33 = vrot.slane %v809_v18, 1  ;;  %v818_v27 = vadd.f32 %v817_v3, %v816_v63 }
 0x378   : > { %v811_v20 = vadd.f32 %v810_v33, %v809_v18  ;;  %v819_v29 = vrot.slane %v818_v27, 1 }
 0x37a   : > { %v812_v28 = vadd.f32 %v5416_v26, %v811_v20  ;;  %v820_v31 = vadd.f32 %v819_v29, %v818_v27 }
 0x37c   : > { %5417 = vrcp.f32 %v812_v28  ;;  %v822_v34 = vadd.f32 %v821_v22, %v820_v31 }
 0x386   : > { %v5418_v36 = vpop.eup %5417 }
 0x387   : > { %v6280_v39 = vmul.f32 %v5418_v36, %v822_v34 }
 0x389   : > { %5419 = vtanh.f32 %v6280_v39 }
 0x38a   : > { %5421 = vpow2.f32 %v1112_v6 }
 0x38b   : > { %5423 = vpow2.f32 %v1180_v9 }
 0x393   : > { %v5420_v44 = vpop.eup %5419 }
 0x394   : > { %842 = vrot.lane.b32.xlu0 %v5420_v44, %s7618_s2  ;;  %v5422_v10 = vpop.eup %5421 }
 0x395   : > { %v5424_v20 = vpop.eup %5423 }
 0x396   : > { %v1182_v34 = vmul.f32 %v5424_v20, %v6167_v61 }
 0x3bb   : > { %v1159_v37 = vpop.permute.xlu1 %1158 }
 0x3bc   : > { %v1139_v32 = vpop.permute.xlu0 %1138 }
 0x3bd   : > { %v1141_v12 = vadd.f32 %v5422_v10, %v1139_v32 }
 0x3bf   : > { %v1161_v63 = vadd.f32 %v1159_v37, %v1141_v12  ;;  %v1116_v33 = vpop.permute.xlu1 %1115 }
 0x3c0   : > { %v1176_v18 = vpop.permute.xlu0 %1175  ;;  %v1118_v27 = vmul.f32 %v5422_v10, %v1116_v33  ;;  %v4924_v33 = vmul.f32 -1.442695, %v6219_v21 }
 0x3c1   : > { %v1178_v3 = vadd.f32 %v1176_v18, %v1161_v63 }
 0x3c3   : > { %v1184_v26 = vadd.f32 %v5424_v20, %v1178_v3 }
 0x3c4   : > { %v1134_v28 = vpop.permute.xlu0 %1133 }
 0x3c5   : > { %5425 = vrcp.f32 %v1184_v26  ;;  %v1136_v29 = vadd.f32 %v1134_v28, %v1118_v27 }
 0x3c7   : > { %v1154_v31 = vpop.permute.xlu1 %1153 }
 0x3c8   : > { %v1156_v22 = vadd.f32 %v1154_v31, %v1136_v29  ;;  %v1171_v19 = vpop.permute.xlu0 %1170 }
 0x3ca   : > { %v1173_v59 = vadd.f32 %v1171_v19, %v1156_v22 }
 0x3cb   : > { %v6293_v7 = vpop.permute.xlu1 %830 }
 0x3cc   : > { %v1183_v36 = vadd.f32 %v1182_v34, %v1173_v59  ;;  %v833_v9 = vadd.f32 %v6293_v7, %v6202_v11 }
 0x3ce   : > { %v4902_v37 = vmul.f32 -1.442695, %v833_v9 }
 0x3cf   : > { %v5426_v44 = vpop.eup %5425 }
 0x3d0   : > { %v6289_v0 = vmul.f32 %v5426_v44, %v1183_v36 }
 0x3d2   : > { %5427 = vtanh.f32 %v6289_v0 }
 0x3d3   : > { %5429 = vpow2.f32 %v4902_v37 }
 0x3dc   : > { %v5428_v6 = vpop.eup %5427  ;;  %v6299_v29 = vpop.permute.xlu1 %1195 }
 0x3dd   : > { %1189 = vrot.lane.b32.xlu0 %v5428_v6, %s7604_s25  ;;  %v5430_v10 = vpop.eup %5429 }
 0x3de   : > { %v837_v32 = vadd.f32 1.0, %v5430_v10 }
 0x3e0   : > { %5431 = vrcp.f32 %v837_v32 }
 0x3e1   : > { %5433 = vpow2.f32 %v4924_v33 }
 0x3ea   : > { %v5432_v12 = vpop.eup %5431 }
 0x3eb   : > { %v5434_v20 = vpop.eup %5433 }
 0x3ec   : > { %v1093_v26 = vadd.f32 1.0, %v5434_v20 }
 0x3ee   : > { %5435 = vrcp.f32 %v1093_v26 }
 0x3f8   : > { %v5436_v27 = vpop.eup %5435 }
 0x406   : > { %v843_v63 = vpop.permute.xlu0 %842 }
 0x407   : > { %v845_v18 = vmul.f32 %v5432_v12, %v843_v63 }
 0x409   : > { %v1201_v3 = vpack.c.bf16 %v845_v18, %v845_v18 }
 0x40b   : > { %1211 = vrot.lane.b32.xlu1 %v1201_v3, %s7604_s25 }
 0x44f   : > { %v1190_v28 = vpop.permute.xlu0 %1189 }
 0x450   : > { %v1192_v11 = vmul.f32 %v5436_v27, %v1190_v28 }
 0x452   : > { %v1198_v31 = vmul.f32 %v6299_v29, %v1192_v11 }
 0x454   : > { %1421 = vrot.lane.b32.xlu0 %v1198_v31, %s7618_s2  ;;  %v1418_v22 = vrot.slane %v1198_v31, 1  ;;  %v1202_v21 = vsel %vm593_vm4, %v1198_v31, 0.0  ;;  %v1200_v12 = vpack.c.bf16 %v1198_v31, %v1198_v31 }
 0x455   : > { %v1203_v59 = vrot.slane %v1202_v21, 4 }
 0x456   : > { %v1419_v19 = vmul.f32 %v1418_v22, %v6006_v25 }
 0x457   : > { %v1204_v34 = vadd.f32 %v1203_v59, %v1202_v21 }
 0x458   : > { %1425 = vrot.lane.b32.xlu1 %v1419_v19, %s7606_s23 }
 0x459   : > { %v1205_v36 = vrot.slane %v1204_v34, 2 }
 0x45b   : > { %v1206_v44 = vadd.f32 %v1205_v36, %v1204_v34 }
 0x45d   : > { %v1207_v6 = vrot.slane %v1206_v44, 1 }
 0x45f   : > { %v1208_v9 = vadd.f32 %v1207_v6, %v1206_v44 }
 0x461   : > { %v1209_v10 = vmul.f32 %v1208_v9, %v6020_v35 }
 0x463   : > { %v1256_v32 = vpack.c.bf16 %v1209_v10, %v1209_v10 }
 0x47d   : > { %v1212_v37 = vpop.permute.xlu1 %1211 }
 0x47e   : > { %5110 = vmatmul.mubr.msk.bf16.vlgmr.msra.gmra.mrb[12].mxu0 %vm593_vm4, %v1212_v37 }
 0x47f   : > { %5114 = vmatpush3.bf16.msra.mxu0 %v5972_v14  ;;  %5117 = vmatprep.mubr.msk.bf16.mxu0 %vm5805_vm0, %v5804_v1 }
 0x480   : > { %5115 = vmatprep.subr.bf16.mxu0 %v5804_v1 }
 0x483   : > { %5116 = vmatpush3.bf16.msra.mxu0 %v5984_v16 }
 0x484   : > { %5121 = vmatprep.subr.bf16.mxu0 %v5804_v1 }
 0x486   : > { %5118 = vmatmul.mubr.msk.bf16.vlgmr.msra.gmra.mrb[16].mxu0 %vm593_vm4, %v1256_v32 }
 0x487   : > { %5122 = vmatpush3.bf16.msra.mxu0 %v5972_v14  ;;  %5125 = vmatprep.mubr.msk.bf16.mxu0 %vm5805_vm0, %v5804_v1  ;;  %v1416_v14 = vrot.slane %v1198_v31, 7 }
 0x488   : > { %5123 = vmatprep.subr.bf16.mxu0 %v5804_v1 }
 0x48b   : > { %5124 = vmatpush3.bf16.msra.mxu0 %v5984_v16 }
 0x48c   : > { %1432 = vmatprep.subr.bf16.mxu0 %v5994_v17  ;;  %v1417_v17 = vmul.f32 %v1416_v14, %v6165_v60 }
 0x48e   : > { %5126 = vmatmul.mubr.msk.bf16.vlgmr.msra.gmra.mrb[20].mxu0 %vm593_vm4, %v1200_v12 }
 0x48f   : > { %1433 = vmatpush1.bf16.msra.mxu0 %v6028_v38  ;;  %1464 = vmatprep.mubr.bf16.mxu0 %v5806_v2 }
 0x490   : > { %1434 = vmatprep.subr.bf16.mxu0 %v6035_v40 }
 0x493   : > { %1435 = vmatpush1.bf16.msra.mxu0 %v6044_v41 }
 0x494   : > { %5129 = vmatprep.subr.bf16.mxu0 %v5804_v1 }
 0x496   : > { %4929 = vmatmul.mubr.msk.bf16.vlgmr.msra.gmra.mrb[24].mxu0 %vm593_vm4, %v1212_v37 }
 0x497   : > { %5130 = vmatpush3.bf16.msra.mxu0 %v5967_v13  ;;  %5133 = vmatprep.mubr.msk.bf16.mxu0 %vm5805_vm0, %v5804_v1 }
 0x498   : > { %5131 = vmatprep.subr.bf16.mxu0 %v5804_v1 }
 0x49b   : > { %5132 = vmatpush3.bf16.msra.mxu0 %v5979_v15 }
 0x49c   : > { %5137 = vmatprep.subr.bf16.mxu0 %v5804_v1 }
 0x4c6   : > { %v1422_v16 = vpop.permute.xlu0 %1421 }
 0x4c7   : > { %v1428_v38 = vsel %vm593_vm4, %v1417_v17, %v1422_v16 }
 0x4ca   : > { %v1426_v40 = vpop.permute.xlu1 %1425 }
 0x4cb   : > { %v1429_v41 = vsel %vm862_vm6, %v1428_v38, %v1426_v40 }
 0x4cc   : > { %v1430_v13 = vsel %vm864_vm7, %v1429_v41, %v6176_v5 }
 0x4cd   : > { %v1431_v63 = vpack.c.bf16 %v1430_v13, %v1430_v13 }
 0x4cf   : > { %1514 = vmatmul.mubr.bf16.vlgmr.msra.gmra.mrb[12].mxu1 %v1431_v63 }
 0x4d0   : > { %1912 = vmatpush1.bf16.msra.mxu1 %v6061_v43  ;;  %1943 = vmatprep.mubr.bf16.mxu1 %v5806_v2 }
 0x4d1   : > { %1913 = vmatprep.subr.bf16.mxu1 %v6069_v45 }
 0x4d4   : > { %1914 = vmatpush1.bf16.msra.mxu1 %v6078_v46 }
 0x4d5   : > { %1915 = vmatprep.subr.bf16.mxu1 %v6085_v47 }
 0x4d8   : > { %1916 = vmatpush1.bf16.msra.mxu1 %v6095_v48 }
 0x4d9   : > { %1917 = vmatprep.subr.bf16.mxu1 %v6101_v49 }
 0x4dc   : > { %1918 = vmatpush1.bf16.msra.mxu1 %v6109_v50 }
 0x4dd   : > { %1919 = vmatprep.subr.bf16.mxu1 %v6115_v51 }
 0x4e0   : > { %1920 = vmatpush1.bf16.msra.mxu1 %v6121_v52 }
 0x4e1   : > { %1921 = vmatprep.subr.bf16.mxu1 %v6127_v53 }
 0x4e4   : > { %1922 = vmatpush1.bf16.msra.mxu1 %v6133_v54 }
 0x4e5   : > { %1923 = vmatprep.subr.bf16.mxu1 %v6139_v55 }
 0x4e8   : > { %1924 = vmatpush1.bf16.msra.mxu1 %v6145_v56 }
 0x4e9   : > { %1925 = vmatprep.subr.bf16.mxu1 %v6151_v57 }
 0x4ec   : > { %1926 = vmatpush1.bf16.msra.mxu1 %v6157_v58 }
 0x4ed   : > { %2341 = vmatprep.subr.bf16.mxu1 %v6051_v42 }
 0x551   : > { %v1250_v15 = vpop.f32.mrb[12].mxu0 }
 0x552   : > { %v5111_v43 = vpop.f32.mrb[13].mxu0  ;;  %v1343_v51 = vadd.f32 %v1250_v15, %v6200_v8 }
 0x553   : > { %v1253_v45 = vpop.f32.mrb[14].mxu0 }
 0x554   : > { %v5112_v46 = vpop.f32.mrb[15].mxu0  ;;  %v1347_v53 = vrot.slane %v1343_v51, %v6205_v23 }
 0x559   : > { %v1294_v47 = vpop.f32.mrb[16].mxu0 }
 0x55a   : > { %v6356_v48 = vadd.f32 %v1294_v47, %v1250_v15  ;;  %v5119_v49 = vpop.f32.mrb[17].mxu0 }
 0x55b   : > { %v1297_v50 = vpop.f32.mrb[18].mxu0 }
 0x55c   : > { %v5120_v52 = vpop.f32.mrb[19].mxu0  ;;  %v1351_v31 = vadd.f32 %v6356_v48, %v6200_v8 }
 0x55e   : > { %v1352_v21 = vadd.f32 %v1351_v31, %v6261_v62 }
 0x561   : > { %v1337_v54 = vpop.f32.mrb[20].mxu0 }
 0x562   : > { %v1348_v55 = vadd.f32 %v1347_v53, %v1337_v54  ;;  %v5127_v56 = vpop.f32.mrb[21].mxu0  ;;  %v1199_v53 = vmul.f32 %v6299_v29, %v6289_v0 }
 0x563   : > { %v1340_v57 = vpop.f32.mrb[22].mxu0 }
 0x564   : > { %v1349_v42 = vadd.f32 %v1348_v55, %v6254_v30  ;;  %v5128_v58 = vpop.f32.mrb[23].mxu0 }
 0x566   : > { %v1353_v18 = vsel %vm593_vm4, %v1349_v42, -inf }
 0x567   : > { %v1354_v3 = vrot.slane %v1353_v18, 4 }
 0x569   : > { %v1355_v33 = vmax.f32 %v1353_v18, %v1354_v3  ;;  %v1466_v20 = vpop.f32.mrb[24].mxu0 }
 0x56a   : > { %v1468_v26 = vpop.f32.mrb[25].mxu0  ;;  %v1476_v63 = vrot.slane %v1466_v20, %v6205_v23 }
 0x56b   : > { %v1356_v27 = vrot.slane %v1355_v33, 2  ;;  %v1470_v28 = vpop.f32.mrb[26].mxu0  ;;  %v1480_v15 = vrot.slane %v1468_v26, %v6205_v23 }
 0x56c   : > { %v1471_v11 = vpop.f32.mrb[27].mxu0 }
 0x56d   : > { %v1357_v22 = vmax.f32 %v1355_v33, %v1356_v27 }
 0x56f   : > { %v1358_v19 = vrot.slane %v1357_v22, 1 }
 0x571   : > { %v1359_v59 = vmax.f32 %v1357_v22, %v1358_v19 }
 0x573   : > { %v1360_v34 = vmax.f32 %v1359_v59, %v1352_v21 }
 0x575   : > { %v1364_v36 = vrot.slane %v1360_v34, %v6205_v23  ;;  %v1368_v44 = vsub.f32 %v1352_v21, %v1360_v34 }
 0x577   : > { %v1365_v6 = vsub.f32 %v1349_v42, %v1364_v36  ;;  %v1369_v37 = vmul.f32 1.442695, %v1368_v44 }
 0x579   : > { %v1366_v9 = vmul.f32 1.442695, %v1365_v6 }
 0x57b   : > { %5437 = vpow2.f32 %v1366_v9 }
 0x57c   : > { %5439 = vpow2.f32 %v1369_v37 }
 0x585   : > { %v5438_v10 = vpop.eup %5437 }
 0x586   : > { %v1371_v32 = vsel %vm593_vm4, %v5438_v10, 0.0  ;;  %v5440_v41 = vpop.eup %5439 }
 0x587   : > { %v1372_v12 = vrot.slane %v1371_v32, 4  ;;  %v1391_v19 = vmul.f32 %v5440_v41, %v6280_v39 }
 0x589   : > { %v1373_v14 = vadd.f32 %v1372_v12, %v1371_v32 }
 0x58b   : > { %v1374_v16 = vrot.slane %v1373_v14, 2 }
 0x58d   : > { %v1375_v17 = vadd.f32 %v1374_v16, %v1373_v14 }
 0x58f   : > { %v1376_v38 = vrot.slane %v1375_v17, 1 }
 0x591   : > { %v1377_v40 = vadd.f32 %v1376_v38, %v1375_v17 }
 0x593   : > { %v1378_v13 = vadd.f32 %v5440_v41, %v1377_v40 }
 0x595   : > { %5441 = vrcp.f32 %v1378_v13 }
 0x59f   : > { %v5442_v34 = vpop.eup %5441 }
 0x5a2   : > { %v1515_v43 = vpop.f32.mrb[12].mxu1 }
 0x5a3   : > { %v1516_v45 = vadd.f32 %v1515_v43, %v1476_v63  ;;  %v1517_v46 = vpop.f32.mrb[13].mxu1 }
 0x5a4   : > { %v1518_v47 = vadd.f32 %v1517_v46, %v1480_v15  ;;  %v1519_v49 = vpop.f32.mrb[14].mxu1  ;;  %v1415_v46 = vrot.slane %v6280_v39, %v6205_v23 }
 0x5a5   : > { %v6370_v50 = vadd.f32 %v1516_v45, %v6214_v4  ;;  %v1520_v51 = vpop.f32.mrb[15].mxu1 }
 0x5a6   : > { %v6377_v52 = vadd.f32 %v1518_v47, %v6221_v24  ;;  %v1395_v51 = vadd.f32 %v6356_v48, %v6293_v7 }
 0x5a7   : > { %1535 = vrot.lane.b32.xlu1 %v6370_v50, %s7606_s23  ;;  %1531 = vrot.lane.b32.xlu0 %v6370_v50, %s7604_s25 }
 0x5ab   : > { %1380 = vrot.lane.b32.xlu1 %v1199_v53, %s7604_s25  ;;  %1540 = vrot.lane.b32.xlu0 %v6377_v52, %s7618_s2 }
 0x619   : > { %v1536_v54 = vpop.permute.xlu1 %1535  ;;  %v1532_v55 = vpop.permute.xlu0 %1531 }
 0x61a   : > { %v1534_v56 = vmax.f32 %v6370_v50, %v1532_v55 }
 0x61c   : > { %v1538_v57 = vmax.f32 %v1534_v56, %v1536_v54 }
 0x61d   : > { %v1381_v42 = vpop.permute.xlu1 %1380  ;;  %v1541_v58 = vpop.permute.xlu0 %1540 }
 0x61e   : > { %v1383_v18 = vmul.f32 %v5438_v10, %v1381_v42  ;;  %v1543_v3 = vmax.f32 %v1538_v57, %v1541_v58  ;;  %v1410_v27 = vrot.slane %v1381_v42, 1  ;;  %v1408_v17 = vrot.slane %v1381_v42, 7 }
 0x620   : > { %v1384_v33 = vsel %vm593_vm4, %v1383_v18, 0.0  ;;  %v1544_v20 = vmax.f32 %v1543_v3, %v6377_v52  ;;  %v1411_v31 = vmul.f32 %v1410_v27, %v6006_v25  ;;  %v1409_v41 = vmul.f32 %v1408_v17, %v6165_v60 }
 0x621   : > { %v1385_v26 = vrot.slane %v1384_v33, 4 }
 0x622   : > { %1576 = vrot.lane.b32.xlu1 %v1544_v20, %s7606_s23  ;;  %1556 = vrot.lane.b32.xlu0 %v1544_v20, %s7618_s2  ;;  %v1545_v54 = vsub.f32 %v6370_v50, %v1544_v20  ;;  %v1614_v56 = vsub.f32 %v6377_v52, %v1544_v20 }
 0x623   : > { %v1386_v0 = vadd.f32 %v1385_v26, %v1384_v33 }
 0x624   : > { %v1546_v55 = vmul.f32 1.442695, %v1545_v54  ;;  %v1615_v57 = vmul.f32 1.442695, %v1614_v56 }
 0x625   : > { %v1387_v28 = vrot.slane %v1386_v0, 2 }
 0x626   : > { %1562 = vrot.lane.b32.xlu1 %v1199_v53, %s7618_s2  ;;  %1597 = vrot.lane.b32.xlu0 %v1544_v20, %s7604_s25  ;;  %v4928_v53 = vmul.f32 -1.442695, %v1395_v51 }
 0x627   : > { %v1388_v11 = vadd.f32 %v1387_v28, %v1386_v0 }
 0x629   : > { %v1389_v22 = vrot.slane %v1388_v11, 1 }
 0x62a   : > { %1583 = vrot.lane.b32.xlu0 %v1411_v31, %s7604_s25 }
 0x62b   : > { %v1390_v21 = vadd.f32 %v1389_v22, %v1388_v11 }
 0x62d   : > { %v1392_v59 = vadd.f32 %v1391_v19, %v1390_v21 }
 0x62f   : > { %v6394_v36 = vmul.f32 %v5442_v34, %v1392_v59 }
 0x694   : > { %v1577_v44 = vpop.permute.xlu1 %1576  ;;  %v1557_v6 = vpop.permute.xlu0 %1556 }
 0x695   : > { %v1579_v9 = vsub.f32 %v6370_v50, %v1577_v44  ;;  %v1559_v37 = vsub.f32 %v6370_v50, %v1557_v6 }
 0x697   : > { %v1580_v10 = vmul.f32 1.442695, %v1579_v9  ;;  %v1560_v32 = vmul.f32 1.442695, %v1559_v37 }
 0x698   : > { %v1598_v12 = vpop.permute.xlu0 %1597  ;;  %v1563_v15 = vpop.permute.xlu1 %1562 }
 0x699   : > { %5443 = vpow2.f32 %v1580_v10  ;;  %v1600_v14 = vsub.f32 %v6377_v52, %v1598_v12 }
 0x69a   : > { %5445 = vpow2.f32 %v1560_v32 }
 0x69b   : > { %v1601_v16 = vmul.f32 1.442695, %v1600_v14 }
 0x69c   : > { %v1584_v63 = vpop.permute.xlu0 %1583 }
 0x69d   : > { %5447 = vpow2.f32 %v1601_v16  ;;  %v4930_v16 = vmul.f32 -1.442695, %v6370_v50  ;;  %v6435_v50 = vld [vmem:[%s7590_s5 + $0x8] sm:$0xff]  }
 0x69e   : > { %5449 = vtanh.f32 %v6394_v36 }
 0x69f   : > { %5451 = vpow2.f32 %v4928_v53 }
 0x6a0   : > { %5453 = vpow2.f32 %v1546_v55 }
 0x6a1   : > { %5455 = vpow2.f32 %v1615_v57 }
 0x6a3   : > { %v5444_v38 = vpop.eup %5443 }
 0x6a4   : > { %v5446_v40 = vpop.eup %5445  ;;  %1593 = vrot.lane.b32.xlu0 %v5444_v38, %s7606_s23  ;;  %v1586_v43 = vmul.f32 %v5444_v38, %v1584_v63 }
 0x6a5   : > { %1572 = vrot.lane.b32.xlu1 %v5446_v40, %s7604_s25  ;;  %v1565_v45 = vmul.f32 %v5446_v40, %v1563_v15  ;;  %v6426_v40 = vld [vmem:[%s7590_s5] sm:$0xff]  }
 0x6a7   : > { %v5448_v13 = vpop.eup %5447 }
 0x6a8   : > { %1549 = vrot.lane.b32.xlu0 %v1409_v41, %s7618_s2  ;;  %v5450_v47 = vpop.eup %5449  ;;  %v1603_v49 = vmul.f32 %v5448_v13, %v1415_v46 }
 0x6a9   : > { %1610 = vrot.lane.b32.xlu1 %v5448_v13, %s7618_s2  ;;  %v5452_v42 = vpop.eup %5451 }
 0x6aa   : > { %v1399_v39 = vadd.f32 1.0, %v5452_v42  ;;  %v5454_v18 = vpop.eup %5453 }
 0x6ab   : > { %v5456_v28 = vpop.eup %5455 }
 0x6ac   : > { %1588 = vrot.lane.b32.xlu0 %v1586_v43, %s7606_s23  ;;  %5457 = vrcp.f32 %v1399_v39  ;;  %v1617_v37 = vmul.f32 %v5456_v28, %v6167_v61 }
 0x6ad   : > { %1567 = vrot.lane.b32.xlu1 %v1565_v45, %s7604_s25 }
 0x6b0   : > { %1404 = vrot.lane.b32.xlu0 %v5450_v47, %s7618_s2 }
 0x6b1   : > { %1605 = vrot.lane.b32.xlu1 %v1603_v49, %s7618_s2 }
 0x6b6   : > { %v5458_v20 = vpop.eup %5457 }
 0x716   : > { %v1594_v58 = vpop.permute.xlu0 %1593 }
 0x717   : > { %v1573_v3 = vpop.permute.xlu1 %1572 }
 0x718   : > { %v1575_v33 = vadd.f32 %v5454_v18, %v1573_v3  ;;  %v6468_v3 = vld [vmem:[%s7594_s9 + $0x14] ss:$8 sps:$4 sm:$0xff]  }
 0x71a   : > { %v1596_v26 = vadd.f32 %v1594_v58, %v1575_v33  ;;  %v1550_v0 = vpop.permute.xlu0 %1549  ;;  %v6454_v58 = vld [vmem:[%s7594_s9 + $0x4] ss:$8 sps:$4 sm:$0xff]   ;;  %v6474_v33 = vld [vmem:[%s7594_s9 + $0x10] ss:$8 sps:$4 sm:$0xff]  }
 0x71b   : > { %v1611_v48 = vpop.permute.xlu1 %1610  ;;  %v1552_v31 = vmul.f32 %v5454_v18, %v1550_v0  ;;  %v6461_v18 = vld [vmem:[%s7594_s9] ss:$8 sps:$4 sm:$0xff]  }
 0x71c   : > { %v1613_v27 = vadd.f32 %v1611_v48, %v1596_v26  ;;  %v6482_v26 = vld [vmem:[%s7589_s4] sm:$0xff]   ;;  %v6491_v0 = vld [vmem:[%s7589_s4 + $0x8] sm:$0xff]  }
 0x71e   : > { %v1619_v11 = vadd.f32 %v5456_v28, %v1613_v27  ;;  %v1589_v22 = vpop.permute.xlu0 %1588 }
 0x71f   : > { %v1568_v19 = vpop.permute.xlu1 %1567 }
 0x720   : > { %5459 = vrcp.f32 %v1619_v11  ;;  %v1570_v52 = vadd.f32 %v1568_v19, %v1552_v31 }
 0x722   : > { %v1591_v21 = vadd.f32 %v1589_v22, %v1570_v52  ;;  %v1405_v59 = vpop.permute.xlu0 %1404 }
 0x723   : > { %v1606_v34 = vpop.permute.xlu1 %1605  ;;  %v1407_v44 = vmul.f32 %v5458_v20, %v1405_v59  ;;  %v6503_v20 = vld [vmem:[%s7593_s8] ss:$8 sps:$4 sm:$0xff]   ;;  %v6516_v59 = vld [vmem:[%s7593_s8 + $0x10] ss:$8 sps:$4 sm:$0xff]  }
 0x724   : > { %v1608_v6 = vadd.f32 %v1606_v34, %v1591_v21  ;;  %v6510_v21 = vld [vmem:[%s7593_s8 + $0x14] ss:$8 sps:$4 sm:$0xff]   ;;  %v6522_v34 = vld [vmem:[%s7593_s8 + $0x24] ss:$8 sps:$4 sm:$0xff]  }
 0x725   : > { %v1631_v9 = vpack.c.bf16 %v1407_v44, %v1407_v44  ;;  %v6528_v44 = vld [vmem:[%s7593_s8 + $0x20] ss:$8 sps:$4 sm:$0xff]  }
 0x726   : > { %v1618_v10 = vadd.f32 %v1617_v37, %v1608_v6  ;;  %v6534_v6 = vld [vmem:[%s7593_s8 + $0x34] ss:$8 sps:$4 sm:$0xff]   ;;  %v6546_v37 = vld [vmem:[%s7593_s8 + $0x44] ss:$8 sps:$4 sm:$0xff]  }
 0x727   : > { %1641 = vrot.lane.b32.xlu0 %v1631_v9, %s7604_s25  ;;  %v6540_v9 = vld [vmem:[%s7593_s8 + $0x30] ss:$8 sps:$4 sm:$0xff]  }
 0x72a   : > { %v5460_v32 = vpop.eup %5459 }
 0x72b   : > { %v6417_v12 = vmul.f32 %v5460_v32, %v1618_v10  ;;  %v6552_v10 = vld [vmem:[%s7593_s8 + $0x40] ss:$8 sps:$4 sm:$0xff]   ;;  %v6558_v32 = vld [vmem:[%s7593_s8 + $0x54] ss:$8 sps:$4 sm:$0xff]  }
 0x72d   : > { %5461 = vtanh.f32 %v6417_v12 }
 0x72e   : > { %5463 = vpow2.f32 %v4930_v16  ;;  %v6570_v16 = vld [vmem:[%s7593_s8 + $0x64] ss:$8 sps:$4 sm:$0xff]  }
 0x737   : > { %v5462_v14 = vpop.eup %5461 }
 0x738   : > { %1624 = vrot.lane.b32.xlu1 %v5462_v14, %s7604_s25  ;;  %v5464_v17 = vpop.eup %5463  ;;  %v6564_v14 = vld [vmem:[%s7593_s8 + $0x50] ss:$8 sps:$4 sm:$0xff]   ;;  %s4818_s25 = sshll.u32 %s497_s20, 4  ;;  %s7545_s25 = int_to_ptr.vmem [resolvable:$true] %s4818_s25 }
 0x739   : > { %v1527_v41 = vadd.f32 1.0, %v5464_v17  ;;  %v6576_v17 = vld [vmem:[%s7593_s8 + $0x60] ss:$8 sps:$4 sm:$0xff]   ;;  %s5740_s26 = scalar_lea.vmem %s7545_s25, 16 }
 0x73a   : > { %p5741_p11 = scmp.ne.s32.totalorder %s7545_s25, %s5740_s26 }
 0x73b   : > { %5465 = vrcp.f32 %v1527_v41  ;;  %v6588_v41 = vld [vmem:[%s7593_s8 + $0x70] ss:$8 sps:$4 sm:$0xff]  }
 0x73c   : > { %p5742_p12 = pnand %p5741_p11, %p5929_p5 }
 0x73e   : > { %p5743_p13 = pneg %p5742_p12 }
 0x745   : > { %v5466_v13 = vpop.eup %5465 }
 0x799   : > { %v1642_v38 = vpop.permute.xlu0 %1641 }
 0x79a   : > { %5134 = vmatmul.mubr.msk.bf16.vlgmr.msra.gmra.mrb[28].mxu0 %vm593_vm4, %v1642_v38 }
 0x79b   : > { %5138 = vmatpush3.bf16.msra.mxu0 %v6426_v40  ;;  %5141 = vmatprep.mubr.msk.bf16.mxu0 %vm5805_vm0, %v5804_v1 }
 0x79c   : > { %5139 = vmatprep.subr.bf16.mxu0 %v5804_v1 }
 0x79f   : > { %5140 = vmatpush3.bf16.msra.mxu0 %v6435_v50 }
 0x7a0   : > { %5145 = vmatprep.subr.bf16.mxu0 %v5804_v1 }
 0x7aa   : > { %v1625_v63 = vpop.permute.xlu1 %1624 }
 0x7ab   : > { %v1627_v15 = vmul.f32 %v5466_v13, %v1625_v63  ;;  %v6594_v13 = vld [vmem:[%s7593_s8 + $0x4] ss:$8 sps:$4 sm:$0xff]  }
 0x7ad   : > { %v1628_v43 = vmul.f32 %v1627_v15, %v6299_v29 }
 0x7af   : > { %v1632_v45 = vsel %vm593_vm4, %v1628_v43, 0.0  ;;  %1851 = vrot.lane.b32.xlu1 %v1628_v43, %s7618_s2  ;;  %v1848_v46 = vrot.slane %v1628_v43, 1  ;;  %v1630_v39 = vpack.c.bf16 %v1628_v43, %v1628_v43  ;;  %v1846_v48 = vrot.slane %v1628_v43, 7 }
 0x7b0   : > { %v1633_v47 = vrot.slane %v1632_v45, 4 }
 0x7b1   : > { %v1849_v49 = vmul.f32 %v1848_v46, %v6006_v25  ;;  %v1847_v28 = vmul.f32 %v1846_v48, %v6165_v60 }
 0x7b2   : > { %v1634_v51 = vadd.f32 %v1633_v47, %v1632_v45 }
 0x7b3   : > { %1855 = vrot.lane.b32.xlu0 %v1849_v49, %s7606_s23 }
 0x7b4   : > { %v1635_v53 = vrot.slane %v1634_v51, 2 }
 0x7b6   : > { %v1636_v54 = vadd.f32 %v1635_v53, %v1634_v51 }
 0x7b8   : > { %v1637_v55 = vrot.slane %v1636_v54, 1 }
 0x7ba   : > { %v1638_v56 = vadd.f32 %v1637_v55, %v1636_v54 }
 0x7bc   : > { %v1639_v57 = vmul.f32 %v1638_v56, %v6020_v35 }
 0x7be   : > { %v1686_v42 = vpack.c.bf16 %v1639_v57, %v1639_v57 }
 0x7c0   : > { %5142 = vmatmul.mubr.msk.bf16.vlgmr.msra.gmra.mrb[32].mxu0 %vm593_vm4, %v1686_v42 }
 0x7c1   : > { %5146 = vmatpush3.bf16.msra.mxu0 %v6426_v40  ;;  %5149 = vmatprep.mubr.msk.bf16.mxu0 %vm5805_vm0, %v5804_v1 }
 0x7c2   : > { %5147 = vmatprep.subr.bf16.mxu0 %v5804_v1 }
 0x7c5   : > { %5148 = vmatpush3.bf16.msra.mxu0 %v6435_v50 }
 0x7c6   : > { %1862 = vmatprep.subr.bf16.mxu0 %v6454_v58 }
 0x7c8   : > { %5150 = vmatmul.mubr.msk.bf16.vlgmr.msra.gmra.mrb[36].mxu0 %vm593_vm4, %v1630_v39 }
 0x7c9   : > { %1863 = vmatpush1.bf16.msra.mxu0 %v6461_v18  ;;  %1894 = vmatprep.mubr.bf16.mxu0 %v5806_v2 }
 0x7ca   : > { %1864 = vmatprep.subr.bf16.mxu0 %v6468_v3 }
 0x7cd   : > { %1865 = vmatpush1.bf16.msra.mxu0 %v6474_v33 }
 0x7ce   : > { %5153 = vmatprep.subr.bf16.mxu0 %v5804_v1 }
 0x7d0   : > { %4935 = vmatmul.mubr.msk.bf16.vlgmr.msra.gmra.mrb[40].mxu0 %vm593_vm4, %v1642_v38  ;;  %v6582_v38 = vld [vmem:[%s7593_s8 + $0x74] ss:$8 sps:$4 sm:$0xff]  }
 0x7d1   : > { %5154 = vmatpush3.bf16.msra.mxu0 %v6482_v26  ;;  %5157 = vmatprep.mubr.msk.bf16.mxu0 %vm5805_vm0, %v5804_v1 }
 0x7d2   : > { %5155 = vmatprep.subr.bf16.mxu0 %v5804_v1 }
 0x7d5   : > { %5156 = vmatpush3.bf16.msra.mxu0 %v6491_v0 }
 0x7d6   : > { %5161 = vmatprep.subr.bf16.mxu0 %v5804_v1 }
 0x821   : > { %v1852_v27 = vpop.permute.xlu1 %1851 }
 0x822   : > { %v1858_v11 = vsel %vm593_vm4, %v1847_v28, %v1852_v27 }
 0x825   : > { %v1856_v31 = vpop.permute.xlu0 %1855 }
 0x826   : > { %v1859_v22 = vsel %vm862_vm6, %v1858_v11, %v1856_v31 }
 0x827   : > { %v1860_v19 = vsel %vm864_vm7, %v1859_v22, %v6176_v5 }
 0x828   : > { %v1861_v52 = vpack.c.bf16 %v1860_v19, %v1860_v19 }
 0x82a   : > { %1944 = vmatmul.mubr.bf16.vlgmr.msra.gmra.mrb[16].mxu1 %v1861_v52 }
 0x82b   : > { %2342 = vmatpush1.bf16.msra.mxu1 %v6503_v20  ;;  %2373 = vmatprep.mubr.bf16.mxu1 %v5806_v2 }
 0x82c   : > { %2343 = vmatprep.subr.bf16.mxu1 %v6510_v21 }
 0x82f   : > { %2344 = vmatpush1.bf16.msra.mxu1 %v6516_v59 }
 0x830   : > { %2345 = vmatprep.subr.bf16.mxu1 %v6522_v34 }
 0x833   : > { %2346 = vmatpush1.bf16.msra.mxu1 %v6528_v44 }
 0x834   : > { %2347 = vmatprep.subr.bf16.mxu1 %v6534_v6 }
 0x837   : > { %2348 = vmatpush1.bf16.msra.mxu1 %v6540_v9 }
 0x838   : > { %2349 = vmatprep.subr.bf16.mxu1 %v6546_v37 }
 0x83b   : > { %2350 = vmatpush1.bf16.msra.mxu1 %v6552_v10 }
 0x83c   : > { %2351 = vmatprep.subr.bf16.mxu1 %v6558_v32 }
 0x83f   : > { %2352 = vmatpush1.bf16.msra.mxu1 %v6564_v14 }
 0x840   : > { %2353 = vmatprep.subr.bf16.mxu1 %v6570_v16 }
 0x843   : > { %2354 = vmatpush1.bf16.msra.mxu1 %v6576_v17 }
 0x844   : > { %2355 = vmatprep.subr.bf16.mxu1 %v6582_v38 }
 0x847   : > { %2356 = vmatpush1.bf16.msra.mxu1 %v6588_v41 }
 0x848   : > { %2771 = vmatprep.subr.bf16.mxu1 %v6594_v13 }
 0x86d   : > { %v1680_v63 = vpop.f32.mrb[28].mxu0 }
 0x86e   : > { %v5135_v15 = vpop.f32.mrb[29].mxu0  ;;  %v1773_v53 = vadd.f32 %v1680_v63, %v6200_v8  ;;  %v6606_v8 = vld [vmem:[%s7591_s6] sm:$0x1] }
 0x86f   : > { %v1683_v43 = vpop.f32.mrb[30].mxu0 }
 0x870   : > { %v5136_v45 = vpop.f32.mrb[31].mxu0  ;;  %v1777_v55 = vrot.slane %v1773_v53, %v6205_v23 }
 0x893   : > { %v1724_v46 = vpop.f32.mrb[32].mxu0 }
 0x894   : > { %v6597_v47 = vadd.f32 %v1724_v46, %v1680_v63  ;;  %v5143_v49 = vpop.f32.mrb[33].mxu0 }
 0x895   : > { %v1727_v51 = vpop.f32.mrb[34].mxu0 }
 0x896   : > { %v5144_v54 = vpop.f32.mrb[35].mxu0  ;;  %v1781_v63 = vadd.f32 %v6606_v8, %v6597_v47 }
 0x898   : > { %v1782_v49 = vadd.f32 %v1781_v63, %v6261_v62 }
 0x89b   : > { %v1767_v56 = vpop.f32.mrb[36].mxu0 }
 0x89c   : > { %v1778_v57 = vadd.f32 %v1777_v55, %v1767_v56  ;;  %v5151_v42 = vpop.f32.mrb[37].mxu0 }
 0x89d   : > { %v1770_v39 = vpop.f32.mrb[38].mxu0 }
 0x89e   : > { %v1779_v48 = vadd.f32 %v1778_v57, %v6254_v30  ;;  %v5152_v27 = vpop.f32.mrb[39].mxu0 }
 0x8a0   : > { %v1783_v28 = vsel %vm593_vm4, %v1779_v48, -inf }
 0x8a1   : > { %v1784_v11 = vrot.slane %v1783_v28, 4 }
 0x8a3   : > { %v1785_v31 = vmax.f32 %v1783_v28, %v1784_v11  ;;  %v1896_v22 = vpop.f32.mrb[40].mxu0 }
 0x8a4   : > { %v1898_v19 = vpop.f32.mrb[41].mxu0 }
 0x8a5   : > { %v1786_v52 = vrot.slane %v1785_v31, 2  ;;  %v1900_v15 = vpop.f32.mrb[42].mxu0 }
 0x8a6   : > { %v1901_v43 = vpop.f32.mrb[43].mxu0 }
 0x8a7   : > { %v1787_v45 = vmax.f32 %v1785_v31, %v1786_v52 }
 0x8a9   : > { %v1788_v46 = vrot.slane %v1787_v45, 1 }
 0x8ab   : > { %v1789_v51 = vmax.f32 %v1787_v45, %v1788_v46  ;;  %v1906_v46 = vrot.slane %v1896_v22, %v6205_v23  ;;  %v1629_v22 = vmul.f32 %v6417_v12, %v6299_v29 }
 0x8ad   : > { %v1790_v53 = vmax.f32 %v1789_v51, %v1782_v49 }
 0x8af   : > { %v1794_v54 = vrot.slane %v1790_v53, %v6205_v23  ;;  %v1798_v55 = vsub.f32 %v1782_v49, %v1790_v53  ;;  %v1910_v49 = vrot.slane %v1898_v19, %v6205_v23 }
 0x8b1   : > { %v1795_v56 = vsub.f32 %v1779_v48, %v1794_v54  ;;  %v1799_v42 = vmul.f32 1.442695, %v1798_v55 }
 0x8b3   : > { %v1796_v57 = vmul.f32 1.442695, %v1795_v56 }
 0x8b5   : > { %5467 = vpow2.f32 %v1796_v57 }
 0x8b6   : > { %5469 = vpow2.f32 %v1799_v42 }
 0x8bf   : > { %v5468_v39 = vpop.eup %5467 }
 0x8c0   : > { %v1801_v27 = vsel %vm593_vm4, %v5468_v39, 0.0  ;;  %v5470_v63 = vpop.eup %5469 }
 0x8c1   : > { %v1802_v28 = vrot.slane %v1801_v27, 4 }
 0x8c3   : > { %v1803_v11 = vadd.f32 %v1802_v28, %v1801_v27 }
 0x8c5   : > { %v1804_v15 = vrot.slane %v1803_v11, 2 }
 0x8c7   : > { %v1805_v31 = vadd.f32 %v1804_v15, %v1803_v11 }
 0x8c9   : > { %v1806_v52 = vrot.slane %v1805_v31, 1 }
 0x8cb   : > { %v1807_v43 = vadd.f32 %v1806_v52, %v1805_v31 }
 0x8cd   : > { %v1808_v45 = vadd.f32 %v5470_v63, %v1807_v43 }
 0x8cf   : > { %5471 = vrcp.f32 %v1808_v45 }
 0x8fd   : > { %v1945_v48 = vpop.f32.mrb[16].mxu1 }
 0x8fe   : > { %v1946_v51 = vadd.f32 %v1945_v48, %v1906_v46  ;;  %v1947_v53 = vpop.f32.mrb[17].mxu1 }
 0x8ff   : > { %v1948_v54 = vadd.f32 %v1947_v53, %v1910_v49  ;;  %v1949_v55 = vpop.f32.mrb[18].mxu1 }
 0x900   : > { %v6616_v56 = vadd.f32 %v1946_v51, %v6214_v4  ;;  %v1950_v57 = vpop.f32.mrb[19].mxu1 }
 0x901   : > { %v6623_v42 = vadd.f32 %v1948_v54, %v6221_v24  ;;  %v1821_v57 = vmul.f32 %v5470_v63, %v6394_v36 }
 0x902   : > { %1965 = vrot.lane.b32.xlu0 %v6616_v56, %s7606_s23  ;;  %1961 = vrot.lane.b32.xlu1 %v6616_v56, %s7619_s27 }
 0x906   : > { %1810 = vrot.lane.b32.xlu0 %v1629_v22, %s7619_s27  ;;  %1970 = vrot.lane.b32.xlu1 %v6623_v42, %s7618_s2 }
 0x974   : > { %v1966_v19 = vpop.permute.xlu0 %1965  ;;  %v1962_v27 = vpop.permute.xlu1 %1961 }
 0x975   : > { %v1964_v28 = vmax.f32 %v6616_v56, %v1962_v27 }
 0x977   : > { %v1968_v11 = vmax.f32 %v1964_v28, %v1966_v19  ;;  %v5472_v28 = vpop.eup %5471 }
 0x978   : > { %v1811_v15 = vpop.permute.xlu0 %1810  ;;  %v1971_v31 = vpop.permute.xlu1 %1970 }
 0x979   : > { %v1813_v52 = vmul.f32 %v5468_v39, %v1811_v15  ;;  %v1973_v43 = vmax.f32 %v1968_v11, %v1971_v31  ;;  %v1840_v51 = vrot.slane %v1811_v15, 1  ;;  %v1838_v63 = vrot.slane %v1811_v15, 7 }
 0x97a   : > { %v1845_v15 = vrot.slane %v6394_v36, %v6205_v23 }
 0x97b   : > { %v1814_v46 = vsel %vm593_vm4, %v1813_v52, 0.0  ;;  %v1974_v49 = vmax.f32 %v1973_v43, %v6623_v42  ;;  %v1841_v39 = vmul.f32 %v1840_v51, %v6006_v25 }
 0x97c   : > { %v1815_v48 = vrot.slane %v1814_v46, 4 }
 0x97d   : > { %2006 = vrot.lane.b32.xlu0 %v1974_v49, %s7606_s23  ;;  %1986 = vrot.lane.b32.xlu1 %v1974_v49, %s7618_s2 }
 0x97e   : > { %v1816_v12 = vadd.f32 %v1815_v48, %v1814_v46 }
 0x980   : > { %v1817_v53 = vrot.slane %v1816_v12, 2 }
 0x981   : > { %1992 = vrot.lane.b32.xlu0 %v1629_v22, %s7618_s2  ;;  %2027 = vrot.lane.b32.xlu1 %v1974_v49, %s7619_s27 }
 0x982   : > { %v1818_v54 = vadd.f32 %v1817_v53, %v1816_v12 }
 0x984   : > { %v1819_v55 = vrot.slane %v1818_v54, 1 }
 0x985   : > { %2013 = vrot.lane.b32.xlu1 %v1841_v39, %s7619_s27  ;;  %v1839_v39 = vmul.f32 %v1838_v63, %v6165_v60 }
 0x986   : > { %v1820_v19 = vadd.f32 %v1819_v55, %v1818_v54 }
 0x988   : > { %v1822_v27 = vadd.f32 %v1821_v57, %v1820_v19 }
 0x98a   : > { %v6640_v11 = vmul.f32 %v5472_v28, %v1822_v27 }
 0x9ef   : > { %v2007_v45 = vpop.permute.xlu0 %2006  ;;  %v1987_v31 = vpop.permute.xlu1 %1986 }
 0x9f0   : > { %v2009_v52 = vsub.f32 %v6616_v56, %v2007_v45  ;;  %v1989_v22 = vsub.f32 %v6616_v56, %v1987_v31 }
 0x9f2   : > { %v2010_v43 = vmul.f32 1.442695, %v2009_v52  ;;  %v1990_v46 = vmul.f32 1.442695, %v1989_v22  ;;  %v1825_v52 = vadd.f32 %v6597_v47, %v6293_v7 }
 0x9f3   : > { %v2028_v48 = vpop.permute.xlu1 %2027  ;;  %v1993_v19 = vpop.permute.xlu0 %1992 }
 0x9f4   : > { %5473 = vpow2.f32 %v2010_v43  ;;  %v2030_v12 = vsub.f32 %v6623_v42, %v2028_v48  ;;  %v4934_v22 = vmul.f32 -1.442695, %v1825_v52  ;;  %v1975_v43 = vsub.f32 %v6616_v56, %v1974_v49 }
 0x9f5   : > { %5475 = vpow2.f32 %v1990_v46  ;;  %v2044_v48 = vsub.f32 %v6623_v42, %v1974_v49 }
 0x9f6   : > { %v2031_v51 = vmul.f32 1.442695, %v2030_v12  ;;  %v1976_v46 = vmul.f32 1.442695, %v1975_v43 }
 0x9f7   : > { %v2014_v57 = vpop.permute.xlu1 %2013  ;;  %v2045_v12 = vmul.f32 1.442695, %v2044_v48 }
 0x9f8   : > { %5477 = vpow2.f32 %v2031_v51 }
 0x9f9   : > { %5479 = vtanh.f32 %v6640_v11 }
 0x9fa   : > { %5481 = vpow2.f32 %v4934_v22 }
 0x9fb   : > { %5483 = vpow2.f32 %v1976_v46 }
 0x9fc   : > { %5485 = vpow2.f32 %v2045_v12 }
 0x9fe   : > { %v5474_v53 = vpop.eup %5473 }
 0x9ff   : > { %v5476_v54 = vpop.eup %5475  ;;  %2023 = vrot.lane.b32.xlu1 %v5474_v53, %s7606_s23  ;;  %v2016_v27 = vmul.f32 %v5474_v53, %v2014_v57 }
 0xa00   : > { %2002 = vrot.lane.b32.xlu0 %v5476_v54, %s7619_s27  ;;  %v1995_v28 = vmul.f32 %v5476_v54, %v1993_v19 }
 0xa02   : > { %v5478_v55 = vpop.eup %5477 }
 0xa03   : > { %1979 = vrot.lane.b32.xlu1 %v1839_v39, %s7618_s2  ;;  %v5480_v45 = vpop.eup %5479  ;;  %v2033_v31 = vmul.f32 %v5478_v55, %v1845_v15 }
 0xa04   : > { %2040 = vrot.lane.b32.xlu0 %v5478_v55, %s7618_s2  ;;  %v5482_v51 = vpop.eup %5481 }
 0xa05   : > { %v1829_v36 = vadd.f32 1.0, %v5482_v51  ;;  %v5484_v53 = vpop.eup %5483 }
 0xa07   : > { %2018 = vrot.lane.b32.xlu1 %v2016_v27, %s7606_s23  ;;  %5487 = vrcp.f32 %v1829_v36  ;;  %v5486_v27 = vpop.eup %5485 }
 0xa08   : > { %1997 = vrot.lane.b32.xlu0 %v1995_v28, %s7619_s27  ;;  %v2047_v51 = vmul.f32 %v5486_v27, %v6167_v61 }
 0xa0b   : > { %1834 = vrot.lane.b32.xlu1 %v5480_v45, %s7618_s2 }
 0xa0c   : > { %2035 = vrot.lane.b32.xlu0 %v2033_v31, %s7618_s2 }
 0xa11   : > { %v5488_v49 = vpop.eup %5487 }
 0xa71   : > { %v2024_v63 = vpop.permute.xlu1 %2023 }
 0xa72   : > { %v2003_v54 = vpop.permute.xlu0 %2002 }
 0xa73   : > { %v2005_v39 = vadd.f32 %v5484_v53, %v2003_v54 }
 0xa75   : > { %v2026_v55 = vadd.f32 %v2024_v63, %v2005_v39  ;;  %v1980_v57 = vpop.permute.xlu1 %1979  ;;  %v4936_v39 = vmul.f32 -1.442695, %v6616_v56 }
 0xa76   : > { %v2041_v47 = vpop.permute.xlu0 %2040  ;;  %v1982_v15 = vmul.f32 %v5484_v53, %v1980_v57 }
 0xa77   : > { %v2043_v19 = vadd.f32 %v2041_v47, %v2026_v55 }
 0xa79   : > { %v2049_v28 = vadd.f32 %v5486_v27, %v2043_v19  ;;  %v2019_v45 = vpop.permute.xlu1 %2018 }
 0xa7a   : > { %v1998_v31 = vpop.permute.xlu0 %1997 }
 0xa7b   : > { %5489 = vrcp.f32 %v2049_v28  ;;  %v2000_v42 = vadd.f32 %v1998_v31, %v1982_v15 }
 0xa7d   : > { %v2021_v52 = vadd.f32 %v2019_v45, %v2000_v42  ;;  %v1835_v22 = vpop.permute.xlu1 %1834 }
 0xa7e   : > { %v2036_v43 = vpop.permute.xlu0 %2035  ;;  %v1837_v46 = vmul.f32 %v5488_v49, %v1835_v22 }
 0xa7f   : > { %v2038_v48 = vadd.f32 %v2036_v43, %v2021_v52 }
 0xa80   : > { %v2061_v12 = vpack.c.bf16 %v1837_v46, %v1837_v46 }
 0xa81   : > { %v2048_v36 = vadd.f32 %v2047_v51, %v2038_v48 }
 0xa82   : > { %2071 = vrot.lane.b32.xlu1 %v2061_v12, %s7619_s27 }
 0xa85   : > { %v5490_v63 = vpop.eup %5489 }
 0xa86   : > { %v6663_v54 = vmul.f32 %v5490_v63, %v2048_v36 }
 0xa88   : > { %5491 = vtanh.f32 %v6663_v54 }
 0xa89   : > { %5493 = vpow2.f32 %v4936_v39 }
 0xa92   : > { %v5492_v53 = vpop.eup %5491 }
 0xa93   : > { %2054 = vrot.lane.b32.xlu0 %v5492_v53, %s7619_s27  ;;  %v5494_v55 = vpop.eup %5493 }
 0xa94   : > { %v1957_v47 = vadd.f32 1.0, %v5494_v55 }
 0xa96   : > { %5495 = vrcp.f32 %v1957_v47 }
 0xaa0   : > { %v5496_v19 = vpop.eup %5495 }
 0xaf4   : > { %v2072_v57 = vpop.permute.xlu1 %2071 }
 0xaf5   : > { %5158 = vmatmul.mubr.msk.bf16.vlgmr.msra.gmra.mrb[44].mxu0 %vm593_vm4, %v2072_v57 }
 0xaf6   : > { %5162 = vmatpush3.bf16.msra.mxu0 %v6426_v40  ;;  %5165 = vmatprep.mubr.msk.bf16.mxu0 %vm5805_vm0, %v5804_v1 }
 0xaf7   : > { %5163 = vmatprep.subr.bf16.mxu0 %v5804_v1 }
 0xafa   : > { %5164 = vmatpush3.bf16.msra.mxu0 %v6435_v50 }
 0xafb   : > { %5169 = vmatprep.subr.bf16.mxu0 %v5804_v1 }
 0xb05   : > { %v2055_v56 = vpop.permute.xlu0 %2054 }
 0xb06   : > { %v2057_v27 = vmul.f32 %v5496_v19, %v2055_v56 }
 0xb08   : > { %v2058_v28 = vmul.f32 %v2057_v27, %v6299_v29 }
 0xb0a   : > { %v2062_v15 = vsel %vm593_vm4, %v2058_v28, 0.0  ;;  %2281 = vrot.lane.b32.xlu0 %v2058_v28, %s7618_s2  ;;  %v2278_v45 = vrot.slane %v2058_v28, 1  ;;  %v2060_v51 = vpack.c.bf16 %v2058_v28, %v2058_v28  ;;  %v2276_v36 = vrot.slane %v2058_v28, 7 }
 0xb0b   : > { %v2063_v31 = vrot.slane %v2062_v15, 4 }
 0xb0c   : > { %v2279_v42 = vmul.f32 %v2278_v45, %v6006_v25  ;;  %v2277_v53 = vmul.f32 %v2276_v36, %v6165_v60 }
 0xb0d   : > { %v2064_v49 = vadd.f32 %v2063_v31, %v2062_v15 }
 0xb0e   : > { %2285 = vrot.lane.b32.xlu1 %v2279_v42, %s7606_s23 }
 0xb0f   : > { %v2065_v52 = vrot.slane %v2064_v49, 2 }
 0xb11   : > { %v2066_v22 = vadd.f32 %v2065_v52, %v2064_v49 }
 0xb13   : > { %v2067_v43 = vrot.slane %v2066_v22, 1 }
 0xb15   : > { %v2068_v46 = vadd.f32 %v2067_v43, %v2066_v22 }
 0xb17   : > { %v2069_v48 = vmul.f32 %v2068_v46, %v6020_v35 }
 0xb19   : > { %v2116_v12 = vpack.c.bf16 %v2069_v48, %v2069_v48 }
 0xb1b   : > { %5166 = vmatmul.mubr.msk.bf16.vlgmr.msra.gmra.mrb[48].mxu0 %vm593_vm4, %v2116_v12 }
 0xb1c   : > { %5170 = vmatpush3.bf16.msra.mxu0 %v6426_v40  ;;  %5173 = vmatprep.mubr.msk.bf16.mxu0 %vm5805_vm0, %v5804_v1 }
 0xb1d   : > { %5171 = vmatprep.subr.bf16.mxu0 %v5804_v1 }
 0xb20   : > { %5172 = vmatpush3.bf16.msra.mxu0 %v6435_v50 }
 0xb21   : > { %2292 = vmatprep.subr.bf16.mxu0 %v6454_v58 }
 0xb23   : > { %5174 = vmatmul.mubr.msk.bf16.vlgmr.msra.gmra.mrb[52].mxu0 %vm593_vm4, %v2060_v51 }
 0xb24   : > { %2293 = vmatpush1.bf16.msra.mxu0 %v6461_v18  ;;  %2324 = vmatprep.mubr.bf16.mxu0 %v5806_v2 }
 0xb25   : > { %2294 = vmatprep.subr.bf16.mxu0 %v6468_v3 }
 0xb28   : > { %2295 = vmatpush1.bf16.msra.mxu0 %v6474_v33 }
 0xb29   : > { %5177 = vmatprep.subr.bf16.mxu0 %v5804_v1 }
 0xb2b   : > { %4941 = vmatmul.mubr.msk.bf16.vlgmr.msra.gmra.mrb[56].mxu0 %vm593_vm4, %v2072_v57 }
 0xb2c   : > { %5178 = vmatpush3.bf16.msra.mxu0 %v6482_v26  ;;  %5181 = vmatprep.mubr.msk.bf16.mxu0 %vm5805_vm0, %v5804_v1 }
 0xb2d   : > { %5179 = vmatprep.subr.bf16.mxu0 %v5804_v1 }
 0xb30   : > { %5180 = vmatpush3.bf16.msra.mxu0 %v6491_v0 }
 0xb31   : > { %5185 = vmatprep.subr.bf16.mxu0 %v5804_v1 }
 0xb7c   : > { %v2282_v63 = vpop.permute.xlu0 %2281 }
 0xb7d   : > { %v2288_v39 = vsel %vm593_vm4, %v2277_v53, %v2282_v63 }
 0xb80   : > { %v2286_v55 = vpop.permute.xlu1 %2285 }
 0xb81   : > { %v2289_v57 = vsel %vm862_vm6, %v2288_v39, %v2286_v55 }
 0xb82   : > { %v2290_v47 = vsel %vm864_vm7, %v2289_v57, %v6176_v5 }
 0xb83   : > { %v2291_v19 = vpack.c.bf16 %v2290_v47, %v2290_v47 }
 0xb85   : > { %2374 = vmatmul.mubr.bf16.vlgmr.msra.gmra.mrb[20].mxu1 %v2291_v19 }
 0xb86   : > { %2772 = vmatpush1.bf16.msra.mxu1 %v6503_v20  ;;  %2803 = vmatprep.mubr.bf16.mxu1 %v5806_v2 }
 0xb87   : > { %2773 = vmatprep.subr.bf16.mxu1 %v6510_v21 }
 0xb8a   : > { %2774 = vmatpush1.bf16.msra.mxu1 %v6516_v59 }
 0xb8b   : > { %2775 = vmatprep.subr.bf16.mxu1 %v6522_v34 }
 0xb8e   : > { %2776 = vmatpush1.bf16.msra.mxu1 %v6528_v44 }
 0xb8f   : > { %2777 = vmatprep.subr.bf16.mxu1 %v6534_v6 }
 0xb92   : > { %2778 = vmatpush1.bf16.msra.mxu1 %v6540_v9 }
 0xb93   : > { %2779 = vmatprep.subr.bf16.mxu1 %v6546_v37 }
 0xb96   : > { %2780 = vmatpush1.bf16.msra.mxu1 %v6552_v10 }
 0xb97   : > { %2781 = vmatprep.subr.bf16.mxu1 %v6558_v32 }
 0xb9a   : > { %2782 = vmatpush1.bf16.msra.mxu1 %v6564_v14 }
 0xb9b   : > { %2783 = vmatprep.subr.bf16.mxu1 %v6570_v16 }
 0xb9e   : > { %2784 = vmatpush1.bf16.msra.mxu1 %v6576_v17 }
 0xb9f   : > { %2785 = vmatprep.subr.bf16.mxu1 %v6582_v38 }
 0xba2   : > { %2786 = vmatpush1.bf16.msra.mxu1 %v6588_v41 }
 0xba3   : > { %3201 = vmatprep.subr.bf16.mxu1 %v6594_v13 }
 0xbc8   : > { %v2110_v56 = vpop.f32.mrb[44].mxu0 }
 0xbc9   : > { %v5159_v27 = vpop.f32.mrb[45].mxu0  ;;  %v2203_v52 = vadd.f32 %v6606_v8, %v2110_v56 }
 0xbca   : > { %v2113_v28 = vpop.f32.mrb[46].mxu0 }
 0xbcb   : > { %v5160_v15 = vpop.f32.mrb[47].mxu0  ;;  %v2207_v43 = vrot.slane %v2203_v52, %v6205_v23 }
 0xbee   : > { %v2154_v45 = vpop.f32.mrb[48].mxu0 }
 0xbef   : > { %v6723_v31 = vadd.f32 %v2154_v45, %v2110_v56  ;;  %v5167_v42 = vpop.f32.mrb[49].mxu0 }
 0xbf0   : > { %v2157_v49 = vpop.f32.mrb[50].mxu0 }
 0xbf1   : > { %v5168_v22 = vpop.f32.mrb[51].mxu0  ;;  %v2211_v56 = vadd.f32 %v6606_v8, %v6723_v31 }
 0xbf3   : > { %v2212_v42 = vadd.f32 %v2211_v56, %v6261_v62 }
 0xbf6   : > { %v2197_v46 = vpop.f32.mrb[52].mxu0 }
 0xbf7   : > { %v2208_v48 = vadd.f32 %v2207_v43, %v2197_v46  ;;  %v5175_v12 = vpop.f32.mrb[53].mxu0 }
 0xbf8   : > { %v2200_v51 = vpop.f32.mrb[54].mxu0 }
 0xbf9   : > { %v2209_v36 = vadd.f32 %v2208_v48, %v6254_v30  ;;  %v5176_v63 = vpop.f32.mrb[55].mxu0 }
 0xbfb   : > { %v2213_v53 = vsel %vm593_vm4, %v2209_v36, -inf }
 0xbfc   : > { %v2214_v39 = vrot.slane %v2213_v53, 4 }
 0xbfe   : > { %v2215_v55 = vmax.f32 %v2213_v53, %v2214_v39  ;;  %v2326_v57 = vpop.f32.mrb[56].mxu0 }
 0xbff   : > { %v2328_v47 = vpop.f32.mrb[57].mxu0 }
 0xc00   : > { %v2216_v19 = vrot.slane %v2215_v55, 2  ;;  %v2330_v27 = vpop.f32.mrb[58].mxu0 }
 0xc01   : > { %v2331_v28 = vpop.f32.mrb[59].mxu0 }
 0xc02   : > { %v2217_v15 = vmax.f32 %v2215_v55, %v2216_v19 }
 0xc04   : > { %v2218_v45 = vrot.slane %v2217_v15, 1 }
 0xc06   : > { %v2219_v49 = vmax.f32 %v2217_v15, %v2218_v45  ;;  %v2336_v45 = vrot.slane %v2326_v57, %v6205_v23  ;;  %v2059_v57 = vmul.f32 %v6663_v54, %v6299_v29 }
 0xc08   : > { %v2220_v52 = vmax.f32 %v2219_v49, %v2212_v42 }
 0xc0a   : > { %v2224_v22 = vrot.slane %v2220_v52, %v6205_v23  ;;  %v2228_v43 = vsub.f32 %v2212_v42, %v2220_v52  ;;  %v2340_v42 = vrot.slane %v2328_v47, %v6205_v23 }
 0xc0c   : > { %v2225_v46 = vsub.f32 %v2209_v36, %v2224_v22  ;;  %v2229_v12 = vmul.f32 1.442695, %v2228_v43 }
 0xc0e   : > { %v2226_v48 = vmul.f32 1.442695, %v2225_v46 }
 0xc10   : > { %5497 = vpow2.f32 %v2226_v48 }
 0xc11   : > { %5499 = vpow2.f32 %v2229_v12 }
 0xc1a   : > { %v5498_v51 = vpop.eup %5497 }
 0xc1b   : > { %v2231_v63 = vsel %vm593_vm4, %v5498_v51, 0.0  ;;  %v5500_v56 = vpop.eup %5499 }
 0xc1c   : > { %v2232_v53 = vrot.slane %v2231_v63, 4 }
 0xc1e   : > { %v2233_v39 = vadd.f32 %v2232_v53, %v2231_v63 }
 0xc20   : > { %v2234_v27 = vrot.slane %v2233_v39, 2 }
 0xc22   : > { %v2235_v55 = vadd.f32 %v2234_v27, %v2233_v39 }
 0xc24   : > { %v2236_v19 = vrot.slane %v2235_v55, 1 }
 0xc26   : > { %v2237_v28 = vadd.f32 %v2236_v19, %v2235_v55 }
 0xc28   : > { %v2238_v15 = vadd.f32 %v5500_v56, %v2237_v28 }
 0xc2a   : > { %5501 = vrcp.f32 %v2238_v15 }
 0xc58   : > { %v2375_v36 = vpop.f32.mrb[20].mxu1 }
 0xc59   : > { %v2376_v49 = vadd.f32 %v2375_v36, %v2336_v45  ;;  %v2377_v52 = vpop.f32.mrb[21].mxu1 }
 0xc5a   : > { %v2378_v22 = vadd.f32 %v2377_v52, %v2340_v42  ;;  %v2379_v43 = vpop.f32.mrb[22].mxu1 }
 0xc5b   : > { %v6737_v46 = vadd.f32 %v2376_v49, %v6214_v4  ;;  %v2380_v48 = vpop.f32.mrb[23].mxu1 }
 0xc5c   : > { %v6744_v12 = vadd.f32 %v2378_v22, %v6221_v24  ;;  %v2251_v48 = vmul.f32 %v5500_v56, %v6640_v11 }
 0xc5d   : > { %2395 = vrot.lane.b32.xlu1 %v6737_v46, %s7606_s23  ;;  %2391 = vrot.lane.b32.xlu0 %v6737_v46, %s7619_s27 }
 0xc61   : > { %2240 = vrot.lane.b32.xlu1 %v2059_v57, %s7619_s27  ;;  %2400 = vrot.lane.b32.xlu0 %v6744_v12, %s7618_s2 }
 0xccf   : > { %v2396_v47 = vpop.permute.xlu1 %2395  ;;  %v2392_v63 = vpop.permute.xlu0 %2391 }
 0xcd0   : > { %v2394_v53 = vmax.f32 %v6737_v46, %v2392_v63 }
 0xcd2   : > { %v2398_v39 = vmax.f32 %v2394_v53, %v2396_v47  ;;  %v5502_v53 = vpop.eup %5501 }
 0xcd3   : > { %v2241_v27 = vpop.permute.xlu1 %2240  ;;  %v2401_v55 = vpop.permute.xlu0 %2400 }
 0xcd4   : > { %v2243_v19 = vmul.f32 %v5498_v51, %v2241_v27  ;;  %v2403_v28 = vmax.f32 %v2398_v39, %v2401_v55  ;;  %v2270_v49 = vrot.slane %v2241_v27, 1  ;;  %v2268_v56 = vrot.slane %v2241_v27, 7 }
 0xcd5   : > { %v2275_v27 = vrot.slane %v6640_v11, %v6205_v23 }
 0xcd6   : > { %v2244_v45 = vsel %vm593_vm4, %v2243_v19, 0.0  ;;  %v2404_v42 = vmax.f32 %v2403_v28, %v6744_v12  ;;  %v2271_v51 = vmul.f32 %v2270_v49, %v6006_v25 }
 0xcd7   : > { %v2245_v36 = vrot.slane %v2244_v45, 4 }
 0xcd8   : > { %2436 = vrot.lane.b32.xlu1 %v2404_v42, %s7606_s23  ;;  %2416 = vrot.lane.b32.xlu0 %v2404_v42, %s7618_s2 }
 0xcd9   : > { %v2246_v54 = vadd.f32 %v2245_v36, %v2244_v45 }
 0xcdb   : > { %v2247_v52 = vrot.slane %v2246_v54, 2 }
 0xcdc   : > { %2422 = vrot.lane.b32.xlu1 %v2059_v57, %s7618_s2  ;;  %2457 = vrot.lane.b32.xlu0 %v2404_v42, %s7619_s27 }
 0xcdd   : > { %v2248_v22 = vadd.f32 %v2247_v52, %v2246_v54 }
 0xcdf   : > { %v2249_v43 = vrot.slane %v2248_v22, 1 }
 0xce0   : > { %2443 = vrot.lane.b32.xlu0 %v2271_v51, %s7619_s27  ;;  %v2269_v51 = vmul.f32 %v2268_v56, %v6165_v60 }
 0xce1   : > { %v2250_v47 = vadd.f32 %v2249_v43, %v2248_v22 }
 0xce3   : > { %v2252_v63 = vadd.f32 %v2251_v48, %v2250_v47 }
 0xce5   : > { %v6761_v39 = vmul.f32 %v5502_v53, %v2252_v63 }
 0xd4a   : > { %v2437_v15 = vpop.permute.xlu1 %2436  ;;  %v2417_v55 = vpop.permute.xlu0 %2416 }
 0xd4b   : > { %v2439_v19 = vsub.f32 %v6737_v46, %v2437_v15  ;;  %v2419_v57 = vsub.f32 %v6737_v46, %v2417_v55 }
 0xd4d   : > { %v2440_v28 = vmul.f32 1.442695, %v2439_v19  ;;  %v2420_v45 = vmul.f32 1.442695, %v2419_v57  ;;  %v2255_v19 = vadd.f32 %v6723_v31, %v6293_v7 }
 0xd4e   : > { %v2458_v36 = vpop.permute.xlu0 %2457  ;;  %v2423_v47 = vpop.permute.xlu1 %2422 }
 0xd4f   : > { %5503 = vpow2.f32 %v2440_v28  ;;  %v2460_v54 = vsub.f32 %v6744_v12, %v2458_v36  ;;  %v4940_v57 = vmul.f32 -1.442695, %v2255_v19  ;;  %v2405_v28 = vsub.f32 %v6737_v46, %v2404_v42 }
 0xd50   : > { %5505 = vpow2.f32 %v2420_v45  ;;  %v2474_v36 = vsub.f32 %v6744_v12, %v2404_v42 }
 0xd51   : > { %v2461_v49 = vmul.f32 1.442695, %v2460_v54  ;;  %v2406_v45 = vmul.f32 1.442695, %v2405_v28 }
 0xd52   : > { %v2444_v48 = vpop.permute.xlu0 %2443  ;;  %v2475_v54 = vmul.f32 1.442695, %v2474_v36 }
 0xd53   : > { %5507 = vpow2.f32 %v2461_v49 }
 0xd54   : > { %5509 = vtanh.f32 %v6761_v39 }
 0xd55   : > { %5511 = vpow2.f32 %v4940_v57 }
 0xd56   : > { %5513 = vpow2.f32 %v2406_v45 }
 0xd57   : > { %5515 = vpow2.f32 %v2475_v54 }
 0xd59   : > { %v5504_v52 = vpop.eup %5503 }
 0xd5a   : > { %v5506_v22 = vpop.eup %5505  ;;  %2453 = vrot.lane.b32.xlu0 %v5504_v52, %s7606_s23  ;;  %v2446_v63 = vmul.f32 %v5504_v52, %v2444_v48 }
 0xd5b   : > { %2432 = vrot.lane.b32.xlu1 %v5506_v22, %s7619_s27  ;;  %v2425_v53 = vmul.f32 %v5506_v22, %v2423_v47 }
 0xd5d   : > { %v5508_v43 = vpop.eup %5507 }
 0xd5e   : > { %2409 = vrot.lane.b32.xlu0 %v2269_v51, %s7618_s2  ;;  %v5510_v15 = vpop.eup %5509  ;;  %v2463_v55 = vmul.f32 %v5508_v43, %v2275_v27 }
 0xd5f   : > { %2470 = vrot.lane.b32.xlu1 %v5508_v43, %s7618_s2  ;;  %v5512_v49 = vpop.eup %5511 }
 0xd60   : > { %v2259_v11 = vadd.f32 1.0, %v5512_v49  ;;  %v5514_v52 = vpop.eup %5513 }
 0xd62   : > { %2448 = vrot.lane.b32.xlu0 %v2446_v63, %s7606_s23  ;;  %5517 = vrcp.f32 %v2259_v11  ;;  %v5516_v63 = vpop.eup %5515 }
 0xd63   : > { %2427 = vrot.lane.b32.xlu1 %v2425_v53, %s7619_s27  ;;  %v2477_v49 = vmul.f32 %v5516_v63, %v6167_v61 }
 0xd66   : > { %2264 = vrot.lane.b32.xlu0 %v5510_v15, %s7618_s2 }
 0xd67   : > { %2465 = vrot.lane.b32.xlu1 %v2463_v55, %s7618_s2 }
 0xd6c   : > { %v5518_v42 = vpop.eup %5517 }
 0xdcc   : > { %v2454_v56 = vpop.permute.xlu0 %2453 }
 0xdcd   : > { %v2433_v22 = vpop.permute.xlu1 %2432 }
 0xdce   : > { %v2435_v51 = vadd.f32 %v5514_v52, %v2433_v22 }
 0xdd0   : > { %v2456_v43 = vadd.f32 %v2454_v56, %v2435_v51  ;;  %v2410_v48 = vpop.permute.xlu0 %2409  ;;  %v4942_v51 = vmul.f32 -1.442695, %v6737_v46 }
 0xdd1   : > { %v2471_v31 = vpop.permute.xlu1 %2470  ;;  %v2412_v27 = vmul.f32 %v5514_v52, %v2410_v48 }
 0xdd2   : > { %v2473_v47 = vadd.f32 %v2471_v31, %v2456_v43 }
 0xdd4   : > { %v2479_v53 = vadd.f32 %v5516_v63, %v2473_v47  ;;  %v2449_v15 = vpop.permute.xlu0 %2448 }
 0xdd5   : > { %v2428_v55 = vpop.permute.xlu1 %2427 }
 0xdd6   : > { %5519 = vrcp.f32 %v2479_v53  ;;  %v2430_v12 = vadd.f32 %v2428_v55, %v2412_v27 }
 0xdd8   : > { %v2451_v19 = vadd.f32 %v2449_v15, %v2430_v12  ;;  %v2265_v57 = vpop.permute.xlu0 %2264 }
 0xdd9   : > { %v2466_v28 = vpop.permute.xlu1 %2465  ;;  %v2267_v45 = vmul.f32 %v5518_v42, %v2265_v57 }
 0xdda   : > { %v2468_v36 = vadd.f32 %v2466_v28, %v2451_v19 }
 0xddb   : > { %v2491_v54 = vpack.c.bf16 %v2267_v45, %v2267_v45 }
 0xddc   : > { %v2478_v11 = vadd.f32 %v2477_v49, %v2468_v36 }
 0xddd   : > { %2501 = vrot.lane.b32.xlu0 %v2491_v54, %s7619_s27 }
 0xde0   : > { %v5520_v56 = vpop.eup %5519 }
 0xde1   : > { %v6784_v22 = vmul.f32 %v5520_v56, %v2478_v11 }
 0xde3   : > { %5521 = vtanh.f32 %v6784_v22 }
 0xde4   : > { %5523 = vpow2.f32 %v4942_v51 }
 0xded   : > { %v5522_v52 = vpop.eup %5521 }
 0xdee   : > { %2484 = vrot.lane.b32.xlu1 %v5522_v52, %s7619_s27  ;;  %v5524_v43 = vpop.eup %5523 }
 0xdef   : > { %v2387_v31 = vadd.f32 1.0, %v5524_v43 }
 0xdf1   : > { %5525 = vrcp.f32 %v2387_v31 }
 0xdfb   : > { %v5526_v47 = vpop.eup %5525 }
 0xe4f   : > { %v2502_v48 = vpop.permute.xlu0 %2501 }
 0xe50   : > { %5182 = vmatmul.mubr.msk.bf16.vlgmr.msra.gmra.mrb[60].mxu0 %vm593_vm4, %v2502_v48 }
 0xe51   : > { %5186 = vmatpush3.bf16.msra.mxu0 %v6426_v40  ;;  %5189 = vmatprep.mubr.msk.bf16.mxu0 %vm5805_vm0, %v5804_v1 }
 0xe52   : > { %5187 = vmatprep.subr.bf16.mxu0 %v5804_v1 }
 0xe55   : > { %5188 = vmatpush3.bf16.msra.mxu0 %v6435_v50 }
 0xe56   : > { %5193 = vmatprep.subr.bf16.mxu0 %v5804_v1 }
 0xe60   : > { %v2485_v46 = vpop.permute.xlu1 %2484 }
 0xe61   : > { %v2487_v63 = vmul.f32 %v5526_v47, %v2485_v46 }
 0xe63   : > { %v2488_v53 = vmul.f32 %v2487_v63, %v6299_v29 }
 0xe65   : > { %v2492_v27 = vsel %vm593_vm4, %v2488_v53, 0.0  ;;  %2711 = vrot.lane.b32.xlu1 %v2488_v53, %s7618_s2  ;;  %v2708_v15 = vrot.slane %v2488_v53, 1  ;;  %v2490_v49 = vpack.c.bf16 %v2488_v53, %v2488_v53 }
 0xe66   : > { %v2493_v55 = vrot.slane %v2492_v27, 4 }
 0xe67   : > { %v2709_v12 = vmul.f32 %v2708_v15, %v6006_v25 }
 0xe68   : > { %v2494_v42 = vadd.f32 %v2493_v55, %v2492_v27 }
 0xe69   : > { %2715 = vrot.lane.b32.xlu0 %v2709_v12, %s7606_s23 }
 0xe6a   : > { %v2495_v19 = vrot.slane %v2494_v42, 2 }
 0xe6c   : > { %v2496_v57 = vadd.f32 %v2495_v19, %v2494_v42 }
 0xe6e   : > { %v2497_v28 = vrot.slane %v2496_v57, 1 }
 0xe70   : > { %v2498_v45 = vadd.f32 %v2497_v28, %v2496_v57 }
 0xe72   : > { %v2499_v36 = vmul.f32 %v2498_v45, %v6020_v35 }
 0xe74   : > { %v2546_v54 = vpack.c.bf16 %v2499_v36, %v2499_v36 }
 0xe76   : > { %5190 = vmatmul.mubr.msk.bf16.vlgmr.msra.gmra.mrb[64].mxu0 %vm593_vm4, %v2546_v54 }
 0xe77   : > { %5194 = vmatpush3.bf16.msra.mxu0 %v6426_v40  ;;  %5197 = vmatprep.mubr.msk.bf16.mxu0 %vm5805_vm0, %v5804_v1  ;;  %v2706_v40 = vrot.slane %v2488_v53, 7 }
 0xe78   : > { %5195 = vmatprep.subr.bf16.mxu0 %v5804_v1 }
 0xe7b   : > { %5196 = vmatpush3.bf16.msra.mxu0 %v6435_v50 }
 0xe7c   : > { %2722 = vmatprep.subr.bf16.mxu0 %v6454_v58  ;;  %v2707_v58 = vmul.f32 %v2706_v40, %v6165_v60 }
 0xe7e   : > { %5198 = vmatmul.mubr.msk.bf16.vlgmr.msra.gmra.mrb[68].mxu0 %vm593_vm4, %v2490_v49 }
 0xe7f   : > { %2723 = vmatpush1.bf16.msra.mxu0 %v6461_v18  ;;  %2754 = vmatprep.mubr.bf16.mxu0 %v5806_v2 }
 0xe80   : > { %2724 = vmatprep.subr.bf16.mxu0 %v6468_v3 }
 0xe83   : > { %2725 = vmatpush1.bf16.msra.mxu0 %v6474_v33 }
 0xe84   : > { %5201 = vmatprep.subr.bf16.mxu0 %v5804_v1 }
 0xe86   : > { %4947 = vmatmul.mubr.msk.bf16.vlgmr.msra.gmra.mrb[72].mxu0 %vm593_vm4, %v2502_v48 }
 0xe87   : > { %5202 = vmatpush3.bf16.msra.mxu0 %v6482_v26  ;;  %5205 = vmatprep.mubr.msk.bf16.mxu0 %vm5805_vm0, %v5804_v1 }
 0xe88   : > { %5203 = vmatprep.subr.bf16.mxu0 %v5804_v1 }
 0xe8b   : > { %5204 = vmatpush3.bf16.msra.mxu0 %v6491_v0 }
 0xe8c   : > { %5209 = vmatprep.subr.bf16.mxu0 %v5804_v1 }
 0xed7   : > { %v2712_v50 = vpop.permute.xlu1 %2711 }
 0xed8   : > { %v2718_v18 = vsel %vm593_vm4, %v2707_v58, %v2712_v50 }
 0xedb   : > { %v2716_v3 = vpop.permute.xlu0 %2715 }
 0xedc   : > { %v2719_v33 = vsel %vm862_vm6, %v2718_v18, %v2716_v3 }
 0xedd   : > { %v2720_v26 = vsel %vm864_vm7, %v2719_v33, %v6176_v5 }
 0xede   : > { %v2721_v11 = vpack.c.bf16 %v2720_v26, %v2720_v26 }
 0xee0   : > { %2804 = vmatmul.mubr.bf16.vlgmr.msra.gmra.mrb[24].mxu1 %v2721_v11 }
 0xee1   : > { %3202 = vmatpush1.bf16.msra.mxu1 %v6503_v20  ;;  %3233 = vmatprep.mubr.bf16.mxu1 %v5806_v2 }
 0xee2   : > { %3203 = vmatprep.subr.bf16.mxu1 %v6510_v21 }
 0xee5   : > { %3204 = vmatpush1.bf16.msra.mxu1 %v6516_v59 }
 0xee6   : > { %3205 = vmatprep.subr.bf16.mxu1 %v6522_v34 }
 0xee9   : > { %3206 = vmatpush1.bf16.msra.mxu1 %v6528_v44 }
 0xeea   : > { %3207 = vmatprep.subr.bf16.mxu1 %v6534_v6 }
 0xeed   : > { %3208 = vmatpush1.bf16.msra.mxu1 %v6540_v9 }
 0xeee   : > { %3209 = vmatprep.subr.bf16.mxu1 %v6546_v37 }
 0xef1   : > { %3210 = vmatpush1.bf16.msra.mxu1 %v6552_v10 }
 0xef2   : > { %3211 = vmatprep.subr.bf16.mxu1 %v6558_v32 }
 0xef5   : > { %3212 = vmatpush1.bf16.msra.mxu1 %v6564_v14 }
 0xef6   : > { %3213 = vmatprep.subr.bf16.mxu1 %v6570_v16 }
 0xef9   : > { %3214 = vmatpush1.bf16.msra.mxu1 %v6576_v17 }
 0xefa   : > { %3215 = vmatprep.subr.bf16.mxu1 %v6582_v38 }
 0xefd   : > { %3216 = vmatpush1.bf16.msra.mxu1 %v6588_v41 }
 0xefe   : > { %3631 = vmatprep.subr.bf16.mxu1 %v6594_v13 }
 0xf23   : > { %v2540_v0 = vpop.f32.mrb[60].mxu0 }
 0xf24   : > { %v5183_v20 = vpop.f32.mrb[61].mxu0  ;;  %v2633_v37 = vadd.f32 %v6606_v8, %v2540_v0 }
 0xf25   : > { %v2543_v21 = vpop.f32.mrb[62].mxu0 }
 0xf26   : > { %v5184_v59 = vpop.f32.mrb[63].mxu0  ;;  %v2637_v32 = vrot.slane %v2633_v37, %v6205_v23 }
 0xf49   : > { %v2584_v34 = vpop.f32.mrb[64].mxu0 }
 0xf4a   : > { %v6844_v44 = vadd.f32 %v2584_v34, %v2540_v0  ;;  %v5191_v6 = vpop.f32.mrb[65].mxu0 }
 0xf4b   : > { %v2587_v9 = vpop.f32.mrb[66].mxu0 }
 0xf4c   : > { %v5192_v10 = vpop.f32.mrb[67].mxu0  ;;  %v2641_v63 = vadd.f32 %v6606_v8, %v6844_v44 }
 0xf4d   : > { %v2489_v10 = vmul.f32 %v6784_v22, %v6299_v29 }
 0xf4e   : > { %v2642_v15 = vadd.f32 %v2641_v63, %v6261_v62 }
 0xf51   : > { %v2627_v14 = vpop.f32.mrb[68].mxu0 }
 0xf52   : > { %v2638_v16 = vadd.f32 %v2637_v32, %v2627_v14  ;;  %v5199_v17 = vpop.f32.mrb[69].mxu0 }
 0xf53   : > { %v2630_v38 = vpop.f32.mrb[70].mxu0 }
 0xf54   : > { %v2639_v41 = vadd.f32 %v2638_v16, %v6254_v30  ;;  %v5200_v13 = vpop.f32.mrb[71].mxu0 }
 0xf56   : > { %v2643_v56 = vsel %vm593_vm4, %v2639_v41, -inf }
 0xf57   : > { %v2644_v52 = vrot.slane %v2643_v56, 4 }
 0xf59   : > { %v2645_v51 = vmax.f32 %v2643_v56, %v2644_v52  ;;  %v2756_v43 = vpop.f32.mrb[72].mxu0 }
 0xf5a   : > { %v2758_v48 = vpop.f32.mrb[73].mxu0  ;;  %v2766_v26 = vrot.slane %v2756_v43, %v6205_v23 }
 0xf5b   : > { %v2646_v31 = vrot.slane %v2645_v51, 2  ;;  %v2760_v47 = vpop.f32.mrb[74].mxu0  ;;  %v2770_v11 = vrot.slane %v2758_v48, %v6205_v23 }
 0xf5c   : > { %v2761_v46 = vpop.f32.mrb[75].mxu0 }
 0xf5d   : > { %v2647_v53 = vmax.f32 %v2645_v51, %v2646_v31 }
 0xf5f   : > { %v2648_v27 = vrot.slane %v2647_v53, 1 }
 0xf61   : > { %v2649_v55 = vmax.f32 %v2647_v53, %v2648_v27 }
 0xf63   : > { %v2650_v12 = vmax.f32 %v2649_v55, %v2642_v15 }
 0xf65   : > { %v2654_v42 = vrot.slane %v2650_v12, %v6205_v23  ;;  %v2658_v19 = vsub.f32 %v2642_v15, %v2650_v12 }
 0xf67   : > { %v2655_v57 = vsub.f32 %v2639_v41, %v2654_v42  ;;  %v2659_v45 = vmul.f32 1.442695, %v2658_v19 }
 0xf69   : > { %v2656_v28 = vmul.f32 1.442695, %v2655_v57 }
 0xf6b   : > { %5527 = vpow2.f32 %v2656_v28 }
 0xf6c   : > { %5529 = vpow2.f32 %v2659_v45 }
 0xf75   : > { %v5528_v36 = vpop.eup %5527 }
 0xf76   : > { %v2661_v54 = vsel %vm593_vm4, %v5528_v36, 0.0  ;;  %v5530_v3 = vpop.eup %5529 }
 0xf77   : > { %v2662_v49 = vrot.slane %v2661_v54, 4  ;;  %v2681_v53 = vmul.f32 %v5530_v3, %v6761_v39 }
 0xf79   : > { %v2663_v40 = vadd.f32 %v2662_v49, %v2661_v54 }
 0xf7b   : > { %v2664_v8 = vrot.slane %v2663_v40, 2 }
 0xf7d   : > { %v2665_v50 = vadd.f32 %v2664_v8, %v2663_v40 }
 0xf7f   : > { %v2666_v58 = vrot.slane %v2665_v50, 1 }
 0xf81   : > { %v2667_v18 = vadd.f32 %v2666_v58, %v2665_v50 }
 0xf83   : > { %v2668_v33 = vadd.f32 %v5530_v3, %v2667_v18 }
 0xf85   : > { %5531 = vrcp.f32 %v2668_v33 }
 0xf8f   : > { %v5532_v55 = vpop.eup %5531 }
 0xfb3   : > { %v2805_v0 = vpop.f32.mrb[24].mxu1 }
 0xfb4   : > { %v2806_v20 = vadd.f32 %v2805_v0, %v2766_v26  ;;  %v2807_v21 = vpop.f32.mrb[25].mxu1 }
 0xfb5   : > { %v2808_v59 = vadd.f32 %v2807_v21, %v2770_v11  ;;  %v2809_v34 = vpop.f32.mrb[26].mxu1 }
 0xfb6   : > { %v6858_v6 = vadd.f32 %v2806_v20, %v6214_v4  ;;  %v2810_v9 = vpop.f32.mrb[27].mxu1  ;;  %v2705_v20 = vrot.slane %v6761_v39, %v6205_v23  ;;  %v2685_v34 = vadd.f32 %v6844_v44, %v6293_v7 }
 0xfb7   : > { %v6865_v37 = vadd.f32 %v2808_v59, %v6221_v24 }
 0xfb8   : > { %2825 = vrot.lane.b32.xlu0 %v6858_v6, %s7606_s23  ;;  %2821 = vrot.lane.b32.xlu1 %v6858_v6, %s7619_s27  ;;  %v4946_v9 = vmul.f32 -1.442695, %v2685_v34 }
 0xfbc   : > { %2670 = vrot.lane.b32.xlu0 %v2489_v10, %s7619_s27  ;;  %2830 = vrot.lane.b32.xlu1 %v6865_v37, %s7618_s2 }
0x102a   : > { %v2826_v32 = vpop.permute.xlu0 %2825  ;;  %v2822_v14 = vpop.permute.xlu1 %2821 }
0x102b   : > { %v2824_v16 = vmax.f32 %v6858_v6, %v2822_v14 }
0x102d   : > { %v2828_v17 = vmax.f32 %v2824_v16, %v2826_v32 }
0x102e   : > { %v2671_v38 = vpop.permute.xlu0 %2670  ;;  %v2831_v41 = vpop.permute.xlu1 %2830 }
0x102f   : > { %v2673_v13 = vmul.f32 %v5528_v36, %v2671_v38  ;;  %v2833_v56 = vmax.f32 %v2828_v17, %v2831_v41  ;;  %v2700_v48 = vrot.slane %v2671_v38, 1  ;;  %v2698_v8 = vrot.slane %v2671_v38, 7 }
0x1031   : > { %v2674_v52 = vsel %vm593_vm4, %v2673_v13, 0.0  ;;  %v2834_v51 = vmax.f32 %v2833_v56, %v6865_v37  ;;  %v2701_v46 = vmul.f32 %v2700_v48, %v6006_v25  ;;  %v2699_v18 = vmul.f32 %v2698_v8, %v6165_v60 }
0x1032   : > { %v2675_v43 = vrot.slane %v2674_v52, 4 }
0x1033   : > { %2866 = vrot.lane.b32.xlu0 %v2834_v51, %s7606_s23  ;;  %2846 = vrot.lane.b32.xlu1 %v2834_v51, %s7618_s2  ;;  %v2904_v14 = vsub.f32 %v6865_v37, %v2834_v51 }
0x1034   : > { %v2676_v22 = vadd.f32 %v2675_v43, %v2674_v52 }
0x1035   : > { %v2905_v16 = vmul.f32 1.442695, %v2904_v14 }
0x1036   : > { %v2677_v31 = vrot.slane %v2676_v22, 2 }
0x1037   : > { %2852 = vrot.lane.b32.xlu0 %v2489_v10, %s7618_s2  ;;  %2887 = vrot.lane.b32.xlu1 %v2834_v51, %s7619_s27  ;;  %v2835_v10 = vsub.f32 %v6858_v6, %v2834_v51 }
0x1038   : > { %v2678_v47 = vadd.f32 %v2677_v31, %v2676_v22 }
0x1039   : > { %v2836_v32 = vmul.f32 1.442695, %v2835_v10 }
0x103a   : > { %v2679_v63 = vrot.slane %v2678_v47, 1 }
0x103b   : > { %2873 = vrot.lane.b32.xlu1 %v2701_v46, %s7619_s27 }
0x103c   : > { %v2680_v27 = vadd.f32 %v2679_v63, %v2678_v47 }
0x103e   : > { %v2682_v15 = vadd.f32 %v2681_v53, %v2680_v27 }
0x1040   : > { %v6882_v12 = vmul.f32 %v5532_v55, %v2682_v15 }
0x10a5   : > { %v2867_v42 = vpop.permute.xlu0 %2866  ;;  %v2847_v19 = vpop.permute.xlu1 %2846 }
0x10a6   : > { %v2869_v57 = vsub.f32 %v6858_v6, %v2867_v42  ;;  %v2849_v28 = vsub.f32 %v6858_v6, %v2847_v19 }
0x10a8   : > { %v2870_v45 = vmul.f32 1.442695, %v2869_v57  ;;  %v2850_v36 = vmul.f32 1.442695, %v2849_v28 }
0x10a9   : > { %v2888_v54 = vpop.permute.xlu1 %2887  ;;  %v2853_v26 = vpop.permute.xlu0 %2852 }
0x10aa   : > { %5533 = vpow2.f32 %v2870_v45  ;;  %v2890_v49 = vsub.f32 %v6865_v37, %v2888_v54 }
0x10ab   : > { %5535 = vpow2.f32 %v2850_v36 }
0x10ac   : > { %v2891_v40 = vmul.f32 1.442695, %v2890_v49  ;;  %v4948_v49 = vmul.f32 -1.442695, %v6858_v6  ;;  %v6923_v6 = vld [vmem:[%s7590_s5 + $0x8] sm:$0xff]  }
0x10ad   : > { %v2874_v33 = vpop.permute.xlu1 %2873 }
0x10ae   : > { %5537 = vpow2.f32 %v2891_v40 }
0x10af   : > { %5539 = vtanh.f32 %v6882_v12 }
0x10b0   : > { %5541 = vpow2.f32 %v4946_v9 }
0x10b1   : > { %5543 = vpow2.f32 %v2836_v32 }
0x10b2   : > { %5545 = vpow2.f32 %v2905_v16 }
0x10b4   : > { %v5534_v50 = vpop.eup %5533 }
0x10b5   : > { %v5536_v58 = vpop.eup %5535  ;;  %2883 = vrot.lane.b32.xlu1 %v5534_v50, %s7606_s23  ;;  %v2876_v11 = vmul.f32 %v5534_v50, %v2874_v33  ;;  %v6914_v50 = vld [vmem:[%s7590_s5] sm:$0xff]  }
0x10b6   : > { %2862 = vrot.lane.b32.xlu0 %v5536_v58, %s7619_s27  ;;  %v2855_v0 = vmul.f32 %v5536_v58, %v2853_v26 }
0x10b8   : > { %v5538_v3 = vpop.eup %5537 }
0x10b9   : > { %2839 = vrot.lane.b32.xlu1 %v2699_v18, %s7618_s2  ;;  %v5540_v21 = vpop.eup %5539  ;;  %v2893_v59 = vmul.f32 %v5538_v3, %v2705_v20 }
0x10ba   : > { %2900 = vrot.lane.b32.xlu0 %v5538_v3, %s7618_s2  ;;  %v5542_v17 = vpop.eup %5541 }
0x10bb   : > { %v2689_v39 = vadd.f32 1.0, %v5542_v17  ;;  %v5544_v41 = vpop.eup %5543 }
0x10bc   : > { %v5546_v48 = vpop.eup %5545 }
0x10bd   : > { %2878 = vrot.lane.b32.xlu1 %v2876_v11, %s7606_s23  ;;  %5547 = vrcp.f32 %v2689_v39  ;;  %v2907_v57 = vmul.f32 %v5546_v48, %v6167_v61  ;;  %v6942_v39 = vld [vmem:[%s7594_s9 + $0x4] ss:$8 sps:$4 sm:$0xff]  }
0x10be   : > { %2857 = vrot.lane.b32.xlu0 %v2855_v0, %s7619_s27 }
0x10c1   : > { %2694 = vrot.lane.b32.xlu1 %v5540_v21, %s7618_s2 }
0x10c2   : > { %2895 = vrot.lane.b32.xlu0 %v2893_v59, %s7618_s2 }
0x10c7   : > { %v5548_v51 = vpop.eup %5547 }
0x1127   : > { %v2884_v38 = vpop.permute.xlu1 %2883 }
0x1128   : > { %v2863_v13 = vpop.permute.xlu0 %2862 }
0x1129   : > { %v2865_v56 = vadd.f32 %v5544_v41, %v2863_v13  ;;  %v6962_v13 = vld [vmem:[%s7594_s9 + $0x10] ss:$8 sps:$4 sm:$0xff]  }
0x112b   : > { %v2886_v52 = vadd.f32 %v2884_v38, %v2865_v56  ;;  %v2840_v43 = vpop.permute.xlu1 %2839  ;;  %v6949_v38 = vld [vmem:[%s7594_s9] ss:$8 sps:$4 sm:$0xff]  }
0x112c   : > { %v2901_v44 = vpop.permute.xlu0 %2900  ;;  %v2842_v47 = vmul.f32 %v5544_v41, %v2840_v43  ;;  %v6956_v41 = vld [vmem:[%s7594_s9 + $0x14] ss:$8 sps:$4 sm:$0xff]   ;;  %v6970_v56 = vld [vmem:[%s7589_s4] sm:$0xff]  }
0x112d   : > { %v2903_v22 = vadd.f32 %v2901_v44, %v2886_v52  ;;  %v6979_v52 = vld [vmem:[%s7589_s4 + $0x8] sm:$0xff]  }
0x112f   : > { %v2909_v31 = vadd.f32 %v5546_v48, %v2903_v22  ;;  %v2879_v46 = vpop.permute.xlu1 %2878 }
0x1130   : > { %v2858_v63 = vpop.permute.xlu0 %2857 }
0x1131   : > { %5549 = vrcp.f32 %v2909_v31  ;;  %v2860_v37 = vadd.f32 %v2858_v63, %v2842_v47 }
0x1133   : > { %v2881_v53 = vadd.f32 %v2879_v46, %v2860_v37  ;;  %v2695_v27 = vpop.permute.xlu1 %2694  ;;  %v6991_v37 = vld [vmem:[%s7593_s8] ss:$8 sps:$4 sm:$0xff]  }
0x1134   : > { %v2896_v15 = vpop.permute.xlu0 %2895  ;;  %v2697_v55 = vmul.f32 %v5548_v51, %v2695_v27  ;;  %v6998_v51 = vld [vmem:[%s7593_s8 + $0x14] ss:$8 sps:$4 sm:$0xff]   ;;  %v7010_v27 = vld [vmem:[%s7593_s8 + $0x24] ss:$8 sps:$4 sm:$0xff]  }
0x1135   : > { %v2898_v42 = vadd.f32 %v2896_v15, %v2881_v53  ;;  %v7004_v53 = vld [vmem:[%s7593_s8 + $0x10] ss:$8 sps:$4 sm:$0xff]   ;;  %v7016_v15 = vld [vmem:[%s7593_s8 + $0x20] ss:$8 sps:$4 sm:$0xff]  }
0x1136   : > { %v2921_v19 = vpack.c.bf16 %v2697_v55, %v2697_v55  ;;  %v7022_v55 = vld [vmem:[%s7593_s8 + $0x34] ss:$8 sps:$4 sm:$0xff]  }
0x1137   : > { %v2908_v28 = vadd.f32 %v2907_v57, %v2898_v42  ;;  %v7028_v42 = vld [vmem:[%s7593_s8 + $0x30] ss:$8 sps:$4 sm:$0xff]   ;;  %v7040_v57 = vld [vmem:[%s7593_s8 + $0x40] ss:$8 sps:$4 sm:$0xff]  }
0x1138   : > { %2931 = vrot.lane.b32.xlu1 %v2921_v19, %s7619_s27  ;;  %v7034_v19 = vld [vmem:[%s7593_s8 + $0x44] ss:$8 sps:$4 sm:$0xff]  }
0x113b   : > { %v5550_v45 = vpop.eup %5549 }
0x113c   : > { %v6905_v36 = vmul.f32 %v5550_v45, %v2908_v28  ;;  %v7046_v28 = vld [vmem:[%s7593_s8 + $0x54] ss:$8 sps:$4 sm:$0xff]   ;;  %v7052_v45 = vld [vmem:[%s7593_s8 + $0x50] ss:$8 sps:$4 sm:$0xff]  }
0x113e   : > { %5551 = vtanh.f32 %v6905_v36 }
0x113f   : > { %5553 = vpow2.f32 %v4948_v49  ;;  %v7064_v49 = vld [vmem:[%s7593_s8 + $0x60] ss:$8 sps:$4 sm:$0xff]  }
0x1148   : > { %v5552_v54 = vpop.eup %5551 }
0x1149   : > { %2914 = vrot.lane.b32.xlu0 %v5552_v54, %s7619_s27  ;;  %v5554_v40 = vpop.eup %5553  ;;  %v7058_v54 = vld [vmem:[%s7593_s8 + $0x64] ss:$8 sps:$4 sm:$0xff]  }
0x114a   : > { %v2817_v58 = vadd.f32 1.0, %v5554_v40  ;;  %v7070_v40 = vld [vmem:[%s7593_s8 + $0x74] ss:$8 sps:$4 sm:$0xff]  }
0x114c   : > { %5555 = vrcp.f32 %v2817_v58  ;;  %v7082_v58 = vld [vmem:[%s7593_s8 + $0x4] ss:$8 sps:$4 sm:$0xff]  }
0x1156   : > { %v5556_v18 = vpop.eup %5555 }
0x11aa   : > { %v2932_v8 = vpop.permute.xlu1 %2931 }
0x11ab   : > { %5206 = vmatmul.mubr.msk.bf16.vlgmr.msra.gmra.mrb[76].mxu0 %vm593_vm4, %v2932_v8 }
0x11ac   : > { %5210 = vmatpush3.bf16.msra.mxu0 %v6914_v50  ;;  %5213 = vmatprep.mubr.msk.bf16.mxu0 %vm5805_vm0, %v5804_v1 }
0x11ad   : > { %5211 = vmatprep.subr.bf16.mxu0 %v5804_v1 }
0x11b0   : > { %5212 = vmatpush3.bf16.msra.mxu0 %v6923_v6 }
0x11b1   : > { %5217 = vmatprep.subr.bf16.mxu0 %v5804_v1 }
0x11bb   : > { %v2915_v3 = vpop.permute.xlu0 %2914 }
0x11bc   : > { %v2917_v33 = vmul.f32 %v5556_v18, %v2915_v3 }
0x11be   : > { %v2918_v26 = vmul.f32 %v2917_v33, %v6299_v29 }
0x11c0   : > { %v2922_v11 = vsel %vm593_vm4, %v2918_v26, 0.0  ;;  %3141 = vrot.lane.b32.xlu0 %v2918_v26, %s7618_s2  ;;  %v3138_v0 = vrot.slane %v2918_v26, 1  ;;  %v2920_v17 = vpack.c.bf16 %v2918_v26, %v2918_v26  ;;  %v3136_v43 = vrot.slane %v2918_v26, 7 }
0x11c1   : > { %v2923_v20 = vrot.slane %v2922_v11, 4 }
0x11c2   : > { %v3139_v21 = vmul.f32 %v3138_v0, %v6006_v25  ;;  %v3137_v22 = vmul.f32 %v3136_v43, %v6165_v60 }
0x11c3   : > { %v2924_v59 = vadd.f32 %v2923_v20, %v2922_v11 }
0x11c4   : > { %3145 = vrot.lane.b32.xlu1 %v3139_v21, %s7606_s23  ;;  %s4981_s23 = sshll.u32 %s5912_s22, 4  ;;  %s5810_s22 = smov [#allocation2]  }
0x11c5   : > { %v2925_v34 = vrot.slane %v2924_v59, 2  ;;  %s5744_s30 = sshll.u32 %s5810_s22, 4  ;;  %s5745_s30 = int_to_ptr.vmem [resolvable:$false] %s5744_s30 }
0x11c6   : > { %p5747_p0 = scmp.lt.s32.totalorder %s7545_s25, %s5745_s30 }
0x11c7   : > { %v2926_v9 = vadd.f32 %v2925_v34, %v2924_v59  ;;  %v7090_v59 = vld [vmem:[%s7591_s6] sm:$0x1] }
0x11c9   : > { %v2927_v10 = vrot.slane %v2926_v9, 1 }
0x11cb   : > { %v2928_v32 = vadd.f32 %v2927_v10, %v2926_v9 }
0x11cd   : > { %v2929_v14 = vmul.f32 %v2928_v32, %v6020_v35 }
0x11cf   : > { %v2976_v16 = vpack.c.bf16 %v2929_v14, %v2929_v14 }
0x11d1   : > { %5214 = vmatmul.mubr.msk.bf16.vlgmr.msra.gmra.mrb[80].mxu0 %vm593_vm4, %v2976_v16 }
0x11d2   : > { %5218 = vmatpush3.bf16.msra.mxu0 %v6914_v50  ;;  %5221 = vmatprep.mubr.msk.bf16.mxu0 %vm5805_vm0, %v5804_v1 }
0x11d3   : > { %5219 = vmatprep.subr.bf16.mxu0 %v5804_v1 }
0x11d6   : > { %5220 = vmatpush3.bf16.msra.mxu0 %v6923_v6 }
0x11d7   : > { %3152 = vmatprep.subr.bf16.mxu0 %v6942_v39 }
0x11d9   : > { %5222 = vmatmul.mubr.msk.bf16.vlgmr.msra.gmra.mrb[84].mxu0 %vm593_vm4, %v2920_v17 }
0x11da   : > { %3153 = vmatpush1.bf16.msra.mxu0 %v6949_v38  ;;  %3184 = vmatprep.mubr.bf16.mxu0 %v5806_v2 }
0x11db   : > { %3154 = vmatprep.subr.bf16.mxu0 %v6956_v41 }
0x11de   : > { %3155 = vmatpush1.bf16.msra.mxu0 %v6962_v13 }
0x11df   : > { %5225 = vmatprep.subr.bf16.mxu0 %v5804_v1 }
0x11e1   : > { %4953 = vmatmul.mubr.msk.bf16.vlgmr.msra.gmra.mrb[88].mxu0 %vm593_vm4, %v2932_v8  ;;  %v7076_v8 = vld [vmem:[%s7593_s8 + $0x70] ss:$8 sps:$4 sm:$0xff]  }
0x11e2   : > { %5226 = vmatpush3.bf16.msra.mxu0 %v6970_v56  ;;  %5229 = vmatprep.mubr.msk.bf16.mxu0 %vm5805_vm0, %v5804_v1 }
0x11e3   : > { %5227 = vmatprep.subr.bf16.mxu0 %v5804_v1 }
0x11e6   : > { %5228 = vmatpush3.bf16.msra.mxu0 %v6979_v52 }
0x11e7   : > { %5233 = vmatprep.subr.bf16.mxu0 %v5804_v1 }
0x1232   : > { %v3142_v44 = vpop.permute.xlu0 %3141 }
0x1233   : > { %v3148_v48 = vsel %vm593_vm4, %v3137_v22, %v3142_v44 }
0x1236   : > { %v3146_v31 = vpop.permute.xlu1 %3145 }
0x1237   : > { %v3149_v47 = vsel %vm862_vm6, %v3148_v48, %v3146_v31 }
0x1238   : > { %v3150_v46 = vsel %vm864_vm7, %v3149_v47, %v6176_v5 }
0x1239   : > { %v3151_v63 = vpack.c.bf16 %v3150_v46, %v3150_v46 }
0x123b   : > { %3234 = vmatmul.mubr.bf16.vlgmr.msra.gmra.mrb[28].mxu1 %v3151_v63 }
0x123c   : > { %3632 = vmatpush1.bf16.msra.mxu1 %v6991_v37  ;;  %3663 = vmatprep.mubr.bf16.mxu1 %v5806_v2 }
0x123d   : > { %3633 = vmatprep.subr.bf16.mxu1 %v6998_v51 }
0x1240   : > { %3634 = vmatpush1.bf16.msra.mxu1 %v7004_v53 }
0x1241   : > { %3635 = vmatprep.subr.bf16.mxu1 %v7010_v27 }
0x1244   : > { %3636 = vmatpush1.bf16.msra.mxu1 %v7016_v15 }
0x1245   : > { %3637 = vmatprep.subr.bf16.mxu1 %v7022_v55 }
0x1248   : > { %3638 = vmatpush1.bf16.msra.mxu1 %v7028_v42 }
0x1249   : > { %3639 = vmatprep.subr.bf16.mxu1 %v7034_v19 }
0x124c   : > { %3640 = vmatpush1.bf16.msra.mxu1 %v7040_v57 }
0x124d   : > { %3641 = vmatprep.subr.bf16.mxu1 %v7046_v28 }
0x1250   : > { %3642 = vmatpush1.bf16.msra.mxu1 %v7052_v45 }
0x1251   : > { %3643 = vmatprep.subr.bf16.mxu1 %v7058_v54 }
0x1254   : > { %3644 = vmatpush1.bf16.msra.mxu1 %v7064_v49 }
0x1255   : > { %3645 = vmatprep.subr.bf16.mxu1 %v7070_v40 }
0x1258   : > { %3646 = vmatpush1.bf16.msra.mxu1 %v7076_v8 }
0x1259   : > { %4061 = vmatprep.subr.bf16.mxu1 %v7082_v58 }
0x127e   : > { %v2970_v18 = vpop.f32.mrb[76].mxu0 }
0x127f   : > { %v5207_v3 = vpop.f32.mrb[77].mxu0  ;;  %v3063_v34 = vadd.f32 %v7090_v59, %v2970_v18 }
0x1280   : > { %v2973_v33 = vpop.f32.mrb[78].mxu0 }
0x1281   : > { %v5208_v26 = vpop.f32.mrb[79].mxu0  ;;  %v3067_v10 = vrot.slane %v3063_v34, %v6205_v23 }
0x12a4   : > { %v3014_v11 = vpop.f32.mrb[80].mxu0 }
0x12a5   : > { %v7085_v0 = vadd.f32 %v3014_v11, %v2970_v18  ;;  %v5215_v20 = vpop.f32.mrb[81].mxu0 }
0x12a6   : > { %v3017_v21 = vpop.f32.mrb[82].mxu0 }
0x12a7   : > { %v5216_v9 = vpop.f32.mrb[83].mxu0  ;;  %v3071_v18 = vadd.f32 %v7090_v59, %v7085_v0 }
0x12a9   : > { %v3072_v20 = vadd.f32 %v3071_v18, %v6261_v62 }
0x12ac   : > { %v3057_v32 = vpop.f32.mrb[84].mxu0 }
0x12ad   : > { %v3068_v14 = vadd.f32 %v3067_v10, %v3057_v32  ;;  %v5223_v16 = vpop.f32.mrb[85].mxu0 }
0x12ae   : > { %v3060_v17 = vpop.f32.mrb[86].mxu0 }
0x12af   : > { %v3069_v43 = vadd.f32 %v3068_v14, %v6254_v30  ;;  %v5224_v44 = vpop.f32.mrb[87].mxu0 }
0x12b1   : > { %v3073_v22 = vsel %vm593_vm4, %v3069_v43, -inf }
0x12b2   : > { %v3074_v48 = vrot.slane %v3073_v22, 4 }
0x12b4   : > { %v3075_v31 = vmax.f32 %v3073_v22, %v3074_v48  ;;  %v3186_v47 = vpop.f32.mrb[88].mxu0 }
0x12b5   : > { %v3188_v46 = vpop.f32.mrb[89].mxu0 }
0x12b6   : > { %v3076_v63 = vrot.slane %v3075_v31, 2  ;;  %v3190_v3 = vpop.f32.mrb[90].mxu0 }
0x12b7   : > { %v3191_v33 = vpop.f32.mrb[91].mxu0 }
0x12b8   : > { %v3077_v26 = vmax.f32 %v3075_v31, %v3076_v63 }
0x12ba   : > { %v3078_v11 = vrot.slane %v3077_v26, 1 }
0x12bc   : > { %v3079_v21 = vmax.f32 %v3077_v26, %v3078_v11  ;;  %v3196_v11 = vrot.slane %v3186_v47, %v6205_v23  ;;  %v2919_v47 = vmul.f32 %v6905_v36, %v6299_v29 }
0x12be   : > { %v3080_v34 = vmax.f32 %v3079_v21, %v3072_v20 }
0x12c0   : > { %v3084_v9 = vrot.slane %v3080_v34, %v6205_v23  ;;  %v3088_v10 = vsub.f32 %v3072_v20, %v3080_v34  ;;  %v3200_v20 = vrot.slane %v3188_v46, %v6205_v23 }
0x12c2   : > { %v3085_v32 = vsub.f32 %v3069_v43, %v3084_v9  ;;  %v3089_v16 = vmul.f32 1.442695, %v3088_v10 }
0x12c4   : > { %v3086_v14 = vmul.f32 1.442695, %v3085_v32 }
0x12c6   : > { %5557 = vpow2.f32 %v3086_v14 }
0x12c7   : > { %5559 = vpow2.f32 %v3089_v16 }
0x12d0   : > { %v5558_v17 = vpop.eup %5557 }
0x12d1   : > { %v3091_v44 = vsel %vm593_vm4, %v5558_v17, 0.0  ;;  %v5560_v18 = vpop.eup %5559 }
0x12d2   : > { %v3092_v22 = vrot.slane %v3091_v44, 4 }
0x12d4   : > { %v3093_v48 = vadd.f32 %v3092_v22, %v3091_v44 }
0x12d6   : > { %v3094_v3 = vrot.slane %v3093_v48, 2 }
0x12d8   : > { %v3095_v31 = vadd.f32 %v3094_v3, %v3093_v48 }
0x12da   : > { %v3096_v63 = vrot.slane %v3095_v31, 1 }
0x12dc   : > { %v3097_v33 = vadd.f32 %v3096_v63, %v3095_v31 }
0x12de   : > { %v3098_v26 = vadd.f32 %v5560_v18, %v3097_v33 }
0x12e0   : > { %5561 = vrcp.f32 %v3098_v26 }
0x130e   : > { %v3235_v43 = vpop.f32.mrb[28].mxu1 }
0x130f   : > { %v3236_v21 = vadd.f32 %v3235_v43, %v3196_v11  ;;  %v3237_v34 = vpop.f32.mrb[29].mxu1 }
0x1310   : > { %v3238_v9 = vadd.f32 %v3237_v34, %v3200_v20  ;;  %v3239_v10 = vpop.f32.mrb[30].mxu1 }
0x1311   : > { %v7104_v32 = vadd.f32 %v3236_v21, %v6214_v4  ;;  %v3240_v14 = vpop.f32.mrb[31].mxu1 }
0x1312   : > { %v7113_v46 = vadd.f32 %v3238_v9, %v6221_v24  ;;  %v3111_v14 = vmul.f32 %v5560_v18, %v6882_v12 }
0x1313   : > { %3255 = vrot.lane.b32.xlu1 %v7104_v32, %s7620_s17  ;;  %3251 = vrot.lane.b32.xlu0 %v7104_v32, %s7619_s27 }
0x1317   : > { %3100 = vrot.lane.b32.xlu1 %v2919_v47, %s7619_s27  ;;  %3260 = vrot.lane.b32.xlu0 %v7113_v46, %s7618_s2 }
0x1385   : > { %v3256_v16 = vpop.permute.xlu1 %3255  ;;  %v3252_v44 = vpop.permute.xlu0 %3251 }
0x1386   : > { %v3254_v22 = vmax.f32 %v7104_v32, %v3252_v44 }
0x1388   : > { %v3258_v48 = vmax.f32 %v3254_v22, %v3256_v16  ;;  %v5562_v22 = vpop.eup %5561 }
0x1389   : > { %v3101_v3 = vpop.permute.xlu1 %3100  ;;  %v3261_v31 = vpop.permute.xlu0 %3260 }
0x138a   : > { %v3103_v63 = vmul.f32 %v5558_v17, %v3101_v3  ;;  %v3263_v33 = vmax.f32 %v3258_v48, %v3261_v31  ;;  %v3130_v21 = vrot.slane %v3101_v3, 1  ;;  %v3128_v18 = vrot.slane %v3101_v3, 7 }
0x138b   : > { %v3135_v3 = vrot.slane %v6882_v12, %v6205_v23 }
0x138c   : > { %v3104_v11 = vsel %vm593_vm4, %v3103_v63, 0.0  ;;  %v3264_v36 = vmax.f32 %v3263_v33, %v7113_v46  ;;  %v3131_v17 = vmul.f32 %v3130_v21, %v6006_v25 }
0x138d   : > { %v3105_v20 = vrot.slane %v3104_v11, 4 }
0x138e   : > { %3296 = vrot.lane.b32.xlu1 %v3264_v36, %s7620_s17  ;;  %3276 = vrot.lane.b32.xlu0 %v3264_v36, %s7618_s2 }
0x138f   : > { %v3106_v43 = vadd.f32 %v3105_v20, %v3104_v11 }
0x1391   : > { %v3107_v34 = vrot.slane %v3106_v43, 2 }
0x1392   : > { %3282 = vrot.lane.b32.xlu1 %v2919_v47, %s7618_s2  ;;  %3317 = vrot.lane.b32.xlu0 %v3264_v36, %s7619_s27 }
0x1393   : > { %v3108_v9 = vadd.f32 %v3107_v34, %v3106_v43 }
0x1395   : > { %v3109_v10 = vrot.slane %v3108_v9, 1 }
0x1396   : > { %3303 = vrot.lane.b32.xlu0 %v3131_v17, %s7619_s27  ;;  %v3129_v17 = vmul.f32 %v3128_v18, %v6165_v60 }
0x1397   : > { %v3110_v16 = vadd.f32 %v3109_v10, %v3108_v9 }
0x1399   : > { %v3112_v44 = vadd.f32 %v3111_v14, %v3110_v16 }
0x139b   : > { %v7128_v48 = vmul.f32 %v5562_v22, %v3112_v44 }
0x1400   : > { %v3297_v26 = vpop.permute.xlu1 %3296  ;;  %v3277_v31 = vpop.permute.xlu0 %3276 }
0x1401   : > { %v3299_v63 = vsub.f32 %v7104_v32, %v3297_v26  ;;  %v3279_v47 = vsub.f32 %v7104_v32, %v3277_v31 }
0x1403   : > { %v3300_v33 = vmul.f32 1.442695, %v3299_v63  ;;  %v3280_v11 = vmul.f32 1.442695, %v3279_v47  ;;  %v3115_v63 = vadd.f32 %v7085_v0, %v6293_v7 }
0x1404   : > { %v3318_v20 = vpop.permute.xlu0 %3317  ;;  %v3283_v16 = vpop.permute.xlu1 %3282 }
0x1405   : > { %5563 = vpow2.f32 %v3300_v33  ;;  %v3320_v43 = vsub.f32 %v7113_v46, %v3318_v20  ;;  %v4952_v47 = vmul.f32 -1.442695, %v3115_v63  ;;  %v3265_v33 = vsub.f32 %v7104_v32, %v3264_v36 }
0x1406   : > { %5565 = vpow2.f32 %v3280_v11  ;;  %v3334_v20 = vsub.f32 %v7113_v46, %v3264_v36 }
0x1407   : > { %v3321_v21 = vmul.f32 1.442695, %v3320_v43  ;;  %v3266_v11 = vmul.f32 1.442695, %v3265_v33 }
0x1408   : > { %v3304_v14 = vpop.permute.xlu0 %3303  ;;  %v3335_v43 = vmul.f32 1.442695, %v3334_v20 }
0x1409   : > { %5567 = vpow2.f32 %v3321_v21 }
0x140a   : > { %5569 = vtanh.f32 %v7128_v48 }
0x140b   : > { %5571 = vpow2.f32 %v4952_v47 }
0x140c   : > { %5573 = vpow2.f32 %v3266_v11 }
0x140d   : > { %5575 = vpow2.f32 %v3335_v43 }
0x140f   : > { %v5564_v34 = vpop.eup %5563 }
0x1410   : > { %v5566_v9 = vpop.eup %5565  ;;  %3313 = vrot.lane.b32.xlu0 %v5564_v34, %s7620_s17  ;;  %v3306_v44 = vmul.f32 %v5564_v34, %v3304_v14 }
0x1411   : > { %3292 = vrot.lane.b32.xlu1 %v5566_v9, %s7619_s27  ;;  %v3285_v22 = vmul.f32 %v5566_v9, %v3283_v16 }
0x1413   : > { %v5568_v10 = vpop.eup %5567 }
0x1414   : > { %3269 = vrot.lane.b32.xlu0 %v3129_v17, %s7618_s2  ;;  %v5570_v26 = vpop.eup %5569  ;;  %v3323_v31 = vmul.f32 %v5568_v10, %v3135_v3 }
0x1415   : > { %3330 = vrot.lane.b32.xlu1 %v5568_v10, %s7618_s2  ;;  %v5572_v21 = vpop.eup %5571 }
0x1416   : > { %v3119_v12 = vadd.f32 1.0, %v5572_v21  ;;  %v5574_v34 = vpop.eup %5573 }
0x1418   : > { %3308 = vrot.lane.b32.xlu0 %v3306_v44, %s7620_s17  ;;  %5577 = vrcp.f32 %v3119_v12  ;;  %v5576_v44 = vpop.eup %5575 }
0x1419   : > { %3287 = vrot.lane.b32.xlu1 %v3285_v22, %s7619_s27  ;;  %v3337_v21 = vmul.f32 %v5576_v44, %v6167_v61 }
0x141c   : > { %3124 = vrot.lane.b32.xlu0 %v5570_v26, %s7618_s2 }
0x141d   : > { %3325 = vrot.lane.b32.xlu1 %v3323_v31, %s7618_s2 }
0x1422   : > { %v5578_v36 = vpop.eup %5577 }
0x1482   : > { %v3314_v18 = vpop.permute.xlu0 %3313 }
0x1483   : > { %v3293_v9 = vpop.permute.xlu1 %3292 }
0x1484   : > { %v3295_v17 = vadd.f32 %v5574_v34, %v3293_v9 }
0x1486   : > { %v3316_v10 = vadd.f32 %v3314_v18, %v3295_v17  ;;  %v3270_v14 = vpop.permute.xlu0 %3269  ;;  %v4954_v17 = vmul.f32 -1.442695, %v7104_v32 }
0x1487   : > { %v3331_v0 = vpop.permute.xlu1 %3330  ;;  %v3272_v3 = vmul.f32 %v5574_v34, %v3270_v14 }
0x1488   : > { %v3333_v16 = vadd.f32 %v3331_v0, %v3316_v10 }
0x148a   : > { %v3339_v22 = vadd.f32 %v5576_v44, %v3333_v16  ;;  %v3309_v26 = vpop.permute.xlu0 %3308 }
0x148b   : > { %v3288_v31 = vpop.permute.xlu1 %3287 }
0x148c   : > { %5579 = vrcp.f32 %v3339_v22  ;;  %v3290_v46 = vadd.f32 %v3288_v31, %v3272_v3 }
0x148e   : > { %v3311_v63 = vadd.f32 %v3309_v26, %v3290_v46  ;;  %v3125_v47 = vpop.permute.xlu0 %3124 }
0x148f   : > { %v3326_v33 = vpop.permute.xlu1 %3325  ;;  %v3127_v11 = vmul.f32 %v5578_v36, %v3125_v47 }
0x1490   : > { %v3328_v20 = vadd.f32 %v3326_v33, %v3311_v63 }
0x1491   : > { %v3351_v43 = vpack.c.bf16 %v3127_v11, %v3127_v11 }
0x1492   : > { %v3338_v12 = vadd.f32 %v3337_v21, %v3328_v20 }
0x1493   : > { %3361 = vrot.lane.b32.xlu0 %v3351_v43, %s7619_s27 }
0x1496   : > { %v5580_v18 = vpop.eup %5579 }
0x1497   : > { %v7151_v9 = vmul.f32 %v5580_v18, %v3338_v12 }
0x1499   : > { %5581 = vtanh.f32 %v7151_v9 }
0x149a   : > { %5583 = vpow2.f32 %v4954_v17 }
0x14a3   : > { %v5582_v34 = vpop.eup %5581 }
0x14a4   : > { %3344 = vrot.lane.b32.xlu1 %v5582_v34, %s7619_s27  ;;  %v5584_v10 = vpop.eup %5583 }
0x14a5   : > { %v3247_v0 = vadd.f32 1.0, %v5584_v10 }
0x14a7   : > { %5585 = vrcp.f32 %v3247_v0 }
0x14b1   : > { %v5586_v16 = vpop.eup %5585 }
0x1505   : > { %v3362_v14 = vpop.permute.xlu0 %3361 }
0x1506   : > { %5230 = vmatmul.mubr.msk.bf16.vlgmr.msra.gmra.mrb[92].mxu0 %vm593_vm4, %v3362_v14 }
0x1507   : > { %5234 = vmatpush3.bf16.msra.mxu0 %v6914_v50  ;;  %5237 = vmatprep.mubr.msk.bf16.mxu0 %vm5805_vm0, %v5804_v1 }
0x1508   : > { %5235 = vmatprep.subr.bf16.mxu0 %v5804_v1 }
0x150b   : > { %5236 = vmatpush3.bf16.msra.mxu0 %v6923_v6 }
0x150c   : > { %5241 = vmatprep.subr.bf16.mxu0 %v5804_v1 }
0x1516   : > { %v3345_v32 = vpop.permute.xlu1 %3344 }
0x1517   : > { %v3347_v44 = vmul.f32 %v5586_v16, %v3345_v32 }
0x1519   : > { %v3348_v22 = vmul.f32 %v3347_v44, %v6299_v29 }
0x151b   : > { %v3352_v3 = vsel %vm593_vm4, %v3348_v22, 0.0  ;;  %3571 = vrot.lane.b32.xlu1 %v3348_v22, %s7618_s2  ;;  %v3568_v26 = vrot.slane %v3348_v22, 1  ;;  %v3350_v21 = vpack.c.bf16 %v3348_v22, %v3348_v22  ;;  %v3566_v12 = vrot.slane %v3348_v22, 7 }
0x151c   : > { %v3353_v31 = vrot.slane %v3352_v3, 4 }
0x151d   : > { %v3569_v46 = vmul.f32 %v3568_v26, %v6006_v25  ;;  %v3567_v34 = vmul.f32 %v3566_v12, %v6165_v60 }
0x151e   : > { %v3354_v36 = vadd.f32 %v3353_v31, %v3352_v3 }
0x151f   : > { %3575 = vrot.lane.b32.xlu0 %v3569_v46, %s7620_s17 }
0x1520   : > { %v3355_v63 = vrot.slane %v3354_v36, 2 }
0x1522   : > { %v3356_v47 = vadd.f32 %v3355_v63, %v3354_v36 }
0x1524   : > { %v3357_v33 = vrot.slane %v3356_v47, 1 }
0x1526   : > { %v3358_v11 = vadd.f32 %v3357_v33, %v3356_v47 }
0x1528   : > { %v3359_v20 = vmul.f32 %v3358_v11, %v6020_v35 }
0x152a   : > { %v3406_v43 = vpack.c.bf16 %v3359_v20, %v3359_v20 }
0x152c   : > { %5238 = vmatmul.mubr.msk.bf16.vlgmr.msra.gmra.mrb[96].mxu0 %vm593_vm4, %v3406_v43 }
0x152d   : > { %5242 = vmatpush3.bf16.msra.mxu0 %v6914_v50  ;;  %5245 = vmatprep.mubr.msk.bf16.mxu0 %vm5805_vm0, %v5804_v1 }
0x152e   : > { %5243 = vmatprep.subr.bf16.mxu0 %v5804_v1 }
0x1531   : > { %5244 = vmatpush3.bf16.msra.mxu0 %v6923_v6 }
0x1532   : > { %3582 = vmatprep.subr.bf16.mxu0 %v6942_v39 }
0x1534   : > { %5246 = vmatmul.mubr.msk.bf16.vlgmr.msra.gmra.mrb[100].mxu0 %vm593_vm4, %v3350_v21 }
0x1535   : > { %3583 = vmatpush1.bf16.msra.mxu0 %v6949_v38  ;;  %3614 = vmatprep.mubr.bf16.mxu0 %v5806_v2 }
0x1536   : > { %3584 = vmatprep.subr.bf16.mxu0 %v6956_v41 }
0x1539   : > { %3585 = vmatpush1.bf16.msra.mxu0 %v6962_v13 }
0x153a   : > { %5249 = vmatprep.subr.bf16.mxu0 %v5804_v1 }
0x153c   : > { %4959 = vmatmul.mubr.msk.bf16.vlgmr.msra.gmra.mrb[104].mxu0 %vm593_vm4, %v3362_v14 }
0x153d   : > { %5250 = vmatpush3.bf16.msra.mxu0 %v6970_v56  ;;  %5253 = vmatprep.mubr.msk.bf16.mxu0 %vm5805_vm0, %v5804_v1 }
0x153e   : > { %5251 = vmatprep.subr.bf16.mxu0 %v5804_v1 }
0x1541   : > { %5252 = vmatpush3.bf16.msra.mxu0 %v6979_v52 }
0x1542   : > { %5257 = vmatprep.subr.bf16.mxu0 %v5804_v1 }
0x158d   : > { %v3572_v18 = vpop.permute.xlu1 %3571 }
0x158e   : > { %v3578_v17 = vsel %vm593_vm4, %v3567_v34, %v3572_v18 }
0x1591   : > { %v3576_v10 = vpop.permute.xlu0 %3575 }
0x1592   : > { %v3579_v14 = vsel %vm862_vm6, %v3578_v17, %v3576_v10 }
0x1593   : > { %v3580_v0 = vsel %vm864_vm7, %v3579_v14, %v6176_v5 }
0x1594   : > { %v3581_v16 = vpack.c.bf16 %v3580_v0, %v3580_v0 }
0x1596   : > { %3664 = vmatmul.mubr.bf16.vlgmr.msra.gmra.mrb[32].mxu1 %v3581_v16 }
0x1597   : > { %4062 = vmatpush1.bf16.msra.mxu1 %v6991_v37  ;;  %4093 = vmatprep.mubr.bf16.mxu1 %v5806_v2 }
0x1598   : > { %4063 = vmatprep.subr.bf16.mxu1 %v6998_v51 }
0x159b   : > { %4064 = vmatpush1.bf16.msra.mxu1 %v7004_v53 }
0x159c   : > { %4065 = vmatprep.subr.bf16.mxu1 %v7010_v27 }
0x159f   : > { %4066 = vmatpush1.bf16.msra.mxu1 %v7016_v15 }
0x15a0   : > { %4067 = vmatprep.subr.bf16.mxu1 %v7022_v55 }
0x15a3   : > { %4068 = vmatpush1.bf16.msra.mxu1 %v7028_v42 }
0x15a4   : > { %4069 = vmatprep.subr.bf16.mxu1 %v7034_v19 }
0x15a7   : > { %4070 = vmatpush1.bf16.msra.mxu1 %v7040_v57 }
0x15a8   : > { %4071 = vmatprep.subr.bf16.mxu1 %v7046_v28 }
0x15ab   : > { %4072 = vmatpush1.bf16.msra.mxu1 %v7052_v45 }
0x15ac   : > { %4073 = vmatprep.subr.bf16.mxu1 %v7058_v54 }
0x15af   : > { %4074 = vmatpush1.bf16.msra.mxu1 %v7064_v49 }
0x15b0   : > { %4075 = vmatprep.subr.bf16.mxu1 %v7070_v40 }
0x15b3   : > { %4076 = vmatpush1.bf16.msra.mxu1 %v7076_v8 }
0x15b4   : > { %4491 = vmatprep.subr.bf16.mxu1 %v7082_v58 }
0x15d9   : > { %v3400_v32 = vpop.f32.mrb[92].mxu0 }
0x15da   : > { %v5231_v44 = vpop.f32.mrb[93].mxu0  ;;  %v3493_v63 = vadd.f32 %v7090_v59, %v3400_v32 }
0x15db   : > { %v3403_v22 = vpop.f32.mrb[94].mxu0 }
0x15dc   : > { %v5232_v3 = vpop.f32.mrb[95].mxu0  ;;  %v3497_v33 = vrot.slane %v3493_v63, %v6205_v23 }
0x15ff   : > { %v3444_v26 = vpop.f32.mrb[96].mxu0 }
0x1600   : > { %v7211_v31 = vadd.f32 %v3444_v26, %v3400_v32  ;;  %v5239_v46 = vpop.f32.mrb[97].mxu0 }
0x1601   : > { %v3447_v36 = vpop.f32.mrb[98].mxu0 }
0x1602   : > { %v5240_v47 = vpop.f32.mrb[99].mxu0  ;;  %v3501_v32 = vadd.f32 %v7090_v59, %v7211_v31 }
0x1604   : > { %v3502_v26 = vadd.f32 %v3501_v32, %v6261_v62 }
0x1607   : > { %v3487_v11 = vpop.f32.mrb[100].mxu0 }
0x1608   : > { %v3498_v20 = vadd.f32 %v3497_v33, %v3487_v11  ;;  %v5247_v43 = vpop.f32.mrb[101].mxu0 }
0x1609   : > { %v3490_v21 = vpop.f32.mrb[102].mxu0 }
0x160a   : > { %v3499_v58 = vadd.f32 %v3498_v20, %v6254_v30  ;;  %v5248_v12 = vpop.f32.mrb[103].mxu0 }
0x160c   : > { %v3503_v18 = vsel %vm593_vm4, %v3499_v58, -inf }
0x160d   : > { %v3504_v34 = vrot.slane %v3503_v18, 4 }
0x160f   : > { %v3505_v17 = vmax.f32 %v3503_v18, %v3504_v34  ;;  %v3616_v10 = vpop.f32.mrb[104].mxu0 }
0x1610   : > { %v3618_v14 = vpop.f32.mrb[105].mxu0 }
0x1611   : > { %v3506_v0 = vrot.slane %v3505_v17, 2  ;;  %v3620_v16 = vpop.f32.mrb[106].mxu0 }
0x1612   : > { %v3621_v44 = vpop.f32.mrb[107].mxu0 }
0x1613   : > { %v3507_v22 = vmax.f32 %v3505_v17, %v3506_v0 }
0x1615   : > { %v3508_v3 = vrot.slane %v3507_v22, 1 }
0x1617   : > { %v3509_v46 = vmax.f32 %v3507_v22, %v3508_v3  ;;  %v3626_v22 = vrot.slane %v3616_v10, %v6205_v23  ;;  %v3630_v3 = vrot.slane %v3618_v14, %v6205_v23  ;;  %v3349_v10 = vmul.f32 %v7151_v9, %v6299_v29 }
0x1619   : > { %v3510_v36 = vmax.f32 %v3509_v46, %v3502_v26 }
0x161b   : > { %v3514_v63 = vrot.slane %v3510_v36, %v6205_v23  ;;  %v3518_v47 = vsub.f32 %v3502_v26, %v3510_v36 }
0x161d   : > { %v3515_v33 = vsub.f32 %v3499_v58, %v3514_v63  ;;  %v3519_v20 = vmul.f32 1.442695, %v3518_v47 }
0x161f   : > { %v3516_v11 = vmul.f32 1.442695, %v3515_v33 }
0x1621   : > { %5587 = vpow2.f32 %v3516_v11 }
0x1622   : > { %5589 = vpow2.f32 %v3519_v20 }
0x162b   : > { %v5588_v43 = vpop.eup %5587 }
0x162c   : > { %v3521_v21 = vsel %vm593_vm4, %v5588_v43, 0.0  ;;  %v5590_v44 = vpop.eup %5589 }
0x162d   : > { %v3522_v12 = vrot.slane %v3521_v21, 4 }
0x162f   : > { %v3523_v18 = vadd.f32 %v3522_v12, %v3521_v21 }
0x1631   : > { %v3524_v34 = vrot.slane %v3523_v18, 2 }
0x1633   : > { %v3525_v17 = vadd.f32 %v3524_v34, %v3523_v18 }
0x1635   : > { %v3526_v0 = vrot.slane %v3525_v17, 1 }
0x1637   : > { %v3527_v16 = vadd.f32 %v3526_v0, %v3525_v17 }
0x1639   : > { %v3528_v32 = vadd.f32 %v5590_v44, %v3527_v16 }
0x163b   : > { %5591 = vrcp.f32 %v3528_v32 }
0x1669   : > { %v3665_v58 = vpop.f32.mrb[32].mxu1 }
0x166a   : > { %v3666_v26 = vadd.f32 %v3665_v58, %v3626_v22  ;;  %v3667_v46 = vpop.f32.mrb[33].mxu1 }
0x166b   : > { %v3668_v36 = vadd.f32 %v3667_v46, %v3630_v3  ;;  %v3669_v63 = vpop.f32.mrb[34].mxu1 }
0x166c   : > { %v7225_v47 = vadd.f32 %v3666_v26, %v6214_v4  ;;  %v3670_v33 = vpop.f32.mrb[35].mxu1  ;;  %v3541_v63 = vmul.f32 %v5590_v44, %v7128_v48 }
0x166d   : > { %v7234_v14 = vadd.f32 %v3668_v36, %v6221_v24 }
0x166e   : > { %3685 = vrot.lane.b32.xlu0 %v7225_v47, %s7620_s17  ;;  %3681 = vrot.lane.b32.xlu1 %v7225_v47, %s7619_s27 }
0x1672   : > { %3530 = vrot.lane.b32.xlu0 %v3349_v10, %s7619_s27  ;;  %3690 = vrot.lane.b32.xlu1 %v7234_v14, %s7618_s2 }
0x16e0   : > { %v3686_v11 = vpop.permute.xlu0 %3685  ;;  %v3682_v20 = vpop.permute.xlu1 %3681 }
0x16e1   : > { %v3684_v21 = vmax.f32 %v7225_v47, %v3682_v20  ;;  %v5592_v20 = vpop.eup %5591 }
0x16e3   : > { %v3688_v12 = vmax.f32 %v3684_v21, %v3686_v11 }
0x16e4   : > { %v3531_v18 = vpop.permute.xlu0 %3530  ;;  %v3691_v34 = vpop.permute.xlu1 %3690 }
0x16e5   : > { %v3533_v17 = vmul.f32 %v5588_v43, %v3531_v18  ;;  %v3693_v0 = vmax.f32 %v3688_v12, %v3691_v34  ;;  %v3560_v58 = vrot.slane %v3531_v18, 1  ;;  %v3558_v44 = vrot.slane %v3531_v18, 7 }
0x16e6   : > { %v3565_v18 = vrot.slane %v7128_v48, %v6205_v23 }
0x16e7   : > { %v3534_v16 = vsel %vm593_vm4, %v3533_v17, 0.0  ;;  %v3694_v9 = vmax.f32 %v3693_v0, %v7234_v14  ;;  %v3561_v43 = vmul.f32 %v3560_v58, %v6006_v25 }
0x16e8   : > { %v3535_v22 = vrot.slane %v3534_v16, 4 }
0x16e9   : > { %3726 = vrot.lane.b32.xlu0 %v3694_v9, %s7620_s17  ;;  %3706 = vrot.lane.b32.xlu1 %v3694_v9, %s7618_s2 }
0x16ea   : > { %v3536_v3 = vadd.f32 %v3535_v22, %v3534_v16 }
0x16ec   : > { %v3537_v26 = vrot.slane %v3536_v3, 2 }
0x16ed   : > { %3712 = vrot.lane.b32.xlu0 %v3349_v10, %s7618_s2  ;;  %3747 = vrot.lane.b32.xlu1 %v3694_v9, %s7619_s27 }
0x16ee   : > { %v3538_v46 = vadd.f32 %v3537_v26, %v3536_v3 }
0x16f0   : > { %v3539_v36 = vrot.slane %v3538_v46, 1 }
0x16f1   : > { %3733 = vrot.lane.b32.xlu1 %v3561_v43, %s7619_s27 }
0x16f2   : > { %v3540_v33 = vadd.f32 %v3539_v36, %v3538_v46  ;;  %v3559_v46 = vmul.f32 %v3558_v44, %v6165_v60 }
0x16f4   : > { %v3542_v11 = vadd.f32 %v3541_v63, %v3540_v33 }
0x16f6   : > { %v7249_v21 = vmul.f32 %v5592_v20, %v3542_v11 }
0x175b   : > { %v3727_v32 = vpop.permute.xlu0 %3726  ;;  %v3707_v12 = vpop.permute.xlu1 %3706 }
0x175c   : > { %v3729_v34 = vsub.f32 %v7225_v47, %v3727_v32  ;;  %v3709_v10 = vsub.f32 %v7225_v47, %v3707_v12  ;;  %v3545_v12 = vadd.f32 %v7211_v31, %v6293_v7 }
0x175e   : > { %v3730_v17 = vmul.f32 1.442695, %v3729_v34  ;;  %v3710_v0 = vmul.f32 1.442695, %v3709_v10  ;;  %v4958_v34 = vmul.f32 -1.442695, %v3545_v12  ;;  %v3695_v10 = vsub.f32 %v7225_v47, %v3694_v9 }
0x175f   : > { %v3748_v16 = vpop.permute.xlu1 %3747  ;;  %v3713_v63 = vpop.permute.xlu0 %3712 }
0x1760   : > { %5593 = vpow2.f32 %v3730_v17  ;;  %v3750_v22 = vsub.f32 %v7234_v14, %v3748_v16  ;;  %v3696_v17 = vmul.f32 1.442695, %v3695_v10 }
0x1761   : > { %5595 = vpow2.f32 %v3710_v0  ;;  %v3764_v0 = vsub.f32 %v7234_v14, %v3694_v9 }
0x1762   : > { %v3751_v3 = vmul.f32 1.442695, %v3750_v22 }
0x1763   : > { %v3734_v36 = vpop.permute.xlu1 %3733  ;;  %v3765_v16 = vmul.f32 1.442695, %v3764_v0 }
0x1764   : > { %5597 = vpow2.f32 %v3751_v3 }
0x1765   : > { %5599 = vtanh.f32 %v7249_v21 }
0x1766   : > { %5601 = vpow2.f32 %v4958_v34 }
0x1767   : > { %5603 = vpow2.f32 %v3696_v17 }
0x1768   : > { %5605 = vpow2.f32 %v3765_v16 }
0x176a   : > { %v5594_v58 = vpop.eup %5593 }
0x176b   : > { %v5596_v26 = vpop.eup %5595  ;;  %3743 = vrot.lane.b32.xlu1 %v5594_v58, %s7620_s17  ;;  %v3736_v33 = vmul.f32 %v5594_v58, %v3734_v36 }
0x176c   : > { %3722 = vrot.lane.b32.xlu0 %v5596_v26, %s7619_s27  ;;  %v3715_v11 = vmul.f32 %v5596_v26, %v3713_v63 }
0x176e   : > { %v5598_v43 = vpop.eup %5597 }
0x176f   : > { %3699 = vrot.lane.b32.xlu1 %v3559_v46, %s7618_s2  ;;  %v5600_v20 = vpop.eup %5599  ;;  %v3753_v32 = vmul.f32 %v5598_v43, %v3565_v18 }
0x1770   : > { %3760 = vrot.lane.b32.xlu0 %v5598_v43, %s7618_s2  ;;  %v5602_v22 = vpop.eup %5601 }
0x1771   : > { %v3549_v48 = vadd.f32 1.0, %v5602_v22  ;;  %v5604_v44 = vpop.eup %5603 }
0x1772   : > { %v5606_v63 = vpop.eup %5605 }
0x1773   : > { %3738 = vrot.lane.b32.xlu1 %v3736_v33, %s7620_s17  ;;  %5607 = vrcp.f32 %v3549_v48  ;;  %v3767_v16 = vmul.f32 %v5606_v63, %v6167_v61 }
0x1774   : > { %3717 = vrot.lane.b32.xlu0 %v3715_v11, %s7619_s27 }
0x1777   : > { %3554 = vrot.lane.b32.xlu1 %v5600_v20, %s7618_s2 }
0x1778   : > { %3755 = vrot.lane.b32.xlu0 %v3753_v32, %s7618_s2 }
0x177d   : > { %v5608_v9 = vpop.eup %5607 }
0x17dd   : > { %v3744_v3 = vpop.permute.xlu1 %3743 }
0x17de   : > { %v3723_v58 = vpop.permute.xlu0 %3722 }
0x17df   : > { %v3725_v26 = vadd.f32 %v5604_v44, %v3723_v58  ;;  %v4960_v58 = vmul.f32 -1.442695, %v7225_v47 }
0x17e1   : > { %v3746_v46 = vadd.f32 %v3744_v3, %v3725_v26  ;;  %v3700_v43 = vpop.permute.xlu1 %3699 }
0x17e2   : > { %v3761_v31 = vpop.permute.xlu0 %3760  ;;  %v3702_v11 = vmul.f32 %v5604_v44, %v3700_v43 }
0x17e3   : > { %v3763_v36 = vadd.f32 %v3761_v31, %v3746_v46 }
0x17e5   : > { %v3769_v33 = vadd.f32 %v5606_v63, %v3763_v36  ;;  %v3739_v18 = vpop.permute.xlu1 %3738 }
0x17e6   : > { %v3718_v20 = vpop.permute.xlu0 %3717 }
0x17e7   : > { %5609 = vrcp.f32 %v3769_v33  ;;  %v3720_v14 = vadd.f32 %v3718_v20, %v3702_v11 }
0x17e9   : > { %v3741_v32 = vadd.f32 %v3739_v18, %v3720_v14  ;;  %v3555_v12 = vpop.permute.xlu1 %3554 }
0x17ea   : > { %v3756_v34 = vpop.permute.xlu0 %3755  ;;  %v3557_v10 = vmul.f32 %v5608_v9, %v3555_v12 }
0x17eb   : > { %v3758_v17 = vadd.f32 %v3756_v34, %v3741_v32 }
0x17ec   : > { %v3781_v0 = vpack.c.bf16 %v3557_v10, %v3557_v10 }
0x17ed   : > { %v3768_v22 = vadd.f32 %v3767_v16, %v3758_v17 }
0x17ee   : > { %3791 = vrot.lane.b32.xlu1 %v3781_v0, %s7619_s27 }
0x17f1   : > { %v5610_v48 = vpop.eup %5609 }
0x17f2   : > { %v7272_v3 = vmul.f32 %v5610_v48, %v3768_v22 }
0x17f4   : > { %5611 = vtanh.f32 %v7272_v3 }
0x17f5   : > { %5613 = vpow2.f32 %v4960_v58 }
0x17fe   : > { %v5612_v44 = vpop.eup %5611 }
0x17ff   : > { %3774 = vrot.lane.b32.xlu0 %v5612_v44, %s7619_s27  ;;  %v5614_v26 = vpop.eup %5613 }
0x1800   : > { %v3677_v43 = vadd.f32 1.0, %v5614_v26 }
0x1802   : > { %5615 = vrcp.f32 %v3677_v43 }
0x180c   : > { %v5616_v31 = vpop.eup %5615 }
0x1860   : > { %v3792_v46 = vpop.permute.xlu1 %3791 }
0x1861   : > { %5254 = vmatmul.mubr.msk.bf16.vlgmr.msra.gmra.mrb[108].mxu0 %vm593_vm4, %v3792_v46 }
0x1862   : > { %5258 = vmatpush3.bf16.msra.mxu0 %v6914_v50  ;;  %5261 = vmatprep.mubr.msk.bf16.mxu0 %vm5805_vm0, %v5804_v1 }
0x1863   : > { %5259 = vmatprep.subr.bf16.mxu0 %v5804_v1 }
0x1866   : > { %5260 = vmatpush3.bf16.msra.mxu0 %v6923_v6 }
0x1867   : > { %5265 = vmatprep.subr.bf16.mxu0 %v5804_v1 }
0x1871   : > { %v3775_v47 = vpop.permute.xlu0 %3774 }
0x1872   : > { %v3777_v36 = vmul.f32 %v5616_v31, %v3775_v47 }
0x1874   : > { %v3778_v63 = vmul.f32 %v3777_v36, %v6299_v29 }
0x1876   : > { %v3782_v33 = vsel %vm593_vm4, %v3778_v63, 0.0  ;;  %4001 = vrot.lane.b32.xlu0 %v3778_v63, %s7618_s2  ;;  %v3998_v11 = vrot.slane %v3778_v63, 1  ;;  %v3780_v0 = vpack.c.bf16 %v3778_v63, %v3778_v63 }
0x1877   : > { %v3783_v18 = vrot.slane %v3782_v33, 4 }
0x1878   : > { %v3999_v20 = vmul.f32 %v3998_v11, %v6006_v25 }
0x1879   : > { %v3784_v14 = vadd.f32 %v3783_v18, %v3782_v33 }
0x187a   : > { %4005 = vrot.lane.b32.xlu1 %v3999_v20, %s7620_s17 }
0x187b   : > { %v3785_v9 = vrot.slane %v3784_v14, 2 }
0x187d   : > { %v3786_v32 = vadd.f32 %v3785_v9, %v3784_v14 }
0x187f   : > { %v3787_v12 = vrot.slane %v3786_v32, 1 }
0x1881   : > { %v3788_v34 = vadd.f32 %v3787_v12, %v3786_v32 }
0x1883   : > { %v3789_v10 = vmul.f32 %v3788_v34, %v6020_v35 }
0x1885   : > { %v3836_v17 = vpack.c.bf16 %v3789_v10, %v3789_v10 }
0x1887   : > { %5262 = vmatmul.mubr.msk.bf16.vlgmr.msra.gmra.mrb[112].mxu0 %vm593_vm4, %v3836_v17 }
0x1888   : > { %5266 = vmatpush3.bf16.msra.mxu0 %v6914_v50  ;;  %5269 = vmatprep.mubr.msk.bf16.mxu0 %vm5805_vm0, %v5804_v1  ;;  %v3996_v50 = vrot.slane %v3778_v63, 7 }
0x1889   : > { %5267 = vmatprep.subr.bf16.mxu0 %v5804_v1 }
0x188c   : > { %5268 = vmatpush3.bf16.msra.mxu0 %v6923_v6 }
0x188d   : > { %4012 = vmatprep.subr.bf16.mxu0 %v6942_v39  ;;  %v3997_v39 = vmul.f32 %v3996_v50, %v6165_v60 }
0x188f   : > { %5270 = vmatmul.mubr.msk.bf16.vlgmr.msra.gmra.mrb[116].mxu0 %vm593_vm4, %v3780_v0 }
0x1890   : > { %4013 = vmatpush1.bf16.msra.mxu0 %v6949_v38  ;;  %4044 = vmatprep.mubr.bf16.mxu0 %v5806_v2 }
0x1891   : > { %4014 = vmatprep.subr.bf16.mxu0 %v6956_v41 }
0x1894   : > { %4015 = vmatpush1.bf16.msra.mxu0 %v6962_v13 }
0x1895   : > { %5273 = vmatprep.subr.bf16.mxu0 %v5804_v1 }
0x1897   : > { %4965 = vmatmul.mubr.msk.bf16.vlgmr.msra.gmra.mrb[120].mxu0 %vm593_vm4, %v3792_v46 }
0x1898   : > { %5274 = vmatpush3.bf16.msra.mxu0 %v6970_v56  ;;  %5277 = vmatprep.mubr.msk.bf16.mxu0 %vm5805_vm0, %v5804_v1 }
0x1899   : > { %5275 = vmatprep.subr.bf16.mxu0 %v5804_v1 }
0x189c   : > { %5276 = vmatpush3.bf16.msra.mxu0 %v6979_v52 }
0x189d   : > { %5281 = vmatprep.subr.bf16.mxu0 %v5804_v1 }
0x18e8   : > { %v4002_v6 = vpop.permute.xlu0 %4001 }
0x18e9   : > { %v4008_v38 = vsel %vm593_vm4, %v3997_v39, %v4002_v6 }
0x18ec   : > { %v4006_v41 = vpop.permute.xlu1 %4005 }
0x18ed   : > { %v4009_v13 = vsel %vm862_vm6, %v4008_v38, %v4006_v41 }
0x18ee   : > { %v4010_v56 = vsel %vm864_vm7, %v4009_v13, %v6176_v5 }
0x18ef   : > { %v4011_v16 = vpack.c.bf16 %v4010_v56, %v4010_v56 }
0x18f1   : > { %4094 = vmatmul.mubr.bf16.vlgmr.msra.gmra.mrb[36].mxu1 %v4011_v16 }
0x18f2   : > { %4492 = vmatpush1.bf16.msra.mxu1 %v6991_v37  ;;  %4523 = vmatprep.mubr.bf16.mxu1 %v5806_v2 }
0x18f3   : > { %4493 = vmatprep.subr.bf16.mxu1 %v6998_v51 }
0x18f6   : > { %4494 = vmatpush1.bf16.msra.mxu1 %v7004_v53 }
0x18f7   : > { %4495 = vmatprep.subr.bf16.mxu1 %v7010_v27 }
0x18fa   : > { %4496 = vmatpush1.bf16.msra.mxu1 %v7016_v15 }
0x18fb   : > { %4497 = vmatprep.subr.bf16.mxu1 %v7022_v55 }
0x18fe   : > { %4498 = vmatpush1.bf16.msra.mxu1 %v7028_v42 }
0x18ff   : > { %4499 = vmatprep.subr.bf16.mxu1 %v7034_v19 }
0x1902   : > { %4500 = vmatpush1.bf16.msra.mxu1 %v7040_v57 }
0x1903   : > { %4501 = vmatprep.subr.bf16.mxu1 %v7046_v28 }
0x1906   : > { %4502 = vmatpush1.bf16.msra.mxu1 %v7052_v45 }
0x1907   : > { %4503 = vmatprep.subr.bf16.mxu1 %v7058_v54 }
0x190a   : > { %4504 = vmatpush1.bf16.msra.mxu1 %v7064_v49 }
0x190b   : > { %4505 = vmatprep.subr.bf16.mxu1 %v7070_v40 }
0x190e   : > { %4506 = vmatpush1.bf16.msra.mxu1 %v7076_v8 }
0x1934   : > { %v3830_v52 = vpop.f32.mrb[108].mxu0 }
0x1935   : > { %v5255_v37 = vpop.f32.mrb[109].mxu0  ;;  %v3923_v19 = vadd.f32 %v7090_v59, %v3830_v52 }
0x1936   : > { %v3833_v51 = vpop.f32.mrb[110].mxu0 }
0x1937   : > { %v5256_v53 = vpop.f32.mrb[111].mxu0  ;;  %v3927_v28 = vrot.slane %v3923_v19, %v6205_v23  ;;  %v3779_v19 = vmul.f32 %v7272_v3, %v6299_v29 }
0x195a   : > { %v3874_v27 = vpop.f32.mrb[112].mxu0 }
0x195b   : > { %v7331_v15 = vadd.f32 %v3874_v27, %v3830_v52  ;;  %v5263_v55 = vpop.f32.mrb[113].mxu0 }
0x195c   : > { %v3877_v42 = vpop.f32.mrb[114].mxu0 }
0x195d   : > { %v5264_v57 = vpop.f32.mrb[115].mxu0  ;;  %v3931_v36 = vadd.f32 %v7090_v59, %v7331_v15 }
0x195f   : > { %v3932_v11 = vadd.f32 %v3931_v36, %v6261_v62 }
0x1962   : > { %v3917_v45 = vpop.f32.mrb[116].mxu0 }
0x1963   : > { %v3928_v54 = vadd.f32 %v3927_v28, %v3917_v45  ;;  %v5271_v49 = vpop.f32.mrb[117].mxu0 }
0x1964   : > { %v3920_v40 = vpop.f32.mrb[118].mxu0 }
0x1965   : > { %v3929_v8 = vadd.f32 %v3928_v54, %v6254_v30  ;;  %v5272_v22 = vpop.f32.mrb[119].mxu0 }
0x1967   : > { %v3933_v48 = vsel %vm593_vm4, %v3929_v8, -inf }
0x1968   : > { %v3934_v44 = vrot.slane %v3933_v48, 4 }
0x196a   : > { %v3935_v58 = vmax.f32 %v3933_v48, %v3934_v44  ;;  %v4046_v26 = vpop.f32.mrb[120].mxu0 }
0x196b   : > { %v4048_v46 = vpop.f32.mrb[121].mxu0  ;;  %v4056_v56 = vrot.slane %v4046_v26, %v6205_v23 }
0x196c   : > { %v3936_v43 = vrot.slane %v3935_v58, 2  ;;  %v4050_v31 = vpop.f32.mrb[122].mxu0  ;;  %v4060_v16 = vrot.slane %v4048_v46, %v6205_v23 }
0x196d   : > { %v4051_v47 = vpop.f32.mrb[123].mxu0 }
0x196e   : > { %v3937_v63 = vmax.f32 %v3935_v58, %v3936_v43 }
0x1970   : > { %v3938_v33 = vrot.slane %v3937_v63, 1 }
0x1972   : > { %v3939_v18 = vmax.f32 %v3937_v63, %v3938_v33 }
0x1974   : > { %v3940_v20 = vmax.f32 %v3939_v18, %v3932_v11 }
0x1976   : > { %v3944_v14 = vrot.slane %v3940_v20, %v6205_v23  ;;  %v3948_v9 = vsub.f32 %v3932_v11, %v3940_v20 }
0x1978   : > { %v3945_v32 = vsub.f32 %v3929_v8, %v3944_v14  ;;  %v3949_v34 = vmul.f32 1.442695, %v3948_v9 }
0x197a   : > { %v3946_v12 = vmul.f32 1.442695, %v3945_v32 }
0x197c   : > { %5617 = vpow2.f32 %v3946_v12 }
0x197d   : > { %5619 = vpow2.f32 %v3949_v34 }
0x1986   : > { %v5618_v10 = vpop.eup %5617 }
0x1987   : > { %v3951_v17 = vsel %vm593_vm4, %v5618_v10, 0.0  ;;  %v5620_v41 = vpop.eup %5619 }
0x1988   : > { %v3952_v0 = vrot.slane %v3951_v17, 4  ;;  %v3971_v63 = vmul.f32 %v5620_v41, %v7249_v21 }
0x198a   : > { %v3953_v50 = vadd.f32 %v3952_v0, %v3951_v17 }
0x198c   : > { %v3954_v59 = vrot.slane %v3953_v50, 2 }
0x198e   : > { %v3955_v6 = vadd.f32 %v3954_v59, %v3953_v50 }
0x1990   : > { %v3956_v39 = vrot.slane %v3955_v6, 1 }
0x1992   : > { %v3957_v38 = vadd.f32 %v3956_v39, %v3955_v6 }
0x1994   : > { %v3958_v13 = vadd.f32 %v5620_v41, %v3957_v38 }
0x1996   : > { %5621 = vrcp.f32 %v3958_v13 }
0x19a0   : > { %v5622_v18 = vpop.eup %5621 }
0x19c4   : > { %v4095_v52 = vpop.f32.mrb[36].mxu1 }
0x19c5   : > { %v4096_v37 = vadd.f32 %v4095_v52, %v4056_v56  ;;  %v4097_v51 = vpop.f32.mrb[37].mxu1 }
0x19c6   : > { %v4098_v53 = vadd.f32 %v4097_v51, %v4060_v16  ;;  %v4099_v27 = vpop.f32.mrb[38].mxu1 }
0x19c7   : > { %v7345_v55 = vadd.f32 %v4096_v37, %v6214_v4  ;;  %v4100_v42 = vpop.f32.mrb[39].mxu1  ;;  %v3995_v37 = vrot.slane %v7249_v21, %v6205_v23  ;;  %v3975_v27 = vadd.f32 %v7331_v15, %v6293_v7 }
0x19c8   : > { %v7354_v57 = vadd.f32 %v4098_v53, %v6221_v24 }
0x19c9   : > { %4115 = vrot.lane.b32.xlu1 %v7345_v55, %s7620_s17  ;;  %4111 = vrot.lane.b32.xlu0 %v7345_v55, %s7619_s27  ;;  %v4964_v42 = vmul.f32 -1.442695, %v3975_v27 }
0x19cd   : > { %3960 = vrot.lane.b32.xlu1 %v3779_v19, %s7619_s27  ;;  %4120 = vrot.lane.b32.xlu0 %v7354_v57, %s7618_s2 }
0x1a3b   : > { %v4116_v28 = vpop.permute.xlu1 %4115  ;;  %v4112_v45 = vpop.permute.xlu0 %4111 }
0x1a3c   : > { %v4114_v54 = vmax.f32 %v7345_v55, %v4112_v45 }
0x1a3e   : > { %v4118_v49 = vmax.f32 %v4114_v54, %v4116_v28 }
0x1a3f   : > { %v3961_v40 = vpop.permute.xlu1 %3960  ;;  %v4121_v8 = vpop.permute.xlu0 %4120 }
0x1a40   : > { %v3963_v22 = vmul.f32 %v5618_v10, %v3961_v40  ;;  %v4123_v48 = vmax.f32 %v4118_v49, %v4121_v8  ;;  %v3990_v46 = vrot.slane %v3961_v40, 1  ;;  %v3988_v59 = vrot.slane %v3961_v40, 7 }
0x1a42   : > { %v3964_v44 = vsel %vm593_vm4, %v3963_v22, 0.0  ;;  %v4124_v3 = vmax.f32 %v4123_v48, %v7354_v57  ;;  %v3991_v47 = vmul.f32 %v3990_v46, %v6006_v25  ;;  %v3989_v38 = vmul.f32 %v3988_v59, %v6165_v60 }
0x1a43   : > { %v3965_v58 = vrot.slane %v3964_v44, 4 }
0x1a44   : > { %4156 = vrot.lane.b32.xlu1 %v4124_v3, %s7620_s17  ;;  %4136 = vrot.lane.b32.xlu0 %v4124_v3, %s7618_s2  ;;  %v4194_v45 = vsub.f32 %v7354_v57, %v4124_v3 }
0x1a45   : > { %v3966_v26 = vadd.f32 %v3965_v58, %v3964_v44 }
0x1a46   : > { %v4195_v54 = vmul.f32 1.442695, %v4194_v45 }
0x1a47   : > { %v3967_v43 = vrot.slane %v3966_v26, 2 }
0x1a48   : > { %4142 = vrot.lane.b32.xlu1 %v3779_v19, %s7618_s2  ;;  %4177 = vrot.lane.b32.xlu0 %v4124_v3, %s7619_s27  ;;  %v4125_v19 = vsub.f32 %v7345_v55, %v4124_v3 }
0x1a49   : > { %v3968_v31 = vadd.f32 %v3967_v43, %v3966_v26 }
0x1a4a   : > { %v4126_v28 = vmul.f32 1.442695, %v4125_v19 }
0x1a4b   : > { %v3969_v36 = vrot.slane %v3968_v31, 1 }
0x1a4c   : > { %4163 = vrot.lane.b32.xlu0 %v3991_v47, %s7619_s27 }
0x1a4d   : > { %v3970_v33 = vadd.f32 %v3969_v36, %v3968_v31 }
0x1a4f   : > { %v3972_v11 = vadd.f32 %v3971_v63, %v3970_v33 }
0x1a51   : > { %v7369_v20 = vmul.f32 %v5622_v18, %v3972_v11 }
0x1ab6   : > { %v4157_v14 = vpop.permute.xlu1 %4156  ;;  %v4137_v9 = vpop.permute.xlu0 %4136 }
0x1ab7   : > { %v4159_v32 = vsub.f32 %v7345_v55, %v4157_v14  ;;  %v4139_v12 = vsub.f32 %v7345_v55, %v4137_v9 }
0x1ab9   : > { %v4160_v34 = vmul.f32 1.442695, %v4159_v32  ;;  %v4140_v10 = vmul.f32 1.442695, %v4139_v12 }
0x1aba   : > { %v4178_v17 = vpop.permute.xlu0 %4177  ;;  %v4143_v56 = vpop.permute.xlu1 %4142 }
0x1abb   : > { %5623 = vpow2.f32 %v4160_v34  ;;  %v4180_v0 = vsub.f32 %v7354_v57, %v4178_v17 }
0x1abc   : > { %5625 = vpow2.f32 %v4140_v10 }
0x1abd   : > { %v4181_v50 = vmul.f32 1.442695, %v4180_v0  ;;  %v4966_v0 = vmul.f32 -1.442695, %v7345_v55  ;;  %v5734_v55 = vld [vmem:[%s7590_s5 + $0x8] sm:$0xff]  }
0x1abe   : > { %v4164_v13 = vpop.permute.xlu0 %4163 }
0x1abf   : > { %5627 = vpow2.f32 %v4181_v50 }
0x1ac0   : > { %5629 = vtanh.f32 %v7369_v20 }
0x1ac1   : > { %5631 = vpow2.f32 %v4964_v42 }
0x1ac2   : > { %5633 = vpow2.f32 %v4126_v28 }
0x1ac3   : > { %5635 = vpow2.f32 %v4195_v54 }
0x1ac5   : > { %v5624_v6 = vpop.eup %5623 }
0x1ac6   : > { %v5626_v39 = vpop.eup %5625  ;;  %4173 = vrot.lane.b32.xlu0 %v5624_v6, %s7620_s17  ;;  %v4166_v16 = vmul.f32 %v5624_v6, %v4164_v13  ;;  %v5733_v6 = vld [vmem:[%s7590_s5] sm:$0xff]  }
0x1ac7   : > { %4152 = vrot.lane.b32.xlu1 %v5626_v39, %s7619_s27  ;;  %v4145_v52 = vmul.f32 %v5626_v39, %v4143_v56 }
0x1ac9   : > { %v5628_v41 = vpop.eup %5627 }
0x1aca   : > { %4129 = vrot.lane.b32.xlu0 %v3989_v38, %s7618_s2  ;;  %v5630_v51 = vpop.eup %5629  ;;  %v4183_v53 = vmul.f32 %v5628_v41, %v3995_v37 }
0x1acb   : > { %4190 = vrot.lane.b32.xlu1 %v5628_v41, %s7618_s2  ;;  %v5632_v49 = vpop.eup %5631 }
0x1acc   : > { %v3979_v21 = vadd.f32 1.0, %v5632_v49  ;;  %v5634_v8 = vpop.eup %5633 }
0x1acd   : > { %v5636_v46 = vpop.eup %5635 }
0x1ace   : > { %4168 = vrot.lane.b32.xlu0 %v4166_v16, %s7620_s17  ;;  %5637 = vrcp.f32 %v3979_v21  ;;  %v4197_v32 = vmul.f32 %v5636_v46, %v6167_v61  ;;  %v5735_v21 = vld [vmem:[%s7594_s9 + $0x4] ss:$8 sps:$4 sm:$0xff]  }
0x1acf   : > { %4147 = vrot.lane.b32.xlu1 %v4145_v52, %s7619_s27 }
0x1ad2   : > { %3984 = vrot.lane.b32.xlu0 %v5630_v51, %s7618_s2 }
0x1ad3   : > { %4185 = vrot.lane.b32.xlu1 %v4183_v53, %s7618_s2 }
0x1ad8   : > { %v5638_v3 = vpop.eup %5637 }
0x1b38   : > { %v4174_v40 = vpop.permute.xlu0 %4173 }
0x1b39   : > { %v4153_v22 = vpop.permute.xlu1 %4152 }
0x1b3a   : > { %v4155_v48 = vadd.f32 %v5634_v8, %v4153_v22  ;;  %v5738_v22 = vld [vmem:[%s7594_s9 + $0x10] ss:$8 sps:$4 sm:$0xff]  }
0x1b3c   : > { %v4176_v44 = vadd.f32 %v4174_v40, %v4155_v48  ;;  %v4130_v58 = vpop.permute.xlu0 %4129  ;;  %v5736_v40 = vld [vmem:[%s7594_s9] ss:$8 sps:$4 sm:$0xff]  }
0x1b3d   : > { %v4191_v15 = vpop.permute.xlu1 %4190  ;;  %v4132_v31 = vmul.f32 %v5634_v8, %v4130_v58  ;;  %v5737_v8 = vld [vmem:[%s7594_s9 + $0x14] ss:$8 sps:$4 sm:$0xff]  }
0x1b3e   : > { %v4193_v26 = vadd.f32 %v4191_v15, %v4176_v44 }
0x1b40   : > { %v4199_v43 = vadd.f32 %v5636_v46, %v4193_v26  ;;  %v4169_v47 = vpop.permute.xlu0 %4168 }
0x1b41   : > { %v4148_v36 = vpop.permute.xlu1 %4147 }
0x1b42   : > { %5639 = vrcp.f32 %v4199_v43  ;;  %v4150_v57 = vadd.f32 %v4148_v36, %v4132_v31 }
0x1b44   : > { %v4171_v63 = vadd.f32 %v4169_v47, %v4150_v57  ;;  %v3985_v33 = vpop.permute.xlu0 %3984 }
0x1b45   : > { %v4186_v11 = vpop.permute.xlu1 %4185  ;;  %v3987_v18 = vmul.f32 %v5638_v3, %v3985_v33 }
0x1b46   : > { %v4188_v14 = vadd.f32 %v4186_v11, %v4171_v63 }
0x1b47   : > { %v4211_v9 = vpack.c.bf16 %v3987_v18, %v3987_v18  ;;  %v5739_v18 = vld [vmem:[%s7591_s6] sm:$0x1] }
0x1b48   : > { %v4198_v12 = vadd.f32 %v4197_v32, %v4188_v14 }
0x1b49   : > { %4221 = vrot.lane.b32.xlu0 %v4211_v9, %s7619_s27 }
0x1b4c   : > { %v5640_v34 = vpop.eup %5639 }
0x1b4d   : > { %v7392_v10 = vmul.f32 %v5640_v34, %v4198_v12 }
0x1b4f   : > { %5641 = vtanh.f32 %v7392_v10 }
0x1b50   : > { %5643 = vpow2.f32 %v4966_v0 }
0x1b59   : > { %v5642_v17 = vpop.eup %5641 }
0x1b5a   : > { %4204 = vrot.lane.b32.xlu1 %v5642_v17, %s7619_s27  ;;  %v5644_v50 = vpop.eup %5643 }
0x1b5b   : > { %v4107_v39 = vadd.f32 1.0, %v5644_v50 }
0x1b5d   : > { %5645 = vrcp.f32 %v4107_v39 }
0x1b67   : > { %v5646_v38 = vpop.eup %5645 }
0x1bbb   : > { %v4222_v59 = vpop.permute.xlu0 %4221 }
0x1bbc   : > { %5278 = vmatmul.mubr.msk.bf16.vlgmr.msra.gmra.mrb[124].mxu0 %vm593_vm4, %v4222_v59 }
0x1bbd   : > { %5282 = vmatpush3.bf16.msra.mxu0 %v5733_v6  ;;  %5285 = vmatprep.mubr.msk.bf16.mxu0 %vm5805_vm0, %v5804_v1 }
0x1bbe   : > { %5283 = vmatprep.subr.bf16.mxu0 %v5804_v1 }
0x1bc1   : > { %5284 = vmatpush3.bf16.msra.mxu0 %v5734_v55 }
0x1bc2   : > { %5289 = vmatprep.subr.bf16.mxu0 %v5804_v1 }
0x1bcc   : > { %v4205_v41 = vpop.permute.xlu1 %4204 }
0x1bcd   : > { %v4207_v13 = vmul.f32 %v5646_v38, %v4205_v41 }
0x1bcf   : > { %v4208_v56 = vmul.f32 %v4207_v13, %v6299_v29 }
0x1bd1   : > { %v4212_v16 = vsel %vm593_vm4, %v4208_v56, 0.0  ;;  %4431 = vrot.lane.b32.xlu1 %v4208_v56, %s7618_s2  ;;  %v4428_v52 = vrot.slane %v4208_v56, 1  ;;  %v4210_v49 = vpack.c.bf16 %v4208_v56, %v4208_v56  ;;  %v4426_v48 = vrot.slane %v4208_v56, 7 }
0x1bd2   : > { %v4213_v37 = vrot.slane %v4212_v16, 4 }
0x1bd3   : > { %v4429_v51 = vmul.f32 %v4428_v52, %v6006_v25 }
0x1bd4   : > { %v4214_v53 = vadd.f32 %v4213_v37, %v4212_v16 }
0x1bd5   : > { %4435 = vrot.lane.b32.xlu0 %v4429_v51, %s7620_s17 }
0x1bd6   : > { %v4215_v27 = vrot.slane %v4214_v53, 2 }
0x1bd8   : > { %v4216_v42 = vadd.f32 %v4215_v27, %v4214_v53 }
0x1bda   : > { %v4217_v19 = vrot.slane %v4216_v42, 1 }
0x1bdc   : > { %v4218_v28 = vadd.f32 %v4217_v19, %v4216_v42 }
0x1bde   : > { %v4219_v45 = vmul.f32 %v4218_v28, %v6020_v35 }
0x1be0   : > { %v4266_v54 = vpack.c.bf16 %v4219_v45, %v4219_v45 }
0x1be2   : > { %5286 = vmatmul.mubr.msk.bf16.vlgmr.msra.gmra.mrb[128].mxu0 %vm593_vm4, %v4266_v54 }
0x1be3   : > { %5290 = vmatpush3.bf16.msra.mxu0 %v5733_v6  ;;  %5293 = vmatprep.mubr.msk.bf16.mxu0 %vm5805_vm0, %v5804_v1 }
0x1be4   : > { %5291 = vmatprep.subr.bf16.mxu0 %v5804_v1 }
0x1be7   : > { %5292 = vmatpush3.bf16.msra.mxu0 %v5734_v55 }
0x1be8   : > { %4442 = vmatprep.subr.bf16.mxu0 %v5735_v21 }
0x1bea   : > { %5294 = vmatmul.mubr.msk.bf16.vlgmr.msra.gmra.mrb[132].mxu0 %vm593_vm4, %v4210_v49 }
0x1beb   : > { %4443 = vmatpush1.bf16.msra.mxu0 %v5736_v40  ;;  %4474 = vmatprep.mubr.bf16.mxu0 %v5806_v2  ;;  %v4427_v2 = vmul.f32 %v4426_v48, %v6165_v60 }
0x1bec   : > { %4444 = vmatprep.subr.bf16.mxu0 %v5737_v8 }
0x1bef   : > { %4445 = vmatpush1.bf16.msra.mxu0 %v5738_v22 }
0x1bf0   : > { %5297 = vmatprep.subr.bf16.mxu0 %v5804_v1 }
0x1bf2   : > { %4971 = vmatmul.mubr.msk.bf16.vlgmr.msra.gmra.mrb[136].mxu0 %vm593_vm4, %v4222_v59 }
0x1bf3   : > { %5301 = vmatprep.mubr.msk.bf16.mxu0 %vm5805_vm0, %v5804_v1 }
0x1c43   : > { %v4432_v44 = vpop.permute.xlu1 %4431 }
0x1c44   : > { %v4438_v58 = vsel %vm593_vm4, %v4427_v2, %v4432_v44 }
0x1c47   : > { %v4436_v15 = vpop.permute.xlu0 %4435 }
0x1c48   : > { %v4439_v26 = vsel %vm862_vm6, %v4438_v58, %v4436_v15 }
0x1c49   : > { %v4440_v46 = vsel %vm864_vm7, %v4439_v26, %v6176_v5 }
0x1c4a   : > { %v4441_v43 = vpack.c.bf16 %v4440_v46, %v4440_v46 }
0x1c4c   : > { %4524 = vmatmul.mubr.bf16.vlgmr.msra.gmra.mrb[40].mxu1 %v4441_v43 }
0x1c8f   : > { %v4260_v31 = vpop.f32.mrb[124].mxu0 }
0x1c90   : > { %v5279_v47 = vpop.f32.mrb[125].mxu0  ;;  %v4353_v14 = vadd.f32 %v5739_v18, %v4260_v31 }
0x1c91   : > { %v4263_v36 = vpop.f32.mrb[126].mxu0 }
0x1c92   : > { %v5280_v57 = vpop.f32.mrb[127].mxu0  ;;  %v4357_v32 = vrot.slane %v4353_v14, %v6205_v23 }
0x1cb5   : > { %v4304_v3 = vpop.f32.mrb[128].mxu0 }
0x1cb6   : > { %v7441_v63 = vadd.f32 %v4304_v3, %v4260_v31  ;;  %v5287_v33 = vpop.f32.mrb[129].mxu0  ;;  %v4209_v3 = vmul.f32 %v7392_v10, %v6299_v29 }
0x1cb7   : > { %v4307_v11 = vpop.f32.mrb[130].mxu0 }
0x1cb8   : > { %v5288_v9 = vpop.f32.mrb[131].mxu0  ;;  %v4361_v16 = vadd.f32 %v5739_v18, %v7441_v63 }
0x1cba   : > { %v4362_v51 = vadd.f32 %v4361_v16, %v6261_v62 }
0x1cbd   : > { %v4347_v5 = vpop.f32.mrb[132].mxu0 }
0x1cbe   : > { %v4358_v12 = vadd.f32 %v4357_v32, %v4347_v5  ;;  %v5295_v34 = vpop.f32.mrb[133].mxu0 }
0x1cbf   : > { %v4350_v17 = vpop.f32.mrb[134].mxu0 }
0x1cc0   : > { %v4359_v0 = vadd.f32 %v4358_v12, %v6254_v30  ;;  %v5296_v50 = vpop.f32.mrb[135].mxu0 }
0x1cc2   : > { %v4363_v59 = vsel %vm593_vm4, %v4359_v0, -inf }
0x1cc3   : > { %v4364_v6 = vrot.slane %v4363_v59, 4 }
0x1cc5   : > { %v4365_v39 = vmax.f32 %v4363_v59, %v4364_v6  ;;  %v4476_v55 = vpop.f32.mrb[136].mxu0 }
0x1cc6   : > { %v4478_v38 = vpop.f32.mrb[137].mxu0  ;;  %v4486_v58 = vrot.slane %v4476_v55, %v6205_v23 }
0x1cc7   : > { %v4366_v41 = vrot.slane %v4365_v39, 2  ;;  %v4480_v13 = vpop.f32.mrb[138].mxu0  ;;  %v4490_v15 = vrot.slane %v4478_v38, %v6205_v23 }
0x1cc8   : > { %v4481_v56 = vpop.f32.mrb[139].mxu0 }
0x1cc9   : > { %v4367_v52 = vmax.f32 %v4365_v39, %v4366_v41 }
0x1ccb   : > { %v4368_v37 = vrot.slane %v4367_v52, 1 }
0x1ccd   : > { %v4369_v53 = vmax.f32 %v4367_v52, %v4368_v37 }
0x1ccf   : > { %v4370_v27 = vmax.f32 %v4369_v53, %v4362_v51 }
0x1cd1   : > { %v4374_v30 = vrot.slane %v4370_v27, %v6205_v23  ;;  %v4378_v42 = vsub.f32 %v4362_v51, %v4370_v27 }
0x1cd3   : > { %v4375_v19 = vsub.f32 %v4359_v0, %v4374_v30  ;;  %v4379_v45 = vmul.f32 1.442695, %v4378_v42 }
0x1cd5   : > { %v4376_v28 = vmul.f32 1.442695, %v4375_v19 }
0x1cd7   : > { %5647 = vpow2.f32 %v4376_v28 }
0x1cd8   : > { %5649 = vpow2.f32 %v4379_v45 }
0x1ce1   : > { %v5648_v54 = vpop.eup %5647 }
0x1ce2   : > { %v4381_v49 = vsel %vm593_vm4, %v5648_v54, 0.0  ;;  %v5650_v62 = vpop.eup %5649 }
0x1ce3   : > { %v4382_v21 = vrot.slane %v4381_v49, 4  ;;  %v4401_v55 = vmul.f32 %v5650_v62, %v7369_v20 }
0x1ce5   : > { %v4383_v40 = vadd.f32 %v4382_v21, %v4381_v49 }
0x1ce7   : > { %v4384_v8 = vrot.slane %v4383_v40, 2 }
0x1ce9   : > { %v4385_v22 = vadd.f32 %v4384_v8, %v4383_v40 }
0x1ceb   : > { %v4386_v48 = vrot.slane %v4385_v22, 1 }
0x1ced   : > { %v4387_v44 = vadd.f32 %v4386_v48, %v4385_v22  ;;  %v4425_v48 = vrot.slane %v7369_v20, %v6205_v23 }
0x1cef   : > { %v4388_v2 = vadd.f32 %v5650_v62, %v4387_v44 }
0x1cf1   : > { %5651 = vrcp.f32 %v4388_v2 }
0x1cfb   : > { %v5652_v13 = vpop.eup %5651 }
0x1d1f   : > { %v4525_v26 = vpop.f32.mrb[40].mxu1 }
0x1d20   : > { %v4526_v46 = vadd.f32 %v4525_v26, %v4486_v58  ;;  %v4527_v43 = vpop.f32.mrb[41].mxu1 }
0x1d21   : > { %v4528_v31 = vadd.f32 %v4527_v43, %v4490_v15  ;;  %v4529_v47 = vpop.f32.mrb[42].mxu1 }
0x1d22   : > { %v7456_v36 = vadd.f32 %v4526_v46, %v6214_v4  ;;  %v4530_v57 = vpop.f32.mrb[43].mxu1 }
0x1d23   : > { %v7465_v33 = vadd.f32 %v4528_v31, %v6221_v24 }
0x1d24   : > { %4545 = vrot.lane.b32.xlu0 %v7456_v36, %s7620_s17  ;;  %4541 = vrot.lane.b32.xlu1 %v7456_v36, %s7619_s27 }
0x1d28   : > { %4390 = vrot.lane.b32.xlu0 %v4209_v3, %s7619_s27  ;;  %4550 = vrot.lane.b32.xlu1 %v7465_v33, %s7618_s2 }
0x1d96   : > { %v4546_v4 = vpop.permute.xlu0 %4545  ;;  %v4542_v11 = vpop.permute.xlu1 %4541 }
0x1d97   : > { %v4544_v18 = vmax.f32 %v7456_v36, %v4542_v11 }
0x1d99   : > { %v4548_v14 = vmax.f32 %v4544_v18, %v4546_v4 }
0x1d9a   : > { %v4391_v9 = vpop.permute.xlu0 %4390  ;;  %v4551_v32 = vpop.permute.xlu1 %4550 }
0x1d9b   : > { %v4393_v5 = vmul.f32 %v5648_v54, %v4391_v9  ;;  %v4553_v12 = vmax.f32 %v4548_v14, %v4551_v32  ;;  %v4420_v0 = vrot.slane %v4391_v9, 1  ;;  %v4418_v19 = vrot.slane %v4391_v9, 7 }
0x1d9d   : > { %v4394_v34 = vsel %vm593_vm4, %v4393_v5, 0.0  ;;  %v4554_v10 = vmax.f32 %v4553_v12, %v7465_v33  ;;  %v4421_v6 = vmul.f32 %v4420_v0, %v6006_v25  ;;  %v4419_v54 = vmul.f32 %v4418_v19, %v6165_v60 }
0x1d9e   : > { %v4395_v24 = vrot.slane %v4394_v34, 4  ;;  %v4405_v60 = vadd.f32 %v7441_v63, %v6293_v7 }
0x1d9f   : > { %4586 = vrot.lane.b32.xlu0 %v4554_v10, %s7620_s17  ;;  %4566 = vrot.lane.b32.xlu1 %v4554_v10, %s7618_s2  ;;  %v4555_v58 = vsub.f32 %v7456_v36, %v4554_v10  ;;  %v4624_v26 = vsub.f32 %v7465_v33, %v4554_v10 }
0x1da0   : > { %v4396_v17 = vadd.f32 %v4395_v24, %v4394_v34  ;;  %v4970_v2 = vmul.f32 -1.442695, %v4405_v60 }
0x1da1   : > { %v4556_v15 = vmul.f32 1.442695, %v4555_v58  ;;  %v4625_v46 = vmul.f32 1.442695, %v4624_v26 }
0x1da2   : > { %v4397_v50 = vrot.slane %v4396_v17, 2 }
0x1da3   : > { %4572 = vrot.lane.b32.xlu0 %v4209_v3, %s7618_s2  ;;  %4607 = vrot.lane.b32.xlu1 %v4554_v10, %s7619_s27 }
0x1da4   : > { %v4398_v59 = vadd.f32 %v4397_v50, %v4396_v17 }
0x1da6   : > { %v4399_v39 = vrot.slane %v4398_v59, 1 }
0x1da7   : > { %4593 = vrot.lane.b32.xlu1 %v4421_v6, %s7619_s27 }
0x1da8   : > { %v4400_v38 = vadd.f32 %v4399_v39, %v4398_v59 }
0x1daa   : > { %v4402_v41 = vadd.f32 %v4401_v55, %v4400_v38  ;;  %v5399_v55 = vld [vmem:[%s7596_s11] sm:$0xff]   ;;  %v5400_v38 = vld [vmem:[%s7596_s11 + $0x8] sm:$0xff]  }
0x1dab   : > { %5298 = vmatpush3.bf16.msra.mxu0 %v5399_v55 }
0x1dac   : > { %v4404_v56 = vmul.f32 %v5652_v13, %v4402_v41  ;;  %5299 = vmatprep.subr.bf16.mxu0 %v5804_v1 }
0x1daf   : > { %5300 = vmatpush3.bf16.msra.mxu0 %v5400_v38 }
0x1db0   : > { %5305 = vmatprep.subr.bf16.mxu0 %v5804_v1 }
0x1e11   : > { %v4587_v16 = vpop.permute.xlu0 %4586  ;;  %v4567_v52 = vpop.permute.xlu1 %4566 }
0x1e12   : > { %v4589_v37 = vsub.f32 %v7456_v36, %v4587_v16  ;;  %v4569_v51 = vsub.f32 %v7456_v36, %v4567_v52 }
0x1e14   : > { %v4590_v53 = vmul.f32 1.442695, %v4589_v37  ;;  %v4570_v27 = vmul.f32 1.442695, %v4569_v51 }
0x1e15   : > { %v4608_v30 = vpop.permute.xlu1 %4607  ;;  %v4573_v40 = vpop.permute.xlu0 %4572 }
0x1e16   : > { %5653 = vpow2.f32 %v4590_v53  ;;  %v4610_v25 = vsub.f32 %v7465_v33, %v4608_v30 }
0x1e17   : > { %5655 = vpow2.f32 %v4570_v27 }
0x1e18   : > { %v4611_v42 = vmul.f32 1.442695, %v4610_v25 }
0x1e19   : > { %v4594_v21 = vpop.permute.xlu1 %4593 }
0x1e1a   : > { %5657 = vpow2.f32 %v4611_v42 }
0x1e1b   : > { %5659 = vtanh.f32 %v4404_v56 }
0x1e1c   : > { %5661 = vpow2.f32 %v4970_v2 }
0x1e1d   : > { %5663 = vpow2.f32 %v4556_v15 }
0x1e1e   : > { %5665 = vpow2.f32 %v4625_v46 }
0x1e20   : > { %v5654_v28 = vpop.eup %5653 }
0x1e21   : > { %v5656_v45 = vpop.eup %5655  ;;  %4603 = vrot.lane.b32.xlu1 %v5654_v28, %s7620_s17  ;;  %v4596_v8 = vmul.f32 %v5654_v28, %v4594_v21  ;;  %v5404_v21 = vld [vmem:[%s7598_s13 + $0x18] sm:$0xff]  }
0x1e22   : > { %4582 = vrot.lane.b32.xlu0 %v5656_v45, %s7619_s27  ;;  %v4575_v22 = vmul.f32 %v5656_v45, %v4573_v40  ;;  %v4657_v40 = vld [vmem:[%s7597_s12] sm:$0x1] }
0x1e24   : > { %v5658_v49 = vpop.eup %5657 }
0x1e25   : > { %4559 = vrot.lane.b32.xlu1 %v4419_v54, %s7618_s2  ;;  %v5660_v44 = vpop.eup %5659  ;;  %v4613_v62 = vmul.f32 %v5658_v49, %v4425_v48 }
0x1e26   : > { %4620 = vrot.lane.b32.xlu0 %v5658_v49, %s7618_s2  ;;  %v5662_v43 = vpop.eup %5661  ;;  %v5402_v49 = vld [vmem:[%s7598_s13 + $0x8] sm:$0xff]  }
0x1e27   : > { %v4409_v23 = vadd.f32 1.0, %v5662_v43  ;;  %v5664_v31 = vpop.eup %5663 }
0x1e28   : > { %v5666_v11 = vpop.eup %5665 }
0x1e29   : > { %4598 = vrot.lane.b32.xlu1 %v4596_v8, %s7620_s17  ;;  %5667 = vrcp.f32 %v4409_v23  ;;  %v4627_v0 = vmul.f32 %v5666_v11, %v6167_v61  ;;  %v4972_v61 = vmul.f32 -1.442695, %v7456_v36  ;;  %s4806_s17 = scalar_lea.sflag [#allocation3], %s496_s16 }
0x1e2a   : > { %4577 = vrot.lane.b32.xlu0 %v4575_v22, %s7619_s27 }
0x1e2d   : > { %4414 = vrot.lane.b32.xlu1 %v5660_v44, %s7618_s2 }
0x1e2e   : > { %4615 = vrot.lane.b32.xlu0 %v4613_v62, %s7618_s2  ;;  %s7543_s2 = scalar_lea.hbm %s7600_s15, %s4981_s23 }
0x1e33   : > { %v5668_v5 = vpop.eup %5667 }
0x1e93   : > { %v4604_v20 = vpop.permute.xlu1 %4603 }
0x1e94   : > { %v4583_v47 = vpop.permute.xlu0 %4582 }
0x1e95   : > { %v4585_v57 = vadd.f32 %v5664_v31, %v4583_v47 }
0x1e97   : > { %v4606_v3 = vadd.f32 %v4604_v20, %v4585_v57  ;;  %v4560_v4 = vpop.permute.xlu1 %4559 }
0x1e98   : > { %v4621_v7 = vpop.permute.xlu0 %4620  ;;  %v4562_v14 = vmul.f32 %v5664_v31, %v4560_v4 }
0x1e99   : > { %v4623_v63 = vadd.f32 %v4621_v7, %v4606_v3 }
0x1e9b   : > { %v4629_v18 = vadd.f32 %v5666_v11, %v4623_v63  ;;  %v4599_v9 = vpop.permute.xlu1 %4598 }
0x1e9c   : > { %v4578_v32 = vpop.permute.xlu0 %4577 }
0x1e9d   : > { %5669 = vrcp.f32 %v4629_v18  ;;  %v4580_v33 = vadd.f32 %v4578_v32, %v4562_v14 }
0x1e9f   : > { %v4601_v12 = vadd.f32 %v4599_v9, %v4580_v33  ;;  %v4415_v34 = vpop.permute.xlu1 %4414 }
0x1ea0   : > { %v4616_v10 = vpop.permute.xlu0 %4615  ;;  %v4417_v24 = vmul.f32 %v5668_v5, %v4415_v34 }
0x1ea1   : > { %v4618_v17 = vadd.f32 %v4616_v10, %v4601_v12 }
0x1ea2   : > { %4647 = vrot.lane.b32.xlu1 %v4417_v24, %s7619_s27 }
0x1ea3   : > { %v4628_v50 = vadd.f32 %v4627_v0, %v4618_v17 }
0x1ea7   : > { %v5670_v59 = vpop.eup %5669 }
0x1ea8   : > { %v4631_v6 = vmul.f32 %v5670_v59, %v4628_v50 }
0x1eaa   : > { %5671 = vtanh.f32 %v4631_v6 }
0x1eab   : > { %5673 = vpow2.f32 %v4972_v61 }
0x1eb4   : > { %v5672_v39 = vpop.eup %5671 }
0x1eb5   : > { %4634 = vrot.lane.b32.xlu0 %v5672_v39, %s7619_s27  ;;  %v5674_v41 = vpop.eup %5673  ;;  %s5746_s27 = scalar_lea.vmem %s5745_s30, 32 }
0x1eb6   : > { %v4537_v13 = vadd.f32 1.0, %v5674_v41  ;;  %p5748_p1 = scmp.lt.s32.totalorder %s5746_s27, %s5740_s26 }
0x1eb8   : > { %5675 = vrcp.f32 %v4537_v13  ;;  %p5749_p2 = por %p5748_p1, %p5747_p0 }
0x1eba   : > { %p5750_p3 = pnand %p5749_p2, %p5743_p13 }
0x1ec2   : > { %v5676_v56 = vpop.eup %5675 }
0x1f14   : > { %v4648_v28 = vpop.permute.xlu1 %4647 }
0x1f27   : > { %v4635_v16 = vpop.permute.xlu0 %4634 }
0x1f28   : > { %v4637_v52 = vmul.f32 %v5676_v56, %v4635_v16 }
0x1f2a   : > { %v4638_v37 = vmul.f32 %v4637_v52, %v6299_v29  ;;  %v5401_v29 = vld [vmem:[%s7598_s13] sm:$0xff]  }
0x1f2c   : > { %v4639_v51 = vsel %vm593_vm4, %v4638_v37, 0.0 }
0x1f2d   : > { %v4640_v53 = vrot.slane %v4639_v51, 4 }
0x1f2f   : > { %v4641_v27 = vadd.f32 %v4640_v53, %v4639_v51 }
0x1f31   : > { %v4642_v30 = vrot.slane %v4641_v27, 2 }
0x1f33   : > { %v4643_v25 = vadd.f32 %v4642_v30, %v4641_v27 }
0x1f35   : > { %v4644_v42 = vrot.slane %v4643_v25, 1 }
0x1f37   : > { %v4645_v19 = vadd.f32 %v4644_v42, %v4643_v25 }
0x1f39   : > { %v4650_v45 = vadd.f32 %v4648_v28, %v4645_v19 }
0x1f3b   : > { %v4651_v36 = vmul.f32 %v4650_v45, %v6020_v35  ;;  %v5403_v35 = vld [vmem:[%s7598_s13 + $0x10] sm:$0xff]  }
0x1f3d   : > { %v4652_v54 = vpack.c.bf16 %v4651_v36, %v4651_v36 }
0x1f3f   : > { %5302 = vmatmul.mubr.msk.bf16.vlgmr.msra.gmra.mrb[140].mxu0 %vm593_vm4, %v4652_v54 }
0x1f40   : > { %5313 = vmatprep.mubr.msk.bf16.mxu0 %vm5805_vm0, %v5804_v1  ;;  %5306 = vmatpush3.bf16.msra.mxu0 %v5401_v29 }
0x1f41   : > { %5307 = vmatprep.subr.bf16.mxu0 %v5804_v1 }
0x1f44   : > { %5308 = vmatpush3.bf16.msra.mxu0 %v5402_v49 }
0x1f45   : > { %5309 = vmatprep.subr.bf16.mxu0 %v5804_v1 }
0x1f48   : > { %5310 = vmatpush3.bf16.msra.mxu0 %v5403_v35 }
0x1f49   : > { %5311 = vmatprep.subr.bf16.mxu0 %v5804_v1  ;;  %v4723_v1 = vld [vmem:[%s7599_s14] sm:$0x1] }
0x1f4c   : > { %5312 = vmatpush3.bf16.msra.mxu0 %v5404_v21 }
0x2012   : > { %v4707_v8 = vpop.f32.mrb[140].mxu0 }
0x2013   : > { %v4708_v22 = vadd.f32 %v4707_v8, %v4657_v40  ;;  %v5303_v48 = vpop.f32.mrb[141].mxu0 }
0x2014   : > { %v4710_v44 = vpop.f32.mrb[142].mxu0 }
0x2015   : > { %5677 = vtanh.f32 %v4708_v22  ;;  %v5304_v62 = vpop.f32.mrb[143].mxu0 }
0x201f   : > { %v5678_v60 = vpop.eup %5677 }
0x2020   : > { %v4714_v2 = vpack.c.bf16 %v5678_v60, %v5678_v60 }
0x2022   : > { %5314 = vmatmul.mubr.msk.bf16.vlgmr.msra.gmra.mrb[144].mxu0 %vm862_vm6, %v4714_v2 }
0x20f5   : > { %v4785_v58 = vpop.f32.mrb[144].mxu0 }
0x20f6   : > { %v4786_v15 = vadd.f32 %v4785_v58, %v4723_v1  ;;  %v5315_v26 = vpop.f32.mrb[145].mxu0 }
0x20f7   : > { %v4788_v46 = vpop.f32.mrb[146].mxu0 }
0x20f8   : > { %v5316_v43 = vpop.f32.mrb[147].mxu0  ;;  %v4792_v23 = vsel %vm4791_vm8, %v4786_v15, -inf }
0x20f9   : > { %4793 = vmax.xlane.f32.xlu0 %v4792_v23 }
0x2186   : > { %v4794_v20 = vpop.xlane.xlu0 %4793 }
0x2187   : > { %v4795_v31 = vsub.f32 %v4786_v15, %v4794_v20 }
0x2189   : > { %v4796_v47 = vmul.f32 1.442695, %v4795_v31 }
0x218b   : > { %5679 = vpow2.f32 %v4796_v47 }
0x2195   : > { %v5680_v57 = vpop.eup %5679 }
0x2196   : > { %v4798_v3 = vsel %vm4791_vm8, %v5680_v57, 0.0 }
0x2197   : > { %4799 = vadd.xlane.f32.xlu1 %v4798_v3 }
0x2224   : > { %v4800_v4 = vpop.xlane.xlu1 %4799 }
0x2225   : > { %5681 = vlog2.f32 %v4800_v4 }
0x222f   : > { %v5682_v7 = vpop.eup %5681 }
0x2230   : > { %v4802_v63 = vmul.f32 0.6931472, %v5682_v7 }
0x2232   : > { %v4803_v11 = vsub.f32 %v4795_v31, %v4802_v63 }
0x2234   : > { %4804 = vst [vmem:[%s497_s20] sm:$0x1] %v4803_v11 }
0x2235   : > { %5753 = shalt.err (!%p5750_p3)
}
0x2236   : > { %s5754_s16 = scalar_lea.hbm %s7543_s2, 16  ;;  %s5758_s0 = scalar_lea.hbm %s7600_s15, 32 }
0x2237   : > { %p5755_p4 = scmp.ne.s32.totalorder %s7543_s2, %s5754_s16  ;;  %p5759_p9 = scmp.lt.u32.totalorder %s7543_s2, %s7600_s15 }
0x2238   : > { %p5760_p10 = scmp.lt.u32.totalorder %s5758_s0, %s5754_s16  ;;  %p5762_p12 = scmp.lt.u32.totalorder %s5754_s16, %s7543_s2 }
0x2239   : > { %p5756_p7 = pnand %p5755_p4, %p5929_p5 }
0x223a   : > { %p5761_p11 = por %p5760_p10, %p5759_p9 }
0x223b   : > { %p5757_p8 = pneg %p5756_p7 }
0x223c   : > { %p5763_p13 = por %p5762_p12, %p5761_p11 }
0x223e   : > { %p5764_p0 = pnand %p5763_p13, %p5757_p8 }
0x2240   : > { %5767 = shalt.err (!%p5764_p0)
}
0x2241   : > { %5317 = dma.vmem_to_hbm [thread:$0]  (%p5929_p5), %s7545_s25, 16, %s7543_s2, %s4806_s17  }
0x2242 PF: > { %p5323_p1 = scmp.ge.s32.totalorder %s5802_s21, 2  ;;  %s4830_s26 = sand.u32 1, %s5790_s18  }
0x2243   : > { %s4831_s30 = scalar_lea.sflag [#allocation3], %s4830_s26 }
0x2244   : > { %p5320_p2 = pnand %p5323_p1, %p5933_p6 }
0x2246   : > { %5785 = dma.done.wait (!%p5320_p2), %s4831_s30, 16  }
0x2247   : > { %5787 = vsyncadd (!%p5320_p2), %s4831_s30, 4294967280  ;;  %s7621_s27 = sld [smem:[#allocation5_spill]]  ;;  %s7622_s20 = sld [smem:[#allocation6_spill]] }
0x2248   : > { %p25_p3 = scmp.ge.s32.totalorder %s5916_s24, 4   ;;  %s7623_s18 = smov %s5794_s19 }
0x2249   : > { %s7625_s21 = smov %s5916_s24 }
0x224a   :  { %27 = sbr.rel (!%p25_p3) target bundleno = 7 (0x7), region = 118 }
0x224d   : > { %s7624_s19 = smov %s7621_s27 }
0x2251   :  { %4835 = vsyncpa [#allocation3], 1 }
0x2252   :  { %4837 = vsyncpa [#allocation3 + $0x1], 1 }

</bundles_post_ra>
